<compile_context>
chip_gen: v7x
topology: tpu7x:2x2x1
jax: 0.10.0
libtpu: 0.0.40
codegen_flags: <defaults>
</compile_context>

<pallas_src>
import jax
import jax.numpy as jnp
from jax.experimental import pallas as pl
from jax.experimental.pallas import tpu as pltpu


def _round_up(x, m):
    return (x + m - 1) // m * m


def _pick_batch_tile(n_pad, tile_n):
    """Largest multiple-of-8 divisor of n_pad <= requested tile, softly capped
    so big batches keep >= 4 batch grid steps (megacore split + pipeline)."""
    cap = max(8, min(tile_n, n_pad))
    if n_pad >= 32:
        cap = min(cap, max(8, n_pad // 4))
    t = (cap // 8) * 8
    while t >= 8:
        if n_pad % t == 0:
            return t
        t -= 8
    return 8


def _finetune_kernel(x_ref, w_ref, b_ref, o_ref, acc_ref):
    # x_ref:   (TN, CB, HW)  f32 NCHW feature-map tile (spatial on lanes)
    # w_ref:   (CB, C_pad)   bf16 classifier-weight slice, pre-scaled by 1/HW
    # b_ref:   (1, C_pad)    f32 classifier bias (zero-padded)
    # o_ref:   (TN, C_pad)   f32 logits tile (written at the last channel step)
    # acc_ref: (TN, C_pad)   f32 accumulator scratch
    k = pl.program_id(1)

    @pl.when(k == 0)
    def _init():
        acc_ref[...] = jnp.zeros_like(acc_ref)

    # AdaptiveAvgPool2d((1,1)) + flatten: spatial sum on the lane axis with an
    # f32-accumulating reduce (no whole-tile upcast is materialized).  The
    # 1/HW scale is folded into the classifier weight in glue.
    f = jnp.sum(x_ref[...], axis=-1, dtype=jnp.float32)          # (TN, CB)

    # Partial classifier matmul for this channel slice; bf16 x bf16 -> f32 is
    # the native MXU path on v5e / v6e / v7x.
    acc_ref[...] += jnp.dot(f.astype(w_ref.dtype), w_ref[...],
                            preferred_element_type=jnp.float32)

    @pl.when(k == pl.num_programs(1) - 1)
    def _finalize():
        o_ref[...] = (acc_ref[...] + b_ref[...]).astype(o_ref.dtype)


def fine_tune_forward(x_nchw, w, b, *, tile_n=128, tile_c=256,
                      mxu_dtype=jnp.bfloat16, vmem_budget_bytes=48 << 20):
    """FineTuneModel's own compute: AdaptiveAvgPool2d((1,1)) + flatten + Linear.

    x_nchw: (N, 2048, H, W) feature map from the frozen ResNet50 backbone.
    w:      (2048, num_classes) classifier weight (transposed vs. PyTorch).
    b:      (num_classes,)      classifier bias.

    Per-generation tuning (kernel is HBM-bound on x):
      v7x (64 MiB VMEM):   tile_n=128, tile_c=256, vmem_budget_bytes=48<<20 (defaults)
      v6e (128 MiB VMEM):  tile_n=256, tile_c=256, vmem_budget_bytes=96<<20
      v5e (128 MiB VMEM):  tile_n=256, tile_c=256, vmem_budget_bytes=96<<20
    """
    n, c, h, wdim = x_nchw.shape
    assert c == 2048, "classifier expects 2048-dim features"
    hw = h * wdim
    num_classes = w.shape[1]
    c_pad = _round_up(max(num_classes, 1), 128)

    # ---- glue: no extra pass over x.  NCHW -> (N, C, HW) is a free reshape;
    # x is consumed in its native layout/dtype (single 4 B/elem HBM read).
    x3 = x_nchw.reshape(n, c, hw)

    # Classifier params: fold the 1/HW average-pool scale into the weight, pad
    # classes to a full 128-lane tile (unmasked output store), ship the weight
    # in the MXU-native dtype.
    w_scaled = w.astype(jnp.float32) * (1.0 / float(hw))
    w_pad = jnp.zeros((c, c_pad), mxu_dtype).at[:, :num_classes].set(
        w_scaled.astype(mxu_dtype))
    b_pad = jnp.zeros((1, c_pad), jnp.float32).at[0, :num_classes].set(
        b.astype(jnp.float32))

    # ---- batch tiling ----
    if n < 8:
        tn, n_pad = n, n          # tiny batch: one partial tile (== full dims)
    else:
        n_pad = _round_up(n, 8)
        tn = _pick_batch_tile(n_pad, tile_n)
    if n_pad != n:
        # TODO(synk): this pad costs one extra copy of x; pass a batch that is
        # a multiple of 8 (ideally of tile_n) to avoid it.
        x3 = jnp.pad(x3, ((0, n_pad - n), (0, 0), (0, 0)))

    # ---- channel tiling & VMEM budgeting ----
    cb = min(tile_c, c)
    assert c % cb == 0 and cb % 8 == 0, "tile_c must divide 2048 and be a multiple of 8"
    x_itm = x3.dtype.itemsize
    w_itm = jnp.dtype(mxu_dtype).itemsize

    def _vmem_need(tn_, cb_):
        lanes = _round_up(hw, 128)            # spatial extent sits on lanes
        x_blk = tn_ * cb_ * lanes * x_itm     # double-buffered input tile
        w_blk = cb_ * c_pad * w_itm           # double-buffered weight slice
        fixed = tn_ * c_pad * 4 * 2 + c_pad * 4   # acc scratch + out block + bias
        return 2 * x_blk + 2 * w_blk + fixed + (4 << 20)   # + compiler margin

    # Grow the channel slice until each grid step DMAs a few MiB (amortizes
    # the ~0.35 us per-step overhead) while staying inside the VMEM budget.
    while (cb < c and (tn * cb * hw * x_itm) < (4 << 20)
           and _vmem_need(tn, cb * 2) <= vmem_budget_bytes):
        cb *= 2
    # Shrink if the requested tiles are too big for the budget.
    while _vmem_need(tn, cb) > vmem_budget_bytes and cb > 128:
        cb //= 2
    while _vmem_need(tn, cb) > vmem_budget_bytes and n >= 8 and tn > 8:
        tn = _pick_batch_tile(n_pad, max(8, tn // 2))

    grid = (n_pad // tn, c // cb)

    cost = pl.CostEstimate(
        flops=2 * n_pad * c * c_pad + n_pad * c * hw,
        transcendentals=0,
        bytes_accessed=(n_pad * c * hw * x_itm            # x, read once
                        + grid[0] * c * c_pad * w_itm     # weight re-reads
                        + c_pad * 4 + n_pad * c_pad * 4),  # bias + logits
    )

    out = pl.pallas_call(
        _finetune_kernel,
        out_shape=jax.ShapeDtypeStruct((n_pad, c_pad), jnp.float32),
        grid=grid,
        in_specs=[
            # Feature-map tile: batch x channel-slice x full spatial extent.
            # Each block is contiguous in HBM and auto double-buffered, so the
            # DMA overlaps the reduce + matmul of the previous block.
            pl.BlockSpec((tn, cb, hw), lambda i, k: (i, k, 0)),
            # Matching classifier-weight slice (bf16, 1/HW folded in).
            pl.BlockSpec((cb, c_pad), lambda i, k: (k, 0)),
            # Bias: same tiny block for the whole grid.
            pl.BlockSpec((1, c_pad), lambda i, k: (0, 0)),
        ],
        out_specs=pl.BlockSpec((tn, c_pad), lambda i, k: (i, 0)),
        scratch_shapes=[pltpu.VMEM((tn, c_pad), jnp.float32)],
        compiler_params=pltpu.CompilerParams(
            dimension_semantics=("parallel", "arbitrary"),
            vmem_limit_bytes=int(min(max(_vmem_need(tn, cb), 16 << 20),
                                     vmem_budget_bytes)),
        ),
        cost_estimate=cost,
    )(x3, w_pad, b_pad)

    return out[:n, :num_classes]


if __name__ == "__main__":
    key = jax.random.PRNGKey(0)
    kx, kw, kb, kx2 = jax.random.split(key, 4)

    # Small, module-consistent shapes: Linear(2048, num_classes) forces 2048
    # channels; batch=2, spatial=4x4, num_classes=10.
    N, C, H, W = 2, 2048, 4, 4
    NUM_CLASSES = 10

    x = jax.random.normal(kx, (N, C, H, W), dtype=jnp.float32)
    # PyTorch stores weight as (num_classes, 2048); we keep (2048, num_classes).
    w = jax.random.normal(kw, (C, NUM_CLASSES), dtype=jnp.float32) * 0.02
    b = jax.random.normal(kb, (NUM_CLASSES,), dtype=jnp.float32) * 0.02

    fwd = jax.jit(fine_tune_forward)
    y = jax.block_until_ready(fwd(x, w, b))
    assert y.shape == (N, NUM_CLASSES)

    # Pure-JAX f32 reference (kernel uses bf16 weights / pooled features on
    # the MXU, so compare at a modest tolerance).
    f_ref = jnp.mean(x.reshape(N, C, H * W), axis=-1)
    y_ref = f_ref @ w + b
    assert jnp.allclose(y, y_ref, atol=1e-2, rtol=1e-2), "mismatch vs f32 reference"

    # Tighter check against a reference quantized the same way as the kernel
    # (f32 spatial sum -> bf16, weight*1/HW -> bf16, f32 accumulation).
    f_bf = jnp.sum(x.reshape(N, C, H * W), axis=-1).astype(jnp.bfloat16).astype(jnp.float32)
    w_bf = (w / float(H * W)).astype(jnp.bfloat16).astype(jnp.float32)
    y_ref_bf = jnp.dot(f_bf, w_bf, precision=jax.lax.Precision.HIGHEST) + b
    assert jnp.allclose(y, y_ref_bf, atol=1e-3, rtol=1e-3), "mismatch vs bf16 reference"

    # Second config: ResNet50-realistic 7x7 spatial map (HW=49, masked lanes)
    # with a multi-step batch grid to exercise the accumulator path.
    N2, H2, W2 = 16, 7, 7
    x2 = jax.random.normal(kx2, (N2, C, H2, W2), dtype=jnp.float32)
    y2 = jax.block_until_ready(fine_tune_forward(x2, w, b, tile_n=8))
    y2_ref = jnp.mean(x2.reshape(N2, C, H2 * W2), axis=-1) @ w + b
    assert y2.shape == (N2, NUM_CLASSES)
    assert jnp.allclose(y2, y2_ref, atol=1e-2, rtol=1e-2), "mismatch vs f32 reference (7x7)"

    print("KERNEL_OK")
</pallas_src>

<mosaic_0001>
module attributes {stable_mosaic.version = 11 : i64} {
  func.func @_finetune_kernel(%arg0: i32, %arg1: i32, %arg2: memref<2x2048x16xf32, #tpu.memory_space<vmem>>, %arg3: memref<2048x128xbf16, #tpu.memory_space<vmem>>, %arg4: memref<1x128xf32, #tpu.memory_space<vmem>>, %arg5: memref<2x128xf32, #tpu.memory_space<vmem>>, %arg6: memref<2x128xf32, #tpu.memory_space<vmem>>) attributes {dimension_semantics = [#tpu.dimension_semantics<parallel>, #tpu.dimension_semantics<arbitrary>], iteration_bounds = array<i64: 1, 1>, scalar_prefetch = 0 : i64, scratch_operands = 1 : i64, tpu.core_type = #tpu.core_type<tc>, window_params = [{transform_indices = @transform_0, window_bounds = array<i64: 2, 2048, 16>}, {transform_indices = @transform_1, window_bounds = array<i64: 2048, 128>}, {pipeline_mode = #tpu.pipeline_mode<synchronous>, transform_indices = @transform_2, window_bounds = array<i64: 1, 128>}, {transform_indices = @transform_3, window_bounds = array<i64: 2, 128>}]} {
    %c0_i32 = arith.constant 0 : i32
    %0 = arith.cmpi eq, %arg1, %c0_i32 : i32
    %1 = arith.extui %0 : i1 to i32
    %c0_i32_0 = arith.constant 0 : i32
    %2 = arith.cmpi ne, %1, %c0_i32_0 : i32
    scf.if %2 {
      %cst_12 = arith.constant 0.000000e+00 : f32
      %14 = vector.broadcast %cst_12 : f32 to vector<2x128xf32>
      %c0_13 = arith.constant 0 : index
      %c0_14 = arith.constant 0 : index
      %15 = vector.load %arg6[%c0_13, %c0_14] : memref<2x128xf32, #tpu.memory_space<vmem>>, vector<2x128xf32>
      tpu.vector_store %arg6[%c0_13, %c0_14], %14 {strides = array<i32>} : memref<2x128xf32, #tpu.memory_space<vmem>>, vector<2x128xf32>,
    } else {
    }
    %c0 = arith.constant 0 : index
    %c0_1 = arith.constant 0 : index
    %c0_2 = arith.constant 0 : index
    %3 = vector.load %arg2[%c0, %c0_1, %c0_2] : memref<2x2048x16xf32, #tpu.memory_space<vmem>>, vector<2x2048x16xf32>
    %cst = arith.constant dense<0.000000e+00> : vector<2x2048xf32>
    %4 = vector.multi_reduction <add>, %3, %cst [2] : vector<2x2048x16xf32> to vector<2x2048xf32>
    %c0_3 = arith.constant 0 : index
    %c0_4 = arith.constant 0 : index
    %5 = vector.load %arg6[%c0_3, %c0_4] : memref<2x128xf32, #tpu.memory_space<vmem>>, vector<2x128xf32>
    %6 = arith.truncf %4 : vector<2x2048xf32> to vector<2x2048xbf16>
    %c0_5 = arith.constant 0 : index
    %c0_6 = arith.constant 0 : index
    %7 = vector.load %arg3[%c0_5, %c0_6] : memref<2048x128xbf16, #tpu.memory_space<vmem>>, vector<2048x128xbf16>
    %cst_7 = arith.constant dense<0.000000e+00> : vector<2x128xf32>
    %8 = tpu.matmul %6, %7, %cst_7 {dimension_numbers = #tpu.dot_dimension_numbers<[1], [0], [0], [1], [0, 0, 1, 1], [], []>} : vector<2x2048xbf16>, vector<2048x128xbf16>, vector<2x128xf32> -> vector<2x128xf32>
    %9 = arith.addf %5, %8 : vector<2x128xf32>
    %c0_8 = arith.constant 0 : index
    %c0_9 = arith.constant 0 : index
    %10 = vector.load %arg6[%c0_8, %c0_9] : memref<2x128xf32, #tpu.memory_space<vmem>>, vector<2x128xf32>
    tpu.vector_store %arg6[%c0_8, %c0_9], %9 {strides = array<i32>} : memref<2x128xf32, #tpu.memory_space<vmem>>, vector<2x128xf32>,
    %c0_i32_10 = arith.constant 0 : i32
    %11 = arith.cmpi eq, %arg1, %c0_i32_10 : i32
    %12 = arith.extui %11 : i1 to i32
    %c0_i32_11 = arith.constant 0 : i32
    %13 = arith.cmpi ne, %12, %c0_i32_11 : i32
    scf.if %13 {
      %c0_12 = arith.constant 0 : index
      %c0_13 = arith.constant 0 : index
      %14 = vector.load %arg6[%c0_12, %c0_13] : memref<2x128xf32, #tpu.memory_space<vmem>>, vector<2x128xf32>
      %c0_14 = arith.constant 0 : index
      %c0_15 = arith.constant 0 : index
      %15 = vector.load %arg4[%c0_14, %c0_15] : memref<1x128xf32, #tpu.memory_space<vmem>>, vector<1x128xf32>
      %16 = vector.broadcast %15 : vector<1x128xf32> to vector<2x128xf32>
      %17 = arith.addf %14, %16 : vector<2x128xf32>
      %c0_16 = arith.constant 0 : index
      %c0_17 = arith.constant 0 : index
      %18 = vector.load %arg5[%c0_16, %c0_17] : memref<2x128xf32, #tpu.memory_space<vmem>>, vector<2x128xf32>
      tpu.vector_store %arg5[%c0_16, %c0_17], %17 {strides = array<i32>} : memref<2x128xf32, #tpu.memory_space<vmem>>, vector<2x128xf32>,
    } else {
    }
    return
  }
  func.func @transform_0(%arg0: i32, %arg1: i32) -> (i32, i32, i32) {
    %c0_i32 = arith.constant 0 : i32
    %c0_i32_0 = arith.constant 0 : i32
    return %arg0, %arg1, %c0_i32 : i32, i32, i32
  }
  func.func @transform_1(%arg0: i32, %arg1: i32) -> (i32, i32) {
    %c0_i32 = arith.constant 0 : i32
    %c0_i32_0 = arith.constant 0 : i32
    return %arg1, %c0_i32 : i32, i32
  }
  func.func @transform_2(%arg0: i32, %arg1: i32) -> (i32, i32) {
    %c0_i32 = arith.constant 0 : i32
    %c0_i32_0 = arith.constant 0 : i32
    %c0_i32_1 = arith.constant 0 : i32
    return %c0_i32, %c0_i32_0 : i32, i32
  }
  func.func @transform_3(%arg0: i32, %arg1: i32) -> (i32, i32) {
    %c0_i32 = arith.constant 0 : i32
    %c0_i32_0 = arith.constant 0 : i32
    return %arg0, %c0_i32 : i32, i32
  }
}

</mosaic_0001>

<bundles_post_ra>
// kernel: fine_tune_forward.1
= control target key start
LH: loop header
LB: loop body
LE: loop exit
PB: predicated region body
PF: predicated region fallthrough
CT: control target
= control target key end

     0   :  { %vm533_vm0 = vcmask 130048   ;;  %vm3362_vm1 = vcmask 130112   ;;  %vm3369_vm2 = vcmask 195712   ;;  %s11511_s0 = inlined_call_operand.vmem [shape: f32[2,2048,16], index: 0, kind: input, shape index: {}]   ;;  %s11512_s1 = inlined_call_operand.vmem [shape: bf16[2048,128], index: 1, kind: input, shape index: {}]   ;;  %s11513_s2 = inlined_call_operand.vmem [shape: f32[1,128], index: 2, kind: input, shape index: {}]   ;;  %s11514_s3 = inlined_call_operand.hbm [shape: f32[2,128], index: 3, kind: output, shape index: {}]  }
   0x1   :  { %v23_v0 = vld [vmem:[%s11511_s0 + $0x10] sm:$0xff]  ;;  %v21_v1 = vld [vmem:[%s11511_s0] sm:$0xff]  ;;  %v24_v2 = vld [vmem:[%s11511_s0 + $0x18] sm:$0xff] }
   0x2   :  { %v540_v3 = vsel %vm533_vm0, %v23_v0, 0.0  ;;  %v534_v4 = vsel %vm533_vm0, %v21_v1, 0.0  ;;  %v22_v5 = vld [vmem:[%s11511_s0 + $0x8] sm:$0xff]  ;;  %v543_v6 = vsel %vm533_vm0, %v24_v2, 0.0  ;;  %v25_v9 = vld [vmem:[%s11511_s0 + $0x20] sm:$0xff]  ;;  %v28_v12 = vld [vmem:[%s11511_s0 + $0x38] sm:$0xff] }
   0x3   :  { %541 = vadd.xlane.f32.xlu1 %v540_v3  ;;  %535 = vadd.xlane.f32.xlu0 %v534_v4  ;;  %v537_v7 = vsel %vm533_vm0, %v22_v5, 0.0  ;;  %v26_v8 = vld [vmem:[%s11511_s0 + $0x28] sm:$0xff]  ;;  %v546_v11 = vsel %vm533_vm0, %v25_v9, 0.0  ;;  %v27_v13 = vld [vmem:[%s11511_s0 + $0x30] sm:$0xff]  ;;  %v555_v14 = vsel %vm533_vm0, %v28_v12, 0.0  ;;  %v29_v17 = vld [vmem:[%s11511_s0 + $0x40] sm:$0xff] }
   0x4   :  { %v549_v10 = vsel %vm533_vm0, %v26_v8, 0.0  ;;  %v552_v15 = vsel %vm533_vm0, %v27_v13, 0.0  ;;  %v30_v16 = vld [vmem:[%s11511_s0 + $0x48] sm:$0xff]  ;;  %v558_v19 = vsel %vm533_vm0, %v29_v17, 0.0  ;;  %v32_v20 = vld [vmem:[%s11511_s0 + $0x58] sm:$0xff]  ;;  %v31_v21 = vld [vmem:[%s11511_s0 + $0x50] sm:$0xff] }
   0x5   :  { %v561_v18 = vsel %vm533_vm0, %v30_v16, 0.0  ;;  %v567_v22 = vsel %vm533_vm0, %v32_v20, 0.0  ;;  %v564_v23 = vsel %vm533_vm0, %v31_v21, 0.0  ;;  %v34_v24 = vld [vmem:[%s11511_s0 + $0x68] sm:$0xff]  ;;  %v33_v25 = vld [vmem:[%s11511_s0 + $0x60] sm:$0xff]  ;;  %v36_v28 = vld [vmem:[%s11511_s0 + $0x78] sm:$0xff] }
   0x6   :  { %v573_v26 = vsel %vm533_vm0, %v34_v24, 0.0  ;;  %v570_v27 = vsel %vm533_vm0, %v33_v25, 0.0  ;;  %v35_v29 = vld [vmem:[%s11511_s0 + $0x70] sm:$0xff]  ;;  %v579_v30 = vsel %vm533_vm0, %v36_v28, 0.0  ;;  %v38_v32 = vld [vmem:[%s11511_s0 + $0x88] sm:$0xff]  ;;  %v37_v33 = vld [vmem:[%s11511_s0 + $0x80] sm:$0xff] }
   0x7   :  { %544 = vadd.xlane.f32.xlu1 %v543_v6  ;;  %538 = vadd.xlane.f32.xlu0 %v537_v7  ;;  %v576_v31 = vsel %vm533_vm0, %v35_v29, 0.0  ;;  %v585_v34 = vsel %vm533_vm0, %v38_v32, 0.0  ;;  %v582_v35 = vsel %vm533_vm0, %v37_v33, 0.0  ;;  %v40_v36 = vld [vmem:[%s11511_s0 + $0x98] sm:$0xff]  ;;  %v39_v37 = vld [vmem:[%s11511_s0 + $0x90] sm:$0xff]  ;;  %v42_v39 = vld [vmem:[%s11511_s0 + $0xa8] sm:$0xff] }
   0x8   :  { %v591_v38 = vsel %vm533_vm0, %v40_v36, 0.0  ;;  %v588_v40 = vsel %vm533_vm0, %v39_v37, 0.0  ;;  %v41_v41 = vld [vmem:[%s11511_s0 + $0xa0] sm:$0xff]  ;;  %v597_v42 = vsel %vm533_vm0, %v42_v39, 0.0  ;;  %v44_v43 = vld [vmem:[%s11511_s0 + $0xb8] sm:$0xff]  ;;  %v43_v45 = vld [vmem:[%s11511_s0 + $0xb0] sm:$0xff] }
   0x9   :  { %v594_v44 = vsel %vm533_vm0, %v41_v41, 0.0  ;;  %v603_v46 = vsel %vm533_vm0, %v44_v43, 0.0  ;;  %v46_v47 = vld [vmem:[%s11511_s0 + $0xc8] sm:$0xff]  ;;  %v600_v48 = vsel %vm533_vm0, %v43_v45, 0.0  ;;  %v45_v49 = vld [vmem:[%s11511_s0 + $0xc0] sm:$0xff]  ;;  %v48_v51 = vld [vmem:[%s11511_s0 + $0xd8] sm:$0xff] }
   0xa   :  { %v609_v50 = vsel %vm533_vm0, %v46_v47, 0.0  ;;  %v606_v52 = vsel %vm533_vm0, %v45_v49, 0.0  ;;  %v47_v53 = vld [vmem:[%s11511_s0 + $0xd0] sm:$0xff]  ;;  %v615_v54 = vsel %vm533_vm0, %v48_v51, 0.0  ;;  %v50_v55 = vld [vmem:[%s11511_s0 + $0xe8] sm:$0xff]  ;;  %v49_v57 = vld [vmem:[%s11511_s0 + $0xe0] sm:$0xff] }
   0xb   :  { %550 = vadd.xlane.f32.xlu1 %v549_v10  ;;  %547 = vadd.xlane.f32.xlu0 %v546_v11  ;;  %v612_v56 = vsel %vm533_vm0, %v47_v53, 0.0  ;;  %v621_v58 = vsel %vm533_vm0, %v50_v55, 0.0  ;;  %v52_v59 = vld [vmem:[%s11511_s0 + $0xf8] sm:$0xff]  ;;  %v618_v60 = vsel %vm533_vm0, %v49_v57, 0.0  ;;  %v51_v61 = vld [vmem:[%s11511_s0 + $0xf0] sm:$0xff]  ;;  %v54_v63 = vld [vmem:[%s11511_s0 + $0x108] sm:$0xff] }
   0xc   :  { %v627_v62 = vsel %vm533_vm0, %v52_v59, 0.0  ;;  %v624_v0 = vsel %vm533_vm0, %v51_v61, 0.0  ;;  %v53_v1 = vld [vmem:[%s11511_s0 + $0x100] sm:$0xff]  ;;  %v633_v2 = vsel %vm533_vm0, %v54_v63, 0.0  ;;  %v56_v3 = vld [vmem:[%s11511_s0 + $0x118] sm:$0xff]  ;;  %v55_v5 = vld [vmem:[%s11511_s0 + $0x110] sm:$0xff] }
   0xd   :  { %v630_v4 = vsel %vm533_vm0, %v53_v1, 0.0  ;;  %v639_v6 = vsel %vm533_vm0, %v56_v3, 0.0  ;;  %v58_v7 = vld [vmem:[%s11511_s0 + $0x128] sm:$0xff]  ;;  %v636_v8 = vsel %vm533_vm0, %v55_v5, 0.0  ;;  %v57_v9 = vld [vmem:[%s11511_s0 + $0x120] sm:$0xff]  ;;  %v60_v11 = vld [vmem:[%s11511_s0 + $0x138] sm:$0xff] }
   0xe   :  { %v645_v10 = vsel %vm533_vm0, %v58_v7, 0.0  ;;  %v642_v12 = vsel %vm533_vm0, %v57_v9, 0.0  ;;  %v59_v13 = vld [vmem:[%s11511_s0 + $0x130] sm:$0xff]  ;;  %v61_v17 = vld [vmem:[%s11511_s0 + $0x140] sm:$0xff]  ;;  %v74_v39 = vld [vmem:[%s11511_s0 + $0x1a8] sm:$0xff] }
   0xf   :  { %556 = vadd.xlane.f32.xlu1 %v555_v14  ;;  %553 = vadd.xlane.f32.xlu0 %v552_v15  ;;  %v651_v14 = vsel %vm533_vm0, %v60_v11, 0.0  ;;  %v62_v15 = vld [vmem:[%s11511_s0 + $0x148] sm:$0xff]  ;;  %v648_v16 = vsel %vm533_vm0, %v59_v13, 0.0  ;;  %v654_v20 = vsel %vm533_vm0, %v61_v17, 0.0  ;;  %v63_v21 = vld [vmem:[%s11511_s0 + $0x150] sm:$0xff]  ;;  %v65_v25 = vld [vmem:[%s11511_s0 + $0x160] sm:$0xff] }
  0x10   :  { %v660_v24 = vsel %vm533_vm0, %v63_v21, 0.0  ;;  %v666_v28 = vsel %vm533_vm0, %v65_v25, 0.0  ;;  %v67_v29 = vld [vmem:[%s11511_s0 + $0x170] sm:$0xff]  ;;  %v69_v33 = vld [vmem:[%s11511_s0 + $0x180] sm:$0xff]  ;;  %v76_v43 = vld [vmem:[%s11511_s0 + $0x1b8] sm:$0xff] }
  0x11   :  { %v672_v32 = vsel %vm533_vm0, %v67_v29, 0.0  ;;  %v678_v36 = vsel %vm533_vm0, %v69_v33, 0.0  ;;  %v71_v37 = vld [vmem:[%s11511_s0 + $0x190] sm:$0xff]  ;;  %v73_v41 = vld [vmem:[%s11511_s0 + $0x1a0] sm:$0xff]  ;;  %v78_v47 = vld [vmem:[%s11511_s0 + $0x1c8] sm:$0xff] }
  0x12   :  { %v75_v45 = vld [vmem:[%s11511_s0 + $0x1b0] sm:$0xff]  ;;  %v77_v49 = vld [vmem:[%s11511_s0 + $0x1c0] sm:$0xff]  ;;  %v80_v51 = vld [vmem:[%s11511_s0 + $0x1d8] sm:$0xff] }
  0x13   :  { %562 = vadd.xlane.f32.xlu1 %v561_v18  ;;  %559 = vadd.xlane.f32.xlu0 %v558_v19  ;;  %v657_v18 = vsel %vm533_vm0, %v62_v15, 0.0  ;;  %v64_v19 = vld [vmem:[%s11511_s0 + $0x158] sm:$0xff]  ;;  %v79_v53 = vld [vmem:[%s11511_s0 + $0x1d0] sm:$0xff]  ;;  %v82_v55 = vld [vmem:[%s11511_s0 + $0x1e8] sm:$0xff] }
  0x14   :  { %v81_v57 = vld [vmem:[%s11511_s0 + $0x1e0] sm:$0xff]  ;;  %v84_v59 = vld [vmem:[%s11511_s0 + $0x1f8] sm:$0xff]  ;;  %v83_v61 = vld [vmem:[%s11511_s0 + $0x1f0] sm:$0xff] }
  0x15   :  { %v86_v63 = vld [vmem:[%s11511_s0 + $0x208] sm:$0xff]  ;;  %v85_v1 = vld [vmem:[%s11511_s0 + $0x200] sm:$0xff]  ;;  %v88_v3 = vld [vmem:[%s11511_s0 + $0x218] sm:$0xff] }
  0x16   :  { %v87_v5 = vld [vmem:[%s11511_s0 + $0x210] sm:$0xff]  ;;  %v90_v7 = vld [vmem:[%s11511_s0 + $0x228] sm:$0xff]  ;;  %v89_v9 = vld [vmem:[%s11511_s0 + $0x220] sm:$0xff] }
  0x17   :  { %568 = vadd.xlane.f32.xlu1 %v567_v22  ;;  %565 = vadd.xlane.f32.xlu0 %v564_v23  ;;  %v663_v22 = vsel %vm533_vm0, %v64_v19, 0.0  ;;  %v66_v23 = vld [vmem:[%s11511_s0 + $0x168] sm:$0xff]  ;;  %v92_v11 = vld [vmem:[%s11511_s0 + $0x238] sm:$0xff]  ;;  %v91_v13 = vld [vmem:[%s11511_s0 + $0x230] sm:$0xff] }
  0x18   :  { %v747_v15 = vsel %vm533_vm0, %v92_v11, 0.0  ;;  %v94_v17 = vld [vmem:[%s11511_s0 + $0x248] sm:$0xff]  ;;  %v96_v25 = vld [vmem:[%s11511_s0 + $0x258] sm:$0xff] }
  0x1b   :  { %574 = vadd.xlane.f32.xlu1 %v573_v26  ;;  %571 = vadd.xlane.f32.xlu0 %v570_v27  ;;  %v669_v26 = vsel %vm533_vm0, %v66_v23, 0.0  ;;  %v68_v27 = vld [vmem:[%s11511_s0 + $0x178] sm:$0xff] }
  0x1f   :  { %580 = vadd.xlane.f32.xlu1 %v579_v30  ;;  %577 = vadd.xlane.f32.xlu0 %v576_v31  ;;  %v675_v30 = vsel %vm533_vm0, %v68_v27, 0.0  ;;  %v70_v31 = vld [vmem:[%s11511_s0 + $0x188] sm:$0xff] }
  0x23   :  { %586 = vadd.xlane.f32.xlu1 %v585_v34  ;;  %583 = vadd.xlane.f32.xlu0 %v582_v35  ;;  %v681_v34 = vsel %vm533_vm0, %v70_v31, 0.0  ;;  %v72_v35 = vld [vmem:[%s11511_s0 + $0x198] sm:$0xff] }
  0x27   :  { %592 = vadd.xlane.f32.xlu1 %v591_v38  ;;  %589 = vadd.xlane.f32.xlu0 %v588_v40  ;;  %v687_v38 = vsel %vm533_vm0, %v72_v35, 0.0  ;;  %v684_v40 = vsel %vm533_vm0, %v71_v37, 0.0 }
  0x2b   :  { %598 = vadd.xlane.f32.xlu1 %v597_v42  ;;  %595 = vadd.xlane.f32.xlu0 %v594_v44  ;;  %v693_v42 = vsel %vm533_vm0, %v74_v39, 0.0  ;;  %v690_v44 = vsel %vm533_vm0, %v73_v41, 0.0 }
  0x2f   :  { %604 = vadd.xlane.f32.xlu1 %v603_v46  ;;  %601 = vadd.xlane.f32.xlu0 %v600_v48  ;;  %v699_v46 = vsel %vm533_vm0, %v76_v43, 0.0  ;;  %v696_v48 = vsel %vm533_vm0, %v75_v45, 0.0 }
  0x33   :  { %610 = vadd.xlane.f32.xlu1 %v609_v50  ;;  %607 = vadd.xlane.f32.xlu0 %v606_v52  ;;  %v705_v50 = vsel %vm533_vm0, %v78_v47, 0.0  ;;  %v702_v52 = vsel %vm533_vm0, %v77_v49, 0.0 }
  0x37   :  { %616 = vadd.xlane.f32.xlu1 %v615_v54  ;;  %613 = vadd.xlane.f32.xlu0 %v612_v56  ;;  %v711_v54 = vsel %vm533_vm0, %v80_v51, 0.0  ;;  %v708_v56 = vsel %vm533_vm0, %v79_v53, 0.0 }
  0x3b   :  { %622 = vadd.xlane.f32.xlu1 %v621_v58  ;;  %619 = vadd.xlane.f32.xlu0 %v618_v60  ;;  %v717_v58 = vsel %vm533_vm0, %v82_v55, 0.0  ;;  %v714_v60 = vsel %vm533_vm0, %v81_v57, 0.0 }
  0x3f   :  { %628 = vadd.xlane.f32.xlu1 %v627_v62  ;;  %625 = vadd.xlane.f32.xlu0 %v624_v0  ;;  %v723_v62 = vsel %vm533_vm0, %v84_v59, 0.0  ;;  %v720_v0 = vsel %vm533_vm0, %v83_v61, 0.0 }
  0x43   :  { %634 = vadd.xlane.f32.xlu1 %v633_v2  ;;  %631 = vadd.xlane.f32.xlu0 %v630_v4  ;;  %v729_v2 = vsel %vm533_vm0, %v86_v63, 0.0  ;;  %v726_v4 = vsel %vm533_vm0, %v85_v1, 0.0 }
  0x47   :  { %640 = vadd.xlane.f32.xlu1 %v639_v6  ;;  %637 = vadd.xlane.f32.xlu0 %v636_v8  ;;  %v735_v6 = vsel %vm533_vm0, %v88_v3, 0.0  ;;  %v732_v8 = vsel %vm533_vm0, %v87_v5, 0.0 }
  0x4b   :  { %646 = vadd.xlane.f32.xlu1 %v645_v10  ;;  %643 = vadd.xlane.f32.xlu0 %v642_v12  ;;  %v741_v10 = vsel %vm533_vm0, %v90_v7, 0.0  ;;  %v738_v12 = vsel %vm533_vm0, %v89_v9, 0.0 }
  0x4f   :  { %652 = vadd.xlane.f32.xlu1 %v651_v14  ;;  %649 = vadd.xlane.f32.xlu0 %v648_v16  ;;  %v3351_v14 = vlaneseq  ;;  %v744_v16 = vsel %vm533_vm0, %v91_v13, 0.0 }
  0x51   :  { %v7852_v19 = vand.u32 127, %v3351_v14 }
  0x53   :  { %658 = vadd.xlane.f32.xlu1 %v657_v18  ;;  %655 = vadd.xlane.f32.xlu0 %v654_v20  ;;  %v93_v18 = vld [vmem:[%s11511_s0 + $0x240] sm:$0xff]  ;;  %v753_v20 = vsel %vm533_vm0, %v94_v17, 0.0  ;;  %v3364_v23 = vadd.s32 4294967280, %v7852_v19  ;;  %v3371_v29 = vadd.s32 4294967272, %v7852_v19 }
  0x54   :  { %v750_v21 = vsel %vm533_vm0, %v93_v18, 0.0 }
  0x57   :  { %664 = vadd.xlane.f32.xlu1 %v663_v22  ;;  %661 = vadd.xlane.f32.xlu0 %v660_v24  ;;  %v7856_v22 = vshrl.u32 %v3351_v14, 7  ;;  %v3357_v24 = vadd.s32 4294967288, %v7852_v19 }
  0x5b   :  { %670 = vadd.xlane.f32.xlu1 %v669_v26  ;;  %667 = vadd.xlane.f32.xlu0 %v666_v28  ;;  %v95_v26 = vld [vmem:[%s11511_s0 + $0x250] sm:$0xff] }
  0x5f   :  { %676 = vadd.xlane.f32.xlu1 %v675_v30  ;;  %673 = vadd.xlane.f32.xlu0 %v672_v32  ;;  %v7869_v30 = vsub.s32 %v7852_v19, %v7856_v22 }
  0x63   :  { %682 = vadd.xlane.f32.xlu1 %v681_v34  ;;  %679 = vadd.xlane.f32.xlu0 %v678_v36 }
  0x67   :  { %688 = vadd.xlane.f32.xlu1 %v687_v38  ;;  %685 = vadd.xlane.f32.xlu0 %v684_v40 }
  0x6b   :  { %694 = vadd.xlane.f32.xlu1 %v693_v42  ;;  %691 = vadd.xlane.f32.xlu0 %v690_v44 }
  0x6f   :  { %700 = vadd.xlane.f32.xlu1 %v699_v46  ;;  %697 = vadd.xlane.f32.xlu0 %v696_v48 }
  0x73   :  { %706 = vadd.xlane.f32.xlu1 %v705_v50  ;;  %703 = vadd.xlane.f32.xlu0 %v702_v52 }
  0x77   :  { %712 = vadd.xlane.f32.xlu1 %v711_v54  ;;  %709 = vadd.xlane.f32.xlu0 %v708_v56 }
  0x7b   :  { %718 = vadd.xlane.f32.xlu1 %v717_v58  ;;  %715 = vadd.xlane.f32.xlu0 %v714_v60 }
  0x7f   :  { %724 = vadd.xlane.f32.xlu1 %v723_v62  ;;  %721 = vadd.xlane.f32.xlu0 %v720_v0 }
  0x83   :  { %730 = vadd.xlane.f32.xlu1 %v729_v2  ;;  %727 = vadd.xlane.f32.xlu0 %v726_v4 }
  0x87   :  { %736 = vadd.xlane.f32.xlu1 %v735_v6  ;;  %733 = vadd.xlane.f32.xlu0 %v732_v8 }
  0x8b   :  { %742 = vadd.xlane.f32.xlu1 %v741_v10  ;;  %739 = vadd.xlane.f32.xlu0 %v738_v12 }
  0x8f   :  { %748 = vadd.xlane.f32.xlu1 %v747_v15  ;;  %745 = vadd.xlane.f32.xlu0 %v744_v16 }
  0x90   :  { %v542_v27 = vpop.xlane.xlu1 %541  ;;  %v536_v28 = vpop.xlane.xlu0 %535 }
  0x93   :  { %754 = vadd.xlane.f32.xlu1 %v753_v20  ;;  %751 = vadd.xlane.f32.xlu0 %v750_v21 }
  0x94   :  { %8 = vsyncpa [#allocation4], 0  ;;  %v545_v31 = vpop.xlane.xlu1 %544  ;;  %v539_v32 = vpop.xlane.xlu0 %538  ;;  %v759_v33 = vsel %vm533_vm0, %v96_v25, 0.0  ;;  %v756_v34 = vsel %vm533_vm0, %v95_v26, 0.0  ;;  %vm3376_vm3 = vcmask 261312   ;;  %v3378_v35 = vadd.s32 4294967264, %v7852_v19 }
  0x95   :  { %v7875_v36 = vsub.s32 %v3364_v23, %v7856_v22  ;;  %v2072_v37 = vpack.c.bf16 %v545_v31, %v542_v27  ;;  %v7878_v38 = vsub.s32 %v3357_v24, %v7856_v22  ;;  %v2071_v39 = vpack.c.bf16 %v539_v32, %v536_v28  ;;  %v98_v40 = vld [vmem:[%s11511_s0 + $0x268] sm:$0xff]  ;;  %v97_v41 = vld [vmem:[%s11511_s0 + $0x260] sm:$0xff]  ;;  %v100_v49 = vld [vmem:[%s11511_s0 + $0x278] sm:$0xff]  ;;  %s7537_s21 = smov [#allocation3]  }
  0x96   :  { %v7887_v42 = vsub.s32 %v3371_v29, %v7856_v22  ;;  %vm3383_vm4 = vcmask 326912   ;;  %v3385_v43 = vadd.s32 4294967256, %v7852_v19  ;;  %v3392_v44 = vadd.s32 4294967248, %v7852_v19  ;;  %v99_v50 = vld [vmem:[%s11511_s0 + $0x270] sm:$0xff]  ;;  %v102_v4 = vld [vmem:[%s11511_s0 + $0x288] sm:$0xff]  ;;  %v101_v11 = vld [vmem:[%s11511_s0 + $0x280] sm:$0xff] }
  0x97   :  { %11525 = vst [vmem:[#allocation6_spill] sm:$0xff] %v7875_v36  ;;  %v2841_v45 = vunpack.c.l.b16 %v2072_v37  ;;  %v2842_v46 = vunpack.c.h.b16 %v2072_v37  ;;  %v2839_v47 = vunpack.c.l.b16 %v2071_v39  ;;  %v2840_v48 = vunpack.c.h.b16 %v2071_v39  ;;  %760 = vadd.xlane.f32.xlu1 %v759_v33  ;;  %757 = vadd.xlane.f32.xlu0 %v756_v34  ;;  %v104_v24 = vld [vmem:[%s11511_s0 + $0x298] sm:$0xff]  ;;  %v103_v32 = vld [vmem:[%s11511_s0 + $0x290] sm:$0xff]  ;;  %s7069_s22 = sshll.u32 %s7537_s21, 4  ;;  %s7070_s22 = int_to_ptr.vmem [resolvable:$true] %s7069_s22 }
  0x98   :  { %11526 = vst [vmem:[#allocation7_spill] sm:$0xff] %v7887_v42  ;;  %v551_v51 = vpop.xlane.xlu1 %550  ;;  %v7898_v52 = vsub.s32 %v3378_v35, %v7856_v22  ;;  %vm11523_vm5 = vcmask 392512   ;;  %v548_v53 = vpop.xlane.xlu0 %547  ;;  %v765_v54 = vsel %vm533_vm0, %v98_v40, 0.0  ;;  %v762_v55 = vsel %vm533_vm0, %v97_v41, 0.0  ;;  %s7512_s23 = scalar_lea.vmem %s7070_s22, 32  ;;  %p7517_p1 = scmp.lt.s32.totalorder %s7070_s22, %s7070_s22 }
  0x99   :  { %v3368_v56 = vrot.slane %v2841_v45, %v7875_v36  ;;  %v3356_v57 = vrot.slane %v2839_v47, %v7869_v30  ;;  %v3361_v58 = vrot.slane %v2840_v48, %v7878_v38  ;;  %v3399_v59 = vadd.s32 4294967240, %v7852_v19  ;;  %v106_v45 = vld [vmem:[%s11511_s0 + $0x2a8] sm:$0xff]  ;;  %p7513_p0 = scmp.ne.s32.totalorder %s7070_s22, %s7512_s23  ;;  %p7518_p2 = scmp.lt.s32.totalorder %s7512_s23, %s7512_s23 }
  0x9a   :  { %11527 = vst [vmem:[#allocation8_spill] sm:$0xff] %v7898_v52  ;;  %v7907_v60 = vsub.s32 %v3385_v43, %v7856_v22  ;;  %v2073_v61 = vpack.c.bf16 %v551_v51, %v548_v53  ;;  %v771_v62 = vsel %vm533_vm0, %v100_v49, 0.0  ;;  %v768_v63 = vsel %vm533_vm0, %v99_v50, 0.0  ;;  %v105_v53 = vld [vmem:[%s11511_s0 + $0x2a0] sm:$0xff] }
  0x9b   :  { %v3375_v0 = vrot.slane %v2842_v46, %v7887_v42  ;;  %v3363_v1 = vsel %vm3362_vm1, %v3361_v58, %v3356_v57  ;;  %766 = vadd.xlane.f32.xlu1 %v765_v54  ;;  %763 = vadd.xlane.f32.xlu0 %v762_v55  ;;  %v7914_v2 = vsub.s32 %v3392_v44, %v7856_v22  ;;  %v3406_v3 = vadd.s32 4294967232, %v7852_v19  ;;  %p7519_p3 = por %p7518_p2, %p7517_p1 }
  0x9c   :  { %v3370_v5 = vsel %vm3369_vm2, %v3368_v56, %v3363_v1  ;;  %v2843_v6 = vunpack.c.l.b16 %v2073_v61  ;;  %v2844_v7 = vunpack.c.h.b16 %v2073_v61  ;;  %v557_v8 = vpop.xlane.xlu1 %556  ;;  %v554_v9 = vpop.xlane.xlu0 %553  ;;  %v3413_v10 = vadd.s32 4294967224, %v7852_v19 }
  0x9d   :  { %v3377_v12 = vsel %vm3376_vm3, %v3375_v0, %v3370_v5  ;;  %vm3397_vm6 = vcmask 458112   ;;  %v7927_v13 = vsub.s32 %v3399_v59, %v7856_v22  ;;  %v2074_v14 = vpack.c.bf16 %v557_v8, %v554_v9  ;;  %p7520_p4 = pnand %p7519_p3, %p7513_p0 }
  0x9e   :  { %v3382_v15 = vrot.slane %v2843_v6, %v7898_v52  ;;  %v3389_v16 = vrot.slane %v2844_v7, %v7907_v60  ;;  %vm3404_vm7 = vcmask 523712   ;;  %v777_v17 = vsel %vm533_vm0, %v102_v4, 0.0 }
  0x9f   :  { %v2845_v18 = vunpack.c.l.b16 %v2074_v14  ;;  %v2846_v20 = vunpack.c.h.b16 %v2074_v14  ;;  %772 = vadd.xlane.f32.xlu1 %v771_v62  ;;  %769 = vadd.xlane.f32.xlu0 %v768_v63  ;;  %v7933_v21 = vsub.s32 %v3406_v3, %v7856_v22  ;;  %v774_v23 = vsel %vm533_vm0, %v101_v11, 0.0  ;;  %v108_v11 = vld [vmem:[%s11511_s0 + $0x2b8] sm:$0xff] }
  0xa0   :  { %v3384_v25 = vsel %vm3383_vm4, %v3382_v15, %v3377_v12  ;;  %v563_v26 = vpop.xlane.xlu1 %562  ;;  %v7941_v27 = vsub.s32 %v3413_v10, %v7856_v22  ;;  %v560_v28 = vpop.xlane.xlu0 %559  ;;  %v3420_v29 = vadd.s32 4294967216, %v7852_v19  ;;  %v3427_v31 = vadd.s32 4294967208, %v7852_v19  ;;  %v107_v12 = vld [vmem:[%s11511_s0 + $0x2b0] sm:$0xff] }
  0xa1   :  { %v3391_v33 = vsel %vm11523_vm5, %v3389_v16, %v3384_v25  ;;  %v3396_v34 = vrot.slane %v2845_v18, %v7914_v2  ;;  %v3403_v35 = vrot.slane %v2846_v20, %v7927_v13  ;;  %v2075_v37 = vpack.c.bf16 %v563_v26, %v560_v28 }
  0xa2   :  { %vm3411_vm8 = vcmask 589312   ;;  %vm11516_vm9 = vcmask 654912   ;;  %v783_v39 = vsel %vm533_vm0, %v104_v24, 0.0  ;;  %v780_v44 = vsel %vm533_vm0, %v103_v32, 0.0  ;;  %v109_v32 = vld [vmem:[%s11511_s0 + $0x2c0] sm:$0xff] }
  0xa3   :  { %v3398_v40 = vsel %vm3397_vm6, %v3396_v34, %v3391_v33  ;;  %v2847_v41 = vunpack.c.l.b16 %v2075_v37  ;;  %v2848_v43 = vunpack.c.h.b16 %v2075_v37  ;;  %778 = vadd.xlane.f32.xlu1 %v777_v17  ;;  %775 = vadd.xlane.f32.xlu0 %v774_v23  ;;  %v7959_v48 = vsub.s32 %v3420_v29, %v7856_v22 }
  0xa4   :  { %v3405_v46 = vsel %vm3404_vm7, %v3403_v35, %v3398_v40  ;;  %v569_v47 = vpop.xlane.xlu1 %568  ;;  %v566_v49 = vpop.xlane.xlu0 %565  ;;  %v3434_v50 = vadd.s32 4294967200, %v7852_v19  ;;  %v3441_v51 = vadd.s32 4294967192, %v7852_v19  ;;  %v7969_v56 = vsub.s32 %v3427_v31, %v7856_v22  ;;  %v110_v31 = vld [vmem:[%s11511_s0 + $0x2c8] sm:$0xff] }
  0xa5   :  { %v3410_v54 = vrot.slane %v2847_v41, %v7933_v21  ;;  %v3417_v55 = vrot.slane %v2848_v43, %v7941_v27  ;;  %v2076_v57 = vpack.c.bf16 %v569_v47, %v566_v49  ;;  %vm3425_vm10 = vcmask 720512   ;;  %v111_v47 = vld [vmem:[%s11511_s0 + $0x2d0] sm:$0xff] }
  0xa6   :  { %vm3432_vm11 = vcmask 786112   ;;  %v789_v58 = vsel %vm533_vm0, %v106_v45, 0.0  ;;  %v786_v63 = vsel %vm533_vm0, %v105_v53, 0.0  ;;  %v7976_v3 = vsub.s32 %v3434_v50, %v7856_v22 }
  0xa7   :  { %v3412_v59 = vsel %vm3411_vm8, %v3410_v54, %v3405_v46  ;;  %v2849_v61 = vunpack.c.l.b16 %v2076_v57  ;;  %v2850_v62 = vunpack.c.h.b16 %v2076_v57  ;;  %784 = vadd.xlane.f32.xlu1 %v783_v39  ;;  %781 = vadd.xlane.f32.xlu0 %v780_v44  ;;  %v7979_v4 = vsub.s32 %v3441_v51, %v7856_v22  ;;  %v112_v46 = vld [vmem:[%s11511_s0 + $0x2d8] sm:$0xff] }
  0xa8   :  { %v3419_v0 = vsel %vm11516_vm9, %v3417_v55, %v3412_v59  ;;  %v575_v1 = vpop.xlane.xlu1 %574  ;;  %v572_v5 = vpop.xlane.xlu0 %571  ;;  %v3448_v6 = vadd.s32 4294967184, %v7852_v19  ;;  %v3455_v10 = vadd.s32 4294967176, %v7852_v19  ;;  %vm11515_vm12 = vcmask 851712   ;;  %v114_v59 = vld [vmem:[%s11511_s0 + $0x2e8] sm:$0xff] }
  0xa9   :  { %v3424_v7 = vrot.slane %v2849_v61, %v7959_v48  ;;  %v3431_v8 = vrot.slane %v2850_v62, %v7969_v56  ;;  %v2077_v9 = vpack.c.bf16 %v575_v1, %v572_v5  ;;  %vm3446_vm13 = vcmask 917312   ;;  %v113_v61 = vld [vmem:[%s11511_s0 + $0x2e0] sm:$0xff] }
  0xaa   :  { %v7994_v19 = vsub.s32 %v3448_v6, %v7856_v22  ;;  %v795_v23 = vsel %vm533_vm0, %v108_v11, 0.0  ;;  %v792_v24 = vsel %vm533_vm0, %v107_v12, 0.0  ;;  %v8001_v28 = vsub.s32 %v3455_v10, %v7856_v22 }
  0xab   :  { %v3426_v14 = vsel %vm3425_vm10, %v3424_v7, %v3419_v0  ;;  %v2851_v15 = vunpack.c.l.b16 %v2077_v9  ;;  %v2852_v16 = vunpack.c.h.b16 %v2077_v9  ;;  %790 = vadd.xlane.f32.xlu1 %v789_v58  ;;  %787 = vadd.xlane.f32.xlu0 %v786_v63  ;;  %v801_v40 = vsel %vm533_vm0, %v110_v31, 0.0 }
  0xac   :  { %v3433_v17 = vsel %vm3432_vm11, %v3431_v8, %v3426_v14  ;;  %v581_v18 = vpop.xlane.xlu1 %580  ;;  %v578_v20 = vpop.xlane.xlu0 %577  ;;  %v798_v41 = vsel %vm533_vm0, %v109_v32, 0.0  ;;  %vm3453_vm14 = vcmask 982912   ;;  %vm3460_vm15 = vcmask 1048512   ;;  %v116_v14 = vld [vmem:[%s11511_s0 + $0x2f8] sm:$0xff] }
  0xad   :  { %v3438_v25 = vrot.slane %v2851_v15, %v7976_v3  ;;  %v3445_v26 = vrot.slane %v2852_v16, %v7979_v4  ;;  %v2078_v29 = vpack.c.bf16 %v581_v18, %v578_v20  ;;  %v807_v54 = vsel %vm533_vm0, %v112_v46, 0.0  ;;  %v115_v15 = vld [vmem:[%s11511_s0 + $0x2f0] sm:$0xff] }
  0xae   :  { %v804_v55 = vsel %vm533_vm0, %v111_v47, 0.0  ;;  %v813_v8 = vsel %vm533_vm0, %v114_v59, 0.0  ;;  %v810_v9 = vsel %vm533_vm0, %v113_v61, 0.0 }
  0xaf   :  { %v3440_v33 = vsel %vm11515_vm12, %v3438_v25, %v3433_v17  ;;  %v2853_v34 = vunpack.c.l.b16 %v2078_v29  ;;  %v2854_v35 = vunpack.c.h.b16 %v2078_v29  ;;  %796 = vadd.xlane.f32.xlu1 %v795_v23  ;;  %793 = vadd.xlane.f32.xlu0 %v792_v24  ;;  %v816_v29 = vsel %vm533_vm0, %v115_v15, 0.0 }
  0xb0   :  { %v3447_v37 = vsel %vm3446_vm13, %v3445_v26, %v3440_v33  ;;  %v587_v39 = vpop.xlane.xlu1 %586  ;;  %v584_v22 = vpop.xlane.xlu0 %583  ;;  %v819_v26 = vsel %vm533_vm0, %v116_v14, 0.0 }
  0xb1   :  { %v3452_v43 = vrot.slane %v2853_v34, %v7994_v19  ;;  %v3459_v44 = vrot.slane %v2854_v35, %v8001_v28  ;;  %v2079_v45 = vpack.c.bf16 %v587_v39, %v584_v22  ;;  %v118_v34 = vld [vmem:[%s11511_s0 + $0x308] sm:$0xff]  ;;  %v117_v35 = vld [vmem:[%s11511_s0 + $0x300] sm:$0xff] }
  0xb3   :  { %v2855_v49 = vunpack.c.l.b16 %v2079_v45  ;;  %v2856_v50 = vunpack.c.h.b16 %v2079_v45  ;;  %802 = vadd.xlane.f32.xlu1 %v801_v40  ;;  %799 = vadd.xlane.f32.xlu0 %v798_v41  ;;  %v3454_v57 = vsel %vm3453_vm14, %v3452_v43, %v3447_v37  ;;  %v822_v45 = vsel %vm533_vm0, %v117_v35, 0.0 }
  0xb4   :  { %v593_v51 = vpop.xlane.xlu1 %592  ;;  %v590_v53 = vpop.xlane.xlu0 %589  ;;  %v8031_v62 = vsel %vm3460_vm15, %v3459_v44, %v3454_v57  ;;  %v825_v44 = vsel %vm533_vm0, %v118_v34, 0.0 }
  0xb5   :  { %v2080_v58 = vpack.c.bf16 %v593_v51, %v590_v53  ;;  %v3465_v63 = vrot.slane %v2855_v49, %v7869_v30  ;;  %v3469_v0 = vrot.slane %v2856_v50, %v7878_v38  ;;  %v120_v50 = vld [vmem:[%s11511_s0 + $0x318] sm:$0xff]  ;;  %v119_v51 = vld [vmem:[%s11511_s0 + $0x310] sm:$0xff] }
  0xb6   :  { %v831_v61 = vsel %vm533_vm0, %v120_v50, 0.0 }
  0xb7   :  { %v2857_v1 = vunpack.c.l.b16 %v2080_v58  ;;  %v2858_v5 = vunpack.c.h.b16 %v2080_v58  ;;  %808 = vadd.xlane.f32.xlu1 %v807_v54  ;;  %805 = vadd.xlane.f32.xlu0 %v804_v55  ;;  %v3470_v16 = vsel %vm3362_vm1, %v3469_v0, %v3465_v63  ;;  %v828_v63 = vsel %vm533_vm0, %v119_v51, 0.0 }
  0xb8   :  { %v599_v6 = vpop.xlane.xlu1 %598  ;;  %v596_v7 = vpop.xlane.xlu0 %595 }
  0xb9   :  { %v3474_v10 = vrot.slane %v2857_v1, %v7875_v36  ;;  %v3479_v11 = vrot.slane %v2858_v5, %v7887_v42  ;;  %v2081_v12 = vpack.c.bf16 %v599_v6, %v596_v7  ;;  %v122_v6 = vld [vmem:[%s11511_s0 + $0x328] sm:$0xff]  ;;  %v121_v7 = vld [vmem:[%s11511_s0 + $0x320] sm:$0xff] }
  0xba   :  { %v837_v15 = vsel %vm533_vm0, %v122_v6, 0.0 }
  0xbb   :  { %v3475_v17 = vsel %vm3369_vm2, %v3474_v10, %v3470_v16  ;;  %v2859_v18 = vunpack.c.l.b16 %v2081_v12  ;;  %v2860_v20 = vunpack.c.h.b16 %v2081_v12  ;;  %814 = vadd.xlane.f32.xlu1 %v813_v8  ;;  %811 = vadd.xlane.f32.xlu0 %v810_v9  ;;  %v834_v16 = vsel %vm533_vm0, %v121_v7, 0.0 }
  0xbc   :  { %v3480_v23 = vsel %vm3376_vm3, %v3479_v11, %v3475_v17  ;;  %v605_v24 = vpop.xlane.xlu1 %604  ;;  %v602_v25 = vpop.xlane.xlu0 %601 }
  0xbd   :  { %v3484_v31 = vrot.slane %v2859_v18, %v7898_v52  ;;  %v3489_v32 = vrot.slane %v2860_v20, %v7907_v60  ;;  %v2082_v33 = vpack.c.bf16 %v605_v24, %v602_v25  ;;  %v123_v24 = vld [vmem:[%s11511_s0 + $0x330] sm:$0xff] }
  0xbe   :  { %v840_v35 = vsel %vm533_vm0, %v123_v24, 0.0 }
  0xbf   :  { %v3485_v37 = vsel %vm3383_vm4, %v3484_v31, %v3480_v23  ;;  %v2861_v39 = vunpack.c.l.b16 %v2082_v33  ;;  %v2862_v22 = vunpack.c.h.b16 %v2082_v33  ;;  %820 = vadd.xlane.f32.xlu1 %v819_v26  ;;  %817 = vadd.xlane.f32.xlu0 %v816_v29  ;;  %v124_v23 = vld [vmem:[%s11511_s0 + $0x338] sm:$0xff] }
  0xc0   :  { %v3490_v40 = vsel %vm11523_vm5, %v3489_v32, %v3485_v37  ;;  %v611_v41 = vpop.xlane.xlu1 %610  ;;  %v608_v43 = vpop.xlane.xlu0 %607  ;;  %v843_v34 = vsel %vm533_vm0, %v124_v23, 0.0 }
  0xc1   :  { %v3494_v46 = vrot.slane %v2861_v39, %v7914_v2  ;;  %v3499_v47 = vrot.slane %v2862_v22, %v7927_v13  ;;  %v2083_v49 = vpack.c.bf16 %v611_v41, %v608_v43  ;;  %v125_v41 = vld [vmem:[%s11511_s0 + $0x340] sm:$0xff] }
  0xc3   :  { %v3495_v53 = vsel %vm3397_vm6, %v3494_v46, %v3490_v40  ;;  %v2863_v54 = vunpack.c.l.b16 %v2083_v49  ;;  %v2864_v55 = vunpack.c.h.b16 %v2083_v49  ;;  %826 = vadd.xlane.f32.xlu1 %v825_v44  ;;  %823 = vadd.xlane.f32.xlu0 %v822_v45  ;;  %v126_v40 = vld [vmem:[%s11511_s0 + $0x348] sm:$0xff]  ;;  %v846_v49 = vsel %vm533_vm0, %v125_v41, 0.0 }
  0xc4   :  { %v3500_v57 = vsel %vm3404_vm7, %v3499_v47, %v3495_v53  ;;  %v617_v58 = vpop.xlane.xlu1 %616  ;;  %v614_v59 = vpop.xlane.xlu0 %613  ;;  %v849_v47 = vsel %vm533_vm0, %v126_v40, 0.0 }
  0xc5   :  { %v3504_v0 = vrot.slane %v2863_v54, %v7933_v21  ;;  %v3509_v1 = vrot.slane %v2864_v55, %v7941_v27  ;;  %v2084_v5 = vpack.c.bf16 %v617_v58, %v614_v59  ;;  %v128_v55 = vld [vmem:[%s11511_s0 + $0x358] sm:$0xff] }
  0xc7   :  { %v3505_v8 = vsel %vm3411_vm8, %v3504_v0, %v3500_v57  ;;  %v2865_v9 = vunpack.c.l.b16 %v2084_v5  ;;  %v2866_v10 = vunpack.c.h.b16 %v2084_v5  ;;  %832 = vadd.xlane.f32.xlu1 %v831_v61  ;;  %829 = vadd.xlane.f32.xlu0 %v828_v63  ;;  %v127_v57 = vld [vmem:[%s11511_s0 + $0x350] sm:$0xff] }
  0xc8   :  { %v3510_v11 = vsel %vm11516_vm9, %v3509_v1, %v3505_v8  ;;  %v623_v12 = vpop.xlane.xlu1 %622  ;;  %v620_v14 = vpop.xlane.xlu0 %619  ;;  %v855_v1 = vsel %vm533_vm0, %v128_v55, 0.0  ;;  %v852_v5 = vsel %vm533_vm0, %v127_v57, 0.0  ;;  %v130_v8 = vld [vmem:[%s11511_s0 + $0x368] sm:$0xff] }
  0xc9   :  { %v3514_v17 = vrot.slane %v2865_v9, %v7959_v48  ;;  %v3519_v18 = vrot.slane %v2866_v10, %v7969_v56  ;;  %v2085_v20 = vpack.c.bf16 %v623_v12, %v620_v14  ;;  %v129_v9 = vld [vmem:[%s11511_s0 + $0x360] sm:$0xff] }
  0xcb   :  { %v3515_v25 = vsel %vm3425_vm10, %v3514_v17, %v3510_v11  ;;  %v2867_v26 = vunpack.c.l.b16 %v2085_v20  ;;  %v2868_v29 = vunpack.c.h.b16 %v2085_v20  ;;  %838 = vadd.xlane.f32.xlu1 %v837_v15  ;;  %835 = vadd.xlane.f32.xlu0 %v834_v16  ;;  %v858_v20 = vsel %vm533_vm0, %v129_v9, 0.0 }
  0xcc   :  { %v3520_v31 = vsel %vm3432_vm11, %v3519_v18, %v3515_v25  ;;  %v629_v32 = vpop.xlane.xlu1 %628  ;;  %v626_v33 = vpop.xlane.xlu0 %625  ;;  %v861_v18 = vsel %vm533_vm0, %v130_v8, 0.0 }
  0xcd   :  { %v3524_v37 = vrot.slane %v2867_v26, %v7976_v3  ;;  %v3529_v39 = vrot.slane %v2868_v29, %v7979_v4  ;;  %v2086_v22 = vpack.c.bf16 %v629_v32, %v626_v33  ;;  %v132_v26 = vld [vmem:[%s11511_s0 + $0x378] sm:$0xff]  ;;  %v131_v29 = vld [vmem:[%s11511_s0 + $0x370] sm:$0xff] }
  0xce   :  { %v864_v40 = vsel %vm533_vm0, %v131_v29, 0.0 }
  0xcf   :  { %v2869_v43 = vunpack.c.l.b16 %v2086_v22  ;;  %v2870_v44 = vunpack.c.h.b16 %v2086_v22  ;;  %844 = vadd.xlane.f32.xlu1 %v843_v34  ;;  %841 = vadd.xlane.f32.xlu0 %v840_v35  ;;  %v3525_v50 = vsel %vm11515_vm12, %v3524_v37, %v3520_v31  ;;  %v867_v22 = vsel %vm533_vm0, %v132_v26, 0.0 }
  0xd0   :  { %v635_v45 = vpop.xlane.xlu1 %634  ;;  %v632_v46 = vpop.xlane.xlu0 %631  ;;  %v3530_v58 = vsel %vm3446_vm13, %v3529_v39, %v3525_v50 }
  0xd1   :  { %v3534_v51 = vrot.slane %v2869_v43, %v7994_v19  ;;  %v3539_v53 = vrot.slane %v2870_v44, %v8001_v28  ;;  %v2087_v54 = vpack.c.bf16 %v635_v45, %v632_v46  ;;  %v134_v45 = vld [vmem:[%s11511_s0 + $0x388] sm:$0xff]  ;;  %v133_v46 = vld [vmem:[%s11511_s0 + $0x380] sm:$0xff] }
  0xd2   :  { %v873_v55 = vsel %vm533_vm0, %v134_v45, 0.0  ;;  %v870_v57 = vsel %vm533_vm0, %v133_v46, 0.0 }
  0xd3   :  { %v2871_v59 = vunpack.c.l.b16 %v2087_v54  ;;  %v2872_v61 = vunpack.c.h.b16 %v2087_v54  ;;  %850 = vadd.xlane.f32.xlu1 %v849_v47  ;;  %847 = vadd.xlane.f32.xlu0 %v846_v49  ;;  %v3535_v6 = vsel %vm3453_vm14, %v3534_v51, %v3530_v58 }
  0xd4   :  { %v641_v63 = vpop.xlane.xlu1 %640  ;;  %v638_v0 = vpop.xlane.xlu0 %637  ;;  %v8128_v10 = vsel %vm3460_vm15, %v3539_v53, %v3535_v6 }
  0xd5   :  { %v2088_v7 = vpack.c.bf16 %v641_v63, %v638_v0  ;;  %v3544_v11 = vrot.slane %v2871_v59, %v7869_v30  ;;  %v3548_v12 = vrot.slane %v2872_v61, %v7878_v38  ;;  %v136_v63 = vld [vmem:[%s11511_s0 + $0x398] sm:$0xff]  ;;  %v135_v0 = vld [vmem:[%s11511_s0 + $0x390] sm:$0xff] }
  0xd7   :  { %v2873_v14 = vunpack.c.l.b16 %v2088_v7  ;;  %v2874_v15 = vunpack.c.h.b16 %v2088_v7  ;;  %856 = vadd.xlane.f32.xlu1 %v855_v1  ;;  %853 = vadd.xlane.f32.xlu0 %v852_v5  ;;  %v3549_v31 = vsel %vm3362_vm1, %v3548_v12, %v3544_v11  ;;  %v879_v11 = vsel %vm533_vm0, %v136_v63, 0.0 }
  0xd8   :  { %v647_v16 = vpop.xlane.xlu1 %646  ;;  %v644_v17 = vpop.xlane.xlu0 %643  ;;  %v876_v12 = vsel %vm533_vm0, %v135_v0, 0.0 }
  0xd9   :  { %v3553_v23 = vrot.slane %v2873_v14, %v7875_v36  ;;  %v3558_v24 = vrot.slane %v2874_v15, %v7887_v42  ;;  %v2089_v25 = vpack.c.bf16 %v647_v16, %v644_v17  ;;  %v138_v17 = vld [vmem:[%s11511_s0 + $0x3a8] sm:$0xff] }
  0xdb   :  { %v3554_v32 = vsel %vm3369_vm2, %v3553_v23, %v3549_v31  ;;  %v2875_v33 = vunpack.c.l.b16 %v2089_v25  ;;  %v2876_v34 = vunpack.c.h.b16 %v2089_v25  ;;  %862 = vadd.xlane.f32.xlu1 %v861_v18  ;;  %859 = vadd.xlane.f32.xlu0 %v858_v20  ;;  %v137_v18 = vld [vmem:[%s11511_s0 + $0x3a0] sm:$0xff]  ;;  %v885_v31 = vsel %vm533_vm0, %v138_v17, 0.0 }
  0xdc   :  { %v3559_v35 = vsel %vm3376_vm3, %v3558_v24, %v3554_v32  ;;  %v653_v37 = vpop.xlane.xlu1 %652  ;;  %v650_v39 = vpop.xlane.xlu0 %649  ;;  %v882_v32 = vsel %vm533_vm0, %v137_v18, 0.0 }
  0xdd   :  { %v3563_v41 = vrot.slane %v2875_v33, %v7898_v52  ;;  %v3568_v43 = vrot.slane %v2876_v34, %v7907_v60  ;;  %v2090_v44 = vpack.c.bf16 %v653_v37, %v650_v39  ;;  %v140_v37 = vld [vmem:[%s11511_s0 + $0x3b8] sm:$0xff]  ;;  %v139_v39 = vld [vmem:[%s11511_s0 + $0x3b0] sm:$0xff] }
  0xde   :  { %v891_v46 = vsel %vm533_vm0, %v140_v37, 0.0 }
  0xdf   :  { %v3564_v47 = vsel %vm3383_vm4, %v3563_v41, %v3559_v35  ;;  %v2877_v49 = vunpack.c.l.b16 %v2090_v44  ;;  %v2878_v50 = vunpack.c.h.b16 %v2090_v44  ;;  %868 = vadd.xlane.f32.xlu1 %v867_v22  ;;  %865 = vadd.xlane.f32.xlu0 %v864_v40 }
  0xe0   :  { %v3569_v51 = vsel %vm11523_vm5, %v3568_v43, %v3564_v47  ;;  %v659_v53 = vpop.xlane.xlu1 %658  ;;  %v656_v54 = vpop.xlane.xlu0 %655  ;;  %v888_v47 = vsel %vm533_vm0, %v139_v39, 0.0 }
  0xe1   :  { %v3573_v58 = vrot.slane %v2877_v49, %v7914_v2  ;;  %v3578_v59 = vrot.slane %v2878_v50, %v7927_v13  ;;  %v2091_v61 = vpack.c.bf16 %v659_v53, %v656_v54  ;;  %v142_v53 = vld [vmem:[%s11511_s0 + $0x3c8] sm:$0xff]  ;;  %v141_v54 = vld [vmem:[%s11511_s0 + $0x3c0] sm:$0xff] }
  0xe2   :  { %v897_v0 = vsel %vm533_vm0, %v142_v53, 0.0 }
  0xe3   :  { %v3574_v1 = vsel %vm3397_vm6, %v3573_v58, %v3569_v51  ;;  %v2879_v5 = vunpack.c.l.b16 %v2091_v61  ;;  %v2880_v6 = vunpack.c.h.b16 %v2091_v61  ;;  %874 = vadd.xlane.f32.xlu1 %v873_v55  ;;  %871 = vadd.xlane.f32.xlu0 %v870_v57 }
  0xe4   :  { %v3579_v7 = vsel %vm3404_vm7, %v3578_v59, %v3574_v1  ;;  %v665_v8 = vpop.xlane.xlu1 %664  ;;  %v662_v9 = vpop.xlane.xlu0 %661  ;;  %v894_v1 = vsel %vm533_vm0, %v141_v54, 0.0 }
  0xe5   :  { %v3583_v14 = vrot.slane %v2879_v5, %v7933_v21  ;;  %v3588_v15 = vrot.slane %v2880_v6, %v7941_v27  ;;  %v2092_v16 = vpack.c.bf16 %v665_v8, %v662_v9  ;;  %v144_v8 = vld [vmem:[%s11511_s0 + $0x3d8] sm:$0xff]  ;;  %v143_v9 = vld [vmem:[%s11511_s0 + $0x3d0] sm:$0xff] }
  0xe6   :  { %v900_v17 = vsel %vm533_vm0, %v143_v9, 0.0 }
  0xe7   :  { %v3584_v20 = vsel %vm3411_vm8, %v3583_v14, %v3579_v7  ;;  %v2881_v23 = vunpack.c.l.b16 %v2092_v16  ;;  %v2882_v24 = vunpack.c.h.b16 %v2092_v16  ;;  %880 = vadd.xlane.f32.xlu1 %v879_v11  ;;  %877 = vadd.xlane.f32.xlu0 %v876_v12  ;;  %v903_v16 = vsel %vm533_vm0, %v144_v8, 0.0 }
  0xe8   :  { %v3589_v25 = vsel %vm11516_vm9, %v3588_v15, %v3584_v20  ;;  %v671_v26 = vpop.xlane.xlu1 %670  ;;  %v668_v29 = vpop.xlane.xlu0 %667 }
  0xe9   :  { %v3593_v33 = vrot.slane %v2881_v23, %v7959_v48  ;;  %v3598_v34 = vrot.slane %v2882_v24, %v7969_v56  ;;  %v2093_v35 = vpack.c.bf16 %v671_v26, %v668_v29  ;;  %v146_v23 = vld [vmem:[%s11511_s0 + $0x3e8] sm:$0xff]  ;;  %v145_v24 = vld [vmem:[%s11511_s0 + $0x3e0] sm:$0xff] }
  0xea   :  { %v906_v37 = vsel %vm533_vm0, %v145_v24, 0.0 }
  0xeb   :  { %v3594_v22 = vsel %vm3425_vm10, %v3593_v33, %v3589_v25  ;;  %v2883_v40 = vunpack.c.l.b16 %v2093_v35  ;;  %v2884_v41 = vunpack.c.h.b16 %v2093_v35  ;;  %886 = vadd.xlane.f32.xlu1 %v885_v31  ;;  %883 = vadd.xlane.f32.xlu0 %v882_v32  ;;  %v909_v35 = vsel %vm533_vm0, %v146_v23, 0.0 }
  0xec   :  { %v3599_v43 = vsel %vm3432_vm11, %v3598_v34, %v3594_v22  ;;  %v677_v44 = vpop.xlane.xlu1 %676  ;;  %v674_v45 = vpop.xlane.xlu0 %673 }
  0xed   :  { %v3603_v49 = vrot.slane %v2883_v40, %v7976_v3  ;;  %v3608_v50 = vrot.slane %v2884_v41, %v7979_v4  ;;  %v2094_v51 = vpack.c.bf16 %v677_v44, %v674_v45  ;;  %v148_v41 = vld [vmem:[%s11511_s0 + $0x3f8] sm:$0xff] }
  0xee   :  { %v915_v53 = vsel %vm533_vm0, %v148_v41, 0.0 }
  0xef   :  { %v3604_v55 = vsel %vm11515_vm12, %v3603_v49, %v3599_v43  ;;  %v2885_v57 = vunpack.c.l.b16 %v2094_v51  ;;  %v2886_v58 = vunpack.c.h.b16 %v2094_v51  ;;  %892 = vadd.xlane.f32.xlu1 %v891_v46  ;;  %889 = vadd.xlane.f32.xlu0 %v888_v47  ;;  %v147_v43 = vld [vmem:[%s11511_s0 + $0x3f0] sm:$0xff] }
  0xf0   :  { %v3609_v59 = vsel %vm3446_vm13, %v3608_v50, %v3604_v55  ;;  %v683_v61 = vpop.xlane.xlu1 %682  ;;  %v680_v63 = vpop.xlane.xlu0 %679  ;;  %v912_v54 = vsel %vm533_vm0, %v147_v43, 0.0 }
  0xf1   :  { %v3613_v5 = vrot.slane %v2885_v57, %v7994_v19  ;;  %v3618_v6 = vrot.slane %v2886_v58, %v8001_v28  ;;  %v2095_v7 = vpack.c.bf16 %v683_v61, %v680_v63  ;;  %v149_v61 = vld [vmem:[%s11511_s0 + $0x400] sm:$0xff] }
  0xf2   :  { %v918_v9 = vsel %vm533_vm0, %v149_v61, 0.0 }
  0xf3   :  { %v2887_v11 = vunpack.c.l.b16 %v2095_v7  ;;  %v2888_v12 = vunpack.c.h.b16 %v2095_v7  ;;  %898 = vadd.xlane.f32.xlu1 %v897_v0  ;;  %895 = vadd.xlane.f32.xlu0 %v894_v1  ;;  %v3614_v18 = vsel %vm3453_vm14, %v3613_v5, %v3609_v59  ;;  %v150_v59 = vld [vmem:[%s11511_s0 + $0x408] sm:$0xff] }
  0xf4   :  { %v689_v14 = vpop.xlane.xlu1 %688  ;;  %v686_v15 = vpop.xlane.xlu0 %685  ;;  %v8225_v25 = vsel %vm3460_vm15, %v3618_v6, %v3614_v18  ;;  %v921_v8 = vsel %vm533_vm0, %v150_v59, 0.0 }
  0xf5   :  { %v2096_v20 = vpack.c.bf16 %v689_v14, %v686_v15  ;;  %v3623_v26 = vrot.slane %v2887_v11, %v7869_v30  ;;  %v3627_v29 = vrot.slane %v2888_v12, %v7878_v38  ;;  %v152_v15 = vld [vmem:[%s11511_s0 + $0x418] sm:$0xff] }
  0xf7   :  { %v2889_v31 = vunpack.c.l.b16 %v2096_v20  ;;  %v2890_v32 = vunpack.c.h.b16 %v2096_v20  ;;  %904 = vadd.xlane.f32.xlu1 %v903_v16  ;;  %901 = vadd.xlane.f32.xlu0 %v900_v17  ;;  %v3628_v44 = vsel %vm3362_vm1, %v3627_v29, %v3623_v26  ;;  %v151_v16 = vld [vmem:[%s11511_s0 + $0x410] sm:$0xff]  ;;  %v927_v29 = vsel %vm533_vm0, %v152_v15, 0.0 }
  0xf8   :  { %v695_v33 = vpop.xlane.xlu1 %694  ;;  %v692_v34 = vpop.xlane.xlu0 %691 }
  0xf9   :  { %v3632_v39 = vrot.slane %v2889_v31, %v7875_v36  ;;  %v3637_v22 = vrot.slane %v2890_v32, %v7887_v42  ;;  %v2097_v40 = vpack.c.bf16 %v695_v33, %v692_v34  ;;  %v924_v31 = vsel %vm533_vm0, %v151_v16, 0.0 }
  0xfb   :  { %v3633_v45 = vsel %vm3369_vm2, %v3632_v39, %v3628_v44  ;;  %v2891_v46 = vunpack.c.l.b16 %v2097_v40  ;;  %v2892_v47 = vunpack.c.h.b16 %v2097_v40  ;;  %910 = vadd.xlane.f32.xlu1 %v909_v35  ;;  %907 = vadd.xlane.f32.xlu0 %v906_v37  ;;  %v154_v35 = vld [vmem:[%s11511_s0 + $0x428] sm:$0xff]  ;;  %v153_v37 = vld [vmem:[%s11511_s0 + $0x420] sm:$0xff] }
  0xfc   :  { %v3638_v49 = vsel %vm3376_vm3, %v3637_v22, %v3633_v45  ;;  %v701_v50 = vpop.xlane.xlu1 %700  ;;  %v698_v51 = vpop.xlane.xlu0 %697  ;;  %v933_v45 = vsel %vm533_vm0, %v154_v35, 0.0 }
  0xfd   :  { %v3642_v55 = vrot.slane %v2891_v46, %v7898_v52  ;;  %v3647_v57 = vrot.slane %v2892_v47, %v7907_v60  ;;  %v2098_v58 = vpack.c.bf16 %v701_v50, %v698_v51  ;;  %v930_v46 = vsel %vm533_vm0, %v153_v37, 0.0  ;;  %v156_v51 = vld [vmem:[%s11511_s0 + $0x438] sm:$0xff] }
  0xff   :  { %v3643_v63 = vsel %vm3383_vm4, %v3642_v55, %v3638_v49  ;;  %v2893_v0 = vunpack.c.l.b16 %v2098_v58  ;;  %v2894_v1 = vunpack.c.h.b16 %v2098_v58  ;;  %916 = vadd.xlane.f32.xlu1 %v915_v53  ;;  %913 = vadd.xlane.f32.xlu0 %v912_v54  ;;  %v155_v53 = vld [vmem:[%s11511_s0 + $0x430] sm:$0xff] }
 0x100   :  { %v3648_v5 = vsel %vm11523_vm5, %v3647_v57, %v3643_v63  ;;  %v707_v6 = vpop.xlane.xlu1 %706  ;;  %v704_v7 = vpop.xlane.xlu0 %703  ;;  %v939_v63 = vsel %vm533_vm0, %v156_v51, 0.0 }
 0x101   :  { %v3652_v11 = vrot.slane %v2893_v0, %v7914_v2  ;;  %v3657_v12 = vrot.slane %v2894_v1, %v7927_v13  ;;  %v2099_v14 = vpack.c.bf16 %v707_v6, %v704_v7  ;;  %v936_v0 = vsel %vm533_vm0, %v155_v53, 0.0  ;;  %v158_v7 = vld [vmem:[%s11511_s0 + $0x448] sm:$0xff] }
 0x102   :  { %v945_v15 = vsel %vm533_vm0, %v158_v7, 0.0 }
 0x103   :  { %v3653_v17 = vsel %vm3397_vm6, %v3652_v11, %v3648_v5  ;;  %v2895_v18 = vunpack.c.l.b16 %v2099_v14  ;;  %v2896_v20 = vunpack.c.h.b16 %v2099_v14  ;;  %922 = vadd.xlane.f32.xlu1 %v921_v8  ;;  %919 = vadd.xlane.f32.xlu0 %v918_v9  ;;  %v157_v8 = vld [vmem:[%s11511_s0 + $0x440] sm:$0xff] }
 0x104   :  { %v3658_v23 = vsel %vm3404_vm7, %v3657_v12, %v3653_v17  ;;  %v713_v24 = vpop.xlane.xlu1 %712  ;;  %v710_v26 = vpop.xlane.xlu0 %709  ;;  %v942_v16 = vsel %vm533_vm0, %v157_v8, 0.0 }
 0x105   :  { %v3662_v32 = vrot.slane %v2895_v18, %v7933_v21  ;;  %v3667_v33 = vrot.slane %v2896_v20, %v7941_v27  ;;  %v2100_v34 = vpack.c.bf16 %v713_v24, %v710_v26  ;;  %v160_v24 = vld [vmem:[%s11511_s0 + $0x458] sm:$0xff]  ;;  %v159_v26 = vld [vmem:[%s11511_s0 + $0x450] sm:$0xff] }
 0x106   :  { %v951_v35 = vsel %vm533_vm0, %v160_v24, 0.0  ;;  %v948_v37 = vsel %vm533_vm0, %v159_v26, 0.0 }
 0x107   :  { %v3663_v39 = vsel %vm3411_vm8, %v3662_v32, %v3658_v23  ;;  %v2897_v22 = vunpack.c.l.b16 %v2100_v34  ;;  %v2898_v40 = vunpack.c.h.b16 %v2100_v34  ;;  %928 = vadd.xlane.f32.xlu1 %v927_v29  ;;  %925 = vadd.xlane.f32.xlu0 %v924_v31 }
 0x108   :  { %v3668_v41 = vsel %vm11516_vm9, %v3667_v33, %v3663_v39  ;;  %v719_v43 = vpop.xlane.xlu1 %718  ;;  %v716_v44 = vpop.xlane.xlu0 %715 }
 0x109   :  { %v3672_v47 = vrot.slane %v2897_v22, %v7959_v48  ;;  %v3677_v49 = vrot.slane %v2898_v40, %v7969_v56  ;;  %v2101_v50 = vpack.c.bf16 %v719_v43, %v716_v44  ;;  %v162_v40 = vld [vmem:[%s11511_s0 + $0x468] sm:$0xff] }
 0x10a   :  { %v957_v51 = vsel %vm533_vm0, %v162_v40, 0.0 }
 0x10b   :  { %v3673_v54 = vsel %vm3425_vm10, %v3672_v47, %v3668_v41  ;;  %v2899_v55 = vunpack.c.l.b16 %v2101_v50  ;;  %v2900_v57 = vunpack.c.h.b16 %v2101_v50  ;;  %934 = vadd.xlane.f32.xlu1 %v933_v45  ;;  %931 = vadd.xlane.f32.xlu0 %v930_v46  ;;  %v161_v41 = vld [vmem:[%s11511_s0 + $0x460] sm:$0xff] }
 0x10c   :  { %v3678_v58 = vsel %vm3432_vm11, %v3677_v49, %v3673_v54  ;;  %v725_v59 = vpop.xlane.xlu1 %724  ;;  %v722_v61 = vpop.xlane.xlu0 %721  ;;  %v954_v53 = vsel %vm533_vm0, %v161_v41, 0.0 }
 0x10d   :  { %v3682_v1 = vrot.slane %v2899_v55, %v7976_v3  ;;  %v3687_v5 = vrot.slane %v2900_v57, %v7979_v4  ;;  %v2102_v6 = vpack.c.bf16 %v725_v59, %v722_v61  ;;  %v163_v59 = vld [vmem:[%s11511_s0 + $0x470] sm:$0xff] }
 0x10f   :  { %v2901_v9 = vunpack.c.l.b16 %v2102_v6  ;;  %v2902_v11 = vunpack.c.h.b16 %v2102_v6  ;;  %940 = vadd.xlane.f32.xlu1 %v939_v63  ;;  %937 = vadd.xlane.f32.xlu0 %v936_v0  ;;  %v3683_v17 = vsel %vm11515_vm12, %v3682_v1, %v3678_v58  ;;  %v164_v58 = vld [vmem:[%s11511_s0 + $0x478] sm:$0xff] }
 0x110   :  { %v731_v12 = vpop.xlane.xlu1 %730  ;;  %v728_v14 = vpop.xlane.xlu0 %727  ;;  %v3688_v29 = vsel %vm3446_vm13, %v3687_v5, %v3683_v17  ;;  %v963_v8 = vsel %vm533_vm0, %v164_v58, 0.0 }
 0x111   :  { %v3692_v18 = vrot.slane %v2901_v9, %v7994_v19  ;;  %v3697_v20 = vrot.slane %v2902_v11, %v8001_v28  ;;  %v2103_v23 = vpack.c.bf16 %v731_v12, %v728_v14  ;;  %v960_v9 = vsel %vm533_vm0, %v163_v59, 0.0 }
 0x113   :  { %v2903_v31 = vunpack.c.l.b16 %v2103_v23  ;;  %v2904_v32 = vunpack.c.h.b16 %v2103_v23  ;;  %946 = vadd.xlane.f32.xlu1 %v945_v15  ;;  %943 = vadd.xlane.f32.xlu0 %v942_v16  ;;  %v3693_v39 = vsel %vm3453_vm14, %v3692_v18, %v3688_v29  ;;  %v166_v15 = vld [vmem:[%s11511_s0 + $0x488] sm:$0xff]  ;;  %v165_v16 = vld [vmem:[%s11511_s0 + $0x480] sm:$0xff] }
 0x114   :  { %v737_v33 = vpop.xlane.xlu1 %736  ;;  %v734_v34 = vpop.xlane.xlu0 %733  ;;  %v8322_v43 = vsel %vm3460_vm15, %v3697_v20, %v3693_v39  ;;  %v969_v29 = vsel %vm533_vm0, %v166_v15, 0.0 }
 0x115   :  { %v2104_v22 = vpack.c.bf16 %v737_v33, %v734_v34  ;;  %v3702_v44 = vrot.slane %v2903_v31, %v7869_v30  ;;  %v3706_v45 = vrot.slane %v2904_v32, %v7878_v38  ;;  %v966_v31 = vsel %vm533_vm0, %v165_v16, 0.0 }
 0x117   :  { %v2905_v46 = vunpack.c.l.b16 %v2104_v22  ;;  %v2906_v47 = vunpack.c.h.b16 %v2104_v22  ;;  %952 = vadd.xlane.f32.xlu1 %v951_v35  ;;  %949 = vadd.xlane.f32.xlu0 %v948_v37  ;;  %v3707_v61 = vsel %vm3362_vm1, %v3706_v45, %v3702_v44  ;;  %v168_v35 = vld [vmem:[%s11511_s0 + $0x498] sm:$0xff]  ;;  %v167_v37 = vld [vmem:[%s11511_s0 + $0x490] sm:$0xff] }
 0x118   :  { %v743_v49 = vpop.xlane.xlu1 %742  ;;  %v740_v50 = vpop.xlane.xlu0 %739 }
 0x119   :  { %v3711_v54 = vrot.slane %v2905_v46, %v7875_v36  ;;  %v3716_v55 = vrot.slane %v2906_v47, %v7887_v42  ;;  %v2105_v57 = vpack.c.bf16 %v743_v49, %v740_v50  ;;  %v975_v46 = vsel %vm533_vm0, %v168_v35, 0.0 }
 0x11a   :  { %v972_v47 = vsel %vm533_vm0, %v167_v37, 0.0 }
 0x11b   :  { %v3712_v63 = vsel %vm3369_vm2, %v3711_v54, %v3707_v61  ;;  %v2907_v0 = vunpack.c.l.b16 %v2105_v57  ;;  %v2908_v1 = vunpack.c.h.b16 %v2105_v57  ;;  %958 = vadd.xlane.f32.xlu1 %v957_v51  ;;  %955 = vadd.xlane.f32.xlu0 %v954_v53  ;;  %v170_v53 = vld [vmem:[%s11511_s0 + $0x4a8] sm:$0xff]  ;;  %v169_v54 = vld [vmem:[%s11511_s0 + $0x4a0] sm:$0xff] }
 0x11c   :  { %v3717_v5 = vsel %vm3376_vm3, %v3716_v55, %v3712_v63  ;;  %v749_v6 = vpop.xlane.xlu1 %748  ;;  %v746_v7 = vpop.xlane.xlu0 %745 }
 0x11d   :  { %v3721_v11 = vrot.slane %v2907_v0, %v7898_v52  ;;  %v3726_v12 = vrot.slane %v2908_v1, %v7907_v60  ;;  %v2106_v14 = vpack.c.bf16 %v749_v6, %v746_v7  ;;  %v981_v0 = vsel %vm533_vm0, %v170_v53, 0.0 }
 0x11e   :  { %v978_v1 = vsel %vm533_vm0, %v169_v54, 0.0 }
 0x11f   :  { %v3722_v17 = vsel %vm3383_vm4, %v3721_v11, %v3717_v5  ;;  %v2909_v18 = vunpack.c.l.b16 %v2106_v14  ;;  %v2910_v20 = vunpack.c.h.b16 %v2106_v14  ;;  %964 = vadd.xlane.f32.xlu1 %v963_v8  ;;  %961 = vadd.xlane.f32.xlu0 %v960_v9  ;;  %v172_v8 = vld [vmem:[%s11511_s0 + $0x4b8] sm:$0xff]  ;;  %v171_v9 = vld [vmem:[%s11511_s0 + $0x4b0] sm:$0xff] }
 0x120   :  { %v3727_v23 = vsel %vm11523_vm5, %v3726_v12, %v3722_v17  ;;  %v755_v24 = vpop.xlane.xlu1 %754  ;;  %v752_v26 = vpop.xlane.xlu0 %751 }
 0x121   :  { %v3731_v32 = vrot.slane %v2909_v18, %v7914_v2  ;;  %v3736_v33 = vrot.slane %v2910_v20, %v7927_v13  ;;  %v2107_v34 = vpack.c.bf16 %v755_v24, %v752_v26  ;;  %v987_v18 = vsel %vm533_vm0, %v172_v8, 0.0 }
 0x122   :  { %v984_v20 = vsel %vm533_vm0, %v171_v9, 0.0 }
 0x123   :  { %v3732_v39 = vsel %vm3397_vm6, %v3731_v32, %v3727_v23  ;;  %v2911_v22 = vunpack.c.l.b16 %v2107_v34  ;;  %v2912_v40 = vunpack.c.h.b16 %v2107_v34  ;;  %970 = vadd.xlane.f32.xlu1 %v969_v29  ;;  %967 = vadd.xlane.f32.xlu0 %v966_v31  ;;  %v174_v29 = vld [vmem:[%s11511_s0 + $0x4c8] sm:$0xff]  ;;  %v173_v31 = vld [vmem:[%s11511_s0 + $0x4c0] sm:$0xff] }
 0x124   :  { %v3737_v41 = vsel %vm3404_vm7, %v3736_v33, %v3732_v39  ;;  %v761_v44 = vpop.xlane.xlu1 %760  ;;  %v758_v45 = vpop.xlane.xlu0 %757 }
 0x125   :  { %v3741_v49 = vrot.slane %v2911_v22, %v7933_v21  ;;  %v3746_v50 = vrot.slane %v2912_v40, %v7941_v27  ;;  %v2108_v51 = vpack.c.bf16 %v761_v44, %v758_v45  ;;  %v993_v22 = vsel %vm533_vm0, %v174_v29, 0.0 }
 0x126   :  { %v990_v40 = vsel %vm533_vm0, %v173_v31, 0.0 }
 0x127   :  { %v3742_v55 = vsel %vm3411_vm8, %v3741_v49, %v3737_v41  ;;  %v2913_v57 = vunpack.c.l.b16 %v2108_v51  ;;  %v2914_v58 = vunpack.c.h.b16 %v2108_v51  ;;  %976 = vadd.xlane.f32.xlu1 %v975_v46  ;;  %973 = vadd.xlane.f32.xlu0 %v972_v47  ;;  %v176_v46 = vld [vmem:[%s11511_s0 + $0x4d8] sm:$0xff]  ;;  %v175_v47 = vld [vmem:[%s11511_s0 + $0x4d0] sm:$0xff] }
 0x128   :  { %v3747_v59 = vsel %vm11516_vm9, %v3746_v50, %v3742_v55  ;;  %v767_v61 = vpop.xlane.xlu1 %766  ;;  %v764_v63 = vpop.xlane.xlu0 %763  ;;  %v999_v55 = vsel %vm533_vm0, %v176_v46, 0.0 }
 0x129   :  { %v3751_v5 = vrot.slane %v2913_v57, %v7959_v48  ;;  %v3756_v6 = vrot.slane %v2914_v58, %v7969_v56  ;;  %v2109_v7 = vpack.c.bf16 %v767_v61, %v764_v63  ;;  %v996_v57 = vsel %vm533_vm0, %v175_v47, 0.0  ;;  %v178_v61 = vld [vmem:[%s11511_s0 + $0x4e8] sm:$0xff]  ;;  %v177_v63 = vld [vmem:[%s11511_s0 + $0x4e0] sm:$0xff] }
 0x12a   :  { %v1005_v9 = vsel %vm533_vm0, %v178_v61, 0.0 }
 0x12b   :  { %v3752_v11 = vsel %vm3425_vm10, %v3751_v5, %v3747_v59  ;;  %v2915_v12 = vunpack.c.l.b16 %v2109_v7  ;;  %v2916_v14 = vunpack.c.h.b16 %v2109_v7  ;;  %982 = vadd.xlane.f32.xlu1 %v981_v0  ;;  %979 = vadd.xlane.f32.xlu0 %v978_v1 }
 0x12c   :  { %v3757_v15 = vsel %vm3432_vm11, %v3756_v6, %v3752_v11  ;;  %v773_v16 = vpop.xlane.xlu1 %772  ;;  %v770_v17 = vpop.xlane.xlu0 %769  ;;  %v1002_v11 = vsel %vm533_vm0, %v177_v63, 0.0 }
 0x12d   :  { %v3761_v23 = vrot.slane %v2915_v12, %v7976_v3  ;;  %v3766_v24 = vrot.slane %v2916_v14, %v7979_v4  ;;  %v2110_v26 = vpack.c.bf16 %v773_v16, %v770_v17  ;;  %v180_v16 = vld [vmem:[%s11511_s0 + $0x4f8] sm:$0xff]  ;;  %v179_v17 = vld [vmem:[%s11511_s0 + $0x4f0] sm:$0xff] }
 0x12f   :  { %v3762_v32 = vsel %vm11515_vm12, %v3761_v23, %v3757_v15  ;;  %v2917_v33 = vunpack.c.l.b16 %v2110_v26  ;;  %v2918_v34 = vunpack.c.h.b16 %v2110_v26  ;;  %988 = vadd.xlane.f32.xlu1 %v987_v18  ;;  %985 = vadd.xlane.f32.xlu0 %v984_v20 }
 0x130   :  { %v3767_v35 = vsel %vm3446_vm13, %v3766_v24, %v3762_v32  ;;  %v779_v37 = vpop.xlane.xlu1 %778  ;;  %v776_v39 = vpop.xlane.xlu0 %775  ;;  %v1011_v32 = vsel %vm533_vm0, %v180_v16, 0.0 }
 0x131   :  { %v3771_v41 = vrot.slane %v2917_v33, %v7994_v19  ;;  %v3776_v44 = vrot.slane %v2918_v34, %v8001_v28  ;;  %v2111_v45 = vpack.c.bf16 %v779_v37, %v776_v39  ;;  %v1008_v33 = vsel %vm533_vm0, %v179_v17, 0.0  ;;  %v182_v39 = vld [vmem:[%s11511_s0 + $0x508] sm:$0xff] }
 0x133   :  { %v3772_v49 = vsel %vm3453_vm14, %v3771_v41, %v3767_v35  ;;  %v2919_v50 = vunpack.c.l.b16 %v2111_v45  ;;  %v2920_v51 = vunpack.c.h.b16 %v2111_v45  ;;  %994 = vadd.xlane.f32.xlu1 %v993_v22  ;;  %991 = vadd.xlane.f32.xlu0 %v990_v40  ;;  %v181_v22 = vld [vmem:[%s11511_s0 + $0x500] sm:$0xff] }
 0x134   :  { %v785_v53 = vpop.xlane.xlu1 %784  ;;  %v782_v54 = vpop.xlane.xlu0 %781  ;;  %v8413_v58 = vsel %vm3460_vm15, %v3776_v44, %v3772_v49  ;;  %v1017_v49 = vsel %vm533_vm0, %v182_v39, 0.0 }
 0x135   :  { %v2112_v59 = vpack.c.bf16 %v785_v53, %v782_v54  ;;  %v3781_v0 = vrot.slane %v2919_v50, %v7869_v30  ;;  %v3785_v1 = vrot.slane %v2920_v51, %v7878_v38  ;;  %v1014_v50 = vsel %vm533_vm0, %v181_v22, 0.0 }
 0x137   :  { %v2921_v5 = vunpack.c.l.b16 %v2112_v59  ;;  %v2922_v6 = vunpack.c.h.b16 %v2112_v59  ;;  %1000 = vadd.xlane.f32.xlu1 %v999_v55  ;;  %997 = vadd.xlane.f32.xlu0 %v996_v57  ;;  %v3786_v18 = vsel %vm3362_vm1, %v3785_v1, %v3781_v0  ;;  %v184_v55 = vld [vmem:[%s11511_s0 + $0x518] sm:$0xff]  ;;  %v183_v57 = vld [vmem:[%s11511_s0 + $0x510] sm:$0xff] }
 0x138   :  { %v791_v7 = vpop.xlane.xlu1 %790  ;;  %v788_v8 = vpop.xlane.xlu0 %787 }
 0x139   :  { %v3790_v12 = vrot.slane %v2921_v5, %v7875_v36  ;;  %v3795_v14 = vrot.slane %v2922_v6, %v7887_v42  ;;  %v2113_v15 = vpack.c.bf16 %v791_v7, %v788_v8  ;;  %v1023_v6 = vsel %vm533_vm0, %v184_v55, 0.0 }
 0x13a   :  { %v1020_v7 = vsel %vm533_vm0, %v183_v57, 0.0 }
 0x13b   :  { %v3791_v20 = vsel %vm3369_vm2, %v3790_v12, %v3786_v18  ;;  %v2923_v23 = vunpack.c.l.b16 %v2113_v15  ;;  %v2924_v24 = vunpack.c.h.b16 %v2113_v15  ;;  %1006 = vadd.xlane.f32.xlu1 %v1005_v9  ;;  %1003 = vadd.xlane.f32.xlu0 %v1002_v11  ;;  %v186_v12 = vld [vmem:[%s11511_s0 + $0x528] sm:$0xff] }
 0x13c   :  { %v3796_v26 = vsel %vm3376_vm3, %v3795_v14, %v3791_v20  ;;  %v797_v29 = vpop.xlane.xlu1 %796  ;;  %v794_v31 = vpop.xlane.xlu0 %793  ;;  %v185_v14 = vld [vmem:[%s11511_s0 + $0x520] sm:$0xff] }
 0x13d   :  { %v3800_v34 = vrot.slane %v2923_v23, %v7898_v52  ;;  %v3805_v35 = vrot.slane %v2924_v24, %v7907_v60  ;;  %v2114_v37 = vpack.c.bf16 %v797_v29, %v794_v31  ;;  %v1029_v24 = vsel %vm533_vm0, %v186_v12, 0.0 }
 0x13f   :  { %v3801_v40 = vsel %vm3383_vm4, %v3800_v34, %v3796_v26  ;;  %v2925_v41 = vunpack.c.l.b16 %v2114_v37  ;;  %v2926_v44 = vunpack.c.h.b16 %v2114_v37  ;;  %1012 = vadd.xlane.f32.xlu1 %v1011_v32  ;;  %1009 = vadd.xlane.f32.xlu0 %v1008_v33  ;;  %v1026_v26 = vsel %vm533_vm0, %v185_v14, 0.0  ;;  %v188_v33 = vld [vmem:[%s11511_s0 + $0x538] sm:$0xff]  ;;  %v187_v34 = vld [vmem:[%s11511_s0 + $0x530] sm:$0xff] }
 0x140   :  { %v3806_v45 = vsel %vm11523_vm5, %v3805_v35, %v3801_v40  ;;  %v803_v46 = vpop.xlane.xlu1 %802  ;;  %v800_v47 = vpop.xlane.xlu0 %799 }
 0x141   :  { %v3810_v51 = vrot.slane %v2925_v41, %v7914_v2  ;;  %v3815_v53 = vrot.slane %v2926_v44, %v7927_v13  ;;  %v2115_v54 = vpack.c.bf16 %v803_v46, %v800_v47  ;;  %v1035_v44 = vsel %vm533_vm0, %v188_v33, 0.0 }
 0x143   :  { %v3811_v59 = vsel %vm3397_vm6, %v3810_v51, %v3806_v45  ;;  %v2927_v61 = vunpack.c.l.b16 %v2115_v54  ;;  %v2928_v63 = vunpack.c.h.b16 %v2115_v54  ;;  %1018 = vadd.xlane.f32.xlu1 %v1017_v49  ;;  %1015 = vadd.xlane.f32.xlu0 %v1014_v50  ;;  %v1032_v45 = vsel %vm533_vm0, %v187_v34, 0.0  ;;  %v190_v50 = vld [vmem:[%s11511_s0 + $0x548] sm:$0xff]  ;;  %v189_v51 = vld [vmem:[%s11511_s0 + $0x540] sm:$0xff] }
 0x144   :  { %v3816_v0 = vsel %vm3404_vm7, %v3815_v53, %v3811_v59  ;;  %v809_v1 = vpop.xlane.xlu1 %808  ;;  %v806_v5 = vpop.xlane.xlu0 %805 }
 0x145   :  { %v3820_v8 = vrot.slane %v2927_v61, %v7933_v21  ;;  %v3825_v9 = vrot.slane %v2928_v63, %v7941_v27  ;;  %v2116_v11 = vpack.c.bf16 %v809_v1, %v806_v5  ;;  %v1041_v63 = vsel %vm533_vm0, %v190_v50, 0.0 }
 0x147   :  { %v3821_v15 = vsel %vm3411_vm8, %v3820_v8, %v3816_v0  ;;  %v2929_v16 = vunpack.c.l.b16 %v2116_v11  ;;  %v2930_v17 = vunpack.c.h.b16 %v2116_v11  ;;  %1024 = vadd.xlane.f32.xlu1 %v1023_v6  ;;  %1021 = vadd.xlane.f32.xlu0 %v1020_v7  ;;  %v1038_v0 = vsel %vm533_vm0, %v189_v51, 0.0  ;;  %v192_v7 = vld [vmem:[%s11511_s0 + $0x558] sm:$0xff]  ;;  %v191_v8 = vld [vmem:[%s11511_s0 + $0x550] sm:$0xff] }
 0x148   :  { %v3826_v18 = vsel %vm11516_vm9, %v3825_v9, %v3821_v15  ;;  %v815_v20 = vpop.xlane.xlu1 %814  ;;  %v812_v23 = vpop.xlane.xlu0 %811  ;;  %v1047_v15 = vsel %vm533_vm0, %v192_v7, 0.0 }
 0x149   :  { %v3830_v29 = vrot.slane %v2929_v16, %v7959_v48  ;;  %v3835_v31 = vrot.slane %v2930_v17, %v7969_v56  ;;  %v2117_v32 = vpack.c.bf16 %v815_v20, %v812_v23  ;;  %v1044_v16 = vsel %vm533_vm0, %v191_v8, 0.0  ;;  %v194_v20 = vld [vmem:[%s11511_s0 + $0x568] sm:$0xff]  ;;  %v193_v23 = vld [vmem:[%s11511_s0 + $0x560] sm:$0xff] }
 0x14b   :  { %v3831_v35 = vsel %vm3425_vm10, %v3830_v29, %v3826_v18  ;;  %v2931_v37 = vunpack.c.l.b16 %v2117_v32  ;;  %v2932_v39 = vunpack.c.h.b16 %v2117_v32  ;;  %1030 = vadd.xlane.f32.xlu1 %v1029_v24  ;;  %1027 = vadd.xlane.f32.xlu0 %v1026_v26 }
 0x14c   :  { %v3836_v22 = vsel %vm3432_vm11, %v3835_v31, %v3831_v35  ;;  %v821_v40 = vpop.xlane.xlu1 %820  ;;  %v818_v41 = vpop.xlane.xlu0 %817  ;;  %v1053_v35 = vsel %vm533_vm0, %v194_v20, 0.0 }
 0x14d   :  { %v3840_v46 = vrot.slane %v2931_v37, %v7976_v3  ;;  %v3845_v47 = vrot.slane %v2932_v39, %v7979_v4  ;;  %v2118_v49 = vpack.c.bf16 %v821_v40, %v818_v41  ;;  %v1050_v37 = vsel %vm533_vm0, %v193_v23, 0.0  ;;  %v196_v41 = vld [vmem:[%s11511_s0 + $0x578] sm:$0xff] }
 0x14f   :  { %v3841_v53 = vsel %vm11515_vm12, %v3840_v46, %v3836_v22  ;;  %v2933_v54 = vunpack.c.l.b16 %v2118_v49  ;;  %v2934_v55 = vunpack.c.h.b16 %v2118_v49  ;;  %1036 = vadd.xlane.f32.xlu1 %v1035_v44  ;;  %1033 = vadd.xlane.f32.xlu0 %v1032_v45  ;;  %v195_v44 = vld [vmem:[%s11511_s0 + $0x570] sm:$0xff] }
 0x150   :  { %v3846_v57 = vsel %vm3446_vm13, %v3845_v47, %v3841_v53  ;;  %v827_v59 = vpop.xlane.xlu1 %826  ;;  %v824_v61 = vpop.xlane.xlu0 %823 }
 0x151   :  { %v3850_v1 = vrot.slane %v2933_v54, %v7994_v19  ;;  %v3855_v5 = vrot.slane %v2934_v55, %v8001_v28  ;;  %v2119_v6 = vpack.c.bf16 %v827_v59, %v824_v61  ;;  %v1059_v54 = vsel %vm533_vm0, %v196_v41, 0.0 }
 0x152   :  { %v1056_v55 = vsel %vm533_vm0, %v195_v44, 0.0 }
 0x153   :  { %v2935_v9 = vunpack.c.l.b16 %v2119_v6  ;;  %v2936_v11 = vunpack.c.h.b16 %v2119_v6  ;;  %1042 = vadd.xlane.f32.xlu1 %v1041_v63  ;;  %1039 = vadd.xlane.f32.xlu0 %v1038_v0  ;;  %v3851_v17 = vsel %vm3453_vm14, %v3850_v1, %v3846_v57  ;;  %v198_v63 = vld [vmem:[%s11511_s0 + $0x588] sm:$0xff]  ;;  %v197_v0 = vld [vmem:[%s11511_s0 + $0x580] sm:$0xff] }
 0x154   :  { %v833_v12 = vpop.xlane.xlu1 %832  ;;  %v830_v14 = vpop.xlane.xlu0 %829  ;;  %v8516_v24 = vsel %vm3460_vm15, %v3855_v5, %v3851_v17  ;;  %v200_v17 = vld [vmem:[%s11511_s0 + $0x598] sm:$0xff] }
 0x155   :  { %v2120_v18 = vpack.c.bf16 %v833_v12, %v830_v14  ;;  %v3860_v26 = vrot.slane %v2935_v9, %v7869_v30  ;;  %v3864_v29 = vrot.slane %v2936_v11, %v7878_v38  ;;  %v1065_v11 = vsel %vm533_vm0, %v198_v63, 0.0 }
 0x156   :  { %v1062_v12 = vsel %vm533_vm0, %v197_v0, 0.0 }
 0x157   :  { %v2937_v31 = vunpack.c.l.b16 %v2120_v18  ;;  %v2938_v32 = vunpack.c.h.b16 %v2120_v18  ;;  %1048 = vadd.xlane.f32.xlu1 %v1047_v15  ;;  %1045 = vadd.xlane.f32.xlu0 %v1044_v16  ;;  %v3865_v45 = vsel %vm3362_vm1, %v3864_v29, %v3860_v26  ;;  %v199_v18 = vld [vmem:[%s11511_s0 + $0x590] sm:$0xff] }
 0x158   :  { %v839_v33 = vpop.xlane.xlu1 %838  ;;  %v836_v34 = vpop.xlane.xlu0 %835 }
 0x159   :  { %v3869_v39 = vrot.slane %v2937_v31, %v7875_v36  ;;  %v3874_v22 = vrot.slane %v2938_v32, %v7887_v42  ;;  %v2121_v40 = vpack.c.bf16 %v839_v33, %v836_v34  ;;  %v1071_v33 = vsel %vm533_vm0, %v200_v17, 0.0 }
 0x15a   :  { %v1068_v34 = vsel %vm533_vm0, %v199_v18, 0.0 }
 0x15b   :  { %v3870_v46 = vsel %vm3369_vm2, %v3869_v39, %v3865_v45  ;;  %v2939_v47 = vunpack.c.l.b16 %v2121_v40  ;;  %v2940_v49 = vunpack.c.h.b16 %v2121_v40  ;;  %1054 = vadd.xlane.f32.xlu1 %v1053_v35  ;;  %1051 = vadd.xlane.f32.xlu0 %v1050_v37  ;;  %v201_v40 = vld [vmem:[%s11511_s0 + $0x5a0] sm:$0xff] }
 0x15c   :  { %v3875_v50 = vsel %vm3376_vm3, %v3874_v22, %v3870_v46  ;;  %v845_v51 = vpop.xlane.xlu1 %844  ;;  %v842_v53 = vpop.xlane.xlu0 %841  ;;  %v202_v22 = vld [vmem:[%s11511_s0 + $0x5a8] sm:$0xff] }
 0x15d   :  { %v3879_v57 = vrot.slane %v2939_v47, %v7898_v52  ;;  %v3884_v59 = vrot.slane %v2940_v49, %v7907_v60  ;;  %v2122_v61 = vpack.c.bf16 %v845_v51, %v842_v53  ;;  %v1074_v51 = vsel %vm533_vm0, %v201_v40, 0.0 }
 0x15f   :  { %v3880_v1 = vsel %vm3383_vm4, %v3879_v57, %v3875_v50  ;;  %v2941_v5 = vunpack.c.l.b16 %v2122_v61  ;;  %v2942_v6 = vunpack.c.h.b16 %v2122_v61  ;;  %1060 = vadd.xlane.f32.xlu1 %v1059_v54  ;;  %1057 = vadd.xlane.f32.xlu0 %v1056_v55  ;;  %v1077_v50 = vsel %vm533_vm0, %v202_v22, 0.0  ;;  %v204_v57 = vld [vmem:[%s11511_s0 + $0x5b8] sm:$0xff] }
 0x160   :  { %v3885_v7 = vsel %vm11523_vm5, %v3884_v59, %v3880_v1  ;;  %v851_v8 = vpop.xlane.xlu1 %850  ;;  %v848_v9 = vpop.xlane.xlu0 %847  ;;  %v203_v59 = vld [vmem:[%s11511_s0 + $0x5b0] sm:$0xff] }
 0x161   :  { %v3889_v14 = vrot.slane %v2941_v5, %v7914_v2  ;;  %v3894_v15 = vrot.slane %v2942_v6, %v7927_v13  ;;  %v2123_v16 = vpack.c.bf16 %v851_v8, %v848_v9  ;;  %v1080_v8 = vsel %vm533_vm0, %v203_v59, 0.0 }
 0x163   :  { %v3890_v20 = vsel %vm3397_vm6, %v3889_v14, %v3885_v7  ;;  %v2943_v23 = vunpack.c.l.b16 %v2123_v16  ;;  %v2944_v26 = vunpack.c.h.b16 %v2123_v16  ;;  %1066 = vadd.xlane.f32.xlu1 %v1065_v11  ;;  %1063 = vadd.xlane.f32.xlu0 %v1062_v12  ;;  %v1083_v7 = vsel %vm533_vm0, %v204_v57, 0.0  ;;  %v206_v14 = vld [vmem:[%s11511_s0 + $0x5c8] sm:$0xff] }
 0x164   :  { %v3895_v29 = vsel %vm3404_vm7, %v3894_v15, %v3890_v20  ;;  %v857_v31 = vpop.xlane.xlu1 %856  ;;  %v854_v32 = vpop.xlane.xlu0 %853  ;;  %v205_v15 = vld [vmem:[%s11511_s0 + $0x5c0] sm:$0xff] }
 0x165   :  { %v3899_v35 = vrot.slane %v2943_v23, %v7933_v21  ;;  %v3904_v37 = vrot.slane %v2944_v26, %v7941_v27  ;;  %v2124_v39 = vpack.c.bf16 %v857_v31, %v854_v32  ;;  %v1086_v31 = vsel %vm533_vm0, %v205_v15, 0.0 }
 0x167   :  { %v3900_v41 = vsel %vm3411_vm8, %v3899_v35, %v3895_v29  ;;  %v2945_v44 = vunpack.c.l.b16 %v2124_v39  ;;  %v2946_v45 = vunpack.c.h.b16 %v2124_v39  ;;  %1072 = vadd.xlane.f32.xlu1 %v1071_v33  ;;  %1069 = vadd.xlane.f32.xlu0 %v1068_v34  ;;  %v1089_v29 = vsel %vm533_vm0, %v206_v14, 0.0  ;;  %v208_v35 = vld [vmem:[%s11511_s0 + $0x5d8] sm:$0xff] }
 0x168   :  { %v3905_v46 = vsel %vm11516_vm9, %v3904_v37, %v3900_v41  ;;  %v863_v47 = vpop.xlane.xlu1 %862  ;;  %v860_v49 = vpop.xlane.xlu0 %859  ;;  %v207_v37 = vld [vmem:[%s11511_s0 + $0x5d0] sm:$0xff] }
 0x169   :  { %v3909_v53 = vrot.slane %v2945_v44, %v7959_v48  ;;  %v3914_v54 = vrot.slane %v2946_v45, %v7969_v56  ;;  %v2125_v55 = vpack.c.bf16 %v863_v47, %v860_v49  ;;  %v1095_v45 = vsel %vm533_vm0, %v208_v35, 0.0 }
 0x16b   :  { %v3910_v61 = vsel %vm3425_vm10, %v3909_v53, %v3905_v46  ;;  %v2947_v63 = vunpack.c.l.b16 %v2125_v55  ;;  %v2948_v0 = vunpack.c.h.b16 %v2125_v55  ;;  %1078 = vadd.xlane.f32.xlu1 %v1077_v50  ;;  %1075 = vadd.xlane.f32.xlu0 %v1074_v51  ;;  %v1092_v46 = vsel %vm533_vm0, %v207_v37, 0.0  ;;  %v210_v50 = vld [vmem:[%s11511_s0 + $0x5e8] sm:$0xff]  ;;  %v209_v51 = vld [vmem:[%s11511_s0 + $0x5e0] sm:$0xff] }
 0x16c   :  { %v3915_v1 = vsel %vm3432_vm11, %v3914_v54, %v3910_v61  ;;  %v869_v5 = vpop.xlane.xlu1 %868  ;;  %v866_v6 = vpop.xlane.xlu0 %865 }
 0x16d   :  { %v3919_v9 = vrot.slane %v2947_v63, %v7976_v3  ;;  %v3924_v11 = vrot.slane %v2948_v0, %v7979_v4  ;;  %v2126_v12 = vpack.c.bf16 %v869_v5, %v866_v6  ;;  %v1101_v63 = vsel %vm533_vm0, %v210_v50, 0.0  ;;  %v215_v50 = vld [vmem:[%s11511_s0 + $0x610] sm:$0xff] }
 0x16e   :  { %v1098_v0 = vsel %vm533_vm0, %v209_v51, 0.0 }
 0x16f   :  { %v3920_v16 = vsel %vm11515_vm12, %v3919_v9, %v3915_v1  ;;  %v2949_v17 = vunpack.c.l.b16 %v2126_v12  ;;  %v2950_v18 = vunpack.c.h.b16 %v2126_v12  ;;  %1084 = vadd.xlane.f32.xlu1 %v1083_v7  ;;  %1081 = vadd.xlane.f32.xlu0 %v1080_v8  ;;  %v212_v7 = vld [vmem:[%s11511_s0 + $0x5f8] sm:$0xff]  ;;  %v211_v8 = vld [vmem:[%s11511_s0 + $0x5f0] sm:$0xff] }
 0x170   :  { %v3925_v20 = vsel %vm3446_vm13, %v3924_v11, %v3920_v16  ;;  %v875_v23 = vpop.xlane.xlu1 %874  ;;  %v872_v26 = vpop.xlane.xlu0 %871 }
 0x171   :  { %v3929_v32 = vrot.slane %v2949_v17, %v7994_v19  ;;  %v3934_v33 = vrot.slane %v2950_v18, %v8001_v28  ;;  %v2127_v34 = vpack.c.bf16 %v875_v23, %v872_v26  ;;  %v1107_v18 = vsel %vm533_vm0, %v212_v7, 0.0  ;;  %v217_v7 = vld [vmem:[%s11511_s0 + $0x620] sm:$0xff] }
 0x173   :  { %v3930_v39 = vsel %vm3453_vm14, %v3929_v32, %v3925_v20  ;;  %v2951_v22 = vunpack.c.l.b16 %v2127_v34  ;;  %v2952_v40 = vunpack.c.h.b16 %v2127_v34  ;;  %1090 = vadd.xlane.f32.xlu1 %v1089_v29  ;;  %1087 = vadd.xlane.f32.xlu0 %v1086_v31  ;;  %v1104_v20 = vsel %vm533_vm0, %v211_v8, 0.0  ;;  %v214_v31 = vld [vmem:[%s11511_s0 + $0x608] sm:$0xff]  ;;  %v213_v32 = vld [vmem:[%s11511_s0 + $0x600] sm:$0xff] }
 0x174   :  { %v881_v41 = vpop.xlane.xlu1 %880  ;;  %v878_v44 = vpop.xlane.xlu0 %877  ;;  %v8607_v47 = vsel %vm3460_vm15, %v3934_v33, %v3930_v39 }
 0x175   :  { %v2128_v49 = vpack.c.bf16 %v881_v41, %v878_v44  ;;  %v3939_v53 = vrot.slane %v2951_v22, %v7869_v30  ;;  %v3943_v54 = vrot.slane %v2952_v40, %v7878_v38  ;;  %v1113_v40 = vsel %vm533_vm0, %v214_v31, 0.0 }
 0x176   :  { %v1110_v41 = vsel %vm533_vm0, %v213_v32, 0.0 }
 0x177   :  { %v2953_v55 = vunpack.c.l.b16 %v2128_v49  ;;  %v2954_v57 = vunpack.c.h.b16 %v2128_v49  ;;  %1096 = vadd.xlane.f32.xlu1 %v1095_v45  ;;  %1093 = vadd.xlane.f32.xlu0 %v1092_v46  ;;  %v3944_v9 = vsel %vm3362_vm1, %v3943_v54, %v3939_v53  ;;  %v216_v49 = vld [vmem:[%s11511_s0 + $0x618] sm:$0xff] }
 0x178   :  { %v887_v59 = vpop.xlane.xlu1 %886  ;;  %v884_v61 = vpop.xlane.xlu0 %883 }
 0x179   :  { %v3948_v1 = vrot.slane %v2953_v55, %v7875_v36  ;;  %v3953_v5 = vrot.slane %v2954_v57, %v7887_v42  ;;  %v2129_v6 = vpack.c.bf16 %v887_v59, %v884_v61  ;;  %v1119_v61 = vsel %vm533_vm0, %v216_v49, 0.0 }
 0x17b   :  { %v3949_v11 = vsel %vm3369_vm2, %v3948_v1, %v3944_v9  ;;  %v2955_v12 = vunpack.c.l.b16 %v2129_v6  ;;  %v2956_v14 = vunpack.c.h.b16 %v2129_v6  ;;  %1102 = vadd.xlane.f32.xlu1 %v1101_v63  ;;  %1099 = vadd.xlane.f32.xlu0 %v1098_v0  ;;  %v1116_v63 = vsel %vm533_vm0, %v215_v50, 0.0  ;;  %v218_v6 = vld [vmem:[%s11511_s0 + $0x628] sm:$0xff] }
 0x17c   :  { %v3954_v15 = vsel %vm3376_vm3, %v3953_v5, %v3949_v11  ;;  %v893_v16 = vpop.xlane.xlu1 %892  ;;  %v890_v17 = vpop.xlane.xlu0 %889 }
 0x17d   :  { %v3958_v23 = vrot.slane %v2955_v12, %v7898_v52  ;;  %v3963_v26 = vrot.slane %v2956_v14, %v7907_v60  ;;  %v2130_v29 = vpack.c.bf16 %v893_v16, %v890_v17  ;;  %v1125_v16 = vsel %vm533_vm0, %v218_v6, 0.0 }
 0x17e   :  { %v1122_v17 = vsel %vm533_vm0, %v217_v7, 0.0 }
 0x17f   :  { %v3959_v33 = vsel %vm3383_vm4, %v3958_v23, %v3954_v15  ;;  %v2957_v34 = vunpack.c.l.b16 %v2130_v29  ;;  %v2958_v35 = vunpack.c.h.b16 %v2130_v29  ;;  %1108 = vadd.xlane.f32.xlu1 %v1107_v18  ;;  %1105 = vadd.xlane.f32.xlu0 %v1104_v20  ;;  %v219_v29 = vld [vmem:[%s11511_s0 + $0x630] sm:$0xff] }
 0x180   :  { %v3964_v37 = vsel %vm11523_vm5, %v3963_v26, %v3959_v33  ;;  %v899_v39 = vpop.xlane.xlu1 %898  ;;  %v896_v22 = vpop.xlane.xlu0 %895  ;;  %v220_v26 = vld [vmem:[%s11511_s0 + $0x638] sm:$0xff] }
 0x181   :  { %v3968_v44 = vrot.slane %v2957_v34, %v7914_v2  ;;  %v3973_v45 = vrot.slane %v2958_v35, %v7927_v13  ;;  %v2131_v46 = vpack.c.bf16 %v899_v39, %v896_v22  ;;  %v1131_v39 = vsel %vm533_vm0, %v220_v26, 0.0 }
 0x182   :  { %v1128_v22 = vsel %vm533_vm0, %v219_v29, 0.0 }
 0x183   :  { %v3969_v51 = vsel %vm3397_vm6, %v3968_v44, %v3964_v37  ;;  %v2959_v53 = vunpack.c.l.b16 %v2131_v46  ;;  %v2960_v54 = vunpack.c.h.b16 %v2131_v46  ;;  %1114 = vadd.xlane.f32.xlu1 %v1113_v40  ;;  %1111 = vadd.xlane.f32.xlu0 %v1110_v41  ;;  %v221_v46 = vld [vmem:[%s11511_s0 + $0x640] sm:$0xff] }
 0x184   :  { %v3974_v55 = vsel %vm3404_vm7, %v3973_v45, %v3969_v51  ;;  %v905_v57 = vpop.xlane.xlu1 %904  ;;  %v902_v59 = vpop.xlane.xlu0 %901  ;;  %v222_v45 = vld [vmem:[%s11511_s0 + $0x648] sm:$0xff] }
 0x185   :  { %v3978_v0 = vrot.slane %v2959_v53, %v7933_v21  ;;  %v3983_v1 = vrot.slane %v2960_v54, %v7941_v27  ;;  %v2132_v5 = vpack.c.bf16 %v905_v57, %v902_v59  ;;  %v1137_v57 = vsel %vm533_vm0, %v222_v45, 0.0 }
 0x186   :  { %v1134_v59 = vsel %vm533_vm0, %v221_v46, 0.0 }
 0x187   :  { %v3979_v8 = vsel %vm3411_vm8, %v3978_v0, %v3974_v55  ;;  %v2961_v9 = vunpack.c.l.b16 %v2132_v5  ;;  %v2962_v11 = vunpack.c.h.b16 %v2132_v5  ;;  %1120 = vadd.xlane.f32.xlu1 %v1119_v61  ;;  %1117 = vadd.xlane.f32.xlu0 %v1116_v63  ;;  %v223_v5 = vld [vmem:[%s11511_s0 + $0x650] sm:$0xff] }
 0x188   :  { %v3984_v12 = vsel %vm11516_vm9, %v3983_v1, %v3979_v8  ;;  %v911_v14 = vpop.xlane.xlu1 %910  ;;  %v908_v15 = vpop.xlane.xlu0 %907  ;;  %v224_v1 = vld [vmem:[%s11511_s0 + $0x658] sm:$0xff] }
 0x189   :  { %v3988_v18 = vrot.slane %v2961_v9, %v7959_v48  ;;  %v3993_v20 = vrot.slane %v2962_v11, %v7969_v56  ;;  %v2133_v23 = vpack.c.bf16 %v911_v14, %v908_v15  ;;  %v1143_v11 = vsel %vm533_vm0, %v224_v1, 0.0 }
 0x18b   :  { %v3989_v31 = vsel %vm3425_vm10, %v3988_v18, %v3984_v12  ;;  %v2963_v32 = vunpack.c.l.b16 %v2133_v23  ;;  %v2964_v33 = vunpack.c.h.b16 %v2133_v23  ;;  %1126 = vadd.xlane.f32.xlu1 %v1125_v16  ;;  %1123 = vadd.xlane.f32.xlu0 %v1122_v17  ;;  %v1140_v12 = vsel %vm533_vm0, %v223_v5, 0.0  ;;  %v226_v16 = vld [vmem:[%s11511_s0 + $0x668] sm:$0xff]  ;;  %v225_v17 = vld [vmem:[%s11511_s0 + $0x660] sm:$0xff] }
 0x18c   :  { %v3994_v34 = vsel %vm3432_vm11, %v3993_v20, %v3989_v31  ;;  %v917_v35 = vpop.xlane.xlu1 %916  ;;  %v914_v37 = vpop.xlane.xlu0 %913 }
 0x18d   :  { %v3998_v40 = vrot.slane %v2963_v32, %v7976_v3  ;;  %v4003_v41 = vrot.slane %v2964_v33, %v7979_v4  ;;  %v2134_v44 = vpack.c.bf16 %v917_v35, %v914_v37  ;;  %v1149_v33 = vsel %vm533_vm0, %v226_v16, 0.0  ;;  %v232_v16 = vld [vmem:[%s11511_s0 + $0x698] sm:$0xff] }
 0x18f   :  { %v3999_v49 = vsel %vm11515_vm12, %v3998_v40, %v3994_v34  ;;  %v2965_v50 = vunpack.c.l.b16 %v2134_v44  ;;  %v2966_v51 = vunpack.c.h.b16 %v2134_v44  ;;  %1132 = vadd.xlane.f32.xlu1 %v1131_v39  ;;  %1129 = vadd.xlane.f32.xlu0 %v1128_v22  ;;  %v1146_v34 = vsel %vm533_vm0, %v225_v17, 0.0  ;;  %v228_v22 = vld [vmem:[%s11511_s0 + $0x678] sm:$0xff]  ;;  %v227_v40 = vld [vmem:[%s11511_s0 + $0x670] sm:$0xff] }
 0x190   :  { %v4004_v53 = vsel %vm3446_vm13, %v4003_v41, %v3999_v49  ;;  %v923_v54 = vpop.xlane.xlu1 %922  ;;  %v920_v55 = vpop.xlane.xlu0 %919  ;;  %v231_v17 = vld [vmem:[%s11511_s0 + $0x690] sm:$0xff] }
 0x191   :  { %v4008_v61 = vrot.slane %v2965_v50, %v7994_v19  ;;  %v4013_v63 = vrot.slane %v2966_v51, %v8001_v28  ;;  %v2135_v0 = vpack.c.bf16 %v923_v54, %v920_v55  ;;  %v1152_v54 = vsel %vm533_vm0, %v227_v40, 0.0  ;;  %v233_v40 = vld [vmem:[%s11511_s0 + $0x6a0] sm:$0xff] }
 0x193   :  { %v2967_v6 = vunpack.c.l.b16 %v2135_v0  ;;  %v2968_v7 = vunpack.c.h.b16 %v2135_v0  ;;  %1138 = vadd.xlane.f32.xlu1 %v1137_v57  ;;  %1135 = vadd.xlane.f32.xlu0 %v1134_v59  ;;  %v4009_v14 = vsel %vm3453_vm14, %v4008_v61, %v4004_v53  ;;  %v1155_v53 = vsel %vm533_vm0, %v228_v22, 0.0  ;;  %v230_v61 = vld [vmem:[%s11511_s0 + $0x688] sm:$0xff] }
 0x194   :  { %v929_v8 = vpop.xlane.xlu1 %928  ;;  %v926_v9 = vpop.xlane.xlu0 %925  ;;  %v8710_v18 = vsel %vm3460_vm15, %v4013_v63, %v4009_v14  ;;  %v229_v63 = vld [vmem:[%s11511_s0 + $0x680] sm:$0xff]  ;;  %v234_v22 = vld [vmem:[%s11511_s0 + $0x6a8] sm:$0xff] }
 0x195   :  { %v2136_v15 = vpack.c.bf16 %v929_v8, %v926_v9  ;;  %v4018_v20 = vrot.slane %v2967_v6, %v7869_v30  ;;  %v4022_v23 = vrot.slane %v2968_v7, %v7878_v38  ;;  %v1161_v9 = vsel %vm533_vm0, %v230_v61, 0.0  ;;  %v235_v61 = vld [vmem:[%s11511_s0 + $0x6b0] sm:$0xff] }
 0x197   :  { %v2969_v26 = vunpack.c.l.b16 %v2136_v15  ;;  %v2970_v29 = vunpack.c.h.b16 %v2136_v15  ;;  %1144 = vadd.xlane.f32.xlu1 %v1143_v11  ;;  %1141 = vadd.xlane.f32.xlu0 %v1140_v12  ;;  %v4023_v41 = vsel %vm3362_vm1, %v4022_v23, %v4018_v20  ;;  %v1158_v11 = vsel %vm533_vm0, %v229_v63, 0.0 }
 0x198   :  { %v935_v31 = vpop.xlane.xlu1 %934  ;;  %v932_v32 = vpop.xlane.xlu0 %931 }
 0x199   :  { %v4027_v35 = vrot.slane %v2969_v26, %v7875_v36  ;;  %v4032_v37 = vrot.slane %v2970_v29, %v7887_v42  ;;  %v2137_v39 = vpack.c.bf16 %v935_v31, %v932_v32 }
 0x19b   :  { %v4028_v44 = vsel %vm3369_vm2, %v4027_v35, %v4023_v41  ;;  %v2971_v45 = vunpack.c.l.b16 %v2137_v39  ;;  %v2972_v46 = vunpack.c.h.b16 %v2137_v39  ;;  %1150 = vadd.xlane.f32.xlu1 %v1149_v33  ;;  %1147 = vadd.xlane.f32.xlu0 %v1146_v34  ;;  %v1167_v33 = vsel %vm533_vm0, %v232_v16, 0.0  ;;  %v237_v16 = vld [vmem:[%s11511_s0 + $0x6c0] sm:$0xff] }
 0x19c   :  { %v4033_v49 = vsel %vm3376_vm3, %v4032_v37, %v4028_v44  ;;  %v941_v50 = vpop.xlane.xlu1 %940  ;;  %v938_v51 = vpop.xlane.xlu0 %937  ;;  %v1164_v34 = vsel %vm533_vm0, %v231_v17, 0.0 }
 0x19d   :  { %v4037_v55 = vrot.slane %v2971_v45, %v7898_v52  ;;  %v4042_v57 = vrot.slane %v2972_v46, %v7907_v60  ;;  %v2138_v59 = vpack.c.bf16 %v941_v50, %v938_v51  ;;  %v1173_v51 = vsel %vm533_vm0, %v234_v22, 0.0  ;;  %v239_v22 = vld [vmem:[%s11511_s0 + $0x6d0] sm:$0xff] }
 0x19f   :  { %v4038_v0 = vsel %vm3383_vm4, %v4037_v55, %v4033_v49  ;;  %v2973_v1 = vunpack.c.l.b16 %v2138_v59  ;;  %v2974_v5 = vunpack.c.h.b16 %v2138_v59  ;;  %1156 = vadd.xlane.f32.xlu1 %v1155_v53  ;;  %1153 = vadd.xlane.f32.xlu0 %v1152_v54  ;;  %v1170_v53 = vsel %vm533_vm0, %v233_v40, 0.0  ;;  %v236_v59 = vld [vmem:[%s11511_s0 + $0x6b8] sm:$0xff] }
 0x1a0   :  { %v4043_v6 = vsel %vm11523_vm5, %v4042_v57, %v4038_v0  ;;  %v947_v7 = vpop.xlane.xlu1 %946  ;;  %v944_v8 = vpop.xlane.xlu0 %943 }
 0x1a1   :  { %v4047_v12 = vrot.slane %v2973_v1, %v7914_v2  ;;  %v4052_v14 = vrot.slane %v2974_v5, %v7927_v13  ;;  %v2139_v15 = vpack.c.bf16 %v947_v7, %v944_v8  ;;  %v1179_v8 = vsel %vm533_vm0, %v236_v59, 0.0 }
 0x1a3   :  { %v4048_v20 = vsel %vm3397_vm6, %v4047_v12, %v4043_v6  ;;  %v2975_v23 = vunpack.c.l.b16 %v2139_v15  ;;  %v2976_v26 = vunpack.c.h.b16 %v2139_v15  ;;  %1162 = vadd.xlane.f32.xlu1 %v1161_v9  ;;  %1159 = vadd.xlane.f32.xlu0 %v1158_v11  ;;  %v1176_v9 = vsel %vm533_vm0, %v235_v61, 0.0  ;;  %v238_v15 = vld [vmem:[%s11511_s0 + $0x6c8] sm:$0xff] }
 0x1a4   :  { %v4053_v29 = vsel %vm3404_vm7, %v4052_v14, %v4048_v20  ;;  %v953_v31 = vpop.xlane.xlu1 %952  ;;  %v950_v32 = vpop.xlane.xlu0 %949 }
 0x1a5   :  { %v4057_v35 = vrot.slane %v2975_v23, %v7933_v21  ;;  %v4062_v37 = vrot.slane %v2976_v26, %v7941_v27  ;;  %v2140_v39 = vpack.c.bf16 %v953_v31, %v950_v32  ;;  %v1185_v32 = vsel %vm533_vm0, %v238_v15, 0.0 }
 0x1a7   :  { %v4058_v41 = vsel %vm3411_vm8, %v4057_v35, %v4053_v29  ;;  %v2977_v44 = vunpack.c.l.b16 %v2140_v39  ;;  %v2978_v45 = vunpack.c.h.b16 %v2140_v39  ;;  %1168 = vadd.xlane.f32.xlu1 %v1167_v33  ;;  %1165 = vadd.xlane.f32.xlu0 %v1164_v34  ;;  %v1182_v33 = vsel %vm533_vm0, %v237_v16, 0.0  ;;  %v240_v39 = vld [vmem:[%s11511_s0 + $0x6d8] sm:$0xff] }
 0x1a8   :  { %v4063_v46 = vsel %vm11516_vm9, %v4062_v37, %v4058_v41  ;;  %v959_v49 = vpop.xlane.xlu1 %958  ;;  %v956_v50 = vpop.xlane.xlu0 %955 }
 0x1a9   :  { %v4067_v54 = vrot.slane %v2977_v44, %v7959_v48  ;;  %v4072_v55 = vrot.slane %v2978_v45, %v7969_v56  ;;  %v2141_v57 = vpack.c.bf16 %v959_v49, %v956_v50  ;;  %v1191_v49 = vsel %vm533_vm0, %v240_v39, 0.0 }
 0x1aa   :  { %v1188_v50 = vsel %vm533_vm0, %v239_v22, 0.0 }
 0x1ab   :  { %v4068_v63 = vsel %vm3425_vm10, %v4067_v54, %v4063_v46  ;;  %v2979_v0 = vunpack.c.l.b16 %v2141_v57  ;;  %v2980_v1 = vunpack.c.h.b16 %v2141_v57  ;;  %1174 = vadd.xlane.f32.xlu1 %v1173_v51  ;;  %1171 = vadd.xlane.f32.xlu0 %v1170_v53  ;;  %v242_v54 = vld [vmem:[%s11511_s0 + $0x6e8] sm:$0xff] }
 0x1ac   :  { %v4073_v5 = vsel %vm3432_vm11, %v4072_v55, %v4068_v63  ;;  %v965_v6 = vpop.xlane.xlu1 %964  ;;  %v962_v7 = vpop.xlane.xlu0 %961  ;;  %v241_v55 = vld [vmem:[%s11511_s0 + $0x6e0] sm:$0xff] }
 0x1ad   :  { %v4077_v11 = vrot.slane %v2979_v0, %v7976_v3  ;;  %v4082_v12 = vrot.slane %v2980_v1, %v7979_v4  ;;  %v2142_v14 = vpack.c.bf16 %v965_v6, %v962_v7  ;;  %v1194_v6 = vsel %vm533_vm0, %v241_v55, 0.0  ;;  %v248_v55 = vld [vmem:[%s11511_s0 + $0x718] sm:$0xff] }
 0x1af   :  { %v4078_v17 = vsel %vm11515_vm12, %v4077_v11, %v4073_v5  ;;  %v2981_v20 = vunpack.c.l.b16 %v2142_v14  ;;  %v2982_v23 = vunpack.c.h.b16 %v2142_v14  ;;  %1180 = vadd.xlane.f32.xlu1 %v1179_v8  ;;  %1177 = vadd.xlane.f32.xlu0 %v1176_v9  ;;  %v1197_v5 = vsel %vm533_vm0, %v242_v54, 0.0  ;;  %v244_v11 = vld [vmem:[%s11511_s0 + $0x6f8] sm:$0xff] }
 0x1b0   :  { %v4083_v26 = vsel %vm3446_vm13, %v4082_v12, %v4078_v17  ;;  %v971_v29 = vpop.xlane.xlu1 %970  ;;  %v968_v31 = vpop.xlane.xlu0 %967  ;;  %v243_v12 = vld [vmem:[%s11511_s0 + $0x6f0] sm:$0xff] }
 0x1b1   :  { %v4087_v34 = vrot.slane %v2981_v20, %v7994_v19  ;;  %v4092_v35 = vrot.slane %v2982_v23, %v8001_v28  ;;  %v2143_v37 = vpack.c.bf16 %v971_v29, %v968_v31  ;;  %v1203_v29 = vsel %vm533_vm0, %v244_v11, 0.0 }
 0x1b2   :  { %v1200_v31 = vsel %vm533_vm0, %v243_v12, 0.0  ;;  %v250_v12 = vld [vmem:[%s11511_s0 + $0x728] sm:$0xff] }
 0x1b3   :  { %v4088_v40 = vsel %vm3453_vm14, %v4087_v34, %v4083_v26  ;;  %v2983_v41 = vunpack.c.l.b16 %v2143_v37  ;;  %v2984_v44 = vunpack.c.h.b16 %v2143_v37  ;;  %1186 = vadd.xlane.f32.xlu1 %v1185_v32  ;;  %1183 = vadd.xlane.f32.xlu0 %v1182_v33  ;;  %v245_v37 = vld [vmem:[%s11511_s0 + $0x700] sm:$0xff] }
 0x1b4   :  { %v977_v45 = vpop.xlane.xlu1 %976  ;;  %v974_v46 = vpop.xlane.xlu0 %973  ;;  %v8801_v51 = vsel %vm3460_vm15, %v4092_v35, %v4088_v40  ;;  %v246_v35 = vld [vmem:[%s11511_s0 + $0x708] sm:$0xff] }
 0x1b5   :  { %11528 = vst [vmem:[#allocation9_spill] sm:$0xff] %v8801_v51  ;;  %v2144_v53 = vpack.c.bf16 %v977_v45, %v974_v46  ;;  %v4097_v57 = vrot.slane %v2983_v41, %v7869_v30  ;;  %v4101_v59 = vrot.slane %v2984_v44, %v7878_v38  ;;  %v1209_v46 = vsel %vm533_vm0, %v246_v35, 0.0  ;;  %v252_v35 = vld [vmem:[%s11511_s0 + $0x738] sm:$0xff] }
 0x1b7   :  { %v2985_v61 = vunpack.c.l.b16 %v2144_v53  ;;  %v2986_v63 = vunpack.c.h.b16 %v2144_v53  ;;  %1192 = vadd.xlane.f32.xlu1 %v1191_v49  ;;  %1189 = vadd.xlane.f32.xlu0 %v1188_v50  ;;  %v4102_v14 = vsel %vm3362_vm1, %v4101_v59, %v4097_v57  ;;  %v1206_v49 = vsel %vm533_vm0, %v245_v37, 0.0  ;;  %v247_v57 = vld [vmem:[%s11511_s0 + $0x710] sm:$0xff] }
 0x1b8   :  { %v983_v0 = vpop.xlane.xlu1 %982  ;;  %v980_v1 = vpop.xlane.xlu0 %979  ;;  %v251_v37 = vld [vmem:[%s11511_s0 + $0x730] sm:$0xff] }
 0x1b9   :  { %v4106_v7 = vrot.slane %v2985_v61, %v7875_v36  ;;  %v4111_v8 = vrot.slane %v2986_v63, %v7887_v42  ;;  %v2145_v9 = vpack.c.bf16 %v983_v0, %v980_v1 }
 0x1bb   :  { %v4107_v15 = vsel %vm3369_vm2, %v4106_v7, %v4102_v14  ;;  %v2987_v16 = vunpack.c.l.b16 %v2145_v9  ;;  %v2988_v17 = vunpack.c.h.b16 %v2145_v9  ;;  %1198 = vadd.xlane.f32.xlu1 %v1197_v5  ;;  %1195 = vadd.xlane.f32.xlu0 %v1194_v6  ;;  %v1215_v6 = vsel %vm533_vm0, %v248_v55, 0.0  ;;  %v249_v14 = vld [vmem:[%s11511_s0 + $0x720] sm:$0xff]  ;;  %v254_v55 = vld [vmem:[%s11511_s0 + $0x748] sm:$0xff] }
 0x1bc   :  { %v4112_v20 = vsel %vm3376_vm3, %v4111_v8, %v4107_v15  ;;  %v989_v23 = vpop.xlane.xlu1 %988  ;;  %v986_v26 = vpop.xlane.xlu0 %985  ;;  %v1212_v7 = vsel %vm533_vm0, %v247_v57, 0.0  ;;  %v253_v57 = vld [vmem:[%s11511_s0 + $0x740] sm:$0xff] }
 0x1bd   :  { %v4116_v32 = vrot.slane %v2987_v16, %v7898_v52  ;;  %v4121_v33 = vrot.slane %v2988_v17, %v7907_v60  ;;  %v2146_v34 = vpack.c.bf16 %v989_v23, %v986_v26 }
 0x1bf   :  { %v4117_v39 = vsel %vm3383_vm4, %v4116_v32, %v4112_v20  ;;  %v2989_v22 = vunpack.c.l.b16 %v2146_v34  ;;  %v2990_v40 = vunpack.c.h.b16 %v2146_v34  ;;  %1204 = vadd.xlane.f32.xlu1 %v1203_v29  ;;  %1201 = vadd.xlane.f32.xlu0 %v1200_v31  ;;  %v1221_v29 = vsel %vm533_vm0, %v250_v12, 0.0  ;;  %v256_v12 = vld [vmem:[%s11511_s0 + $0x758] sm:$0xff] }
 0x1c0   :  { %v4122_v41 = vsel %vm11523_vm5, %v4121_v33, %v4117_v39  ;;  %v995_v44 = vpop.xlane.xlu1 %994  ;;  %v992_v45 = vpop.xlane.xlu0 %991  ;;  %v1218_v31 = vsel %vm533_vm0, %v249_v14, 0.0  ;;  %v255_v14 = vld [vmem:[%s11511_s0 + $0x750] sm:$0xff] }
 0x1c1   :  { %v4126_v50 = vrot.slane %v2989_v22, %v7914_v2  ;;  %v4131_v53 = vrot.slane %v2990_v40, %v7927_v13  ;;  %v2147_v54 = vpack.c.bf16 %v995_v44, %v992_v45 }
 0x1c3   :  { %v4127_v59 = vsel %vm3397_vm6, %v4126_v50, %v4122_v41  ;;  %v2991_v61 = vunpack.c.l.b16 %v2147_v54  ;;  %v2992_v63 = vunpack.c.h.b16 %v2147_v54  ;;  %1210 = vadd.xlane.f32.xlu1 %v1209_v46  ;;  %1207 = vadd.xlane.f32.xlu0 %v1206_v49  ;;  %v1227_v46 = vsel %vm533_vm0, %v252_v35, 0.0 }
 0x1c4   :  { %v4132_v0 = vsel %vm3404_vm7, %v4131_v53, %v4127_v59  ;;  %v1001_v1 = vpop.xlane.xlu1 %1000  ;;  %v998_v5 = vpop.xlane.xlu0 %997  ;;  %v1224_v49 = vsel %vm533_vm0, %v251_v37, 0.0 }
 0x1c5   :  { %v4136_v8 = vrot.slane %v2991_v61, %v7933_v21  ;;  %v4141_v9 = vrot.slane %v2992_v63, %v7941_v27  ;;  %v2148_v11 = vpack.c.bf16 %v1001_v1, %v998_v5 }
 0x1c7   :  { %v4137_v15 = vsel %vm3411_vm8, %v4136_v8, %v4132_v0  ;;  %v2993_v16 = vunpack.c.l.b16 %v2148_v11  ;;  %v2994_v17 = vunpack.c.h.b16 %v2148_v11  ;;  %1216 = vadd.xlane.f32.xlu1 %v1215_v6  ;;  %1213 = vadd.xlane.f32.xlu0 %v1212_v7  ;;  %v1233_v6 = vsel %vm533_vm0, %v254_v55, 0.0 }
 0x1c8   :  { %v4142_v20 = vsel %vm11516_vm9, %v4141_v9, %v4137_v15  ;;  %v1007_v23 = vpop.xlane.xlu1 %1006  ;;  %v1004_v26 = vpop.xlane.xlu0 %1003  ;;  %v1230_v7 = vsel %vm533_vm0, %v253_v57, 0.0 }
 0x1c9   :  { %v4146_v32 = vrot.slane %v2993_v16, %v7959_v48  ;;  %v4151_v33 = vrot.slane %v2994_v17, %v7969_v56  ;;  %v2149_v34 = vpack.c.bf16 %v1007_v23, %v1004_v26  ;;  %v1239_v23 = vsel %vm533_vm0, %v256_v12, 0.0  ;;  %v261_v12 = vld [vmem:[%s11511_s0 + $0x780] sm:$0xff] }
 0x1ca   :  { %v1236_v26 = vsel %vm533_vm0, %v255_v14, 0.0 }
 0x1cb   :  { %v4147_v39 = vsel %vm3425_vm10, %v4146_v32, %v4142_v20  ;;  %v2995_v22 = vunpack.c.l.b16 %v2149_v34  ;;  %v2996_v40 = vunpack.c.h.b16 %v2149_v34  ;;  %1222 = vadd.xlane.f32.xlu1 %v1221_v29  ;;  %1219 = vadd.xlane.f32.xlu0 %v1218_v31  ;;  %v258_v32 = vld [vmem:[%s11511_s0 + $0x768] sm:$0xff] }
 0x1cc   :  { %v4152_v41 = vsel %vm3432_vm11, %v4151_v33, %v4147_v39  ;;  %v1013_v44 = vpop.xlane.xlu1 %1012  ;;  %v1010_v45 = vpop.xlane.xlu0 %1009  ;;  %v257_v33 = vld [vmem:[%s11511_s0 + $0x760] sm:$0xff] }
 0x1cd   :  { %v4156_v50 = vrot.slane %v2995_v22, %v7976_v3  ;;  %v4161_v53 = vrot.slane %v2996_v40, %v7979_v4  ;;  %v2150_v54 = vpack.c.bf16 %v1013_v44, %v1010_v45  ;;  %v1245_v44 = vsel %vm533_vm0, %v258_v32, 0.0 }
 0x1ce   :  { %v1242_v45 = vsel %vm533_vm0, %v257_v33, 0.0 }
 0x1cf   :  { %v4157_v59 = vsel %vm11515_vm12, %v4156_v50, %v4152_v41  ;;  %v2997_v61 = vunpack.c.l.b16 %v2150_v54  ;;  %v2998_v63 = vunpack.c.h.b16 %v2150_v54  ;;  %1228 = vadd.xlane.f32.xlu1 %v1227_v46  ;;  %1225 = vadd.xlane.f32.xlu0 %v1224_v49  ;;  %v259_v54 = vld [vmem:[%s11511_s0 + $0x770] sm:$0xff] }
 0x1d0   :  { %v4162_v0 = vsel %vm3446_vm13, %v4161_v53, %v4157_v59  ;;  %v1019_v1 = vpop.xlane.xlu1 %1018  ;;  %v1016_v5 = vpop.xlane.xlu0 %1015  ;;  %v260_v53 = vld [vmem:[%s11511_s0 + $0x778] sm:$0xff] }
 0x1d1   :  { %v4166_v8 = vrot.slane %v2997_v61, %v7994_v19  ;;  %v4171_v9 = vrot.slane %v2998_v63, %v8001_v28  ;;  %v2151_v11 = vpack.c.bf16 %v1019_v1, %v1016_v5  ;;  %v1251_v5 = vsel %vm533_vm0, %v260_v53, 0.0 }
 0x1d3   :  { %v2999_v15 = vunpack.c.l.b16 %v2151_v11  ;;  %v3000_v16 = vunpack.c.h.b16 %v2151_v11  ;;  %1234 = vadd.xlane.f32.xlu1 %v1233_v6  ;;  %1231 = vadd.xlane.f32.xlu0 %v1230_v7  ;;  %v4167_v29 = vsel %vm3453_vm14, %v4166_v8, %v4162_v0  ;;  %v1248_v6 = vsel %vm533_vm0, %v259_v54, 0.0  ;;  %v262_v11 = vld [vmem:[%s11511_s0 + $0x788] sm:$0xff] }
 0x1d4   :  { %v1025_v17 = vpop.xlane.xlu1 %1024  ;;  %v1022_v20 = vpop.xlane.xlu0 %1021  ;;  %v8904_v34 = vsel %vm3460_vm15, %v4171_v9, %v4167_v29  ;;  %v1254_v29 = vsel %vm533_vm0, %v261_v12, 0.0  ;;  %v268_v12 = vld [vmem:[%s11511_s0 + $0x7b8] sm:$0xff] }
 0x1d5   :  { %v2152_v31 = vpack.c.bf16 %v1025_v17, %v1022_v20  ;;  %11529 = vst [vmem:[#allocation10_spill] sm:$0xff] %v8904_v34  ;;  %v4176_v35 = vrot.slane %v2999_v15, %v7869_v30  ;;  %v4180_v37 = vrot.slane %v3000_v16, %v7878_v38 }
 0x1d7   :  { %v3001_v39 = vunpack.c.l.b16 %v2152_v31  ;;  %v3002_v22 = vunpack.c.h.b16 %v2152_v31  ;;  %1240 = vadd.xlane.f32.xlu1 %v1239_v23  ;;  %1237 = vadd.xlane.f32.xlu0 %v1236_v26  ;;  %v4181_v55 = vsel %vm3362_vm1, %v4180_v37, %v4176_v35  ;;  %v1257_v26 = vsel %vm533_vm0, %v262_v11, 0.0  ;;  %v264_v35 = vld [vmem:[%s11511_s0 + $0x798] sm:$0xff]  ;;  %v263_v37 = vld [vmem:[%s11511_s0 + $0x790] sm:$0xff] }
 0x1d8   :  { %v1031_v40 = vpop.xlane.xlu1 %1030  ;;  %v1028_v41 = vpop.xlane.xlu0 %1027 }
 0x1d9   :  { %v4185_v46 = vrot.slane %v3001_v39, %v7875_v36  ;;  %v4190_v49 = vrot.slane %v3002_v22, %v7887_v42  ;;  %v2153_v50 = vpack.c.bf16 %v1031_v40, %v1028_v41 }
 0x1db   :  { %v4186_v57 = vsel %vm3369_vm2, %v4185_v46, %v4181_v55  ;;  %v3003_v59 = vunpack.c.l.b16 %v2153_v50  ;;  %v3004_v61 = vunpack.c.h.b16 %v2153_v50  ;;  %1246 = vadd.xlane.f32.xlu1 %v1245_v44  ;;  %1243 = vadd.xlane.f32.xlu0 %v1242_v45  ;;  %v1263_v46 = vsel %vm533_vm0, %v264_v35, 0.0  ;;  %v266_v55 = vld [vmem:[%s11511_s0 + $0x7a8] sm:$0xff] }
 0x1dc   :  { %v4191_v63 = vsel %vm3376_vm3, %v4190_v49, %v4186_v57  ;;  %v1037_v0 = vpop.xlane.xlu1 %1036  ;;  %v1034_v1 = vpop.xlane.xlu0 %1033  ;;  %v1260_v49 = vsel %vm533_vm0, %v263_v37, 0.0  ;;  %v265_v57 = vld [vmem:[%s11511_s0 + $0x7a0] sm:$0xff]  ;;  %v270_v37 = vld [vmem:[%s11511_s0 + $0x7c8] sm:$0xff] }
 0x1dd   :  { %v4195_v7 = vrot.slane %v3003_v59, %v7898_v52  ;;  %v4200_v8 = vrot.slane %v3004_v61, %v7907_v60  ;;  %v2154_v9 = vpack.c.bf16 %v1037_v0, %v1034_v1 }
 0x1df   :  { %v4196_v14 = vsel %vm3383_vm4, %v4195_v7, %v4191_v63  ;;  %v3005_v15 = vunpack.c.l.b16 %v2154_v9  ;;  %v3006_v16 = vunpack.c.h.b16 %v2154_v9  ;;  %1252 = vadd.xlane.f32.xlu1 %v1251_v5  ;;  %1249 = vadd.xlane.f32.xlu0 %v1248_v6  ;;  %v1269_v6 = vsel %vm533_vm0, %v266_v55, 0.0 }
 0x1e0   :  { %v4201_v17 = vsel %vm11523_vm5, %v4200_v8, %v4196_v14  ;;  %v1043_v20 = vpop.xlane.xlu1 %1042  ;;  %v1040_v23 = vpop.xlane.xlu0 %1039  ;;  %v1266_v7 = vsel %vm533_vm0, %v265_v57, 0.0  ;;  %v267_v14 = vld [vmem:[%s11511_s0 + $0x7b0] sm:$0xff]  ;;  %v272_v57 = vld [vmem:[%s11511_s0 + $0x7d8] sm:$0xff] }
 0x1e1   :  { %v4205_v31 = vrot.slane %v3005_v15, %v7914_v2  ;;  %v4210_v32 = vrot.slane %v3006_v16, %v7927_v13  ;;  %v2155_v33 = vpack.c.bf16 %v1043_v20, %v1040_v23 }
 0x1e3   :  { %v4206_v39 = vsel %vm3397_vm6, %v4205_v31, %v4201_v17  ;;  %v3007_v22 = vunpack.c.l.b16 %v2155_v33  ;;  %v3008_v40 = vunpack.c.h.b16 %v2155_v33  ;;  %1258 = vadd.xlane.f32.xlu1 %v1257_v26  ;;  %1255 = vadd.xlane.f32.xlu0 %v1254_v29  ;;  %v1275_v29 = vsel %vm533_vm0, %v268_v12, 0.0  ;;  %v273_v12 = vld [vmem:[%s11511_s0 + $0x7e0] sm:$0xff] }
 0x1e4   :  { %v4211_v41 = vsel %vm3404_vm7, %v4210_v32, %v4206_v39  ;;  %v1049_v44 = vpop.xlane.xlu1 %1048  ;;  %v1046_v45 = vpop.xlane.xlu0 %1045  ;;  %v1272_v31 = vsel %vm533_vm0, %v267_v14, 0.0  ;;  %v269_v39 = vld [vmem:[%s11511_s0 + $0x7c0] sm:$0xff] }
 0x1e5   :  { %v4215_v50 = vrot.slane %v3007_v22, %v7933_v21  ;;  %v4220_v53 = vrot.slane %v3008_v40, %v7941_v27  ;;  %v2156_v54 = vpack.c.bf16 %v1049_v44, %v1046_v45 }
 0x1e7   :  { %v4216_v59 = vsel %vm3411_vm8, %v4215_v50, %v4211_v41  ;;  %v3009_v61 = vunpack.c.l.b16 %v2156_v54  ;;  %v3010_v63 = vunpack.c.h.b16 %v2156_v54  ;;  %1264 = vadd.xlane.f32.xlu1 %v1263_v46  ;;  %1261 = vadd.xlane.f32.xlu0 %v1260_v49  ;;  %v1281_v49 = vsel %vm533_vm0, %v270_v37, 0.0  ;;  %v275_v37 = vld [vmem:[%s11511_s0 + $0x7f0] sm:$0xff] }
 0x1e8   :  { %v4221_v0 = vsel %vm11516_vm9, %v4220_v53, %v4216_v59  ;;  %v1055_v1 = vpop.xlane.xlu1 %1054  ;;  %v1052_v5 = vpop.xlane.xlu0 %1051  ;;  %v1278_v50 = vsel %vm533_vm0, %v269_v39, 0.0  ;;  %v271_v59 = vld [vmem:[%s11511_s0 + $0x7d0] sm:$0xff] }
 0x1e9   :  { %v4225_v8 = vrot.slane %v3009_v61, %v7959_v48  ;;  %v4230_v9 = vrot.slane %v3010_v63, %v7969_v56  ;;  %v2157_v11 = vpack.c.bf16 %v1055_v1, %v1052_v5 }
 0x1eb   :  { %v4226_v15 = vsel %vm3425_vm10, %v4225_v8, %v4221_v0  ;;  %v3011_v16 = vunpack.c.l.b16 %v2157_v11  ;;  %v3012_v17 = vunpack.c.h.b16 %v2157_v11  ;;  %1270 = vadd.xlane.f32.xlu1 %v1269_v6  ;;  %1267 = vadd.xlane.f32.xlu0 %v1266_v7  ;;  %v1287_v6 = vsel %vm533_vm0, %v272_v57, 0.0  ;;  %v274_v11 = vld [vmem:[%s11511_s0 + $0x7e8] sm:$0xff] }
 0x1ec   :  { %v4231_v20 = vsel %vm3432_vm11, %v4230_v9, %v4226_v15  ;;  %v1061_v23 = vpop.xlane.xlu1 %1060  ;;  %v1058_v26 = vpop.xlane.xlu0 %1057  ;;  %v1284_v7 = vsel %vm533_vm0, %v271_v59, 0.0  ;;  %v278_v57 = vld [vmem:[%s11511_s0 + $0x808] sm:$0xff]  ;;  %v277_v59 = vld [vmem:[%s11511_s0 + $0x800] sm:$0xff] }
 0x1ed   :  { %v4235_v32 = vrot.slane %v3011_v16, %v7976_v3  ;;  %v4240_v33 = vrot.slane %v3012_v17, %v7979_v4  ;;  %v2158_v35 = vpack.c.bf16 %v1061_v23, %v1058_v26  ;;  %v1293_v26 = vsel %vm533_vm0, %v274_v11, 0.0 }
 0x1ef   :  { %v4236_v22 = vsel %vm11515_vm12, %v4235_v32, %v4231_v20  ;;  %v3013_v40 = vunpack.c.l.b16 %v2158_v35  ;;  %v3014_v41 = vunpack.c.h.b16 %v2158_v35  ;;  %1276 = vadd.xlane.f32.xlu1 %v1275_v29  ;;  %1273 = vadd.xlane.f32.xlu0 %v1272_v31  ;;  %v1290_v29 = vsel %vm533_vm0, %v273_v12, 0.0  ;;  %v276_v35 = vld [vmem:[%s11511_s0 + $0x7f8] sm:$0xff] }
 0x1f0   :  { %v4241_v44 = vsel %vm3446_vm13, %v4240_v33, %v4236_v22  ;;  %v1067_v45 = vpop.xlane.xlu1 %1066  ;;  %v1064_v46 = vpop.xlane.xlu0 %1063 }
 0x1f1   :  { %v4245_v53 = vrot.slane %v3013_v40, %v7994_v19  ;;  %v4250_v54 = vrot.slane %v3014_v41, %v8001_v28  ;;  %v2159_v55 = vpack.c.bf16 %v1067_v45, %v1064_v46 }
 0x1f3   :  { %v4246_v61 = vsel %vm3453_vm14, %v4245_v53, %v4241_v44  ;;  %v3015_v63 = vunpack.c.l.b16 %v2159_v55  ;;  %v3016_v0 = vunpack.c.h.b16 %v2159_v55  ;;  %1282 = vadd.xlane.f32.xlu1 %v1281_v49  ;;  %1279 = vadd.xlane.f32.xlu0 %v1278_v50  ;;  %v1299_v49 = vsel %vm533_vm0, %v276_v35, 0.0 }
 0x1f4   :  { %v1073_v1 = vpop.xlane.xlu1 %1072  ;;  %v1070_v5 = vpop.xlane.xlu0 %1069  ;;  %v8995_v8 = vsel %vm3460_vm15, %v4250_v54, %v4246_v61  ;;  %v1296_v50 = vsel %vm533_vm0, %v275_v37, 0.0 }
 0x1f5   :  { %11530 = vst [vmem:[#allocation11_spill] sm:$0xff] %v8995_v8  ;;  %v2160_v9 = vpack.c.bf16 %v1073_v1, %v1070_v5  ;;  %v4255_v14 = vrot.slane %v3015_v63, %v7869_v30  ;;  %v4259_v15 = vrot.slane %v3016_v0, %v7878_v38 }
 0x1f7   :  { %v3017_v16 = vunpack.c.l.b16 %v2160_v9  ;;  %v3018_v17 = vunpack.c.h.b16 %v2160_v9  ;;  %1288 = vadd.xlane.f32.xlu1 %v1287_v6  ;;  %1285 = vadd.xlane.f32.xlu0 %v1284_v7  ;;  %v4260_v39 = vsel %vm3362_vm1, %v4259_v15, %v4255_v14  ;;  %v1305_v7 = vsel %vm533_vm0, %v278_v57, 0.0  ;;  %v280_v15 = vld [vmem:[%s11511_s0 + $0x818] sm:$0xff] }
 0x1f8   :  { %v1079_v20 = vpop.xlane.xlu1 %1078  ;;  %v1076_v23 = vpop.xlane.xlu0 %1075  ;;  %v1302_v9 = vsel %vm533_vm0, %v277_v59, 0.0 }
 0x1f9   :  { %v4264_v31 = vrot.slane %v3017_v16, %v7875_v36  ;;  %v4269_v32 = vrot.slane %v3018_v17, %v7887_v42  ;;  %v2161_v33 = vpack.c.bf16 %v1079_v20, %v1076_v23  ;;  %v279_v16 = vld [vmem:[%s11511_s0 + $0x810] sm:$0xff] }
 0x1fb   :  { %v4265_v22 = vsel %vm3369_vm2, %v4264_v31, %v4260_v39  ;;  %v3019_v40 = vunpack.c.l.b16 %v2161_v33  ;;  %v3020_v41 = vunpack.c.h.b16 %v2161_v33  ;;  %1294 = vadd.xlane.f32.xlu1 %v1293_v26  ;;  %1291 = vadd.xlane.f32.xlu0 %v1290_v29  ;;  %v1308_v33 = vsel %vm533_vm0, %v279_v16, 0.0 }
 0x1fc   :  { %v4270_v44 = vsel %vm3376_vm3, %v4269_v32, %v4265_v22  ;;  %v1085_v45 = vpop.xlane.xlu1 %1084  ;;  %v1082_v46 = vpop.xlane.xlu0 %1081  ;;  %v1311_v32 = vsel %vm533_vm0, %v280_v15, 0.0  ;;  %v282_v22 = vld [vmem:[%s11511_s0 + $0x828] sm:$0xff] }
 0x1fd   :  { %v4274_v53 = vrot.slane %v3019_v40, %v7898_v52  ;;  %v4279_v54 = vrot.slane %v3020_v41, %v7907_v60  ;;  %v2162_v55 = vpack.c.bf16 %v1085_v45, %v1082_v46  ;;  %v281_v40 = vld [vmem:[%s11511_s0 + $0x820] sm:$0xff] }
 0x1ff   :  { %v4275_v61 = vsel %vm3383_vm4, %v4274_v53, %v4270_v44  ;;  %v3021_v63 = vunpack.c.l.b16 %v2162_v55  ;;  %v3022_v0 = vunpack.c.h.b16 %v2162_v55  ;;  %1300 = vadd.xlane.f32.xlu1 %v1299_v49  ;;  %1297 = vadd.xlane.f32.xlu0 %v1296_v50  ;;  %v1317_v53 = vsel %vm533_vm0, %v282_v22, 0.0 }
 0x200   :  { %v4280_v1 = vsel %vm11523_vm5, %v4279_v54, %v4275_v61  ;;  %v1091_v5 = vpop.xlane.xlu1 %1090  ;;  %v1088_v6 = vpop.xlane.xlu0 %1087  ;;  %v1314_v54 = vsel %vm533_vm0, %v281_v40, 0.0  ;;  %v284_v61 = vld [vmem:[%s11511_s0 + $0x838] sm:$0xff] }
 0x201   :  { %v4284_v11 = vrot.slane %v3021_v63, %v7914_v2  ;;  %v4289_v12 = vrot.slane %v3022_v0, %v7927_v13  ;;  %v2163_v14 = vpack.c.bf16 %v1091_v5, %v1088_v6  ;;  %v283_v63 = vld [vmem:[%s11511_s0 + $0x830] sm:$0xff] }
 0x203   :  { %v4285_v17 = vsel %vm3397_vm6, %v4284_v11, %v4280_v1  ;;  %v3023_v20 = vunpack.c.l.b16 %v2163_v14  ;;  %v3024_v23 = vunpack.c.h.b16 %v2163_v14  ;;  %1306 = vadd.xlane.f32.xlu1 %v1305_v7  ;;  %1303 = vadd.xlane.f32.xlu0 %v1302_v9  ;;  %v1323_v11 = vsel %vm533_vm0, %v284_v61, 0.0  ;;  %v289_v61 = vld [vmem:[%s11511_s0 + $0x860] sm:$0xff] }
 0x204   :  { %v4290_v26 = vsel %vm3404_vm7, %v4289_v12, %v4285_v17  ;;  %v1097_v29 = vpop.xlane.xlu1 %1096  ;;  %v1094_v31 = vpop.xlane.xlu0 %1093  ;;  %v1320_v12 = vsel %vm533_vm0, %v283_v63, 0.0  ;;  %v286_v17 = vld [vmem:[%s11511_s0 + $0x848] sm:$0xff] }
 0x205   :  { %v4294_v35 = vrot.slane %v3023_v20, %v7933_v21  ;;  %v4299_v37 = vrot.slane %v3024_v23, %v7941_v27  ;;  %v2164_v39 = vpack.c.bf16 %v1097_v29, %v1094_v31  ;;  %v285_v20 = vld [vmem:[%s11511_s0 + $0x840] sm:$0xff] }
 0x207   :  { %v4295_v41 = vsel %vm3411_vm8, %v4294_v35, %v4290_v26  ;;  %v3025_v44 = vunpack.c.l.b16 %v2164_v39  ;;  %v3026_v45 = vunpack.c.h.b16 %v2164_v39  ;;  %1312 = vadd.xlane.f32.xlu1 %v1311_v32  ;;  %1309 = vadd.xlane.f32.xlu0 %v1308_v33  ;;  %v1329_v35 = vsel %vm533_vm0, %v286_v17, 0.0  ;;  %v292_v17 = vld [vmem:[%s11511_s0 + $0x878] sm:$0xff] }
 0x208   :  { %v4300_v46 = vsel %vm11516_vm9, %v4299_v37, %v4295_v41  ;;  %v1103_v49 = vpop.xlane.xlu1 %1102  ;;  %v1100_v50 = vpop.xlane.xlu0 %1099  ;;  %v1326_v37 = vsel %vm533_vm0, %v285_v20, 0.0  ;;  %v288_v41 = vld [vmem:[%s11511_s0 + $0x858] sm:$0xff]  ;;  %v291_v20 = vld [vmem:[%s11511_s0 + $0x870] sm:$0xff] }
 0x209   :  { %v4304_v55 = vrot.slane %v3025_v44, %v7959_v48  ;;  %v4309_v57 = vrot.slane %v3026_v45, %v7969_v56  ;;  %v2165_v59 = vpack.c.bf16 %v1103_v49, %v1100_v50  ;;  %v287_v44 = vld [vmem:[%s11511_s0 + $0x850] sm:$0xff] }
 0x20b   :  { %v4305_v0 = vsel %vm3425_vm10, %v4304_v55, %v4300_v46  ;;  %v3027_v1 = vunpack.c.l.b16 %v2165_v59  ;;  %v3028_v5 = vunpack.c.h.b16 %v2165_v59  ;;  %1318 = vadd.xlane.f32.xlu1 %v1317_v53  ;;  %1315 = vadd.xlane.f32.xlu0 %v1314_v54  ;;  %v1335_v53 = vsel %vm533_vm0, %v288_v41, 0.0  ;;  %v290_v59 = vld [vmem:[%s11511_s0 + $0x868] sm:$0xff] }
 0x20c   :  { %v4310_v6 = vsel %vm3432_vm11, %v4309_v57, %v4305_v0  ;;  %v1109_v7 = vpop.xlane.xlu1 %1108  ;;  %v1106_v9 = vpop.xlane.xlu0 %1105  ;;  %v1332_v54 = vsel %vm533_vm0, %v287_v44, 0.0  ;;  %v294_v44 = vld [vmem:[%s11511_s0 + $0x888] sm:$0xff] }
 0x20d   :  { %v4314_v14 = vrot.slane %v3027_v1, %v7976_v3  ;;  %v4319_v15 = vrot.slane %v3028_v5, %v7979_v4  ;;  %v2166_v16 = vpack.c.bf16 %v1109_v7, %v1106_v9 }
 0x20f   :  { %v4315_v23 = vsel %vm11515_vm12, %v4314_v14, %v4310_v6  ;;  %v3029_v26 = vunpack.c.l.b16 %v2166_v16  ;;  %v3030_v29 = vunpack.c.h.b16 %v2166_v16  ;;  %1324 = vadd.xlane.f32.xlu1 %v1323_v11  ;;  %1321 = vadd.xlane.f32.xlu0 %v1320_v12  ;;  %v1341_v11 = vsel %vm533_vm0, %v290_v59, 0.0 }
 0x210   :  { %v4320_v31 = vsel %vm3446_vm13, %v4319_v15, %v4315_v23  ;;  %v1115_v32 = vpop.xlane.xlu1 %1114  ;;  %v1112_v33 = vpop.xlane.xlu0 %1111  ;;  %v1338_v12 = vsel %vm533_vm0, %v289_v61, 0.0 }
 0x211   :  { %v4324_v39 = vrot.slane %v3029_v26, %v7994_v19  ;;  %v4329_v22 = vrot.slane %v3030_v29, %v8001_v28  ;;  %v2167_v40 = vpack.c.bf16 %v1115_v32, %v1112_v33 }
 0x213   :  { %v3031_v45 = vunpack.c.l.b16 %v2167_v40  ;;  %v3032_v46 = vunpack.c.h.b16 %v2167_v40  ;;  %1330 = vadd.xlane.f32.xlu1 %v1329_v35  ;;  %1327 = vadd.xlane.f32.xlu0 %v1326_v37  ;;  %v4325_v55 = vsel %vm3453_vm14, %v4324_v39, %v4320_v31  ;;  %v1347_v37 = vsel %vm533_vm0, %v292_v17, 0.0 }
 0x214   :  { %v1121_v49 = vpop.xlane.xlu1 %1120  ;;  %v1118_v50 = vpop.xlane.xlu0 %1117  ;;  %v9098_v63 = vsel %vm3460_vm15, %v4329_v22, %v4325_v55  ;;  %v1344_v39 = vsel %vm533_vm0, %v291_v20, 0.0 }
 0x215   :  { %v2168_v57 = vpack.c.bf16 %v1121_v49, %v1118_v50  ;;  %11531 = vst [vmem:[#allocation12_spill] sm:$0xff] %v9098_v63  ;;  %v4334_v0 = vrot.slane %v3031_v45, %v7869_v30  ;;  %v4338_v1 = vrot.slane %v3032_v46, %v7878_v38  ;;  %v293_v45 = vld [vmem:[%s11511_s0 + $0x880] sm:$0xff] }
 0x216   :  { %v1350_v59 = vsel %vm533_vm0, %v293_v45, 0.0 }
 0x217   :  { %v3033_v5 = vunpack.c.l.b16 %v2168_v57  ;;  %v3034_v6 = vunpack.c.h.b16 %v2168_v57  ;;  %1336 = vadd.xlane.f32.xlu1 %v1335_v53  ;;  %1333 = vadd.xlane.f32.xlu0 %v1332_v54  ;;  %v4339_v23 = vsel %vm3362_vm1, %v4338_v1, %v4334_v0  ;;  %v1353_v57 = vsel %vm533_vm0, %v294_v44, 0.0 }
 0x218   :  { %v1127_v7 = vpop.xlane.xlu1 %1126  ;;  %v1124_v9 = vpop.xlane.xlu0 %1123 }
 0x219   :  { %v4343_v14 = vrot.slane %v3033_v5, %v7875_v36  ;;  %v4348_v15 = vrot.slane %v3034_v6, %v7887_v42  ;;  %v2169_v16 = vpack.c.bf16 %v1127_v7, %v1124_v9  ;;  %v296_v5 = vld [vmem:[%s11511_s0 + $0x898] sm:$0xff]  ;;  %v295_v6 = vld [vmem:[%s11511_s0 + $0x890] sm:$0xff] }
 0x21a   :  { %v1356_v17 = vsel %vm533_vm0, %v295_v6, 0.0 }
 0x21b   :  { %v4344_v26 = vsel %vm3369_vm2, %v4343_v14, %v4339_v23  ;;  %v3035_v29 = vunpack.c.l.b16 %v2169_v16  ;;  %v3036_v31 = vunpack.c.h.b16 %v2169_v16  ;;  %1342 = vadd.xlane.f32.xlu1 %v1341_v11  ;;  %1339 = vadd.xlane.f32.xlu0 %v1338_v12  ;;  %v1359_v16 = vsel %vm533_vm0, %v296_v5, 0.0 }
 0x21c   :  { %v4349_v32 = vsel %vm3376_vm3, %v4348_v15, %v4344_v26  ;;  %v1133_v33 = vpop.xlane.xlu1 %1132  ;;  %v1130_v35 = vpop.xlane.xlu0 %1129 }
 0x21d   :  { %v4353_v22 = vrot.slane %v3035_v29, %v7898_v52  ;;  %v4358_v40 = vrot.slane %v3036_v31, %v7907_v60  ;;  %v2170_v41 = vpack.c.bf16 %v1133_v33, %v1130_v35  ;;  %v298_v29 = vld [vmem:[%s11511_s0 + $0x8a8] sm:$0xff]  ;;  %v297_v31 = vld [vmem:[%s11511_s0 + $0x8a0] sm:$0xff] }
 0x21f   :  { %v4354_v46 = vsel %vm3383_vm4, %v4353_v22, %v4349_v32  ;;  %v3037_v49 = vunpack.c.l.b16 %v2170_v41  ;;  %v3038_v50 = vunpack.c.h.b16 %v2170_v41  ;;  %1348 = vadd.xlane.f32.xlu1 %v1347_v37  ;;  %1345 = vadd.xlane.f32.xlu0 %v1344_v39  ;;  %v1362_v41 = vsel %vm533_vm0, %v297_v31, 0.0 }
 0x220   :  { %v4359_v53 = vsel %vm11523_vm5, %v4358_v40, %v4354_v46  ;;  %v1139_v54 = vpop.xlane.xlu1 %1138  ;;  %v1136_v55 = vpop.xlane.xlu0 %1135  ;;  %v1365_v40 = vsel %vm533_vm0, %v298_v29, 0.0 }
 0x221   :  { %v4363_v61 = vrot.slane %v3037_v49, %v7914_v2  ;;  %v4368_v0 = vrot.slane %v3038_v50, %v7927_v13  ;;  %v2171_v1 = vpack.c.bf16 %v1139_v54, %v1136_v55  ;;  %v300_v49 = vld [vmem:[%s11511_s0 + $0x8b8] sm:$0xff]  ;;  %v299_v50 = vld [vmem:[%s11511_s0 + $0x8b0] sm:$0xff] }
 0x223   :  { %v4364_v7 = vsel %vm3397_vm6, %v4363_v61, %v4359_v53  ;;  %v3039_v9 = vunpack.c.l.b16 %v2171_v1  ;;  %v3040_v11 = vunpack.c.h.b16 %v2171_v1  ;;  %1354 = vadd.xlane.f32.xlu1 %v1353_v57  ;;  %1351 = vadd.xlane.f32.xlu0 %v1350_v59  ;;  %v1368_v1 = vsel %vm533_vm0, %v299_v50, 0.0  ;;  %v306_v50 = vld [vmem:[%s11511_s0 + $0x8e8] sm:$0xff] }
 0x224   :  { %v4369_v12 = vsel %vm3404_vm7, %v4368_v0, %v4364_v7  ;;  %v1145_v14 = vpop.xlane.xlu1 %1144  ;;  %v1142_v15 = vpop.xlane.xlu0 %1141  ;;  %v1371_v0 = vsel %vm533_vm0, %v300_v49, 0.0 }
 0x225   :  { %v4373_v20 = vrot.slane %v3039_v9, %v7933_v21  ;;  %v4378_v23 = vrot.slane %v3040_v11, %v7941_v27  ;;  %v2172_v26 = vpack.c.bf16 %v1145_v14, %v1142_v15  ;;  %v302_v9 = vld [vmem:[%s11511_s0 + $0x8c8] sm:$0xff]  ;;  %v301_v11 = vld [vmem:[%s11511_s0 + $0x8c0] sm:$0xff] }
 0x227   :  { %v4374_v32 = vsel %vm3411_vm8, %v4373_v20, %v4369_v12  ;;  %v3041_v33 = vunpack.c.l.b16 %v2172_v26  ;;  %v3042_v35 = vunpack.c.h.b16 %v2172_v26  ;;  %1360 = vadd.xlane.f32.xlu1 %v1359_v16  ;;  %1357 = vadd.xlane.f32.xlu0 %v1356_v17  ;;  %v1374_v26 = vsel %vm533_vm0, %v301_v11, 0.0 }
 0x228   :  { %v4379_v37 = vsel %vm11516_vm9, %v4378_v23, %v4374_v32  ;;  %v1151_v39 = vpop.xlane.xlu1 %1150  ;;  %v1148_v22 = vpop.xlane.xlu0 %1147  ;;  %v1377_v23 = vsel %vm533_vm0, %v302_v9, 0.0 }
 0x229   :  { %v4383_v44 = vrot.slane %v3041_v33, %v7959_v48  ;;  %v4388_v45 = vrot.slane %v3042_v35, %v7969_v56  ;;  %v2173_v46 = vpack.c.bf16 %v1151_v39, %v1148_v22  ;;  %v304_v33 = vld [vmem:[%s11511_s0 + $0x8d8] sm:$0xff]  ;;  %v303_v35 = vld [vmem:[%s11511_s0 + $0x8d0] sm:$0xff] }
 0x22b   :  { %v4384_v53 = vsel %vm3425_vm10, %v4383_v44, %v4379_v37  ;;  %v3043_v54 = vunpack.c.l.b16 %v2173_v46  ;;  %v3044_v55 = vunpack.c.h.b16 %v2173_v46  ;;  %1366 = vadd.xlane.f32.xlu1 %v1365_v40  ;;  %1363 = vadd.xlane.f32.xlu0 %v1362_v41  ;;  %v1383_v44 = vsel %vm533_vm0, %v304_v33, 0.0 }
 0x22c   :  { %v4389_v57 = vsel %vm3432_vm11, %v4388_v45, %v4384_v53  ;;  %v1157_v59 = vpop.xlane.xlu1 %1156  ;;  %v1154_v61 = vpop.xlane.xlu0 %1153  ;;  %v1380_v45 = vsel %vm533_vm0, %v303_v35, 0.0  ;;  %v305_v53 = vld [vmem:[%s11511_s0 + $0x8e0] sm:$0xff]  ;;  %v7386_v35 = vld [vmem:[%s11512_s1 + $0x48] sm:$0xff]  }
 0x22d   :  { %v4393_v5 = vrot.slane %v3043_v54, %v7976_v3  ;;  %v4398_v6 = vrot.slane %v3044_v55, %v7979_v4  ;;  %v2174_v7 = vpack.c.bf16 %v1157_v59, %v1154_v61 }
 0x22f   :  { %v4394_v12 = vsel %vm11515_vm12, %v4393_v5, %v4389_v57  ;;  %v3045_v14 = vunpack.c.l.b16 %v2174_v7  ;;  %v3046_v15 = vunpack.c.h.b16 %v2174_v7  ;;  %1372 = vadd.xlane.f32.xlu1 %v1371_v0  ;;  %1369 = vadd.xlane.f32.xlu0 %v1368_v1  ;;  %v1389_v1 = vsel %vm533_vm0, %v306_v50, 0.0 }
 0x230   :  { %v4399_v16 = vsel %vm3446_vm13, %v4398_v6, %v4394_v12  ;;  %v1163_v17 = vpop.xlane.xlu1 %1162  ;;  %v1160_v20 = vpop.xlane.xlu0 %1159  ;;  %v1386_v5 = vsel %vm533_vm0, %v305_v53, 0.0  ;;  %v7384_v6 = vld [vmem:[%s11512_s1 + $0x40] sm:$0xff]   ;;  %v308_v12 = vld [vmem:[%s11511_s0 + $0x8f8] sm:$0xff] }
 0x231   :  { %v4403_v29 = vrot.slane %v3045_v14, %v7994_v19  ;;  %v4408_v31 = vrot.slane %v3046_v15, %v8001_v28  ;;  %v2175_v32 = vpack.c.bf16 %v1163_v17, %v1160_v20  ;;  %v307_v14 = vld [vmem:[%s11511_s0 + $0x8f0] sm:$0xff]  ;;  %v7385_v15 = vld [vmem:[%s11512_s1] sm:$0xff]   ;;  %7206 = vmatprep.subr.bf16.mxu0 %v7384_v6  ;;  %v312_v6 = vld [vmem:[%s11511_s0 + $0x918] sm:$0xff] }
 0x232   :  { %v1392_v33 = vsel %vm533_vm0, %v307_v14, 0.0  ;;  %7207 = vmatpush3.bf16.msra.mxu0 %v7385_v15 }
 0x233   :  { %v4404_v37 = vsel %vm3453_vm14, %v4403_v29, %v4399_v16  ;;  %v3047_v39 = vunpack.c.l.b16 %v2175_v32  ;;  %v3048_v22 = vunpack.c.h.b16 %v2175_v32  ;;  %1378 = vadd.xlane.f32.xlu1 %v1377_v23  ;;  %1375 = vadd.xlane.f32.xlu0 %v1374_v26  ;;  %v1395_v32 = vsel %vm533_vm0, %v308_v12, 0.0 }
 0x234   :  { %v1169_v40 = vpop.xlane.xlu1 %1168  ;;  %v1166_v41 = vpop.xlane.xlu0 %1165  ;;  %v9189_v46 = vsel %vm3460_vm15, %v4408_v31, %v4404_v37  ;;  %7208 = vmatprep.subr.bf16.mxu0 %v7386_v35  ;;  %v313_v35 = vld [vmem:[%s11511_s0 + $0x920] sm:$0xff] }
 0x235   :  { %11532 = vst [vmem:[#allocation13_spill] sm:$0xff] %v9189_v46  ;;  %v2176_v49 = vpack.c.bf16 %v1169_v40, %v1166_v41  ;;  %v4413_v54 = vrot.slane %v3047_v39, %v7869_v30  ;;  %v4417_v55 = vrot.slane %v3048_v22, %v7878_v38  ;;  %v310_v40 = vld [vmem:[%s11511_s0 + $0x908] sm:$0xff]  ;;  %v309_v41 = vld [vmem:[%s11511_s0 + $0x900] sm:$0xff] }
 0x237   :  { %v3049_v57 = vunpack.c.l.b16 %v2176_v49  ;;  %v3050_v59 = vunpack.c.h.b16 %v2176_v49  ;;  %1384 = vadd.xlane.f32.xlu1 %v1383_v44  ;;  %1381 = vadd.xlane.f32.xlu0 %v1380_v45  ;;  %v4418_v16 = vsel %vm3362_vm1, %v4417_v55, %v4413_v54  ;;  %v7387_v44 = vld [vmem:[%s11512_s1 + $0x8] sm:$0xff]  }
 0x238   :  { %v1175_v61 = vpop.xlane.xlu1 %1174  ;;  %v1172_v0 = vpop.xlane.xlu0 %1171  ;;  %7209 = vmatpush3.bf16.msra.mxu0 %v7387_v44 }
 0x239   :  { %v4422_v7 = vrot.slane %v3049_v57, %v7875_v36  ;;  %v4427_v9 = vrot.slane %v3050_v59, %v7887_v42  ;;  %v2177_v11 = vpack.c.bf16 %v1175_v61, %v1172_v0  ;;  %v1401_v57 = vsel %vm533_vm0, %v310_v40, 0.0  ;;  %v7388_v61 = vld [vmem:[%s11512_s1 + $0x50] sm:$0xff]  }
 0x23a   :  { %v1398_v59 = vsel %vm533_vm0, %v309_v41, 0.0  ;;  %7210 = vmatprep.subr.bf16.mxu0 %v7388_v61  ;;  %v315_v61 = vld [vmem:[%s11511_s0 + $0x930] sm:$0xff] }
 0x23b   :  { %v4423_v17 = vsel %vm3369_vm2, %v4422_v7, %v4418_v16  ;;  %v3051_v20 = vunpack.c.l.b16 %v2177_v11  ;;  %v3052_v23 = vunpack.c.h.b16 %v2177_v11  ;;  %1390 = vadd.xlane.f32.xlu1 %v1389_v1  ;;  %1387 = vadd.xlane.f32.xlu0 %v1386_v5  ;;  %v311_v7 = vld [vmem:[%s11511_s0 + $0x910] sm:$0xff] }
 0x23c   :  { %v4428_v26 = vsel %vm3376_vm3, %v4427_v9, %v4423_v17  ;;  %v1181_v29 = vpop.xlane.xlu1 %1180  ;;  %v1178_v31 = vpop.xlane.xlu0 %1177  ;;  %v7389_v9 = vld [vmem:[%s11512_s1 + $0x10] sm:$0xff]  }
 0x23d   :  { %v4432_v37 = vrot.slane %v3051_v20, %v7898_v52  ;;  %v4437_v39 = vrot.slane %v3052_v23, %v7907_v60  ;;  %v2178_v22 = vpack.c.bf16 %v1181_v29, %v1178_v31  ;;  %v1407_v20 = vsel %vm533_vm0, %v312_v6, 0.0  ;;  %7211 = vmatpush3.bf16.msra.mxu0 %v7389_v9 }
 0x23e   :  { %v1404_v23 = vsel %vm533_vm0, %v311_v7, 0.0 }
 0x23f   :  { %v4433_v45 = vsel %vm3383_vm4, %v4432_v37, %v4428_v26  ;;  %v3053_v49 = vunpack.c.l.b16 %v2178_v22  ;;  %v3054_v50 = vunpack.c.h.b16 %v2178_v22  ;;  %1396 = vadd.xlane.f32.xlu1 %v1395_v32  ;;  %1393 = vadd.xlane.f32.xlu0 %v1392_v33  ;;  %v7390_v26 = vld [vmem:[%s11512_s1 + $0x58] sm:$0xff]   ;;  %v314_v33 = vld [vmem:[%s11511_s0 + $0x928] sm:$0xff] }
 0x240   :  { %v4438_v53 = vsel %vm11523_vm5, %v4437_v39, %v4433_v45  ;;  %v1187_v54 = vpop.xlane.xlu1 %1186  ;;  %v1184_v55 = vpop.xlane.xlu0 %1183  ;;  %v7391_v37 = vld [vmem:[%s11512_s1 + $0x18] sm:$0xff]   ;;  %7212 = vmatprep.subr.bf16.mxu0 %v7390_v26  ;;  %v317_v26 = vld [vmem:[%s11511_s0 + $0x940] sm:$0xff] }
 0x241   :  { %v4442_v0 = vrot.slane %v3053_v49, %v7914_v2  ;;  %v4447_v1 = vrot.slane %v3054_v50, %v7927_v13  ;;  %v2179_v5 = vpack.c.bf16 %v1187_v54, %v1184_v55  ;;  %v1413_v49 = vsel %vm533_vm0, %v314_v33, 0.0  ;;  %7213 = vmatpush3.bf16.msra.mxu0 %v7391_v37 }
 0x242   :  { %v1410_v50 = vsel %vm533_vm0, %v313_v35, 0.0 }
 0x243   :  { %v4443_v11 = vsel %vm3397_vm6, %v4442_v0, %v4438_v53  ;;  %v3055_v12 = vunpack.c.l.b16 %v2179_v5  ;;  %v3056_v14 = vunpack.c.h.b16 %v2179_v5  ;;  %1402 = vadd.xlane.f32.xlu1 %v1401_v57  ;;  %1399 = vadd.xlane.f32.xlu0 %v1398_v59  ;;  %v7392_v53 = vld [vmem:[%s11512_s1 + $0x60] sm:$0xff]   ;;  %v316_v59 = vld [vmem:[%s11511_s0 + $0x938] sm:$0xff] }
 0x244   :  { %v4448_v15 = vsel %vm3404_vm7, %v4447_v1, %v4443_v11  ;;  %v1193_v16 = vpop.xlane.xlu1 %1192  ;;  %v1190_v17 = vpop.xlane.xlu0 %1189  ;;  %v7393_v0 = vld [vmem:[%s11512_s1 + $0x20] sm:$0xff]   ;;  %7214 = vmatprep.subr.bf16.mxu0 %v7392_v53  ;;  %v319_v53 = vld [vmem:[%s11511_s0 + $0x950] sm:$0xff] }
 0x245   :  { %v4452_v29 = vrot.slane %v3055_v12, %v7933_v21  ;;  %v4457_v31 = vrot.slane %v3056_v14, %v7941_v27  ;;  %v2180_v32 = vpack.c.bf16 %v1193_v16, %v1190_v17  ;;  %v1419_v12 = vsel %vm533_vm0, %v316_v59, 0.0  ;;  %7215 = vmatpush3.bf16.msra.mxu0 %v7393_v0 }
 0x246   :  { %v1416_v14 = vsel %vm533_vm0, %v315_v61, 0.0 }
 0x247   :  { %v4453_v39 = vsel %vm3411_vm8, %v4452_v29, %v4448_v15  ;;  %v3057_v22 = vunpack.c.l.b16 %v2180_v32  ;;  %v3058_v40 = vunpack.c.h.b16 %v2180_v32  ;;  %1408 = vadd.xlane.f32.xlu1 %v1407_v20  ;;  %1405 = vadd.xlane.f32.xlu0 %v1404_v23  ;;  %v7394_v15 = vld [vmem:[%s11512_s1 + $0x68] sm:$0xff]  }
 0x248   :  { %v4458_v41 = vsel %vm11516_vm9, %v4457_v31, %v4453_v39  ;;  %v1199_v44 = vpop.xlane.xlu1 %1198  ;;  %v1196_v45 = vpop.xlane.xlu0 %1195  ;;  %v318_v23 = vld [vmem:[%s11511_s0 + $0x948] sm:$0xff]  ;;  %7216 = vmatprep.subr.bf16.mxu0 %v7394_v15 }
 0x249   :  { %v4462_v54 = vrot.slane %v3057_v22, %v7959_v48  ;;  %v4467_v55 = vrot.slane %v3058_v40, %v7969_v56  ;;  %v2181_v57 = vpack.c.bf16 %v1199_v44, %v1196_v45  ;;  %v7395_v29 = vld [vmem:[%s11512_s1 + $0x28] sm:$0xff]   ;;  %v1425_v22 = vsel %vm533_vm0, %v318_v23, 0.0 }
 0x24a   :  { %v1422_v40 = vsel %vm533_vm0, %v317_v26, 0.0  ;;  %7217 = vmatpush3.bf16.msra.mxu0 %v7395_v29 }
 0x24b   :  { %v4463_v1 = vsel %vm3425_vm10, %v4462_v54, %v4458_v41  ;;  %v3059_v5 = vunpack.c.l.b16 %v2181_v57  ;;  %v3060_v6 = vunpack.c.h.b16 %v2181_v57  ;;  %1414 = vadd.xlane.f32.xlu1 %v1413_v49  ;;  %1411 = vadd.xlane.f32.xlu0 %v1410_v50  ;;  %v7396_v41 = vld [vmem:[%s11512_s1 + $0x70] sm:$0xff]   ;;  %v320_v50 = vld [vmem:[%s11511_s0 + $0x958] sm:$0xff] }
 0x24c   :  { %v4468_v7 = vsel %vm3432_vm11, %v4467_v55, %v4463_v1  ;;  %v1205_v9 = vpop.xlane.xlu1 %1204  ;;  %v1202_v11 = vpop.xlane.xlu0 %1201  ;;  %v7397_v54 = vld [vmem:[%s11512_s1 + $0x30] sm:$0xff]   ;;  %7218 = vmatprep.subr.bf16.mxu0 %v7396_v41  ;;  %v1431_v0 = vsel %vm533_vm0, %v320_v50, 0.0  ;;  %v1428_v1 = vsel %vm533_vm0, %v319_v53, 0.0 }
 0x24d   :  { %v4472_v16 = vrot.slane %v3059_v5, %v7976_v3  ;;  %v4477_v17 = vrot.slane %v3060_v6, %v7979_v4  ;;  %v2182_v20 = vpack.c.bf16 %v1205_v9, %v1202_v11  ;;  %v7398_v5 = vld [vmem:[%s11512_s1 + $0x78] sm:$0xff]   ;;  %v325_v9 = vld [vmem:[%s11511_s0 + $0x980] sm:$0xff] }
 0x24e   :  { %7219 = vmatpush3.bf16.msra.mxu0 %v7397_v54  ;;  %v321_v11 = vld [vmem:[%s11511_s0 + $0x960] sm:$0xff]  ;;  %v1446_v29 = vsel %vm533_vm0, %v325_v9, 0.0 }
 0x24f   :  { %v4473_v31 = vsel %vm11515_vm12, %v4472_v16, %v4468_v7  ;;  %v3061_v32 = vunpack.c.l.b16 %v2182_v20  ;;  %v3062_v33 = vunpack.c.h.b16 %v2182_v20  ;;  %1420 = vadd.xlane.f32.xlu1 %v1419_v12  ;;  %1417 = vadd.xlane.f32.xlu0 %v1416_v14  ;;  %v7399_v12 = vld [vmem:[%s11512_s1 + $0x38] sm:$0xff]  }
 0x250   :  { %v4478_v35 = vsel %vm3446_vm13, %v4477_v17, %v4473_v31  ;;  %v1211_v37 = vpop.xlane.xlu1 %1210  ;;  %v1208_v39 = vpop.xlane.xlu0 %1207  ;;  %7220 = vmatprep.subr.bf16.mxu0 %v7398_v5  ;;  %v1434_v31 = vsel %vm533_vm0, %v321_v11, 0.0 }
 0x251   :  { %v4482_v44 = vrot.slane %v3061_v32, %v7994_v19  ;;  %v4487_v45 = vrot.slane %v3062_v33, %v8001_v28  ;;  %v2183_v49 = vpack.c.bf16 %v1211_v37, %v1208_v39  ;;  %v327_v37 = vld [vmem:[%s11511_s0 + $0x990] sm:$0xff]  ;;  %v326_v39 = vld [vmem:[%s11511_s0 + $0x988] sm:$0xff] }
 0x252   :  { %7221 = vmatpush3.bf16.msra.mxu0 %v7399_v12  ;;  %v1452_v53 = vsel %vm533_vm0, %v327_v37, 0.0  ;;  %v1449_v54 = vsel %vm533_vm0, %v326_v39, 0.0 }
 0x253   :  { %v3063_v55 = vunpack.c.l.b16 %v2183_v49  ;;  %v3064_v57 = vunpack.c.h.b16 %v2183_v49  ;;  %1426 = vadd.xlane.f32.xlu1 %v1425_v22  ;;  %1423 = vadd.xlane.f32.xlu0 %v1422_v40  ;;  %v4483_v6 = vsel %vm3453_vm14, %v4482_v44, %v4478_v35 }
 0x254   :  { %v1217_v59 = vpop.xlane.xlu1 %1216  ;;  %v1214_v61 = vpop.xlane.xlu0 %1213  ;;  %v9340_v14 = vsel %vm3460_vm15, %v4487_v45, %v4483_v6 }
 0x255   :  { %v2184_v7 = vpack.c.bf16 %v1217_v59, %v1214_v61  ;;  %11533 = vst [vmem:[#allocation14_spill] sm:$0xff] %v9340_v14  ;;  %v4492_v15 = vrot.slane %v3063_v55, %v7869_v30  ;;  %v4496_v16 = vrot.slane %v3064_v57, %v7878_v38  ;;  %v329_v61 = vld [vmem:[%s11511_s0 + $0x9a0] sm:$0xff] }
 0x256   :  { %v1458_v12 = vsel %vm533_vm0, %v329_v61, 0.0 }
 0x257   :  { %v3065_v17 = vunpack.c.l.b16 %v2184_v7  ;;  %v3066_v20 = vunpack.c.h.b16 %v2184_v7  ;;  %1432 = vadd.xlane.f32.xlu1 %v1431_v0  ;;  %1429 = vadd.xlane.f32.xlu0 %v1428_v1  ;;  %v4497_v22 = vsel %vm3362_vm1, %v4496_v16, %v4492_v15  ;;  %v328_v0 = vld [vmem:[%s11511_s0 + $0x998] sm:$0xff] }
 0x258   :  { %v1223_v23 = vpop.xlane.xlu1 %1222  ;;  %v1220_v26 = vpop.xlane.xlu0 %1219  ;;  %v1455_v15 = vsel %vm533_vm0, %v328_v0, 0.0 }
 0x259   :  { %v4501_v32 = vrot.slane %v3065_v17, %v7875_v36  ;;  %v4506_v33 = vrot.slane %v3066_v20, %v7887_v42  ;;  %v2185_v35 = vpack.c.bf16 %v1223_v23, %v1220_v26  ;;  %v331_v23 = vld [vmem:[%s11511_s0 + $0x9b0] sm:$0xff]  ;;  %v330_v26 = vld [vmem:[%s11511_s0 + $0x9a8] sm:$0xff] }
 0x25a   :  { %v1464_v39 = vsel %vm533_vm0, %v331_v23, 0.0 }
 0x25b   :  { %v4502_v40 = vsel %vm3369_vm2, %v4501_v32, %v4497_v22  ;;  %v3067_v41 = vunpack.c.l.b16 %v2185_v35  ;;  %v3068_v44 = vunpack.c.h.b16 %v2185_v35  ;;  %1447 = vadd.xlane.f32.xlu1 %v1446_v29  ;;  %1435 = vadd.xlane.f32.xlu0 %v1434_v31  ;;  %v1461_v22 = vsel %vm533_vm0, %v330_v26, 0.0 }
 0x25c   :  { %v4507_v45 = vsel %vm3376_vm3, %v4506_v33, %v4502_v40  ;;  %v1229_v49 = vpop.xlane.xlu1 %1228  ;;  %v1226_v50 = vpop.xlane.xlu0 %1225 }
 0x25d   :  { %v4511_v55 = vrot.slane %v3067_v41, %v7898_v52  ;;  %v4516_v57 = vrot.slane %v3068_v44, %v7907_v60  ;;  %v2186_v59 = vpack.c.bf16 %v1229_v49, %v1226_v50  ;;  %v332_v49 = vld [vmem:[%s11511_s0 + $0x9b8] sm:$0xff] }
 0x25e   :  { %v1467_v0 = vsel %vm533_vm0, %v332_v49, 0.0 }
 0x25f   :  { %v4512_v1 = vsel %vm3383_vm4, %v4511_v55, %v4507_v45  ;;  %v3069_v5 = vunpack.c.l.b16 %v2186_v59  ;;  %v3070_v6 = vunpack.c.h.b16 %v2186_v59  ;;  %1453 = vadd.xlane.f32.xlu1 %v1452_v53  ;;  %1450 = vadd.xlane.f32.xlu0 %v1449_v54  ;;  %v333_v45 = vld [vmem:[%s11511_s0 + $0x9c0] sm:$0xff] }
 0x260   :  { %v4517_v7 = vsel %vm11523_vm5, %v4516_v57, %v4512_v1  ;;  %v1235_v9 = vpop.xlane.xlu1 %1234  ;;  %v1232_v11 = vpop.xlane.xlu0 %1231  ;;  %v1470_v61 = vsel %vm533_vm0, %v333_v45, 0.0 }
 0x261   :  { %v4521_v16 = vrot.slane %v3069_v5, %v7914_v2  ;;  %v4526_v17 = vrot.slane %v3070_v6, %v7927_v13  ;;  %v2187_v20 = vpack.c.bf16 %v1235_v9, %v1232_v11  ;;  %v334_v9 = vld [vmem:[%s11511_s0 + $0x9c8] sm:$0xff] }
 0x262   :  { %v1473_v26 = vsel %vm533_vm0, %v334_v9, 0.0 }
 0x263   :  { %v4522_v29 = vsel %vm3397_vm6, %v4521_v16, %v4517_v7  ;;  %v3071_v31 = vunpack.c.l.b16 %v2187_v20  ;;  %v3072_v32 = vunpack.c.h.b16 %v2187_v20  ;;  %1459 = vadd.xlane.f32.xlu1 %v1458_v12  ;;  %1456 = vadd.xlane.f32.xlu0 %v1455_v15  ;;  %v335_v7 = vld [vmem:[%s11511_s0 + $0x9d0] sm:$0xff] }
 0x264   :  { %v4527_v33 = vsel %vm3404_vm7, %v4526_v17, %v4522_v29  ;;  %v1241_v35 = vpop.xlane.xlu1 %1240  ;;  %v1238_v37 = vpop.xlane.xlu0 %1237  ;;  %v1476_v23 = vsel %vm533_vm0, %v335_v7, 0.0 }
 0x265   :  { %v4531_v40 = vrot.slane %v3071_v31, %v7933_v21  ;;  %v4536_v41 = vrot.slane %v3072_v32, %v7941_v27  ;;  %v2188_v44 = vpack.c.bf16 %v1241_v35, %v1238_v37  ;;  %v336_v35 = vld [vmem:[%s11511_s0 + $0x9d8] sm:$0xff] }
 0x266   :  { %v1479_v49 = vsel %vm533_vm0, %v336_v35, 0.0  ;;  %v7401_v35 = vld [vmem:[%s11512_s1 + $0x80] sm:$0xff]  }
 0x267   :  { %v4532_v50 = vsel %vm3411_vm8, %v4531_v40, %v4527_v33  ;;  %v3073_v53 = vunpack.c.l.b16 %v2188_v44  ;;  %v3074_v54 = vunpack.c.h.b16 %v2188_v44  ;;  %1465 = vadd.xlane.f32.xlu1 %v1464_v39  ;;  %1462 = vadd.xlane.f32.xlu0 %v1461_v22  ;;  %v337_v33 = vld [vmem:[%s11511_s0 + $0x9e0] sm:$0xff] }
 0x268   :  { %v4537_v55 = vsel %vm11516_vm9, %v4536_v41, %v4532_v50  ;;  %v1247_v57 = vpop.xlane.xlu1 %1246  ;;  %v1244_v59 = vpop.xlane.xlu0 %1243  ;;  %v1482_v45 = vsel %vm533_vm0, %v337_v33, 0.0 }
 0x269   :  { %v4541_v1 = vrot.slane %v3073_v53, %v7959_v48  ;;  %v4546_v5 = vrot.slane %v3074_v54, %v7969_v56  ;;  %v2189_v6 = vpack.c.bf16 %v1247_v57, %v1244_v59  ;;  %v338_v57 = vld [vmem:[%s11511_s0 + $0x9e8] sm:$0xff] }
 0x26a   :  { %v1485_v7 = vsel %vm533_vm0, %v338_v57, 0.0 }
 0x26b   :  { %v4542_v11 = vsel %vm3425_vm10, %v4541_v1, %v4537_v55  ;;  %v3075_v12 = vunpack.c.l.b16 %v2189_v6  ;;  %v3076_v15 = vunpack.c.h.b16 %v2189_v6  ;;  %1471 = vadd.xlane.f32.xlu1 %v1470_v61  ;;  %1468 = vadd.xlane.f32.xlu0 %v1467_v0  ;;  %v322_v55 = vld [vmem:[%s11511_s0 + $0x968] sm:$0xff] }
 0x26c   :  { %v4547_v16 = vsel %vm3432_vm11, %v4546_v5, %v4542_v11  ;;  %v1253_v17 = vpop.xlane.xlu1 %1252  ;;  %v1250_v20 = vpop.xlane.xlu0 %1249  ;;  %v1437_v6 = vsel %vm533_vm0, %v322_v55, 0.0 }
 0x26d   :  { %v4551_v29 = vrot.slane %v3075_v12, %v7976_v3  ;;  %v4556_v31 = vrot.slane %v3076_v15, %v7979_v4  ;;  %v2190_v32 = vpack.c.bf16 %v1253_v17, %v1250_v20  ;;  %v340_v12 = vld [vmem:[%s11511_s0 + $0x9f8] sm:$0xff]  ;;  %v339_v15 = vld [vmem:[%s11511_s0 + $0x9f0] sm:$0xff] }
 0x26e   :  { %v1488_v33 = vsel %vm533_vm0, %v339_v15, 0.0 }
 0x26f   :  { %v4552_v37 = vsel %vm11515_vm12, %v4551_v29, %v4547_v16  ;;  %v3077_v39 = vunpack.c.l.b16 %v2190_v32  ;;  %v3078_v22 = vunpack.c.h.b16 %v2190_v32  ;;  %1477 = vadd.xlane.f32.xlu1 %v1476_v23  ;;  %1474 = vadd.xlane.f32.xlu0 %v1473_v26  ;;  %v7400_v26 = vld [vmem:[%s11512_s1 + $0xc0] sm:$0xff]   ;;  %v1491_v32 = vsel %vm533_vm0, %v340_v12, 0.0 }
 0x270   :  { %v4557_v40 = vsel %vm3446_vm13, %v4556_v31, %v4552_v37  ;;  %v1259_v41 = vpop.xlane.xlu1 %1258  ;;  %v1256_v44 = vpop.xlane.xlu0 %1255  ;;  %7228 = vmatprep.subr.bf16.mxu1 %v7400_v26 }
 0x271   :  { %v4561_v50 = vrot.slane %v3077_v39, %v7994_v19  ;;  %v4566_v53 = vrot.slane %v3078_v22, %v8001_v28  ;;  %v2191_v54 = vpack.c.bf16 %v1259_v41, %v1256_v44  ;;  %v323_v41 = vld [vmem:[%s11511_s0 + $0x970] sm:$0xff]  ;;  %7229 = vmatpush3.bf16.msra.mxu1 %v7401_v35 }
 0x273   :  { %v4562_v59 = vsel %vm3453_vm14, %v4561_v50, %v4557_v40  ;;  %v3079_v61 = vunpack.c.l.b16 %v2191_v54  ;;  %v3080_v0 = vunpack.c.h.b16 %v2191_v54  ;;  %1483 = vadd.xlane.f32.xlu1 %v1482_v45  ;;  %1480 = vadd.xlane.f32.xlu0 %v1479_v49  ;;  %v324_v40 = vld [vmem:[%s11511_s0 + $0x978] sm:$0xff] }
 0x274   :  { %v1265_v1 = vpop.xlane.xlu1 %1264  ;;  %v1262_v5 = vpop.xlane.xlu0 %1261  ;;  %v9431_v9 = vsel %vm3460_vm15, %v4566_v53, %v4562_v59  ;;  %v7402_v53 = vld [vmem:[%s11512_s1 + $0xc8] sm:$0xff]   ;;  %v1443_v59 = vsel %vm533_vm0, %v324_v40, 0.0 }
 0x275   :  { %11534 = vst [vmem:[#allocation15_spill] sm:$0xff] %v9431_v9  ;;  %v2192_v11 = vpack.c.bf16 %v1265_v1, %v1262_v5  ;;  %v4571_v16 = vrot.slane %v3079_v61, %v7869_v30  ;;  %v4575_v17 = vrot.slane %v3080_v0, %v7878_v38  ;;  %v1440_v61 = vsel %vm533_vm0, %v323_v41, 0.0  ;;  %v7403_v0 = vld [vmem:[%s11512_s1 + $0x88] sm:$0xff]   ;;  %7230 = vmatprep.subr.bf16.mxu1 %v7402_v53  ;;  %v468_v9 = vld [vmem:[%s11511_s0 + $0xdf8] sm:$0xff] }
 0x276   :  { %7231 = vmatpush3.bf16.msra.mxu1 %v7403_v0 }
 0x277   :  { %v3081_v20 = vunpack.c.l.b16 %v2192_v11  ;;  %v3082_v23 = vunpack.c.h.b16 %v2192_v11  ;;  %1438 = vadd.xlane.f32.xlu1 %v1437_v6  ;;  %1486 = vadd.xlane.f32.xlu0 %v1485_v7  ;;  %v4576_v44 = vsel %vm3362_vm1, %v4575_v17, %v4571_v16  ;;  %v358_v7 = vld [vmem:[%s11511_s0 + $0xa88] sm:$0xff]  ;;  %v357_v11 = vld [vmem:[%s11511_s0 + $0xa80] sm:$0xff]  ;;  %v7404_v17 = vld [vmem:[%s11512_s1 + $0xd0] sm:$0xff]  }
 0x278   :  { %v1271_v29 = vpop.xlane.xlu1 %1270  ;;  %v1268_v31 = vpop.xlane.xlu0 %1267  ;;  %7232 = vmatprep.subr.bf16.mxu1 %v7404_v17 }
 0x279   :  { %v4580_v37 = vrot.slane %v3081_v20, %v7875_v36  ;;  %v4585_v39 = vrot.slane %v3082_v23, %v7887_v42  ;;  %v2193_v22 = vpack.c.bf16 %v1271_v29, %v1268_v31  ;;  %v1545_v29 = vsel %vm533_vm0, %v358_v7, 0.0 }
 0x27a   :  { %v1542_v31 = vsel %vm533_vm0, %v357_v11, 0.0 }
 0x27b   :  { %v4581_v45 = vsel %vm3369_vm2, %v4580_v37, %v4576_v44  ;;  %v3083_v49 = vunpack.c.l.b16 %v2193_v22  ;;  %v3084_v50 = vunpack.c.h.b16 %v2193_v22  ;;  %1492 = vadd.xlane.f32.xlu1 %v1491_v32  ;;  %1489 = vadd.xlane.f32.xlu0 %v1488_v33  ;;  %v7405_v32 = vld [vmem:[%s11512_s1 + $0x90] sm:$0xff]   ;;  %v341_v22 = vld [vmem:[%s11511_s0 + $0xa00] sm:$0xff] }
 0x27c   :  { %v4586_v54 = vsel %vm3376_vm3, %v4585_v39, %v4581_v45  ;;  %v1277_v55 = vpop.xlane.xlu1 %1276  ;;  %v1274_v57 = vpop.xlane.xlu0 %1273  ;;  %v342_v39 = vld [vmem:[%s11511_s0 + $0xa08] sm:$0xff]  ;;  %7233 = vmatpush3.bf16.msra.mxu1 %v7405_v32  ;;  %v7406_v45 = vld [vmem:[%s11512_s1 + $0xd8] sm:$0xff]  }
 0x27d   :  { %v4590_v1 = vrot.slane %v3083_v49, %v7898_v52  ;;  %v4595_v5 = vrot.slane %v3084_v50, %v7907_v60  ;;  %v2194_v6 = vpack.c.bf16 %v1277_v55, %v1274_v57  ;;  %v1494_v55 = vsel %vm533_vm0, %v341_v22, 0.0  ;;  %v7407_v57 = vld [vmem:[%s11512_s1 + $0x98] sm:$0xff]   ;;  %7234 = vmatprep.subr.bf16.mxu1 %v7406_v45 }
 0x27f   :  { %v4591_v12 = vsel %vm3383_vm4, %v4590_v1, %v4586_v54  ;;  %v3085_v15 = vunpack.c.l.b16 %v2194_v6  ;;  %v3086_v16 = vunpack.c.h.b16 %v2194_v6  ;;  %1444 = vadd.xlane.f32.xlu1 %v1443_v59  ;;  %1441 = vadd.xlane.f32.xlu0 %v1440_v61  ;;  %v1497_v54 = vsel %vm533_vm0, %v342_v39, 0.0  ;;  %v360_v1 = vld [vmem:[%s11511_s0 + $0xa98] sm:$0xff] }
 0x280   :  { %v4596_v20 = vsel %vm11523_vm5, %v4595_v5, %v4591_v12  ;;  %v1283_v23 = vpop.xlane.xlu1 %1282  ;;  %v1280_v26 = vpop.xlane.xlu0 %1279  ;;  %v359_v5 = vld [vmem:[%s11511_s0 + $0xa90] sm:$0xff]  ;;  %7235 = vmatpush3.bf16.msra.mxu1 %v7407_v57  ;;  %v7408_v12 = vld [vmem:[%s11512_s1 + $0xe0] sm:$0xff]  }
 0x281   :  { %v4600_v33 = vrot.slane %v3085_v15, %v7914_v2  ;;  %v4605_v35 = vrot.slane %v3086_v16, %v7927_v13  ;;  %v2195_v37 = vpack.c.bf16 %v1283_v23, %v1280_v26  ;;  %v1548_v23 = vsel %vm533_vm0, %v359_v5, 0.0  ;;  %v7409_v26 = vld [vmem:[%s11512_s1 + $0xa0] sm:$0xff]   ;;  %7236 = vmatprep.subr.bf16.mxu1 %v7408_v12 }
 0x283   :  { %v4601_v40 = vsel %vm3397_vm6, %v4600_v33, %v4596_v20  ;;  %v3087_v41 = vunpack.c.l.b16 %v2195_v37  ;;  %v3088_v44 = vunpack.c.h.b16 %v2195_v37  ;;  %1546 = vadd.xlane.f32.xlu1 %v1545_v29  ;;  %1543 = vadd.xlane.f32.xlu0 %v1542_v31  ;;  %v1551_v20 = vsel %vm533_vm0, %v360_v1, 0.0  ;;  %v344_v33 = vld [vmem:[%s11511_s0 + $0xa18] sm:$0xff] }
 0x284   :  { %v4606_v49 = vsel %vm3404_vm7, %v4605_v35, %v4601_v40  ;;  %v1289_v50 = vpop.xlane.xlu1 %1288  ;;  %v1286_v53 = vpop.xlane.xlu0 %1285  ;;  %v343_v35 = vld [vmem:[%s11511_s0 + $0xa10] sm:$0xff]  ;;  %7237 = vmatpush3.bf16.msra.mxu1 %v7409_v26  ;;  %v7410_v40 = vld [vmem:[%s11512_s1 + $0xe8] sm:$0xff]  }
 0x285   :  { %v4610_v59 = vrot.slane %v3087_v41, %v7933_v21  ;;  %v4615_v61 = vrot.slane %v3088_v44, %v7941_v27  ;;  %v2196_v0 = vpack.c.bf16 %v1289_v50, %v1286_v53  ;;  %v1500_v50 = vsel %vm533_vm0, %v343_v35, 0.0  ;;  %v7411_v53 = vld [vmem:[%s11512_s1 + $0xa8] sm:$0xff]   ;;  %7238 = vmatprep.subr.bf16.mxu1 %v7410_v40 }
 0x286   :  { %v362_v26 = vld [vmem:[%s11511_s0 + $0xaa8] sm:$0xff] }
 0x287   :  { %v4611_v6 = vsel %vm3411_vm8, %v4610_v59, %v4606_v49  ;;  %v3089_v7 = vunpack.c.l.b16 %v2196_v0  ;;  %v3090_v11 = vunpack.c.h.b16 %v2196_v0  ;;  %1498 = vadd.xlane.f32.xlu1 %v1497_v54  ;;  %1495 = vadd.xlane.f32.xlu0 %v1494_v55  ;;  %v1503_v49 = vsel %vm533_vm0, %v344_v33, 0.0  ;;  %v390_v59 = vld [vmem:[%s11511_s0 + $0xb88] sm:$0xff] }
 0x288   :  { %v4616_v15 = vsel %vm11516_vm9, %v4615_v61, %v4611_v6  ;;  %v1295_v16 = vpop.xlane.xlu1 %1294  ;;  %v1292_v17 = vpop.xlane.xlu0 %1291  ;;  %v389_v61 = vld [vmem:[%s11511_s0 + $0xb80] sm:$0xff]  ;;  %7239 = vmatpush3.bf16.msra.mxu1 %v7411_v53  ;;  %v7412_v6 = vld [vmem:[%s11512_s1 + $0xf0] sm:$0xff]   ;;  %v1557_v35 = vsel %vm533_vm0, %v362_v26, 0.0  ;;  %v374_v40 = vld [vmem:[%s11511_s0 + $0xb08] sm:$0xff] }
 0x289   :  { %v4620_v29 = vrot.slane %v3089_v7, %v7959_v48  ;;  %v4625_v31 = vrot.slane %v3090_v11, %v7969_v56  ;;  %v2197_v32 = vpack.c.bf16 %v1295_v16, %v1292_v17  ;;  %v1638_v16 = vsel %vm533_vm0, %v389_v61, 0.0  ;;  %v7413_v17 = vld [vmem:[%s11512_s1 + $0xb0] sm:$0xff]   ;;  %7240 = vmatprep.subr.bf16.mxu1 %v7412_v6 }
 0x28b   :  { %v4621_v37 = vsel %vm3425_vm10, %v4620_v29, %v4616_v15  ;;  %v3091_v39 = vunpack.c.l.b16 %v2197_v32  ;;  %v3092_v22 = vunpack.c.h.b16 %v2197_v32  ;;  %1552 = vadd.xlane.f32.xlu1 %v1551_v20  ;;  %1549 = vadd.xlane.f32.xlu0 %v1548_v23  ;;  %v1641_v15 = vsel %vm533_vm0, %v390_v59, 0.0  ;;  %v361_v29 = vld [vmem:[%s11511_s0 + $0xaa0] sm:$0xff] }
 0x28c   :  { %v4626_v41 = vsel %vm3432_vm11, %v4625_v31, %v4621_v37  ;;  %v1301_v44 = vpop.xlane.xlu1 %1300  ;;  %v1298_v45 = vpop.xlane.xlu0 %1297  ;;  %7241 = vmatpush3.bf16.msra.mxu1 %v7413_v17  ;;  %v7414_v31 = vld [vmem:[%s11512_s1 + $0xf8] sm:$0xff]   ;;  %v1554_v37 = vsel %vm533_vm0, %v361_v29, 0.0 }
 0x28d   :  { %v4630_v54 = vrot.slane %v3091_v39, %v7976_v3  ;;  %v4635_v55 = vrot.slane %v3092_v22, %v7979_v4  ;;  %v2198_v57 = vpack.c.bf16 %v1301_v44, %v1298_v45  ;;  %v7415_v39 = vld [vmem:[%s11512_s1 + $0xb8] sm:$0xff]   ;;  %7242 = vmatprep.subr.bf16.mxu1 %v7414_v31 }
 0x28e   :  { %v376_v17 = vld [vmem:[%s11511_s0 + $0xb18] sm:$0xff] }
 0x28f   :  { %v4631_v0 = vsel %vm11515_vm12, %v4630_v54, %v4626_v41  ;;  %v3093_v1 = vunpack.c.l.b16 %v2198_v57  ;;  %v3094_v5 = vunpack.c.h.b16 %v2198_v57  ;;  %1504 = vadd.xlane.f32.xlu1 %v1503_v49  ;;  %1501 = vadd.xlane.f32.xlu0 %v1500_v50  ;;  %v373_v41 = vld [vmem:[%s11511_s0 + $0xb00] sm:$0xff]  ;;  %v1593_v50 = vsel %vm533_vm0, %v374_v40, 0.0  ;;  %v392_v54 = vld [vmem:[%s11511_s0 + $0xb98] sm:$0xff] }
 0x290   :  { %v4636_v7 = vsel %vm3446_vm13, %v4635_v55, %v4631_v0  ;;  %v1307_v11 = vpop.xlane.xlu1 %1306  ;;  %v1304_v12 = vpop.xlane.xlu0 %1303  ;;  %7243 = vmatpush3.bf16.msra.mxu1 %v7415_v39  ;;  %v1590_v53 = vsel %vm533_vm0, %v373_v41, 0.0  ;;  %v391_v55 = vld [vmem:[%s11511_s0 + $0xb90] sm:$0xff]  ;;  %v1647_v61 = vsel %vm533_vm0, %v392_v54, 0.0  ;;  %v1599_v29 = vsel %vm533_vm0, %v376_v17, 0.0  ;;  %v394_v54 = vld [vmem:[%s11511_s0 + $0xba8] sm:$0xff] }
 0x291   :  { %v4640_v20 = vrot.slane %v3093_v1, %v7994_v19  ;;  %v4645_v23 = vrot.slane %v3094_v5, %v8001_v28  ;;  %v1644_v0 = vsel %vm533_vm0, %v391_v55, 0.0  ;;  %v346_v1 = vld [vmem:[%s11511_s0 + $0xa28] sm:$0xff]  ;;  %v345_v5 = vld [vmem:[%s11511_s0 + $0xa20] sm:$0xff]  ;;  %v2199_v39 = vpack.c.bf16 %v1307_v11, %v1304_v12 }
 0x292   :  { %v393_v55 = vld [vmem:[%s11511_s0 + $0xba0] sm:$0xff] }
 0x293   :  { %1642 = vadd.xlane.f32.xlu1 %v1641_v15  ;;  %1639 = vadd.xlane.f32.xlu0 %v1638_v16  ;;  %v4641_v22 = vsel %vm3453_vm14, %v4640_v20, %v4636_v7  ;;  %v1509_v15 = vsel %vm533_vm0, %v346_v1, 0.0  ;;  %v1506_v16 = vsel %vm533_vm0, %v345_v5, 0.0  ;;  %v375_v20 = vld [vmem:[%s11511_s0 + $0xb10] sm:$0xff]  ;;  %v3095_v11 = vunpack.c.l.b16 %v2199_v39 }
 0x294   :  { %v1313_v32 = vpop.xlane.xlu1 %1312  ;;  %v1310_v33 = vpop.xlane.xlu0 %1309  ;;  %v9582_v44 = vsel %vm3460_vm15, %v4645_v23, %v4641_v22  ;;  %v1596_v31 = vsel %vm533_vm0, %v375_v20, 0.0  ;;  %v3096_v12 = vunpack.c.h.b16 %v2199_v39  ;;  %v1653_v1 = vsel %vm533_vm0, %v394_v54, 0.0 }
 0x295   :  { %11535 = vst [vmem:[#allocation16_spill] sm:$0xff] %v9582_v44  ;;  %v2200_v22 = vpack.c.bf16 %v1313_v32, %v1310_v33  ;;  %v1650_v5 = vsel %vm533_vm0, %v393_v55, 0.0  ;;  %v4650_v17 = vrot.slane %v3095_v11, %v7869_v30 }
 0x297   :  { %1558 = vadd.xlane.f32.xlu1 %v1557_v35  ;;  %1555 = vadd.xlane.f32.xlu0 %v1554_v37  ;;  %v364_v35 = vld [vmem:[%s11511_s0 + $0xab8] sm:$0xff]  ;;  %v363_v37 = vld [vmem:[%s11511_s0 + $0xab0] sm:$0xff]  ;;  %v3097_v32 = vunpack.c.l.b16 %v2200_v22 }
 0x298   :  { %v1319_v45 = vpop.xlane.xlu1 %1318  ;;  %v1316_v49 = vpop.xlane.xlu0 %1315 }
 0x299   :  { %v2201_v33 = vpack.c.bf16 %v1319_v45, %v1316_v49  ;;  %v4654_v45 = vrot.slane %v3096_v12, %v7878_v38  ;;  %v3098_v49 = vunpack.c.h.b16 %v2200_v22  ;;  %v377_v22 = vld [vmem:[%s11511_s0 + $0xb20] sm:$0xff] }
 0x29b   :  { %1594 = vadd.xlane.f32.xlu1 %v1593_v50  ;;  %1591 = vadd.xlane.f32.xlu0 %v1590_v53  ;;  %v1563_v50 = vsel %vm533_vm0, %v364_v35, 0.0  ;;  %v1560_v53 = vsel %vm533_vm0, %v363_v37, 0.0  ;;  %v3099_v35 = vunpack.c.l.b16 %v2201_v33  ;;  %v4655_v55 = vsel %vm3362_vm1, %v4654_v45, %v4650_v17 }
 0x29c   :  { %v1325_v57 = vpop.xlane.xlu1 %1324  ;;  %v1322_v59 = vpop.xlane.xlu0 %1321  ;;  %v4664_v12 = vrot.slane %v3098_v49, %v7887_v42  ;;  %v1602_v45 = vsel %vm533_vm0, %v377_v22, 0.0 }
 0x29d   :  { %v2202_v37 = vpack.c.bf16 %v1325_v57, %v1322_v59  ;;  %v366_v57 = vld [vmem:[%s11511_s0 + $0xac8] sm:$0xff] }
 0x29f   :  { %1648 = vadd.xlane.f32.xlu1 %v1647_v61  ;;  %1645 = vadd.xlane.f32.xlu0 %v1644_v0 }
 0x2a0   :  { %v9600_v6 = vpop.xlane.xlu1 %1330  ;;  %v9602_v7 = vpop.xlane.xlu0 %1327 }
 0x2a3   :  { %1510 = vadd.xlane.f32.xlu1 %v1509_v15  ;;  %1507 = vadd.xlane.f32.xlu0 %v1506_v16  ;;  %v348_v15 = vld [vmem:[%s11511_s0 + $0xa38] sm:$0xff]  ;;  %v347_v16 = vld [vmem:[%s11511_s0 + $0xa30] sm:$0xff] }
 0x2a4   :  { %v9612_v23 = vpop.xlane.xlu1 %1336  ;;  %v9614_v26 = vpop.xlane.xlu0 %1333  ;;  %v1515_v20 = vsel %vm533_vm0, %v348_v15, 0.0  ;;  %v4669_v15 = vrot.slane %v3099_v35, %v7898_v52 }
 0x2a7   :  { %1600 = vadd.xlane.f32.xlu1 %v1599_v29  ;;  %1597 = vadd.xlane.f32.xlu0 %v1596_v31  ;;  %v378_v29 = vld [vmem:[%s11511_s0 + $0xb28] sm:$0xff]  ;;  %v4659_v31 = vrot.slane %v3097_v32, %v7875_v36 }
 0x2a8   :  { %v9624_v40 = vpop.xlane.xlu1 %1342  ;;  %v9626_v41 = vpop.xlane.xlu0 %1339  ;;  %v1605_v11 = vsel %vm533_vm0, %v378_v29, 0.0 }
 0x2a9   :  { %v4660_v59 = vsel %vm3369_vm2, %v4659_v31, %v4655_v55  ;;  %v1569_v31 = vsel %vm533_vm0, %v366_v57, 0.0  ;;  %v3102_v55 = vunpack.c.h.b16 %v2202_v37 }
 0x2aa   :  { %v4665_v35 = vsel %vm3376_vm3, %v4664_v12, %v4660_v59 }
 0x2ab   :  { %1564 = vadd.xlane.f32.xlu1 %v1563_v50  ;;  %1561 = vadd.xlane.f32.xlu0 %v1560_v53  ;;  %v1512_v53 = vsel %vm533_vm0, %v347_v16, 0.0  ;;  %v3101_v16 = vunpack.c.l.b16 %v2202_v37 }
 0x2ac   :  { %v9636_v61 = vpop.xlane.xlu1 %1348  ;;  %v9638_v0 = vpop.xlane.xlu0 %1345 }
 0x2af   :  { %1654 = vadd.xlane.f32.xlu1 %v1653_v1  ;;  %1651 = vadd.xlane.f32.xlu0 %v1650_v5  ;;  %v3100_v1 = vunpack.c.h.b16 %v2201_v33  ;;  %v2203_v33 = vpack.c.bf16 %v9600_v6, %v9602_v7  ;;  %v396_v6 = vld [vmem:[%s11511_s0 + $0xbb8] sm:$0xff]  ;;  %v4670_v7 = vsel %vm3383_vm4, %v4669_v15, %v4665_v35 }
 0x2b0   :  { %v1355_v39 = vpop.xlane.xlu1 %1354  ;;  %v1352_v50 = vpop.xlane.xlu0 %1351 }
 0x2b1   :  { %v2207_v54 = vpack.c.bf16 %v1355_v39, %v1352_v50  ;;  %v3103_v12 = vunpack.c.l.b16 %v2203_v33 }
 0x2b3   :  { %v3111_v5 = vunpack.c.l.b16 %v2207_v54  ;;  %v3112_v32 = vunpack.c.h.b16 %v2207_v54  ;;  %1516 = vadd.xlane.f32.xlu1 %v1515_v20  ;;  %1513 = vadd.xlane.f32.xlu0 %v1512_v53  ;;  %v365_v20 = vld [vmem:[%s11511_s0 + $0xac0] sm:$0xff]  ;;  %v4674_v53 = vrot.slane %v3100_v1, %v7907_v60  ;;  %v2204_v1 = vpack.c.bf16 %v9612_v23, %v9614_v26 }
 0x2b4   :  { %v1361_v39 = vpop.xlane.xlu1 %1360  ;;  %v1358_v17 = vpop.xlane.xlu0 %1357  ;;  %v1566_v57 = vsel %vm533_vm0, %v365_v20, 0.0  ;;  %v4684_v26 = vrot.slane %v3102_v55, %v7927_v13 }
 0x2b5   :  { %v2208_v49 = vpack.c.bf16 %v1361_v39, %v1358_v17  ;;  %v4729_v29 = vrot.slane %v3111_v5, %v7869_v30  ;;  %v4733_v50 = vrot.slane %v3112_v32, %v7878_v38  ;;  %v4679_v5 = vrot.slane %v3101_v16, %v7914_v2  ;;  %v395_v17 = vld [vmem:[%s11511_s0 + $0xbb0] sm:$0xff] }
 0x2b6   :  { %v1659_v16 = vsel %vm533_vm0, %v396_v6, 0.0 }
 0x2b7   :  { %v3113_v54 = vunpack.c.l.b16 %v2208_v49  ;;  %v3114_v22 = vunpack.c.h.b16 %v2208_v49  ;;  %1606 = vadd.xlane.f32.xlu1 %v1605_v11  ;;  %1603 = vadd.xlane.f32.xlu0 %v1602_v45  ;;  %v4734_v15 = vsel %vm3362_vm1, %v4733_v50, %v4729_v29  ;;  %v4675_v45 = vsel %vm11523_vm5, %v4674_v53, %v4670_v7  ;;  %v350_v50 = vld [vmem:[%s11511_s0 + $0xa48] sm:$0xff]  ;;  %v349_v7 = vld [vmem:[%s11511_s0 + $0xa40] sm:$0xff] }
 0x2b8   :  { %v1367_v32 = vpop.xlane.xlu1 %1366  ;;  %v1364_v39 = vpop.xlane.xlu0 %1363  ;;  %v4680_v23 = vsel %vm3397_vm6, %v4679_v5, %v4675_v45  ;;  %v1656_v29 = vsel %vm533_vm0, %v395_v17, 0.0  ;;  %v4689_v53 = vrot.slane %v3103_v12, %v7933_v21  ;;  %v1521_v12 = vsel %vm533_vm0, %v350_v50, 0.0 }
 0x2b9   :  { %v4738_v11 = vrot.slane %v3113_v54, %v7875_v36  ;;  %v2209_v59 = vpack.c.bf16 %v1367_v32, %v1364_v39  ;;  %v4743_v37 = vrot.slane %v3114_v22, %v7887_v42  ;;  %v3104_v54 = vunpack.c.h.b16 %v2203_v33 }
 0x2ba   :  { %v3105_v22 = vunpack.c.l.b16 %v2204_v1  ;;  %v2205_v33 = vpack.c.bf16 %v9624_v40, %v9626_v41  ;;  %v4685_v17 = vsel %vm3404_vm7, %v4684_v26, %v4680_v23  ;;  %v3106_v45 = vunpack.c.h.b16 %v2204_v1  ;;  %v379_v23 = vld [vmem:[%s11511_s0 + $0xb30] sm:$0xff] }
 0x2bb   :  { %v4739_v49 = vsel %vm3369_vm2, %v4738_v11, %v4734_v15  ;;  %v3115_v20 = vunpack.c.l.b16 %v2209_v59  ;;  %v3116_v35 = vunpack.c.h.b16 %v2209_v59  ;;  %1570 = vadd.xlane.f32.xlu1 %v1569_v31  ;;  %1567 = vadd.xlane.f32.xlu0 %v1566_v57  ;;  %v4694_v15 = vrot.slane %v3104_v54, %v7941_v27 }
 0x2bc   :  { %v1373_v32 = vpop.xlane.xlu1 %1372  ;;  %v1370_v39 = vpop.xlane.xlu0 %1369  ;;  %v4744_v55 = vsel %vm3376_vm3, %v4743_v37, %v4739_v49  ;;  %v1518_v40 = vsel %vm533_vm0, %v349_v7, 0.0  ;;  %v4690_v41 = vsel %vm3411_vm8, %v4689_v53, %v4685_v17  ;;  %v4699_v37 = vrot.slane %v3105_v22, %v7959_v48 }
 0x2bd   :  { %v4748_v6 = vrot.slane %v3115_v20, %v7898_v52  ;;  %v2210_v31 = vpack.c.bf16 %v1373_v32, %v1370_v39  ;;  %v4753_v5 = vrot.slane %v3116_v35, %v7907_v60  ;;  %v3107_v1 = vunpack.c.l.b16 %v2205_v33 }
 0x2be   :  { %v2206_v26 = vpack.c.bf16 %v9636_v61, %v9638_v0  ;;  %v4695_v22 = vsel %vm11516_vm9, %v4694_v15, %v4690_v41  ;;  %v1608_v61 = vsel %vm533_vm0, %v379_v23, 0.0 }
 0x2bf   :  { %v4749_v57 = vsel %vm3383_vm4, %v4748_v6, %v4744_v55  ;;  %v3117_v11 = vunpack.c.l.b16 %v2210_v31  ;;  %v3118_v59 = vunpack.c.h.b16 %v2210_v31  ;;  %1660 = vadd.xlane.f32.xlu1 %v1659_v16  ;;  %1657 = vadd.xlane.f32.xlu0 %v1656_v29  ;;  %v380_v16 = vld [vmem:[%s11511_s0 + $0xb38] sm:$0xff]  ;;  %v4704_v6 = vrot.slane %v3106_v45, %v7969_v56 }
 0x2c0   :  { %v1379_v20 = vpop.xlane.xlu1 %1378  ;;  %v1376_v32 = vpop.xlane.xlu0 %1375  ;;  %v4754_v54 = vsel %vm11523_vm5, %v4753_v5, %v4749_v57  ;;  %v1611_v55 = vsel %vm533_vm0, %v380_v16, 0.0  ;;  %v4700_v0 = vsel %vm3425_vm10, %v4699_v37, %v4695_v22  ;;  %v3108_v5 = vunpack.c.h.b16 %v2205_v33 }
 0x2c1   :  { %v4758_v49 = vrot.slane %v3117_v11, %v7914_v2  ;;  %v2211_v35 = vpack.c.bf16 %v1379_v20, %v1376_v32  ;;  %v4763_v39 = vrot.slane %v3118_v59, %v7927_v13  ;;  %v368_v59 = vld [vmem:[%s11511_s0 + $0xad8] sm:$0xff]  ;;  %v4709_v17 = vrot.slane %v3107_v1, %v7976_v3 }
 0x2c2   :  { %v3109_v15 = vunpack.c.l.b16 %v2206_v26  ;;  %v4705_v41 = vsel %vm3432_vm11, %v4704_v6, %v4700_v0  ;;  %v4714_v23 = vrot.slane %v3108_v5, %v7979_v4  ;;  %v3110_v1 = vunpack.c.h.b16 %v2206_v26 }
 0x2c3   :  { %v4759_v29 = vsel %vm3397_vm6, %v4758_v49, %v4754_v54  ;;  %v3119_v50 = vunpack.c.l.b16 %v2211_v35  ;;  %v3120_v53 = vunpack.c.h.b16 %v2211_v35  ;;  %1522 = vadd.xlane.f32.xlu1 %v1521_v12  ;;  %1519 = vadd.xlane.f32.xlu0 %v1518_v40  ;;  %v367_v12 = vld [vmem:[%s11511_s0 + $0xad0] sm:$0xff]  ;;  %v1575_v35 = vsel %vm533_vm0, %v368_v59, 0.0 }
 0x2c4   :  { %v1385_v31 = vpop.xlane.xlu1 %1384  ;;  %v1382_v7 = vpop.xlane.xlu0 %1381  ;;  %v4764_v45 = vsel %vm3404_vm7, %v4763_v39, %v4759_v29  ;;  %v1572_v16 = vsel %vm533_vm0, %v367_v12, 0.0  ;;  %v398_v29 = vld [vmem:[%s11511_s0 + $0xbc8] sm:$0xff]  ;;  %v4719_v22 = vrot.slane %v3109_v15, %v7994_v19  ;;  %v4724_v59 = vrot.slane %v3110_v1, %v8001_v28  ;;  %v352_v15 = vld [vmem:[%s11511_s0 + $0xa58] sm:$0xff] }
 0x2c5   :  { %v4768_v57 = vrot.slane %v3119_v50, %v7933_v21  ;;  %v2212_v11 = vpack.c.bf16 %v1385_v31, %v1382_v7  ;;  %v4773_v20 = vrot.slane %v3120_v53, %v7941_v27  ;;  %v397_v50 = vld [vmem:[%s11511_s0 + $0xbc0] sm:$0xff]  ;;  %v4710_v53 = vsel %vm11515_vm12, %v4709_v17, %v4705_v41 }
 0x2c6   :  { %v1665_v5 = vsel %vm533_vm0, %v398_v29, 0.0  ;;  %v381_v29 = vld [vmem:[%s11511_s0 + $0xb40] sm:$0xff] }
 0x2c7   :  { %v4769_v33 = vsel %vm3411_vm8, %v4768_v57, %v4764_v45  ;;  %v3121_v32 = vunpack.c.l.b16 %v2212_v11  ;;  %v3122_v40 = vunpack.c.h.b16 %v2212_v11  ;;  %1612 = vadd.xlane.f32.xlu1 %v1611_v55  ;;  %1609 = vadd.xlane.f32.xlu0 %v1608_v61  ;;  %v1662_v57 = vsel %vm533_vm0, %v397_v50, 0.0  ;;  %v351_v45 = vld [vmem:[%s11511_s0 + $0xa50] sm:$0xff] }
 0x2c8   :  { %v1391_v37 = vpop.xlane.xlu1 %1390  ;;  %v1388_v49 = vpop.xlane.xlu0 %1387  ;;  %v4774_v6 = vsel %vm11516_vm9, %v4773_v20, %v4769_v33  ;;  %v4715_v11 = vsel %vm3446_vm13, %v4714_v23, %v4710_v53  ;;  %v1524_v23 = vsel %vm533_vm0, %v351_v45, 0.0  ;;  %v399_v45 = vld [vmem:[%s11511_s0 + $0xbd0] sm:$0xff] }
 0x2c9   :  { %v4778_v54 = vrot.slane %v3121_v32, %v7959_v48  ;;  %v2213_v39 = vpack.c.bf16 %v1391_v37, %v1388_v49  ;;  %v4783_v31 = vrot.slane %v3122_v40, %v7969_v56  ;;  %v4720_v32 = vsel %vm3453_vm14, %v4719_v22, %v4715_v11 }
 0x2ca   :  { %v4725_v50 = vsel %vm3460_vm15, %v4724_v59, %v4720_v32 }
 0x2cb   :  { %v4779_v26 = vsel %vm3425_vm10, %v4778_v54, %v4774_v6  ;;  %v3123_v7 = vunpack.c.l.b16 %v2213_v39  ;;  %v3124_v55 = vunpack.c.h.b16 %v2213_v39  ;;  %1576 = vadd.xlane.f32.xlu1 %v1575_v35  ;;  %1573 = vadd.xlane.f32.xlu0 %v1572_v16  ;;  %v1527_v16 = vsel %vm533_vm0, %v352_v15, 0.0  ;;  %v382_v39 = vld [vmem:[%s11511_s0 + $0xb48] sm:$0xff]  ;;  %v400_v15 = vld [vmem:[%s11511_s0 + $0xbd8] sm:$0xff] }
 0x2cc   :  { %v1397_v61 = vpop.xlane.xlu1 %1396  ;;  %v1394_v0 = vpop.xlane.xlu0 %1393  ;;  %v4784_v20 = vsel %vm3432_vm11, %v4783_v31, %v4779_v26  ;;  %v1617_v26 = vsel %vm533_vm0, %v382_v39, 0.0  ;;  %v1671_v32 = vsel %vm533_vm0, %v400_v15, 0.0  ;;  %v384_v39 = vld [vmem:[%s11511_s0 + $0xb58] sm:$0xff] }
 0x2cd   :  { %v4788_v12 = vrot.slane %v3123_v7, %v7976_v3  ;;  %v2214_v17 = vpack.c.bf16 %v1397_v61, %v1394_v0  ;;  %v4793_v33 = vrot.slane %v3124_v55, %v7979_v4  ;;  %v1614_v7 = vsel %vm533_vm0, %v381_v29, 0.0  ;;  %v383_v29 = vld [vmem:[%s11511_s0 + $0xb50] sm:$0xff] }
 0x2cf   :  { %v3125_v40 = vunpack.c.l.b16 %v2214_v17  ;;  %v3126_v41 = vunpack.c.h.b16 %v2214_v17  ;;  %1666 = vadd.xlane.f32.xlu1 %v1665_v5  ;;  %1663 = vadd.xlane.f32.xlu0 %v1662_v57  ;;  %v4789_v37 = vsel %vm11515_vm12, %v4788_v12, %v4784_v20  ;;  %vm5911_vm12 = vcmask 1041409   ;;  %v370_v5 = vld [vmem:[%s11511_s0 + $0xae8] sm:$0xff]  ;;  %v369_v57 = vld [vmem:[%s11511_s0 + $0xae0] sm:$0xff] }
 0x2d0   :  { %v9776_v49 = vpop.xlane.xlu1 %1402  ;;  %v9778_v35 = vpop.xlane.xlu0 %1399  ;;  %v4794_v53 = vsel %vm3446_vm13, %v4793_v33, %v4789_v37  ;;  %v5912_v61 = vsel %vm5911_vm12, %v4725_v50, %v8031_v62  ;;  %v1581_v62 = vsel %vm533_vm0, %v370_v5, 0.0  ;;  %v353_v37 = vld [vmem:[%s11511_s0 + $0xa60] sm:$0xff] }
 0x2d1   :  { %v4798_v1 = vrot.slane %v3125_v40, %v7994_v19  ;;  %v4803_v54 = vrot.slane %v3126_v41, %v8001_v28  ;;  %v5928_v59 = vpack.c.b16 %v5912_v61, %v5912_v61  ;;  %v1668_v40 = vsel %vm533_vm0, %v399_v45, 0.0  ;;  %v354_v41 = vld [vmem:[%s11511_s0 + $0xa68] sm:$0xff] }
 0x2d3   :  { %1528 = vadd.xlane.f32.xlu1 %v1527_v16  ;;  %1525 = vadd.xlane.f32.xlu0 %v1524_v23  ;;  %v4799_v22 = vsel %vm3453_vm14, %v4798_v1, %v4794_v53  ;;  %v1533_v1 = vsel %vm533_vm0, %v354_v41, 0.0 }
 0x2d4   :  { %v1409_v6 = vpop.xlane.xlu1 %1408  ;;  %v1406_v31 = vpop.xlane.xlu0 %1405  ;;  %v4804_v55 = vsel %vm3460_vm15, %v4803_v54, %v4799_v22  ;;  %v1530_v54 = vsel %vm533_vm0, %v353_v37, 0.0  ;;  %v1623_v22 = vsel %vm533_vm0, %v384_v39, 0.0  ;;  %v7417_v37 = vld [vmem:[%s11512_s1 + $0x100] sm:$0xff]  }
 0x2d5   :  { %v5913_v0 = vsel %vm5911_vm12, %v4804_v55, %v8128_v10  ;;  %v1578_v10 = vsel %vm533_vm0, %v369_v57, 0.0  ;;  %v371_v55 = vld [vmem:[%s11511_s0 + $0xaf0] sm:$0xff]  ;;  %v9869_v15 = vpack.c.bf16 %v1409_v6, %v1406_v31 }
 0x2d6   :  { %v5929_v11 = vpack.c.b16 %v5913_v0, %v5913_v0  ;;  %v1584_v57 = vsel %vm533_vm0, %v371_v55, 0.0 }
 0x2d7   :  { %1618 = vadd.xlane.f32.xlu1 %v1617_v26  ;;  %1615 = vadd.xlane.f32.xlu0 %v1614_v7  ;;  %v1620_v26 = vsel %vm533_vm0, %v383_v29, 0.0  ;;  %v372_v7 = vld [vmem:[%s11511_s0 + $0xaf8] sm:$0xff]  ;;  %v7418_v29 = vld [vmem:[%s11512_s1 + $0x148] sm:$0xff]  }
 0x2d8   :  { %v9806_v12 = vpop.xlane.xlu1 %1414  ;;  %6760 = vmatprep.mubr.bf16.mxu0 %v5929_v11  ;;  %v9808_v17 = vpop.xlane.xlu0 %1411  ;;  %v1587_v5 = vsel %vm533_vm0, %v372_v7, 0.0  ;;  %v402_v11 = vld [vmem:[%s11511_s0 + $0xbe8] sm:$0xff] }
 0x2d9   :  { %6761 = vmatmul.mubr.bf16.vlgmr.msra.gmra.mrb[0].mxu0 %v5928_v59  ;;  %v401_v59 = vld [vmem:[%s11511_s0 + $0xbe0] sm:$0xff] }
 0x2da   :  { %v1674_v41 = vsel %vm533_vm0, %v401_v59, 0.0  ;;  %v386_v59 = vld [vmem:[%s11511_s0 + $0xb68] sm:$0xff] }
 0x2db   :  { %1582 = vadd.xlane.f32.xlu1 %v1581_v62  ;;  %1579 = vadd.xlane.f32.xlu0 %v1578_v10  ;;  %v2215_v62 = vpack.c.bf16 %v9776_v49, %v9778_v35  ;;  %v7416_v10 = vld [vmem:[%s11512_s1 + $0x140] sm:$0xff]   ;;  %v356_v49 = vld [vmem:[%s11511_s0 + $0xa78] sm:$0xff]  ;;  %v355_v35 = vld [vmem:[%s11511_s0 + $0xa70] sm:$0xff] }
 0x2dc   :  { %v9818_v20 = vpop.xlane.xlu1 %1420  ;;  %v9820_v33 = vpop.xlane.xlu0 %1417  ;;  %7250 = vmatprep.subr.bf16.mxu0 %v7416_v10  ;;  %v1539_v55 = vsel %vm533_vm0, %v356_v49, 0.0 }
 0x2dd   :  { %7251 = vmatpush3.bf16.msra.mxu0 %v7417_v37  ;;  %v3127_v6 = vunpack.c.l.b16 %v2215_v62  ;;  %v3128_v31 = vunpack.c.h.b16 %v2215_v62  ;;  %v385_v62 = vld [vmem:[%s11511_s0 + $0xb60] sm:$0xff]  ;;  %v7420_v37 = vld [vmem:[%s11512_s1 + $0x150] sm:$0xff]  }
 0x2de   :  { %7252 = vmatprep.subr.bf16.mxu0 %v7418_v29 }
 0x2df   :  { %1672 = vadd.xlane.f32.xlu1 %v1671_v32  ;;  %1669 = vadd.xlane.f32.xlu0 %v1668_v40  ;;  %v1677_v40 = vsel %vm533_vm0, %v402_v11, 0.0 }
 0x2e0   :  { %v9830_v16 = vpop.xlane.xlu1 %1426  ;;  %v9832_v23 = vpop.xlane.xlu0 %1423 }
 0x2e3   :  { %1534 = vadd.xlane.f32.xlu1 %v1533_v1  ;;  %1531 = vadd.xlane.f32.xlu0 %v1530_v54 }
 0x2e4   :  { %v9842_v50 = vpop.xlane.xlu1 %1432  ;;  %v9844_v53 = vpop.xlane.xlu0 %1429 }
 0x2e7   :  { %1624 = vadd.xlane.f32.xlu1 %v1623_v22  ;;  %1621 = vadd.xlane.f32.xlu0 %v1620_v26  ;;  %v3129_v22 = vunpack.c.l.b16 %v9869_v15 }
 0x2e8   :  { %v1448_v61 = vpop.xlane.xlu1 %1447  ;;  %v9854_v0 = vpop.xlane.xlu0 %1435 }
 0x2e9   :  { %v4817_v49 = vrot.slane %v3129_v22, %v7875_v36  ;;  %v403_v22 = vld [vmem:[%s11511_s0 + $0xbf0] sm:$0xff] }
 0x2eb   :  { %1588 = vadd.xlane.f32.xlu1 %v1587_v5  ;;  %1585 = vadd.xlane.f32.xlu0 %v1584_v57  ;;  %v7419_v5 = vld [vmem:[%s11512_s1 + $0x108] sm:$0xff]   ;;  %v9893_v57 = vpack.c.bf16 %v9806_v12, %v9808_v17  ;;  %v4812_v12 = vrot.slane %v3128_v31, %v7878_v38  ;;  %v1629_v31 = vsel %vm533_vm0, %v386_v59, 0.0 }
 0x2ec   :  { %v1454_v45 = vpop.xlane.xlu1 %1453  ;;  %v1451_v32 = vpop.xlane.xlu0 %1450  ;;  %7253 = vmatpush3.bf16.msra.mxu0 %v7419_v5 }
 0x2ed   :  { %v2223_v1 = vpack.c.bf16 %v1451_v32, %v1448_v61  ;;  %v1536_v61 = vsel %vm533_vm0, %v355_v35, 0.0  ;;  %v3131_v29 = vunpack.c.l.b16 %v9893_v57  ;;  %7254 = vmatprep.subr.bf16.mxu0 %v7420_v37  ;;  %v388_v37 = vld [vmem:[%s11511_s0 + $0xb78] sm:$0xff] }
 0x2ef   :  { %v3143_v54 = vunpack.c.l.b16 %v2223_v1  ;;  %v3144_v39 = vunpack.c.h.b16 %v2223_v1  ;;  %1678 = vadd.xlane.f32.xlu1 %v1677_v40  ;;  %1675 = vadd.xlane.f32.xlu0 %v1674_v41  ;;  %v4808_v40 = vrot.slane %v3127_v6, %v7869_v30  ;;  %v404_v41 = vld [vmem:[%s11511_s0 + $0xbf8] sm:$0xff]  ;;  %v3130_v1 = vunpack.c.h.b16 %v9869_v15 }
 0x2f0   :  { %v1460_v26 = vpop.xlane.xlu1 %1459  ;;  %v1457_v7 = vpop.xlane.xlu0 %1456 }
 0x2f1   :  { %v2224_v11 = vpack.c.bf16 %v1457_v7, %v1454_v45  ;;  %v4887_v10 = vrot.slane %v3143_v54, %v7869_v30  ;;  %v4891_v32 = vrot.slane %v3144_v39, %v7878_v38  ;;  %v1626_v54 = vsel %vm533_vm0, %v385_v62, 0.0  ;;  %v7421_v39 = vld [vmem:[%s11512_s1 + $0x110] sm:$0xff]  }
 0x2f2   :  { %v9921_v7 = vpack.c.bf16 %v9818_v20, %v9820_v33  ;;  %7255 = vmatpush3.bf16.msra.mxu0 %v7421_v39  ;;  %v4813_v59 = vsel %vm3362_vm1, %v4812_v12, %v4808_v40  ;;  %v3132_v40 = vunpack.c.h.b16 %v9893_v57  ;;  %v387_v57 = vld [vmem:[%s11511_s0 + $0xb70] sm:$0xff]  ;;  %v9956_v39 = vpack.c.bf16 %v9830_v16, %v9832_v23 }
 0x2f3   :  { %v3145_v17 = vunpack.c.l.b16 %v2224_v11  ;;  %v3146_v45 = vunpack.c.h.b16 %v2224_v11  ;;  %1540 = vadd.xlane.f32.xlu1 %v1539_v55  ;;  %1537 = vadd.xlane.f32.xlu0 %v1536_v61  ;;  %v4892_v61 = vsel %vm3362_vm1, %v4891_v32, %v4887_v10  ;;  %v1683_v11 = vsel %vm533_vm0, %v404_v41, 0.0  ;;  %v7423_v10 = vld [vmem:[%s11512_s1 + $0x158] sm:$0xff]  }
 0x2f4   :  { %v1466_v35 = vpop.xlane.xlu1 %1465  ;;  %v1463_v6 = vpop.xlane.xlu0 %1462  ;;  %v4818_v32 = vsel %vm3369_vm2, %v4817_v49, %v4813_v59  ;;  %v1680_v41 = vsel %vm533_vm0, %v403_v22, 0.0  ;;  %v3133_v49 = vunpack.c.l.b16 %v9921_v7  ;;  %7256 = vmatprep.subr.bf16.mxu0 %v7423_v10  ;;  %v7426_v59 = vld [vmem:[%s11512_s1 + $0x160] sm:$0xff]   ;;  %v4832_v23 = vrot.slane %v3132_v40, %v7907_v60 }
 0x2f5   :  { %v4896_v15 = vrot.slane %v3145_v17, %v7875_v36  ;;  %v2225_v55 = vpack.c.bf16 %v1463_v6, %v1460_v26  ;;  %v4901_v5 = vrot.slane %v3146_v45, %v7887_v42  ;;  %v7422_v26 = vld [vmem:[%s11512_s1 + $0x1c0] sm:$0xff]   ;;  %v4822_v17 = vrot.slane %v3130_v1, %v7887_v42  ;;  %v7424_v6 = vld [vmem:[%s11512_s1 + $0x118] sm:$0xff]  }
 0x2f6   :  { %7272 = vmatprep.subr.bf16.mxu1 %v7422_v26  ;;  %7257 = vmatpush3.bf16.msra.mxu0 %v7424_v6  ;;  %v7428_v26 = vld [vmem:[%s11512_s1 + $0x120] sm:$0xff]  }
 0x2f7   :  { %v4897_v20 = vsel %vm3369_vm2, %v4896_v15, %v4892_v61  ;;  %v3147_v33 = vunpack.c.l.b16 %v2225_v55  ;;  %v3148_v62 = vunpack.c.h.b16 %v2225_v55  ;;  %1630 = vadd.xlane.f32.xlu1 %v1629_v31  ;;  %1627 = vadd.xlane.f32.xlu0 %v1626_v54  ;;  %v4827_v31 = vrot.slane %v3131_v29, %v7898_v52 }
 0x2f8   :  { %v1472_v12 = vpop.xlane.xlu1 %1471  ;;  %v1469_v45 = vpop.xlane.xlu0 %1468  ;;  %v4902_v15 = vsel %vm3376_vm3, %v4901_v5, %v4897_v20  ;;  %v4823_v16 = vsel %vm3376_vm3, %v4822_v17, %v4818_v32  ;;  %v3134_v5 = vunpack.c.h.b16 %v9921_v7  ;;  %v4837_v32 = vrot.slane %v3133_v49, %v7914_v2  ;;  %v421_v7 = vld [vmem:[%s11511_s0 + $0xc80] sm:$0xff]  ;;  %7258 = vmatprep.subr.bf16.mxu0 %v7426_v59 }
 0x2f9   :  { %v4906_v1 = vrot.slane %v3147_v33, %v7898_v52  ;;  %v2226_v54 = vpack.c.bf16 %v1469_v45, %v1466_v35  ;;  %v4911_v55 = vrot.slane %v3148_v62, %v7907_v60  ;;  %v1635_v35 = vsel %vm533_vm0, %v388_v37, 0.0 }
 0x2fa   :  { %v1632_v62 = vsel %vm533_vm0, %v387_v57, 0.0  ;;  %v4828_v10 = vsel %vm3383_vm4, %v4827_v31, %v4823_v16  ;;  %v3135_v45 = vunpack.c.l.b16 %v9956_v39  ;;  %7259 = vmatpush3.bf16.msra.mxu0 %v7428_v26  ;;  %v3136_v57 = vunpack.c.h.b16 %v9956_v39  ;;  %v406_v16 = vld [vmem:[%s11511_s0 + $0xc08] sm:$0xff]  ;;  %v405_v39 = vld [vmem:[%s11511_s0 + $0xc00] sm:$0xff] }
 0x2fb   :  { %v4907_v29 = vsel %vm3383_vm4, %v4906_v1, %v4902_v15  ;;  %v3149_v22 = vunpack.c.l.b16 %v2226_v54  ;;  %v3150_v61 = vunpack.c.h.b16 %v2226_v54  ;;  %1684 = vadd.xlane.f32.xlu1 %v1683_v11  ;;  %1681 = vadd.xlane.f32.xlu0 %v1680_v41  ;;  %v422_v11 = vld [vmem:[%s11511_s0 + $0xc88] sm:$0xff]  ;;  %v9984_v41 = vpack.c.bf16 %v9842_v50, %v9844_v53 }
 0x2fc   :  { %v1478_v20 = vpop.xlane.xlu1 %1477  ;;  %v1475_v33 = vpop.xlane.xlu0 %1474  ;;  %v4912_v37 = vsel %vm11523_vm5, %v4911_v55, %v4907_v29  ;;  %v1737_v1 = vsel %vm533_vm0, %v422_v11, 0.0  ;;  %v7430_v54 = vld [vmem:[%s11512_s1 + $0x168] sm:$0xff]   ;;  %v4833_v50 = vsel %vm11523_vm5, %v4832_v23, %v4828_v10  ;;  %v4842_v53 = vrot.slane %v3134_v5, %v7927_v13  ;;  %v7434_v10 = vld [vmem:[%s11512_s1 + $0x170] sm:$0xff]  }
 0x2fd   :  { %v4916_v17 = vrot.slane %v3149_v22, %v7914_v2  ;;  %v2227_v40 = vpack.c.bf16 %v1475_v33, %v1472_v12  ;;  %v4921_v6 = vrot.slane %v3150_v61, %v7927_v13  ;;  %v1734_v29 = vsel %vm533_vm0, %v421_v7, 0.0  ;;  %v7432_v22 = vld [vmem:[%s11512_s1 + $0x128] sm:$0xff]   ;;  %7260 = vmatprep.subr.bf16.mxu0 %v7430_v54  ;;  %v424_v54 = vld [vmem:[%s11511_s0 + $0xc98] sm:$0xff] }
 0x2fe   :  { %v4838_v61 = vsel %vm3397_vm6, %v4837_v32, %v4833_v50  ;;  %v4847_v23 = vrot.slane %v3135_v45, %v7933_v21  ;;  %v3137_v5 = vunpack.c.l.b16 %v9984_v41  ;;  %7261 = vmatpush3.bf16.msra.mxu0 %v7432_v22  ;;  %v1689_v45 = vsel %vm533_vm0, %v406_v16, 0.0  ;;  %v423_v50 = vld [vmem:[%s11511_s0 + $0xc90] sm:$0xff]  ;;  %v7438_v22 = vld [vmem:[%s11512_s1 + $0x178] sm:$0xff]  }
 0x2ff   :  { %v4917_v31 = vsel %vm3397_vm6, %v4916_v17, %v4912_v37  ;;  %v3151_v49 = vunpack.c.l.b16 %v2227_v40  ;;  %v3152_v12 = vunpack.c.h.b16 %v2227_v40  ;;  %1636 = vadd.xlane.f32.xlu1 %v1635_v35  ;;  %1633 = vadd.xlane.f32.xlu0 %v1632_v62  ;;  %v4843_v32 = vsel %vm3404_vm7, %v4842_v53, %v4838_v61 }
 0x300   :  { %v1484_v15 = vpop.xlane.xlu1 %1483  ;;  %v1481_v55 = vpop.xlane.xlu0 %1480  ;;  %v4922_v33 = vsel %vm3404_vm7, %v4921_v6, %v4917_v31  ;;  %v4852_v17 = vrot.slane %v3136_v57, %v7941_v27  ;;  %v1686_v37 = vsel %vm533_vm0, %v405_v39, 0.0  ;;  %v7436_v6 = vld [vmem:[%s11512_s1 + $0x130] sm:$0xff]   ;;  %v3138_v31 = vunpack.c.h.b16 %v9984_v41  ;;  %7262 = vmatprep.subr.bf16.mxu0 %v7434_v10 }
 0x301   :  { %v4926_v35 = vrot.slane %v3151_v49, %v7933_v21  ;;  %v2228_v59 = vpack.c.bf16 %v1481_v55, %v1478_v20  ;;  %v4931_v62 = vrot.slane %v3152_v12, %v7941_v27  ;;  %v4848_v53 = vsel %vm3411_vm8, %v4847_v23, %v4843_v32  ;;  %v7440_v23 = vld [vmem:[%s11512_s1 + $0x138] sm:$0xff]  }
 0x302   :  { %v4857_v57 = vrot.slane %v3137_v5, %v7959_v48  ;;  %7263 = vmatpush3.bf16.msra.mxu0 %v7436_v6  ;;  %v1743_v16 = vsel %vm533_vm0, %v424_v54, 0.0  ;;  %v1740_v39 = vsel %vm533_vm0, %v423_v50, 0.0  ;;  %v4853_v5 = vsel %vm11516_vm9, %v4852_v17, %v4848_v53 }
 0x303   :  { %v4927_v20 = vsel %vm3411_vm8, %v4926_v35, %v4922_v33  ;;  %v3153_v11 = vunpack.c.l.b16 %v2228_v59  ;;  %v3154_v26 = vunpack.c.h.b16 %v2228_v59  ;;  %1738 = vadd.xlane.f32.xlu1 %v1737_v1  ;;  %1735 = vadd.xlane.f32.xlu0 %v1734_v29  ;;  %v4862_v33 = vrot.slane %v3138_v31, %v7969_v56 }
 0x304   :  { %v1439_v40 = vpop.xlane.xlu1 %1438  ;;  %v1487_v7 = vpop.xlane.xlu0 %1486  ;;  %v4932_v41 = vsel %vm11516_vm9, %v4931_v62, %v4927_v20  ;;  %7264 = vmatprep.subr.bf16.mxu0 %v7438_v22  ;;  %v4858_v10 = vsel %vm3425_vm10, %v4857_v57, %v4853_v5  ;;  %vm11536_vm9 = vcmask 851712   ;;  %v454_v57 = vld [vmem:[%s11511_s0 + $0xd88] sm:$0xff] }
 0x305   :  { %v4936_v49 = vrot.slane %v3153_v11, %v7959_v48  ;;  %v2221_v12 = vpack.c.bf16 %v1439_v40, %v9854_v0  ;;  %v2229_v1 = vpack.c.bf16 %v1487_v7, %v1484_v15  ;;  %v4941_v55 = vrot.slane %v3154_v26, %v7969_v56  ;;  %v408_v11 = vld [vmem:[%s11511_s0 + $0xc18] sm:$0xff]  ;;  %v407_v26 = vld [vmem:[%s11511_s0 + $0xc10] sm:$0xff] }
 0x306   :  { %7265 = vmatpush3.bf16.msra.mxu0 %v7440_v23  ;;  %v1692_v54 = vsel %vm533_vm0, %v407_v26, 0.0  ;;  %v426_v26 = vld [vmem:[%s11511_s0 + $0xca8] sm:$0xff] }
 0x307   :  { %v4937_v0 = vsel %vm3425_vm10, %v4936_v49, %v4932_v41  ;;  %v3139_v15 = vunpack.c.l.b16 %v2221_v12  ;;  %v3155_v29 = vunpack.c.l.b16 %v2229_v1  ;;  %1690 = vadd.xlane.f32.xlu1 %v1689_v45  ;;  %1687 = vadd.xlane.f32.xlu0 %v1686_v37  ;;  %v3156_v61 = vunpack.c.h.b16 %v2229_v1  ;;  %v453_v41 = vld [vmem:[%s11511_s0 + $0xd80] sm:$0xff] }
 0x308   :  { %v1493_v35 = vpop.xlane.xlu1 %1492  ;;  %v1490_v59 = vpop.xlane.xlu0 %1489  ;;  %v4942_v32 = vsel %vm3432_vm11, %v4941_v55, %v4937_v0  ;;  %v3140_v40 = vunpack.c.h.b16 %v2221_v12  ;;  %v1695_v1 = vsel %vm533_vm0, %v408_v11, 0.0  ;;  %v4863_v55 = vsel %vm3432_vm11, %v4862_v33, %v4858_v10  ;;  %v425_v10 = vld [vmem:[%s11511_s0 + $0xca0] sm:$0xff] }
 0x309   :  { %v4946_v62 = vrot.slane %v3155_v29, %v7976_v3  ;;  %v2230_v20 = vpack.c.bf16 %v1493_v35, %v1490_v59  ;;  %v4951_v17 = vrot.slane %v3156_v61, %v7979_v4  ;;  %v4867_v7 = vrot.slane %v3139_v15, %v7976_v3 }
 0x30a   :  { %v4872_v0 = vrot.slane %v3140_v40, %v7979_v4  ;;  %v1830_v23 = vsel %vm533_vm0, %v453_v41, 0.0  ;;  %v7427_v41 = vld [vmem:[%s11512_s1 + $0x1c8] sm:$0xff]  }
 0x30b   :  { %v3157_v45 = vunpack.c.l.b16 %v2230_v20  ;;  %v3158_v37 = vunpack.c.h.b16 %v2230_v20  ;;  %1744 = vadd.xlane.f32.xlu1 %v1743_v16  ;;  %1741 = vadd.xlane.f32.xlu0 %v1740_v39  ;;  %v4947_v6 = vsel %vm11536_vm9, %v4946_v62, %v4942_v32  ;;  %v4868_v29 = vsel %vm11536_vm9, %v4867_v7, %v4863_v55 }
 0x30c   :  { %v1445_v31 = vpop.xlane.xlu1 %1444  ;;  %v1442_v49 = vpop.xlane.xlu0 %1441  ;;  %v4952_v15 = vsel %vm3446_vm13, %v4951_v17, %v4947_v6  ;;  %v1833_v39 = vsel %vm533_vm0, %v454_v57, 0.0  ;;  %v4873_v32 = vsel %vm3446_vm13, %v4872_v0, %v4868_v29  ;;  %vm11537_vm9 = vcmask 654912  }
 0x30d   :  { %v4956_v50 = vrot.slane %v3157_v45, %v7994_v19  ;;  %v4961_v12 = vrot.slane %v3158_v37, %v8001_v28  ;;  %v2222_v53 = vpack.c.bf16 %v1445_v31, %v1442_v49  ;;  %v1746_v37 = vsel %vm533_vm0, %v425_v10, 0.0 }
 0x30f   :  { %v3141_v22 = vunpack.c.l.b16 %v2222_v53  ;;  %v3142_v61 = vunpack.c.h.b16 %v2222_v53  ;;  %1696 = vadd.xlane.f32.xlu1 %v1695_v1  ;;  %1693 = vadd.xlane.f32.xlu0 %v1692_v54  ;;  %v4957_v35 = vsel %vm3453_vm14, %v4956_v50, %v4952_v15  ;;  %v438_v1 = vld [vmem:[%s11511_s0 + $0xd08] sm:$0xff]  ;;  %v437_v54 = vld [vmem:[%s11511_s0 + $0xd00] sm:$0xff] }
 0x310   :  { %v1547_v59 = vpop.xlane.xlu1 %1546  ;;  %v1544_v16 = vpop.xlane.xlu0 %1543  ;;  %v4962_v5 = vsel %vm3460_vm15, %v4961_v12, %v4957_v35  ;;  %v7425_v50 = vld [vmem:[%s11512_s1 + $0x180] sm:$0xff]   ;;  %v1785_v0 = vsel %vm533_vm0, %v438_v1, 0.0  ;;  %v1782_v15 = vsel %vm533_vm0, %v437_v54, 0.0  ;;  %v7429_v35 = vld [vmem:[%s11512_s1 + $0x188] sm:$0xff]  }
 0x311   :  { %v4877_v33 = vrot.slane %v3141_v22, %v7994_v19  ;;  %v4882_v62 = vrot.slane %v3142_v61, %v8001_v28  ;;  %v2239_v20 = vpack.c.bf16 %v1547_v59, %v1544_v16  ;;  %v5915_v11 = vsel %vm5911_vm12, %v4962_v5, %v8322_v43  ;;  %v456_v22 = vld [vmem:[%s11511_s0 + $0xd98] sm:$0xff]  ;;  %v455_v61 = vld [vmem:[%s11511_s0 + $0xd90] sm:$0xff] }
 0x312   :  { %v5931_v40 = vpack.c.b16 %v5915_v11, %v5915_v11  ;;  %v1749_v43 = vsel %vm533_vm0, %v426_v26, 0.0  ;;  %v7431_v5 = vld [vmem:[%s11512_s1 + $0x1d0] sm:$0xff]   ;;  %v1839_v26 = vsel %vm533_vm0, %v456_v22, 0.0  ;;  %v1836_v10 = vsel %vm533_vm0, %v455_v61, 0.0  ;;  %v7437_v61 = vld [vmem:[%s11512_s1 + $0x198] sm:$0xff]  }
 0x313   :  { %1834 = vadd.xlane.f32.xlu1 %v1833_v39  ;;  %1831 = vadd.xlane.f32.xlu0 %v1830_v23  ;;  %v4878_v17 = vsel %vm3453_vm14, %v4877_v33, %v4873_v32  ;;  %v3175_v12 = vunpack.c.l.b16 %v2239_v20  ;;  %v3176_v53 = vunpack.c.h.b16 %v2239_v20  ;;  %v439_v22 = vld [vmem:[%s11511_s0 + $0xd10] sm:$0xff] }
 0x314   :  { %v1499_v7 = vpop.xlane.xlu1 %1498  ;;  %6800 = vmatprep.mubr.bf16.mxu1 %v5931_v40  ;;  %v1496_v45 = vpop.xlane.xlu0 %1495  ;;  %v4883_v6 = vsel %vm3460_vm15, %v4882_v62, %v4878_v17 }
 0x315   :  { %v2231_v31 = vpack.c.bf16 %v1499_v7, %v1496_v45  ;;  %v5914_v49 = vsel %vm5911_vm12, %v4883_v6, %v8225_v25  ;;  %v5045_v59 = vrot.slane %v3175_v12, %v7869_v30  ;;  %v5049_v16 = vrot.slane %v3176_v53, %v7878_v38  ;;  %v410_v7 = vld [vmem:[%s11511_s0 + $0xc28] sm:$0xff]  ;;  %v409_v45 = vld [vmem:[%s11511_s0 + $0xc20] sm:$0xff] }
 0x316   :  { %v5930_v57 = vpack.c.b16 %v5914_v49, %v5914_v49  ;;  %v7435_v49 = vld [vmem:[%s11512_s1 + $0x1d8] sm:$0xff]  }
 0x317   :  { %1750 = vadd.xlane.f32.xlu1 %v1749_v43  ;;  %1747 = vadd.xlane.f32.xlu0 %v1746_v37  ;;  %v3159_v39 = vunpack.c.l.b16 %v2231_v31  ;;  %v3160_v23 = vunpack.c.h.b16 %v2231_v31  ;;  %v7433_v43 = vld [vmem:[%s11512_s1 + $0x190] sm:$0xff]   ;;  %v5050_v37 = vsel %vm3362_vm1, %v5049_v16, %v5045_v59  ;;  %v7439_v59 = vld [vmem:[%s11512_s1 + $0x1e0] sm:$0xff]  }
 0x318   :  { %v1553_v25 = vpop.xlane.xlu1 %1552  ;;  %6801 = vmatmul.mubr.bf16.vlgmr.msra.gmra.mrb[0].mxu1 %v5930_v57  ;;  %v1550_v55 = vpop.xlane.xlu0 %1549 }
 0x319   :  { %v2240_v29 = vpack.c.bf16 %v1553_v25, %v1550_v55  ;;  %7273 = vmatpush3.bf16.msra.mxu1 %v7425_v50  ;;  %v4966_v6 = vrot.slane %v3159_v39, %v7869_v30  ;;  %v4970_v31 = vrot.slane %v3160_v23, %v7878_v38  ;;  %v1698_v25 = vsel %vm533_vm0, %v409_v45, 0.0 }
 0x31a   :  { %7274 = vmatprep.subr.bf16.mxu1 %v7427_v41  ;;  %v1701_v41 = vsel %vm533_vm0, %v410_v7, 0.0 }
 0x31b   :  { %v3177_v33 = vunpack.c.l.b16 %v2240_v29  ;;  %v3178_v62 = vunpack.c.h.b16 %v2240_v29  ;;  %1786 = vadd.xlane.f32.xlu1 %v1785_v0  ;;  %1783 = vadd.xlane.f32.xlu0 %v1782_v15  ;;  %v440_v29 = vld [vmem:[%s11511_s0 + $0xd18] sm:$0xff] }
 0x31c   :  { %v1505_v20 = vpop.xlane.xlu1 %1504  ;;  %v1502_v11 = vpop.xlane.xlu0 %1501 }
 0x31d   :  { %v5054_v32 = vrot.slane %v3177_v33, %v7875_v36  ;;  %v5059_v40 = vrot.slane %v3178_v62, %v7887_v42  ;;  %v2232_v17 = vpack.c.bf16 %v1505_v20, %v1502_v11  ;;  %7275 = vmatpush3.bf16.msra.mxu1 %v7429_v35  ;;  %v4971_v35 = vsel %vm3362_vm1, %v4970_v31, %v4966_v6  ;;  %v428_v11 = vld [vmem:[%s11511_s0 + $0xcb8] sm:$0xff] }
 0x31e   :  { %7276 = vmatprep.subr.bf16.mxu1 %v7431_v5  ;;  %v1791_v33 = vsel %vm533_vm0, %v440_v29, 0.0  ;;  %v1788_v62 = vsel %vm533_vm0, %v439_v22, 0.0 }
 0x31f   :  { %v5055_v1 = vsel %vm3369_vm2, %v5054_v32, %v5050_v37  ;;  %v3161_v54 = vunpack.c.l.b16 %v2232_v17  ;;  %v3162_v50 = vunpack.c.h.b16 %v2232_v17  ;;  %1840 = vadd.xlane.f32.xlu1 %v1839_v26  ;;  %1837 = vadd.xlane.f32.xlu0 %v1836_v10  ;;  %v427_v26 = vld [vmem:[%s11511_s0 + $0xcb0] sm:$0xff]  ;;  %v7441_v10 = vld [vmem:[%s11512_s1 + $0x1a0] sm:$0xff]   ;;  %v7442_v32 = vld [vmem:[%s11512_s1 + $0x1e8] sm:$0xff]  }
 0x320   :  { %v5060_v12 = vsel %vm3376_vm3, %v5059_v40, %v5055_v1  ;;  %v1643_v53 = vpop.xlane.xlu1 %1642  ;;  %v1640_v57 = vpop.xlane.xlu0 %1639  ;;  %v1752_v37 = vsel %vm533_vm0, %v427_v26, 0.0  ;;  %v458_v1 = vld [vmem:[%s11511_s0 + $0xda8] sm:$0xff] }
 0x321   :  { %v4975_v55 = vrot.slane %v3161_v54, %v7875_v36  ;;  %v4980_v0 = vrot.slane %v3162_v50, %v7887_v42  ;;  %v2255_v15 = vpack.c.bf16 %v1643_v53, %v1640_v57  ;;  %7277 = vmatpush3.bf16.msra.mxu1 %v7433_v43  ;;  %v1755_v43 = vsel %vm533_vm0, %v428_v11, 0.0  ;;  %v457_v54 = vld [vmem:[%s11511_s0 + $0xda0] sm:$0xff]  ;;  %v7443_v50 = vld [vmem:[%s11512_s1 + $0x1a8] sm:$0xff]  }
 0x322   :  { %7278 = vmatprep.subr.bf16.mxu1 %v7435_v49  ;;  %v1845_v22 = vsel %vm533_vm0, %v458_v1, 0.0 }
 0x323   :  { %v4976_v16 = vsel %vm3369_vm2, %v4975_v55, %v4971_v35  ;;  %1702 = vadd.xlane.f32.xlu1 %v1701_v41  ;;  %1699 = vadd.xlane.f32.xlu0 %v1698_v25  ;;  %v3207_v53 = vunpack.c.l.b16 %v2255_v15  ;;  %v3208_v57 = vunpack.c.h.b16 %v2255_v15  ;;  %v7444_v41 = vld [vmem:[%s11512_s1 + $0x1f0] sm:$0xff]   ;;  %v412_v15 = vld [vmem:[%s11511_s0 + $0xc38] sm:$0xff] }
 0x324   :  { %v10162_v39 = vsel %vm3376_vm3, %v4980_v0, %v4976_v16  ;;  %v1559_v23 = vpop.xlane.xlu1 %1558  ;;  %v1556_v5 = vpop.xlane.xlu0 %1555  ;;  %v1707_v26 = vsel %vm533_vm0, %v412_v15, 0.0 }
 0x325   :  { %v2241_v20 = vpack.c.bf16 %v1559_v23, %v1556_v5  ;;  %7279 = vmatpush3.bf16.msra.mxu1 %v7437_v61  ;;  %v1842_v61 = vsel %vm533_vm0, %v457_v54, 0.0  ;;  %v5203_v16 = vrot.slane %v3207_v53, %v7869_v30  ;;  %v5207_v23 = vrot.slane %v3208_v57, %v7878_v38  ;;  %v7446_v5 = vld [vmem:[%s11512_s1 + $0x1f8] sm:$0xff]  }
 0x326   :  { %7280 = vmatprep.subr.bf16.mxu1 %v7439_v59  ;;  %v7445_v59 = vld [vmem:[%s11512_s1 + $0x1b0] sm:$0xff]  }
 0x327   :  { %v3179_v40 = vunpack.c.l.b16 %v2241_v20  ;;  %v3180_v17 = vunpack.c.h.b16 %v2241_v20  ;;  %1792 = vadd.xlane.f32.xlu1 %v1791_v33  ;;  %1789 = vadd.xlane.f32.xlu0 %v1788_v62 }
 0x328   :  { %v1595_v7 = vpop.xlane.xlu1 %1594  ;;  %v1592_v45 = vpop.xlane.xlu0 %1591 }
 0x329   :  { %v5064_v6 = vrot.slane %v3179_v40, %v7898_v52  ;;  %v5069_v31 = vrot.slane %v3180_v17, %v7907_v60  ;;  %v10182_v49 = vpack.c.bf16 %v1595_v7, %v1592_v45  ;;  %7281 = vmatpush3.bf16.msra.mxu1 %v7441_v10  ;;  %v442_v7 = vld [vmem:[%s11511_s0 + $0xd28] sm:$0xff]  ;;  %v441_v45 = vld [vmem:[%s11511_s0 + $0xd20] sm:$0xff] }
 0x32a   :  { %7282 = vmatprep.subr.bf16.mxu1 %v7442_v32 }
 0x32b   :  { %v5065_v25 = vsel %vm3383_vm4, %v5064_v6, %v5060_v12  ;;  %1756 = vadd.xlane.f32.xlu1 %v1755_v43  ;;  %1753 = vadd.xlane.f32.xlu0 %v1752_v37  ;;  %v411_v12 = vld [vmem:[%s11511_s0 + $0xc30] sm:$0xff]  ;;  %v7447_v43 = vld [vmem:[%s11512_s1 + $0x1b8] sm:$0xff]   ;;  %v5208_v37 = vsel %vm3362_vm1, %v5207_v23, %v5203_v16  ;;  %v3191_v6 = vunpack.c.l.b16 %v10182_v49 }
 0x32c   :  { %v10198_v55 = vsel %vm11523_vm5, %v5069_v31, %v5065_v25  ;;  %v1649_v0 = vpop.xlane.xlu1 %1648  ;;  %v1646_v29 = vpop.xlane.xlu0 %1645  ;;  %v1704_v10 = vsel %vm533_vm0, %v411_v12, 0.0  ;;  %v3192_v31 = vunpack.c.h.b16 %v10182_v49  ;;  %v1797_v25 = vsel %vm533_vm0, %v442_v7, 0.0 }
 0x32d   :  { %v2256_v35 = vpack.c.bf16 %v1649_v0, %v1646_v29  ;;  %7283 = vmatpush3.bf16.msra.mxu1 %v7443_v50  ;;  %v1794_v0 = vsel %vm533_vm0, %v441_v45, 0.0  ;;  %v5124_v15 = vrot.slane %v3191_v6, %v7869_v30 }
 0x32e   :  { %7284 = vmatprep.subr.bf16.mxu1 %v7444_v41  ;;  %v5128_v12 = vrot.slane %v3192_v31, %v7878_v38 }
 0x32f   :  { %v3209_v33 = vunpack.c.l.b16 %v2256_v35  ;;  %v3210_v62 = vunpack.c.h.b16 %v2256_v35  ;;  %1846 = vadd.xlane.f32.xlu1 %v1845_v22  ;;  %1843 = vadd.xlane.f32.xlu0 %v1842_v61  ;;  %v430_v61 = vld [vmem:[%s11511_s0 + $0xcc8] sm:$0xff]  ;;  %v429_v35 = vld [vmem:[%s11511_s0 + $0xcc0] sm:$0xff] }
 0x330   :  { %v1511_v20 = vpop.xlane.xlu1 %1510  ;;  %v1508_v11 = vpop.xlane.xlu0 %1507 }
 0x331   :  { %v5212_v32 = vrot.slane %v3209_v33, %v7875_v36  ;;  %v5217_v40 = vrot.slane %v3210_v62, %v7887_v42  ;;  %v2233_v17 = vpack.c.bf16 %v1511_v20, %v1508_v11  ;;  %7285 = vmatpush3.bf16.msra.mxu1 %v7445_v59  ;;  %v1761_v20 = vsel %vm533_vm0, %v430_v61, 0.0  ;;  %v444_v61 = vld [vmem:[%s11511_s0 + $0xd38] sm:$0xff] }
 0x332   :  { %7286 = vmatprep.subr.bf16.mxu1 %v7446_v5  ;;  %v1758_v11 = vsel %vm533_vm0, %v429_v35, 0.0  ;;  %v443_v35 = vld [vmem:[%s11511_s0 + $0xd30] sm:$0xff] }
 0x333   :  { %v5213_v1 = vsel %vm3369_vm2, %v5212_v32, %v5208_v37  ;;  %v3163_v54 = vunpack.c.l.b16 %v2233_v17  ;;  %v3164_v50 = vunpack.c.h.b16 %v2233_v17  ;;  %1708 = vadd.xlane.f32.xlu1 %v1707_v26  ;;  %1705 = vadd.xlane.f32.xlu0 %v1704_v10  ;;  %v459_v32 = vld [vmem:[%s11511_s0 + $0xdb0] sm:$0xff] }
 0x334   :  { %v5218_v53 = vsel %vm3376_vm3, %v5217_v40, %v5213_v1  ;;  %v1601_v57 = vpop.xlane.xlu1 %1600  ;;  %v1598_v41 = vpop.xlane.xlu0 %1597  ;;  %v5129_v40 = vsel %vm3362_vm1, %v5128_v12, %v5124_v15  ;;  %v1848_v6 = vsel %vm533_vm0, %v459_v32, 0.0  ;;  %v414_v1 = vld [vmem:[%s11511_s0 + $0xc48] sm:$0xff] }
 0x335   :  { %v4985_v29 = vrot.slane %v3163_v54, %v7898_v52  ;;  %v4990_v22 = vrot.slane %v3164_v50, %v7907_v60  ;;  %v2248_v49 = vpack.c.bf16 %v1601_v57, %v1598_v41  ;;  %7287 = vmatpush3.bf16.msra.mxu1 %v7447_v43  ;;  %v413_v54 = vld [vmem:[%s11511_s0 + $0xc40] sm:$0xff] }
 0x337   :  { %v4986_v59 = vsel %vm3383_vm4, %v4985_v29, %v10162_v39  ;;  %v3193_v16 = vunpack.c.l.b16 %v2248_v49  ;;  %v3194_v23 = vunpack.c.h.b16 %v2248_v49  ;;  %1798 = vadd.xlane.f32.xlu1 %v1797_v25  ;;  %1795 = vadd.xlane.f32.xlu0 %v1794_v0  ;;  %v460_v39 = vld [vmem:[%s11511_s0 + $0xdb8] sm:$0xff]  ;;  %v1713_v0 = vsel %vm533_vm0, %v414_v1, 0.0  ;;  %v415_v1 = vld [vmem:[%s11511_s0 + $0xc50] sm:$0xff] }
 0x338   :  { %v10249_v5 = vsel %vm11523_vm5, %v4990_v22, %v4986_v59  ;;  %v10251_v33 = vpop.xlane.xlu1 %1564  ;;  %v10253_v62 = vpop.xlane.xlu0 %1561  ;;  %v1851_v37 = vsel %vm533_vm0, %v460_v39, 0.0  ;;  %v1710_v29 = vsel %vm533_vm0, %v413_v54, 0.0 }
 0x339   :  { %v5133_v26 = vrot.slane %v3193_v16, %v7875_v36  ;;  %v5138_v10 = vrot.slane %v3194_v23, %v7887_v42  ;;  %v1803_v23 = vsel %vm533_vm0, %v444_v61, 0.0 }
 0x33b   :  { %v5134_v17 = vsel %vm3369_vm2, %v5133_v26, %v5129_v40  ;;  %1762 = vadd.xlane.f32.xlu1 %v1761_v20  ;;  %1759 = vadd.xlane.f32.xlu0 %v1758_v11  ;;  %v1800_v20 = vsel %vm533_vm0, %v443_v35, 0.0  ;;  %v432_v11 = vld [vmem:[%s11511_s0 + $0xcd8] sm:$0xff]  ;;  %v462_v40 = vld [vmem:[%s11511_s0 + $0xdc8] sm:$0xff] }
 0x33c   :  { %v10268_v7 = vsel %vm3376_vm3, %v5138_v10, %v5134_v17  ;;  %v1655_v45 = vpop.xlane.xlu1 %1654  ;;  %v1652_v43 = vpop.xlane.xlu0 %1651  ;;  %v1767_v39 = vsel %vm533_vm0, %v432_v11, 0.0  ;;  %v461_v17 = vld [vmem:[%s11511_s0 + $0xdc0] sm:$0xff] }
 0x33d   :  { %v2257_v31 = vpack.c.bf16 %v1655_v45, %v1652_v43 }
 0x33f   :  { %v3211_v50 = vunpack.c.l.b16 %v2257_v31  ;;  %v3212_v57 = vunpack.c.h.b16 %v2257_v31  ;;  %1852 = vadd.xlane.f32.xlu1 %v1851_v37  ;;  %1849 = vadd.xlane.f32.xlu0 %v1848_v6  ;;  %v1857_v37 = vsel %vm533_vm0, %v462_v40, 0.0  ;;  %v1854_v6 = vsel %vm533_vm0, %v461_v17, 0.0  ;;  %v416_v31 = vld [vmem:[%s11511_s0 + $0xc58] sm:$0xff]  ;;  %v463_v17 = vld [vmem:[%s11511_s0 + $0xdd0] sm:$0xff] }
 0x340   :  { %v10278_v41 = vpop.xlane.xlu1 %1516  ;;  %v10280_v25 = vpop.xlane.xlu0 %1513  ;;  %v464_v40 = vld [vmem:[%s11511_s0 + $0xdd8] sm:$0xff] }
 0x341   :  { %v5222_v22 = vrot.slane %v3211_v50, %v7898_v52  ;;  %v5227_v49 = vrot.slane %v3212_v57, %v7907_v60  ;;  %v1719_v57 = vsel %vm533_vm0, %v416_v31, 0.0  ;;  %v1863_v31 = vsel %vm533_vm0, %v464_v40, 0.0 }
 0x343   :  { %v5223_v15 = vsel %vm3383_vm4, %v5222_v22, %v5218_v53  ;;  %1714 = vadd.xlane.f32.xlu1 %v1713_v0  ;;  %1711 = vadd.xlane.f32.xlu0 %v1710_v29  ;;  %v431_v53 = vld [vmem:[%s11511_s0 + $0xcd0] sm:$0xff]  ;;  %v1716_v0 = vsel %vm533_vm0, %v415_v1, 0.0  ;;  %v446_v29 = vld [vmem:[%s11511_s0 + $0xd48] sm:$0xff]  ;;  %v445_v22 = vld [vmem:[%s11511_s0 + $0xd40] sm:$0xff]  ;;  %v1860_v1 = vsel %vm533_vm0, %v463_v17, 0.0 }
 0x344   :  { %v10294_v12 = vsel %vm11523_vm5, %v5227_v49, %v5223_v15  ;;  %v10296_v59 = vpop.xlane.xlu1 %1606  ;;  %v10298_v16 = vpop.xlane.xlu0 %1603  ;;  %v1764_v32 = vsel %vm533_vm0, %v431_v53, 0.0  ;;  %v1809_v35 = vsel %vm533_vm0, %v446_v29, 0.0  ;;  %v1806_v15 = vsel %vm533_vm0, %v445_v22, 0.0 }
 0x345   :  { %v2242_v29 = vpack.c.bf16 %v10251_v33, %v10253_v62  ;;  %v10392_v33 = vpack.c.bf16 %v10278_v41, %v10280_v25  ;;  %v10396_v62 = vpack.c.bf16 %v10296_v59, %v10298_v16  ;;  %v435_v41 = vld [vmem:[%s11511_s0 + $0xcf0] sm:$0xff]  ;;  %v466_v59 = vld [vmem:[%s11511_s0 + $0xde8] sm:$0xff]  ;;  %v465_v16 = vld [vmem:[%s11511_s0 + $0xde0] sm:$0xff] }
 0x347   :  { %1804 = vadd.xlane.f32.xlu1 %v1803_v23  ;;  %1801 = vadd.xlane.f32.xlu0 %v1800_v20  ;;  %v434_v23 = vld [vmem:[%s11511_s0 + $0xce8] sm:$0xff]  ;;  %v433_v20 = vld [vmem:[%s11511_s0 + $0xce0] sm:$0xff]  ;;  %v3165_v44 = vunpack.c.l.b16 %v10392_v33 }
 0x348   :  { %v10308_v26 = vpop.xlane.xlu1 %1570  ;;  %v10310_v10 = vpop.xlane.xlu0 %1567 }
 0x349   :  { %v10412_v25 = vpack.c.bf16 %v10308_v26, %v10310_v10  ;;  %v450_v26 = vld [vmem:[%s11511_s0 + $0xd68] sm:$0xff]  ;;  %v3182_v10 = vunpack.c.h.b16 %v2242_v29 }
 0x34a   :  { %v10448_v8 = vsel %vm533_vm0, %v450_v26, 0.0  ;;  %v3166_v26 = vunpack.c.h.b16 %v10392_v33  ;;  %v4995_v33 = vrot.slane %v3165_v44, %v7914_v2 }
 0x34b   :  { %1768 = vadd.xlane.f32.xlu1 %v1767_v39  ;;  %1765 = vadd.xlane.f32.xlu0 %v1764_v32  ;;  %v1773_v39 = vsel %vm533_vm0, %v434_v23, 0.0  ;;  %v1770_v32 = vsel %vm533_vm0, %v433_v20, 0.0  ;;  %v448_v20 = vld [vmem:[%s11511_s0 + $0xd58] sm:$0xff] }
 0x34c   :  { %v1661_v45 = vpop.xlane.xlu1 %1660  ;;  %v1658_v43 = vpop.xlane.xlu0 %1657 }
 0x34f   :  { %1858 = vadd.xlane.f32.xlu1 %v1857_v37  ;;  %1855 = vadd.xlane.f32.xlu0 %v1854_v6 }
 0x350   :  { %v10328_v54 = vpop.xlane.xlu1 %1522  ;;  %v10330_v50 = vpop.xlane.xlu0 %1519 }
 0x351   :  { %v10453_v51 = vpack.c.bf16 %v10328_v54, %v10330_v50  ;;  %v451_v50 = vld [vmem:[%s11511_s0 + $0xd70] sm:$0xff] }
 0x353   :  { %1720 = vadd.xlane.f32.xlu1 %v1719_v57  ;;  %1717 = vadd.xlane.f32.xlu0 %v1716_v0  ;;  %v418_v57 = vld [vmem:[%s11511_s0 + $0xc68] sm:$0xff]  ;;  %v417_v0 = vld [vmem:[%s11511_s0 + $0xc60] sm:$0xff] }
 0x354   :  { %v10340_v49 = vpop.xlane.xlu1 %1612  ;;  %v10342_v61 = vpop.xlane.xlu0 %1609  ;;  %v1722_v23 = vsel %vm533_vm0, %v417_v0, 0.0  ;;  %v10420_v0 = vpack.c.bf16 %v1661_v45, %v1658_v43  ;;  %v1776_v43 = vsel %vm533_vm0, %v435_v41, 0.0 }
 0x355   :  { %v2250_v42 = vpack.c.bf16 %v10340_v49, %v10342_v61 }
 0x356   :  { %v3213_v63 = vunpack.c.l.b16 %v10420_v0 }
 0x357   :  { %1810 = vadd.xlane.f32.xlu1 %v1809_v35  ;;  %1807 = vadd.xlane.f32.xlu0 %v1806_v15  ;;  %v1725_v15 = vsel %vm533_vm0, %v418_v57, 0.0  ;;  %v436_v57 = vld [vmem:[%s11511_s0 + $0xcf8] sm:$0xff] }
 0x358   :  { %v10352_v11 = vpop.xlane.xlu1 %1576  ;;  %v10354_v53 = vpop.xlane.xlu0 %1573  ;;  %v1779_v45 = vsel %vm533_vm0, %v436_v57, 0.0  ;;  %v3183_v57 = vunpack.c.l.b16 %v10412_v25  ;;  %v5232_v44 = vrot.slane %v3213_v63, %v7914_v2  ;;  %v4996_v63 = vsel %vm3397_vm6, %v4995_v33, %v10249_v5 }
 0x359   :  { %v10470_v54 = vpack.c.bf16 %v10352_v11, %v10354_v53  ;;  %v3184_v53 = vunpack.c.h.b16 %v10412_v25 }
 0x35b   :  { %1774 = vadd.xlane.f32.xlu1 %v1773_v39  ;;  %1771 = vadd.xlane.f32.xlu0 %v1770_v32  ;;  %v447_v39 = vld [vmem:[%s11511_s0 + $0xd50] sm:$0xff]  ;;  %v3181_v32 = vunpack.c.l.b16 %v2242_v29  ;;  %v3195_v29 = vunpack.c.l.b16 %v10396_v62  ;;  %v3185_v49 = vunpack.c.l.b16 %v10470_v54  ;;  %v3186_v33 = vunpack.c.h.b16 %v10470_v54 }
 0x35c   :  { %v10364_v37 = vpop.xlane.xlu1 %1666  ;;  %v10366_v6 = vpop.xlane.xlu0 %1663 }
 0x35d   :  { %v5143_v11 = vrot.slane %v3195_v29, %v7898_v52  ;;  %v10502_v29 = vsel %vm533_vm0, %v451_v50, 0.0  ;;  %v5089_v50 = vrot.slane %v3184_v53, %v7941_v27 }
 0x35f   :  { %1864 = vadd.xlane.f32.xlu1 %v1863_v31  ;;  %1861 = vadd.xlane.f32.xlu0 %v1860_v1  ;;  %v1815_v31 = vsel %vm533_vm0, %v448_v20, 0.0  ;;  %v1812_v1 = vsel %vm533_vm0, %v447_v39, 0.0  ;;  %v5074_v20 = vrot.slane %v3181_v32, %v7914_v2  ;;  %v449_v39 = vld [vmem:[%s11511_s0 + $0xd60] sm:$0xff] }
 0x360   :  { %v10378_v22 = vpop.xlane.xlu1 %1528  ;;  %v10380_v35 = vpop.xlane.xlu0 %1525  ;;  %v10456_v34 = vsel %vm533_vm0, %v449_v39, 0.0  ;;  %v3214_v39 = vunpack.c.h.b16 %v10420_v0  ;;  %v5000_v0 = vrot.slane %v3166_v26, %v7927_v13 }
 0x362   :  { %v5237_v5 = vrot.slane %v3214_v39, %v7927_v13 }
 0x363   :  { %1726 = vadd.xlane.f32.xlu1 %v1725_v15  ;;  %1723 = vadd.xlane.f32.xlu0 %v1722_v23  ;;  %v420_v15 = vld [vmem:[%s11511_s0 + $0xc78] sm:$0xff]  ;;  %v419_v23 = vld [vmem:[%s11511_s0 + $0xc70] sm:$0xff] }
 0x364   :  { %v10398_v40 = vpop.xlane.xlu1 %1618  ;;  %v10400_v17 = vpop.xlane.xlu0 %1615  ;;  %v1731_v41 = vsel %vm533_vm0, %v420_v15, 0.0  ;;  %v1728_v14 = vsel %vm533_vm0, %v419_v23, 0.0  ;;  %v5075_v15 = vsel %vm3397_vm6, %v5074_v20, %v10198_v55  ;;  %v5079_v23 = vrot.slane %v3182_v10, %v7927_v13  ;;  %v7448_v55 = vld [vmem:[%s11512_s1 + $0x240] sm:$0xff]  }
 0x365   :  { %v3196_v10 = vunpack.c.h.b16 %v10396_v62  ;;  %7294 = vmatprep.subr.bf16.mxu0 %v7448_v55  ;;  %v3167_v62 = vunpack.c.l.b16 %v10453_v51 }
 0x367   :  { %1816 = vadd.xlane.f32.xlu1 %v1815_v31  ;;  %1813 = vadd.xlane.f32.xlu0 %v1812_v1  ;;  %v1869_v31 = vsel %vm533_vm0, %v466_v59, 0.0  ;;  %v1866_v1 = vsel %vm533_vm0, %v465_v16, 0.0  ;;  %v10459_v59 = vsel %vm533_vm0, %v468_v9, 0.0  ;;  %v467_v16 = vld [vmem:[%s11511_s0 + $0xdf0] sm:$0xff]  ;;  %v452_v9 = vld [vmem:[%s11511_s0 + $0xd78] sm:$0xff]  ;;  %v5005_v26 = vrot.slane %v3167_v62, %v7933_v21 }
 0x368   :  { %v1583_v46 = vpop.xlane.xlu1 %1582  ;;  %v1580_v32 = vpop.xlane.xlu0 %1579  ;;  %v10494_v36 = vsel %vm533_vm0, %v467_v16, 0.0  ;;  %v10499_v25 = vsel %vm533_vm0, %v452_v9, 0.0  ;;  %v5144_v16 = vsel %vm3383_vm4, %v5143_v11, %v10268_v7  ;;  %v5148_v9 = vrot.slane %v3196_v10, %v7907_v60 }
 0x369   :  { %v2245_v61 = vpack.c.bf16 %v1583_v46, %v1580_v32  ;;  %v485_v46 = vld [vmem:[%s11511_s0 + $0xe80] sm:$0xff]  ;;  %v10523_v7 = vpack.c.bf16 %v10378_v22, %v10380_v35  ;;  %v5094_v10 = vrot.slane %v3185_v49, %v7959_v48  ;;  %v5001_v35 = vsel %vm3404_vm7, %v5000_v0, %v4996_v63 }
 0x36a   :  { %v10535_v22 = vsel %vm533_vm0, %v485_v46, 0.0 }
 0x36b   :  { %1780 = vadd.xlane.f32.xlu1 %v1779_v45  ;;  %1777 = vadd.xlane.f32.xlu0 %v1776_v43  ;;  %v5084_v43 = vrot.slane %v3183_v57, %v7933_v21  ;;  %v5080_v57 = vsel %vm3404_vm7, %v5079_v23, %v5075_v15  ;;  %v486_v15 = vld [vmem:[%s11511_s0 + $0xe88] sm:$0xff]  ;;  %v3168_v23 = vunpack.c.h.b16 %v10453_v51  ;;  %v3187_v11 = vunpack.c.l.b16 %v2245_v61 }
 0x36c   :  { %v10485_v20 = vpop.xlane.xlu1 %1672  ;;  %v10487_v45 = vpop.xlane.xlu0 %1669  ;;  %v10532_v53 = vsel %vm533_vm0, %v486_v15, 0.0  ;;  %v3198_v51 = vunpack.c.h.b16 %v2250_v42 }
 0x36d   :  { %v5085_v32 = vsel %vm3411_vm8, %v5084_v43, %v5080_v57  ;;  %v2259_v43 = vpack.c.bf16 %v10364_v37, %v10366_v6  ;;  %v3169_v57 = vunpack.c.l.b16 %v10523_v7  ;;  %v5010_v0 = vrot.slane %v3168_v23, %v7941_v27 }
 0x36e   :  { %v5099_v37 = vrot.slane %v3186_v33, %v7969_v56  ;;  %v3188_v6 = vunpack.c.h.b16 %v2245_v61  ;;  %v5104_v63 = vrot.slane %v3187_v11, %v7976_v3  ;;  %v5158_v15 = vrot.slane %v3198_v51, %v7927_v13 }
 0x36f   :  { %1870 = vadd.xlane.f32.xlu1 %v1869_v31  ;;  %1867 = vadd.xlane.f32.xlu0 %v1866_v1  ;;  %v3197_v31 = vunpack.c.l.b16 %v2250_v42  ;;  %v5233_v1 = vsel %vm3397_vm6, %v5232_v44, %v10294_v12  ;;  %v5149_v12 = vsel %vm11523_vm5, %v5148_v9, %v5144_v16  ;;  %v5006_v42 = vsel %vm3411_vm8, %v5005_v26, %v5001_v35 }
 0x370   :  { %v1535_v55 = vpop.xlane.xlu1 %1534  ;;  %v1532_v52 = vpop.xlane.xlu0 %1531  ;;  %v10546_v44 = vsel %vm3404_vm7, %v5237_v5, %v5233_v1  ;;  %v3215_v46 = vunpack.c.l.b16 %v2259_v43  ;;  %v3216_v61 = vunpack.c.h.b16 %v2259_v43  ;;  %v5011_v1 = vsel %vm11537_vm9, %v5010_v0, %v5006_v42 }
 0x371   :  { %v5153_v62 = vrot.slane %v3197_v31, %v7914_v2  ;;  %v2237_v16 = vpack.c.bf16 %v1535_v55, %v1532_v52  ;;  %v5015_v55 = vrot.slane %v3169_v57, %v7959_v48  ;;  %v5109_v26 = vrot.slane %v3188_v6, %v7979_v4 }
 0x372   :  { %v2260_v33 = vpack.c.bf16 %v10485_v20, %v10487_v45  ;;  %vm11538_vm5 = vcmask 851712   ;;  %v5242_v35 = vrot.slane %v3215_v46, %v7933_v21  ;;  %v469_v20 = vld [vmem:[%s11511_s0 + $0xe00] sm:$0xff] }
 0x373   :  { %1732 = vadd.xlane.f32.xlu1 %v1731_v41  ;;  %1729 = vadd.xlane.f32.xlu0 %v1728_v14  ;;  %v470_v14 = vld [vmem:[%s11511_s0 + $0xe08] sm:$0xff]  ;;  %v5090_v41 = vsel %vm11537_vm9, %v5089_v50, %v5085_v32  ;;  %v7455_v50 = vld [vmem:[%s11512_s1 + $0x2c0] sm:$0xff]   ;;  %v2251_v32 = vpack.c.bf16 %v10398_v40, %v10400_v17  ;;  %v3171_v17 = vunpack.c.l.b16 %v2237_v16  ;;  %v5016_v45 = vsel %vm3425_vm10, %v5015_v55, %v5011_v1 }
 0x374   :  { %v1625_v54 = vpop.xlane.xlu1 %1624  ;;  %v1622_v39 = vpop.xlane.xlu0 %1621  ;;  %v5095_v49 = vsel %vm3425_vm10, %v5094_v10, %v5090_v41  ;;  %v10558_v9 = vsel %vm533_vm0, %v470_v14, 0.0  ;;  %7316 = vmatprep.subr.bf16.mxu1 %v7455_v50  ;;  %v3217_v57 = vunpack.c.l.b16 %v2260_v33  ;;  %v3172_v42 = vunpack.c.h.b16 %v2237_v16 }
 0x375   :  { %v5100_v23 = vsel %vm3432_vm11, %v5099_v37, %v5095_v49  ;;  %v3199_v51 = vunpack.c.l.b16 %v2251_v32  ;;  %v2252_v0 = vpack.c.bf16 %v1625_v54, %v1622_v39  ;;  %v5025_v37 = vrot.slane %v3171_v17, %v7976_v3 }
 0x376   :  { %v5105_v40 = vsel %vm11538_vm5, %v5104_v63, %v5100_v23  ;;  %v1878_v63 = vsel %vm533_vm0, %v469_v20, 0.0  ;;  %v3200_v50 = vunpack.c.h.b16 %v2251_v32  ;;  %v3218_v46 = vunpack.c.h.b16 %v2260_v33 }
 0x377   :  { %1822 = vadd.xlane.f32.xlu1 %v10448_v8  ;;  %1819 = vadd.xlane.f32.xlu0 %v10456_v34  ;;  %v5154_v8 = vsel %vm3397_vm6, %v5153_v62, %v5149_v12  ;;  %v3170_v34 = vunpack.c.h.b16 %v10523_v7  ;;  %v5247_v12 = vrot.slane %v3216_v61, %v7941_v27  ;;  %v5110_v62 = vsel %vm3446_vm13, %v5109_v26, %v5105_v40 }
 0x378   :  { %v1589_v5 = vpop.xlane.xlu1 %1588  ;;  %v1586_v52 = vpop.xlane.xlu0 %1585  ;;  %v5159_v7 = vsel %vm3404_vm7, %v5158_v15, %v5154_v8  ;;  %v5163_v15 = vrot.slane %v3199_v51, %v7933_v21  ;;  %v5243_v54 = vsel %vm3411_vm8, %v5242_v35, %v10546_v44  ;;  %v5030_v32 = vrot.slane %v3172_v42, %v7979_v4 }
 0x379   :  { %v2246_v31 = vpack.c.bf16 %v1589_v5, %v1586_v52  ;;  %v5020_v41 = vrot.slane %v3170_v34, %v7969_v56  ;;  %v5252_v52 = vrot.slane %v3217_v57, %v7959_v48  ;;  %v3201_v8 = vunpack.c.l.b16 %v2252_v0 }
 0x37a   :  { %v5248_v44 = vsel %vm11537_vm9, %v5247_v12, %v5243_v54  ;;  %v5164_v26 = vsel %vm3411_vm8, %v5163_v15, %v5159_v7  ;;  %v5257_v33 = vrot.slane %v3218_v46, %v7969_v56  ;;  %v7449_v15 = vld [vmem:[%s11512_s1 + $0x200] sm:$0xff]  }
 0x37b   :  { %v3189_v10 = vunpack.c.l.b16 %v2246_v31  ;;  %v3190_v11 = vunpack.c.h.b16 %v2246_v31  ;;  %1876 = vadd.xlane.f32.xlu1 %v10459_v59  ;;  %1873 = vadd.xlane.f32.xlu0 %v10494_v36  ;;  %v5021_v39 = vsel %vm3432_vm11, %v5020_v41, %v5016_v45  ;;  %v5253_v7 = vsel %vm3425_vm10, %v5252_v52, %v5248_v44  ;;  %v517_v44 = vld [vmem:[%s11511_s0 + $0xf80] sm:$0xff] }
 0x37c   :  { %v1679_v43 = vpop.xlane.xlu1 %1678  ;;  %v1676_v14 = vpop.xlane.xlu0 %1675  ;;  %v5026_v55 = vsel %vm11538_vm5, %v5025_v37, %v5021_v39  ;;  %vm11539_vm5 = vmmov %vm11537_vm9  ;;  %v5258_v37 = vsel %vm3432_vm11, %v5257_v33, %v5253_v7  ;;  %vm11540_vm9 = vcmask 851712  }
 0x37d   :  { %v5114_v59 = vrot.slane %v3189_v10, %v7994_v19  ;;  %v5119_v36 = vrot.slane %v3190_v11, %v8001_v28  ;;  %v2261_v6 = vpack.c.bf16 %v1679_v43, %v1676_v14  ;;  %v3202_v10 = vunpack.c.h.b16 %v2252_v0 }
 0x37e   :  { %v5031_v12 = vsel %vm3446_vm13, %v5030_v32, %v5026_v55  ;;  %v5173_v43 = vrot.slane %v3201_v8, %v7959_v48 }
 0x37f   :  { %1828 = vadd.xlane.f32.xlu1 %v10499_v25  ;;  %1825 = vadd.xlane.f32.xlu0 %v10502_v29  ;;  %v5115_v49 = vsel %vm3453_vm14, %v5114_v59, %v5110_v62  ;;  %v3219_v31 = vunpack.c.l.b16 %v2261_v6  ;;  %v3220_v14 = vunpack.c.h.b16 %v2261_v6  ;;  %v5178_v6 = vrot.slane %v3202_v10, %v7969_v56 }
 0x380   :  { %v1541_v61 = vpop.xlane.xlu1 %1540  ;;  %v1538_v5 = vpop.xlane.xlu0 %1537  ;;  %v5120_v16 = vsel %vm3460_vm15, %v5119_v36, %v5115_v49 }
 0x381   :  { %v2238_v25 = vpack.c.bf16 %v1541_v61, %v1538_v5  ;;  %v5917_v29 = vsel %vm5911_vm12, %v5120_v16, %v8516_v24  ;;  %v5168_v24 = vrot.slane %v3200_v50, %v7941_v27  ;;  %v5262_v20 = vrot.slane %v3219_v31, %v7976_v3 }
 0x382   :  { %v5933_v34 = vpack.c.b16 %v5917_v29, %v5917_v29  ;;  %v5267_v61 = vrot.slane %v3220_v14, %v7979_v4 }
 0x383   :  { %v3173_v1 = vunpack.c.l.b16 %v2238_v25  ;;  %v3174_v23 = vunpack.c.h.b16 %v2238_v25  ;;  %1930 = vadd.xlane.f32.xlu1 %v10532_v53  ;;  %1927 = vadd.xlane.f32.xlu0 %v10535_v22  ;;  %v488_v53 = vld [vmem:[%s11511_s0 + $0xe98] sm:$0xff]  ;;  %v487_v22 = vld [vmem:[%s11511_s0 + $0xe90] sm:$0xff]  ;;  %v5169_v59 = vsel %vm11539_vm5, %v5168_v24, %v5164_v26  ;;  %v5263_v54 = vsel %vm11540_vm9, %v5262_v20, %v5258_v37  ;;  %v7451_v26 = vld [vmem:[%s11512_s1 + $0x208] sm:$0xff]  }
 0x384   :  { %v1631_v40 = vpop.xlane.xlu1 %1630  ;;  %6840 = vmatprep.mubr.bf16.mxu0 %v5933_v34  ;;  %v1628_v17 = vpop.xlane.xlu0 %1627  ;;  %v1935_v57 = vsel %vm533_vm0, %v488_v53, 0.0  ;;  %v1932_v42 = vsel %vm533_vm0, %v487_v22, 0.0  ;;  %v5174_v46 = vsel %vm3425_vm10, %v5173_v43, %v5169_v59  ;;  %v5268_v33 = vsel %vm3446_vm13, %v5267_v61, %v5263_v54  ;;  %vm11541_vm5 = vmmov %vm11540_vm9  ;;  %v490_v59 = vld [vmem:[%s11511_s0 + $0xea8] sm:$0xff]  ;;  %v501_v61 = vld [vmem:[%s11511_s0 + $0xf00] sm:$0xff] }
 0x385   :  { %v5035_v11 = vrot.slane %v3173_v1, %v7994_v19  ;;  %v5040_v35 = vrot.slane %v3174_v23, %v8001_v28  ;;  %v2253_v51 = vpack.c.bf16 %v1631_v40, %v1628_v17  ;;  %v518_v23 = vld [vmem:[%s11511_s0 + $0xf88] sm:$0xff]  ;;  %v5179_v24 = vsel %vm3432_vm11, %v5178_v6, %v5174_v46  ;;  %v7452_v17 = vld [vmem:[%s11512_s1 + $0x250] sm:$0xff]  }
 0x386   :  { %v2025_v7 = vsel %vm533_vm0, %v518_v23, 0.0  ;;  %v7461_v23 = vld [vmem:[%s11512_s1 + $0x288] sm:$0xff]   ;;  %vm11545_vm9 = vcmask 392512  }
 0x387   :  { %v5036_v45 = vsel %vm3453_vm14, %v5035_v11, %v5031_v12  ;;  %v3203_v41 = vunpack.c.l.b16 %v2253_v51  ;;  %1882 = vadd.xlane.f32.xlu1 %v10558_v9  ;;  %1879 = vadd.xlane.f32.xlu0 %v1878_v63  ;;  %v472_v9 = vld [vmem:[%s11511_s0 + $0xe18] sm:$0xff]  ;;  %v471_v63 = vld [vmem:[%s11511_s0 + $0xe10] sm:$0xff]  ;;  %v3204_v5 = vunpack.c.h.b16 %v2253_v51  ;;  %v2022_v12 = vsel %vm533_vm0, %v517_v44, 0.0 }
 0x388   :  { %v1685_v36 = vpop.xlane.xlu1 %1684  ;;  %v1682_v62 = vpop.xlane.xlu0 %1681  ;;  %v5041_v0 = vsel %vm3460_vm15, %v5040_v35, %v5036_v45  ;;  %v1887_v8 = vsel %vm533_vm0, %v472_v9, 0.0  ;;  %v1884_v34 = vsel %vm533_vm0, %v471_v63, 0.0  ;;  %v502_v63 = vld [vmem:[%s11511_s0 + $0xf08] sm:$0xff] }
 0x389   :  { %v2262_v49 = vpack.c.bf16 %v1685_v36, %v1682_v62  ;;  %v5916_v50 = vsel %vm5911_vm12, %v5041_v0, %v8413_v58  ;;  %v7450_v58 = vld [vmem:[%s11512_s1 + $0x248] sm:$0xff]   ;;  %v5183_v39 = vrot.slane %v3203_v41, %v7976_v3  ;;  %v5188_v40 = vrot.slane %v3204_v5, %v7979_v4  ;;  %v489_v36 = vld [vmem:[%s11511_s0 + $0xea0] sm:$0xff]  ;;  %v7453_v62 = vld [vmem:[%s11512_s1 + $0x210] sm:$0xff]  }
 0x38a   :  { %v5932_v16 = vpack.c.b16 %v5916_v50, %v5916_v50  ;;  %v1938_v50 = vsel %vm533_vm0, %v489_v36, 0.0  ;;  %v7456_v5 = vld [vmem:[%s11512_s1 + $0x218] sm:$0xff]   ;;  %v7465_v36 = vld [vmem:[%s11512_s1 + $0x290] sm:$0xff]  }
 0x38b   :  { %v3221_v25 = vunpack.c.l.b16 %v2262_v49  ;;  %v3222_v29 = vunpack.c.h.b16 %v2262_v49  ;;  %1936 = vadd.xlane.f32.xlu1 %v1935_v57  ;;  %1933 = vadd.xlane.f32.xlu0 %v1932_v42  ;;  %v5184_v10 = vsel %vm11541_vm5, %v5183_v39, %v5179_v24  ;;  %v1941_v49 = vsel %vm533_vm0, %v490_v59, 0.0  ;;  %v7464_v59 = vld [vmem:[%s11512_s1 + $0x228] sm:$0xff]   ;;  %vm11546_vm5 = vmmov %vm11545_vm9 }
 0x38c   :  { %v1637_v52 = vpop.xlane.xlu1 %1636  ;;  %6841 = vmatmul.mubr.bf16.vlgmr.msra.gmra.mrb[4].mxu0 %v5932_v16  ;;  %v1634_v32 = vpop.xlane.xlu0 %1633  ;;  %v5189_v57 = vsel %vm3446_vm13, %v5188_v40, %v5184_v10  ;;  %v7457_v16 = vld [vmem:[%s11512_s1 + $0x280] sm:$0xff]   ;;  %v7462_v40 = vld [vmem:[%s11512_s1 + $0x268] sm:$0xff]  }
 0x38d   :  { %v5272_v55 = vrot.slane %v3221_v25, %v7994_v19  ;;  %v5277_v31 = vrot.slane %v3222_v29, %v8001_v28  ;;  %v2254_v1 = vpack.c.bf16 %v1637_v52, %v1634_v32  ;;  %7295 = vmatpush3.bf16.msra.mxu0 %v7449_v15  ;;  %v7459_v25 = vld [vmem:[%s11512_s1 + $0x2c8] sm:$0xff]   ;;  %v1977_v32 = vsel %vm533_vm0, %v502_v63, 0.0 }
 0x38e   :  { %7296 = vmatprep.subr.bf16.mxu0 %v7450_v58 }
 0x38f   :  { %v3205_v11 = vunpack.c.l.b16 %v2254_v1  ;;  %v3206_v35 = vunpack.c.h.b16 %v2254_v1  ;;  %1888 = vadd.xlane.f32.xlu1 %v1887_v8  ;;  %1885 = vadd.xlane.f32.xlu0 %v1884_v34  ;;  %v5273_v51 = vsel %vm3453_vm14, %v5272_v55, %v5268_v33  ;;  %v1974_v8 = vsel %vm533_vm0, %v501_v61, 0.0  ;;  %v520_v34 = vld [vmem:[%s11511_s0 + $0xf98] sm:$0xff]  ;;  %v7460_v1 = vld [vmem:[%s11512_s1 + $0x220] sm:$0xff]  }
 0x390   :  { %v1739_v53 = vpop.xlane.xlu1 %1738  ;;  %v1736_v22 = vpop.xlane.xlu0 %1735  ;;  %v5278_v43 = vsel %vm3460_vm15, %v5277_v31, %v5273_v51  ;;  %v519_v31 = vld [vmem:[%s11511_s0 + $0xf90] sm:$0xff]  ;;  %v504_v61 = vld [vmem:[%s11511_s0 + $0xf18] sm:$0xff] }
 0x391   :  { %v5193_v14 = vrot.slane %v3205_v11, %v7994_v19  ;;  %v5198_v20 = vrot.slane %v3206_v35, %v8001_v28  ;;  %v2271_v45 = vpack.c.bf16 %v1739_v53, %v1736_v22  ;;  %v5919_v41 = vsel %vm5911_vm12, %v5278_v43, %v8710_v18  ;;  %7297 = vmatpush3.bf16.msra.mxu0 %v7451_v26  ;;  %v7454_v18 = vld [vmem:[%s11512_s1 + $0x258] sm:$0xff]  }
 0x392   :  { %v5935_v42 = vpack.c.b16 %v5919_v41, %v5919_v41  ;;  %7298 = vmatprep.subr.bf16.mxu0 %v7452_v17  ;;  %v7463_v17 = vld [vmem:[%s11512_s1 + $0x2d0] sm:$0xff]   ;;  %v2031_v53 = vsel %vm533_vm0, %v520_v34, 0.0  ;;  %v2028_v22 = vsel %vm533_vm0, %v519_v31, 0.0  ;;  %v473_v41 = vld [vmem:[%s11511_s0 + $0xe20] sm:$0xff]  ;;  %v1983_v31 = vsel %vm533_vm0, %v504_v61, 0.0 }
 0x393   :  { %v5194_v0 = vsel %vm3453_vm14, %v5193_v14, %v5189_v57  ;;  %2026 = vadd.xlane.f32.xlu1 %v2025_v7  ;;  %2023 = vadd.xlane.f32.xlu0 %v2022_v12  ;;  %v3239_v58 = vunpack.c.l.b16 %v2271_v45  ;;  %v3240_v54 = vunpack.c.h.b16 %v2271_v45  ;;  %v474_v7 = vld [vmem:[%s11511_s0 + $0xe28] sm:$0xff] }
 0x394   :  { %v1691_v37 = vpop.xlane.xlu1 %1690  ;;  %6880 = vmatprep.mubr.bf16.mxu1 %v5935_v42  ;;  %v1688_v6 = vpop.xlane.xlu0 %1687  ;;  %v5199_v9 = vsel %vm3460_vm15, %v5198_v20, %v5194_v0  ;;  %v11542_v12 = vld [vmem:[#allocation6_spill] sm:$0xff]  ;;  %v11543_v14 = vld [vmem:[#allocation7_spill] sm:$0xff]  ;;  %v7467_v0 = vld [vmem:[%s11512_s1 + $0x2d8] sm:$0xff]  }
 0x395   :  { %v2263_v15 = vpack.c.bf16 %v1691_v37, %v1688_v6  ;;  %v5918_v46 = vsel %vm5911_vm12, %v5199_v9, %v8607_v47  ;;  %7299 = vmatpush3.bf16.msra.mxu0 %v7453_v62  ;;  %v7458_v47 = vld [vmem:[%s11512_s1 + $0x260] sm:$0xff]   ;;  %v5361_v44 = vrot.slane %v3239_v58, %v7869_v30  ;;  %v5365_v26 = vrot.slane %v3240_v54, %v7878_v38  ;;  %v503_v54 = vld [vmem:[%s11511_s0 + $0xf10] sm:$0xff] }
 0x396   :  { %v5934_v39 = vpack.c.b16 %v5918_v46, %v5918_v46  ;;  %7300 = vmatprep.subr.bf16.mxu0 %v7454_v18  ;;  %v7466_v18 = vld [vmem:[%s11512_s1 + $0x270] sm:$0xff]   ;;  %v1890_v46 = vsel %vm533_vm0, %v473_v41, 0.0  ;;  %v521_v41 = vld [vmem:[%s11511_s0 + $0xfa0] sm:$0xff] }
 0x397   :  { %1942 = vadd.xlane.f32.xlu1 %v1941_v49  ;;  %1939 = vadd.xlane.f32.xlu0 %v1938_v50  ;;  %v3223_v24 = vunpack.c.l.b16 %v2263_v15  ;;  %v3224_v33 = vunpack.c.h.b16 %v2263_v15  ;;  %v5366_v62 = vsel %vm3362_vm1, %v5365_v26, %v5361_v44  ;;  %v1893_v15 = vsel %vm533_vm0, %v474_v7, 0.0  ;;  %v491_v26 = vld [vmem:[%s11511_s0 + $0xeb0] sm:$0xff] }
 0x398   :  { %v1745_v29 = vpop.xlane.xlu1 %1744  ;;  %6881 = vmatmul.mubr.bf16.vlgmr.msra.gmra.mrb[4].mxu1 %v5934_v39  ;;  %v1742_v52 = vpop.xlane.xlu0 %1741  ;;  %v7468_v39 = vld [vmem:[%s11512_s1 + $0x230] sm:$0xff]  }
 0x399   :  { %v2272_v55 = vpack.c.bf16 %v1745_v29, %v1742_v52  ;;  %7301 = vmatpush3.bf16.msra.mxu0 %v7456_v5  ;;  %7317 = vmatpush3.bf16.msra.mxu1 %v7457_v16  ;;  %v5282_v57 = vrot.slane %v3223_v24, %v7869_v30  ;;  %v5286_v42 = vrot.slane %v3224_v33, %v7878_v38  ;;  %v7470_v29 = vld [vmem:[%s11512_s1 + $0x278] sm:$0xff]   ;;  %v7471_v52 = vld [vmem:[%s11512_s1 + $0x2e0] sm:$0xff]  }
 0x39a   :  { %7302 = vmatprep.subr.bf16.mxu0 %v7458_v47  ;;  %7318 = vmatprep.subr.bf16.mxu1 %v7459_v25  ;;  %v7469_v47 = vld [vmem:[%s11512_s1 + $0x298] sm:$0xff]   ;;  %v7473_v33 = vld [vmem:[%s11512_s1 + $0x2a0] sm:$0xff]  }
 0x39b   :  { %v3241_v10 = vunpack.c.l.b16 %v2272_v55  ;;  %v3242_v11 = vunpack.c.h.b16 %v2272_v55  ;;  %1978 = vadd.xlane.f32.xlu1 %v1977_v32  ;;  %1975 = vadd.xlane.f32.xlu0 %v1974_v8  ;;  %v5287_v25 = vsel %vm3362_vm1, %v5286_v42, %v5282_v57  ;;  %v7472_v24 = vld [vmem:[%s11512_s1 + $0x238] sm:$0xff]  }
 0x39c   :  { %v1697_v35 = vpop.xlane.xlu1 %1696  ;;  %v1694_v51 = vpop.xlane.xlu0 %1693 }
 0x39d   :  { %v5370_v43 = vrot.slane %v3241_v10, %v11542_v12  ;;  %v5375_v20 = vrot.slane %v3242_v11, %v11543_v14  ;;  %v2264_v45 = vpack.c.bf16 %v1697_v35, %v1694_v51  ;;  %7303 = vmatpush3.bf16.msra.mxu0 %v7460_v1  ;;  %7319 = vmatpush3.bf16.msra.mxu1 %v7461_v23  ;;  %v1980_v1 = vsel %vm533_vm0, %v503_v54, 0.0  ;;  %v492_v23 = vld [vmem:[%s11511_s0 + $0xeb8] sm:$0xff] }
 0x39e   :  { %7304 = vmatprep.subr.bf16.mxu0 %v7462_v40  ;;  %7320 = vmatprep.subr.bf16.mxu1 %v7463_v17  ;;  %v7474_v40 = vld [vmem:[%s11512_s1 + $0x2e8] sm:$0xff]   ;;  %v1947_v51 = vsel %vm533_vm0, %v492_v23, 0.0  ;;  %v7479_v23 = vld [vmem:[%s11512_s1 + $0x2b8] sm:$0xff]  }
 0x39f   :  { %v5371_v37 = vsel %vm3369_vm2, %v5370_v43, %v5366_v62  ;;  %v3225_v6 = vunpack.c.l.b16 %v2264_v45  ;;  %v3226_v49 = vunpack.c.h.b16 %v2264_v45  ;;  %2032 = vadd.xlane.f32.xlu1 %v2031_v53  ;;  %2029 = vadd.xlane.f32.xlu0 %v2028_v22  ;;  %v1944_v53 = vsel %vm533_vm0, %v491_v26, 0.0  ;;  %v11544_v22 = vld [vmem:[#allocation8_spill] sm:$0xff]  ;;  %v522_v45 = vld [vmem:[%s11511_s0 + $0xfa8] sm:$0xff] }
 0x3a0   :  { %v5376_v50 = vsel %vm3376_vm3, %v5375_v20, %v5371_v37  ;;  %v1835_v9 = vpop.xlane.xlu1 %1834  ;;  %v1832_v63 = vpop.xlane.xlu0 %1831 }
 0x3a1   :  { %v5291_v5 = vrot.slane %v3225_v6, %v11542_v12  ;;  %v5296_v16 = vrot.slane %v3226_v49, %v11543_v14  ;;  %v10768_v58 = vpack.c.bf16 %v1835_v9, %v1832_v63  ;;  %7305 = vmatpush3.bf16.msra.mxu0 %v7464_v59  ;;  %7321 = vmatpush3.bf16.msra.mxu1 %v7465_v36  ;;  %v7475_v59 = vld [vmem:[%s11512_s1 + $0x2a8] sm:$0xff]   ;;  %v7476_v36 = vld [vmem:[%s11512_s1 + $0x2f0] sm:$0xff]   ;;  %v2037_v6 = vsel %vm533_vm0, %v522_v45, 0.0 }
 0x3a2   :  { %7306 = vmatprep.subr.bf16.mxu0 %v7466_v18  ;;  %7322 = vmatprep.subr.bf16.mxu1 %v7467_v0  ;;  %v2034_v49 = vsel %vm533_vm0, %v521_v41, 0.0 }
 0x3a3   :  { %v5292_v32 = vsel %vm3369_vm2, %v5291_v5, %v5287_v25  ;;  %1894 = vadd.xlane.f32.xlu1 %v1893_v15  ;;  %1891 = vadd.xlane.f32.xlu0 %v1890_v46  ;;  %v3271_v62 = vunpack.c.l.b16 %v10768_v58  ;;  %v3272_v57 = vunpack.c.h.b16 %v10768_v58  ;;  %v476_v15 = vld [vmem:[%s11511_s0 + $0xe38] sm:$0xff]  ;;  %v7477_v46 = vld [vmem:[%s11512_s1 + $0x2b0] sm:$0xff]  }
 0x3a4   :  { %v10788_v8 = vsel %vm3376_vm3, %v5296_v16, %v5292_v32  ;;  %v1751_v34 = vpop.xlane.xlu1 %1750  ;;  %v1748_v55 = vpop.xlane.xlu0 %1747  ;;  %v7478_v58 = vld [vmem:[%s11512_s1 + $0x2f8] sm:$0xff]   ;;  %v1899_v32 = vsel %vm533_vm0, %v476_v15, 0.0 }
 0x3a5   :  { %v2273_v44 = vpack.c.bf16 %v1751_v34, %v1748_v55  ;;  %7307 = vmatpush3.bf16.msra.mxu0 %v7468_v39  ;;  %7323 = vmatpush3.bf16.msra.mxu1 %v7469_v47  ;;  %v5519_v54 = vrot.slane %v3271_v62, %v7869_v30  ;;  %v5523_v39 = vrot.slane %v3272_v57, %v7878_v38  ;;  %v506_v55 = vld [vmem:[%s11511_s0 + $0xf28] sm:$0xff] }
 0x3a6   :  { %7308 = vmatprep.subr.bf16.mxu0 %v7470_v29  ;;  %7324 = vmatprep.subr.bf16.mxu1 %v7471_v52 }
 0x3a7   :  { %v3243_v17 = vunpack.c.l.b16 %v2273_v44  ;;  %v3244_v10 = vunpack.c.h.b16 %v2273_v44  ;;  %1984 = vadd.xlane.f32.xlu1 %v1983_v31  ;;  %1981 = vadd.xlane.f32.xlu0 %v1980_v1  ;;  %v505_v1 = vld [vmem:[%s11511_s0 + $0xf20] sm:$0xff] }
 0x3a8   :  { %v1787_v11 = vpop.xlane.xlu1 %1786  ;;  %v1784_v35 = vpop.xlane.xlu0 %1783 }
 0x3a9   :  { %v5380_v7 = vrot.slane %v3243_v17, %v11544_v22  ;;  %v5385_v43 = vrot.slane %v3244_v10, %v7907_v60  ;;  %v10811_v20 = vpack.c.bf16 %v1787_v11, %v1784_v35  ;;  %7309 = vmatpush3.bf16.msra.mxu0 %v7472_v24  ;;  %7325 = vmatpush3.bf16.msra.mxu1 %v7473_v33  ;;  %v1989_v10 = vsel %vm533_vm0, %v506_v55, 0.0 }
 0x3aa   :  { %7326 = vmatprep.subr.bf16.mxu1 %v7474_v40  ;;  %v5524_v33 = vsel %vm3362_vm1, %v5523_v39, %v5519_v54 }
 0x3ab   :  { %v5381_v42 = vsel %vm3383_vm4, %v5380_v7, %v5376_v50  ;;  %1948 = vadd.xlane.f32.xlu1 %v1947_v51  ;;  %1945 = vadd.xlane.f32.xlu0 %v1944_v53  ;;  %v475_v50 = vld [vmem:[%s11511_s0 + $0xe30] sm:$0xff]  ;;  %v3255_v40 = vunpack.c.l.b16 %v10811_v20  ;;  %v3256_v17 = vunpack.c.h.b16 %v10811_v20  ;;  %v1986_v7 = vsel %vm533_vm0, %v505_v1, 0.0  ;;  %v493_v20 = vld [vmem:[%s11511_s0 + $0xec0] sm:$0xff] }
 0x3ac   :  { %v10829_v18 = vsel %vm11545_vm9, %v5385_v43, %v5381_v42  ;;  %v1841_v0 = vpop.xlane.xlu1 %1840  ;;  %v7222_v37 = vpop.f32.mrb[0].mxu0  ;;  %v1896_v34 = vsel %vm533_vm0, %v475_v50, 0.0  ;;  %v494_v43 = vld [vmem:[%s11511_s0 + $0xec8] sm:$0xff]  ;;  %vm11547_vm9 = vmmov %vm11546_vm5 }
 0x3ad   :  { %v1838_v9 = vpop.xlane.xlu0 %1837  ;;  %v7223_v63 = vpop.f32.mrb[1].mxu0  ;;  %7327 = vmatpush3.bf16.msra.mxu1 %v7475_v59  ;;  %v5440_v57 = vrot.slane %v3255_v40, %v7869_v30  ;;  %v5444_v42 = vrot.slane %v3256_v17, %v7878_v38  ;;  %v507_v40 = vld [vmem:[%s11511_s0 + $0xf30] sm:$0xff] }
 0x3ae   :  { %v2288_v61 = vpack.c.bf16 %v1841_v0, %v1838_v9  ;;  %v10842_v5 = vadd.f32 %v7223_v63, %v7222_v37  ;;  %v7225_v16 = vpop.f32.mrb[2].mxu0  ;;  %7328 = vmatprep.subr.bf16.mxu1 %v7476_v36  ;;  %v1953_v0 = vsel %vm533_vm0, %v494_v43, 0.0  ;;  %v1950_v63 = vsel %vm533_vm0, %v493_v20, 0.0  ;;  %v495_v20 = vld [vmem:[%s11511_s0 + $0xed0] sm:$0xff] }
 0x3af   :  { %2038 = vadd.xlane.f32.xlu1 %v2037_v6  ;;  %v7226_v47 = vpop.f32.mrb[3].mxu0  ;;  %2035 = vadd.xlane.f32.xlu0 %v2034_v49 }
 0x3b0   :  { %v3273_v25 = vunpack.c.l.b16 %v2288_v61  ;;  %v3274_v29 = vunpack.c.h.b16 %v2288_v61  ;;  %v1703_v52 = vpop.xlane.xlu1 %1702  ;;  %v523_v61 = vld [vmem:[%s11511_s0 + $0xfb0] sm:$0xff] }
 0x3b1   :  { %v1700_v31 = vpop.xlane.xlu0 %1699  ;;  %7329 = vmatpush3.bf16.msra.mxu1 %v7477_v46  ;;  %v524_v46 = vld [vmem:[%s11511_s0 + $0xfb8] sm:$0xff] }
 0x3b2   :  { %v5528_v44 = vrot.slane %v3273_v25, %v11542_v12  ;;  %v5533_v26 = vrot.slane %v3274_v29, %v11543_v14  ;;  %v2265_v24 = vpack.c.bf16 %v1703_v52, %v1700_v31  ;;  %7330 = vmatprep.subr.bf16.mxu1 %v7478_v58  ;;  %v5445_v58 = vsel %vm3362_vm1, %v5444_v42, %v5440_v57  ;;  %v526_v57 = vld [vmem:[%s11511_s0 + $0xfc8] sm:$0xff]  ;;  %v525_v42 = vld [vmem:[%s11511_s0 + $0xfc0] sm:$0xff] }
 0x3b3   :  { %1900 = vadd.xlane.f32.xlu1 %v1899_v32  ;;  %1897 = vadd.xlane.f32.xlu0 %v1896_v34  ;;  %v2043_v47 = vsel %vm533_vm0, %v524_v46, 0.0  ;;  %v2040_v25 = vsel %vm533_vm0, %v523_v61, 0.0  ;;  %v478_v32 = vld [vmem:[%s11511_s0 + $0xe48] sm:$0xff]  ;;  %v477_v34 = vld [vmem:[%s11511_s0 + $0xe40] sm:$0xff]  ;;  %v479_v46 = vld [vmem:[%s11511_s0 + $0xe50] sm:$0xff] }
 0x3b4   :  { %v5529_v11 = vsel %vm3369_vm2, %v5528_v44, %v5524_v33  ;;  %v3227_v35 = vunpack.c.l.b16 %v2265_v24  ;;  %v3228_v51 = vunpack.c.h.b16 %v2265_v24  ;;  %v1793_v53 = vpop.xlane.xlu1 %1792  ;;  %v1905_v44 = vsel %vm533_vm0, %v478_v32, 0.0  ;;  %v508_v33 = vld [vmem:[%s11511_s0 + $0xf38] sm:$0xff] }
 0x3b5   :  { %v5534_v45 = vsel %vm3376_vm3, %v5533_v26, %v5529_v11  ;;  %v1790_v41 = vpop.xlane.xlu0 %1789  ;;  %7331 = vmatpush3.bf16.msra.mxu1 %v7479_v23  ;;  %v1902_v26 = vsel %vm533_vm0, %v477_v34, 0.0  ;;  %v498_v34 = vld [vmem:[%s11511_s0 + $0xee8] sm:$0xff] }
 0x3b6   :  { %v5301_v59 = vrot.slane %v3227_v35, %v11544_v22  ;;  %v5306_v36 = vrot.slane %v3228_v51, %v7907_v60  ;;  %v2280_v62 = vpack.c.bf16 %v1793_v53, %v1790_v41  ;;  %v1995_v51 = vsel %vm533_vm0, %v508_v33, 0.0  ;;  %v496_v41 = vld [vmem:[%s11511_s0 + $0xed8] sm:$0xff] }
 0x3b7   :  { %1990 = vadd.xlane.f32.xlu1 %v1989_v10  ;;  %1987 = vadd.xlane.f32.xlu0 %v1986_v7  ;;  %v1992_v53 = vsel %vm533_vm0, %v507_v40, 0.0  ;;  %v528_v33 = vld [vmem:[%s11511_s0 + $0xfd8] sm:$0xff]  ;;  %v527_v40 = vld [vmem:[%s11511_s0 + $0xfd0] sm:$0xff] }
 0x3b8   :  { %v5302_v37 = vsel %vm3383_vm4, %v5301_v59, %v10788_v8  ;;  %v3257_v6 = vunpack.c.l.b16 %v2280_v62  ;;  %v3258_v49 = vunpack.c.h.b16 %v2280_v62  ;;  %v10882_v9 = vpop.xlane.xlu1 %1756  ;;  %v1959_v59 = vsel %vm533_vm0, %v496_v41, 0.0  ;;  %v481_v41 = vld [vmem:[%s11511_s0 + $0xe60] sm:$0xff] }
 0x3b9   :  { %v10886_v15 = vsel %vm11546_vm5, %v5306_v36, %v5302_v37  ;;  %v10888_v50 = vpop.xlane.xlu0 %1753  ;;  %v1956_v36 = vsel %vm533_vm0, %v495_v20, 0.0  ;;  %v2049_v37 = vsel %vm533_vm0, %v526_v57, 0.0 }
 0x3ba   :  { %v5449_v8 = vrot.slane %v3257_v6, %v11542_v12  ;;  %v5454_v16 = vrot.slane %v3258_v49, %v11543_v14  ;;  %v2046_v6 = vsel %vm533_vm0, %v525_v42, 0.0  ;;  %v512_v42 = vld [vmem:[%s11511_s0 + $0xf58] sm:$0xff] }
 0x3bb   :  { %1954 = vadd.xlane.f32.xlu1 %v1953_v0  ;;  %1951 = vadd.xlane.f32.xlu0 %v1950_v63  ;;  %v480_v63 = vld [vmem:[%s11511_s0 + $0xe58] sm:$0xff] }
 0x3bc   :  { %v5450_v54 = vsel %vm3369_vm2, %v5449_v8, %v5445_v58  ;;  %v1847_v39 = vpop.xlane.xlu1 %1846  ;;  %v1911_v8 = vsel %vm533_vm0, %v480_v63, 0.0 }
 0x3bd   :  { %v10903_v29 = vsel %vm3376_vm3, %v5454_v16, %v5450_v54  ;;  %v1844_v52 = vpop.xlane.xlu0 %1843  ;;  %v1908_v16 = vsel %vm533_vm0, %v479_v46, 0.0  ;;  %v510_v54 = vld [vmem:[%s11511_s0 + $0xf48] sm:$0xff]  ;;  %v2007_v46 = vsel %vm533_vm0, %v512_v42, 0.0 }
 0x3be   :  { %v2289_v55 = vpack.c.bf16 %v1847_v39, %v1844_v52  ;;  %v509_v39 = vld [vmem:[%s11511_s0 + $0xf40] sm:$0xff] }
 0x3bf   :  { %2044 = vadd.xlane.f32.xlu1 %v2043_v47  ;;  %2041 = vadd.xlane.f32.xlu0 %v2040_v25  ;;  %v2001_v25 = vsel %vm533_vm0, %v510_v54, 0.0  ;;  %v1998_v52 = vsel %vm533_vm0, %v509_v39, 0.0  ;;  %v500_v39 = vld [vmem:[%s11511_s0 + $0xef8] sm:$0xff] }
 0x3c0   :  { %v3275_v31 = vunpack.c.l.b16 %v2289_v55  ;;  %v3276_v1 = vunpack.c.h.b16 %v2289_v55  ;;  %v10911_v23 = vpop.xlane.xlu1 %1708  ;;  %v497_v55 = vld [vmem:[%s11511_s0 + $0xee0] sm:$0xff] }
 0x3c1   :  { %v10915_v24 = vpop.xlane.xlu0 %1705 }
 0x3c2   :  { %v5538_v17 = vrot.slane %v3275_v31, %v11544_v22  ;;  %v5543_v10 = vrot.slane %v3276_v1, %v7907_v60  ;;  %v1965_v1 = vsel %vm533_vm0, %v498_v34, 0.0  ;;  %v484_v34 = vld [vmem:[%s11511_s0 + $0xe78] sm:$0xff] }
 0x3c3   :  { %1906 = vadd.xlane.f32.xlu1 %v1905_v44  ;;  %1903 = vadd.xlane.f32.xlu0 %v1902_v26  ;;  %v1962_v44 = vsel %vm533_vm0, %v497_v55, 0.0 }
 0x3c4   :  { %v5539_v11 = vsel %vm3383_vm4, %v5538_v17, %v5534_v45  ;;  %v10926_v35 = vpop.xlane.xlu1 %1798 }
 0x3c5   :  { %v10931_v7 = vsel %vm11547_vm9, %v5543_v10, %v5539_v11  ;;  %v10933_v43 = vpop.xlane.xlu0 %1795  ;;  %v2055_v10 = vsel %vm533_vm0, %v528_v33, 0.0  ;;  %v2052_v11 = vsel %vm533_vm0, %v527_v40, 0.0  ;;  %v513_v33 = vld [vmem:[%s11511_s0 + $0xf60] sm:$0xff]  ;;  %v532_v40 = vld [vmem:[%s11511_s0 + $0xff8] sm:$0xff]  ;;  %vm11548_vm9 = vcmask 654912  }
 0x3c7   :  { %1996 = vadd.xlane.f32.xlu1 %v1995_v51  ;;  %1993 = vadd.xlane.f32.xlu0 %v1992_v53  ;;  %v482_v53 = vld [vmem:[%s11511_s0 + $0xe68] sm:$0xff] }
 0x3c8   :  { %v10941_v45 = vpop.xlane.xlu1 %1762 }
 0x3c9   :  { %v10945_v62 = vpop.xlane.xlu0 %1759 }
 0x3cb   :  { %1960 = vadd.xlane.f32.xlu1 %v1959_v59  ;;  %1957 = vadd.xlane.f32.xlu0 %v1956_v36  ;;  %v1917_v59 = vsel %vm533_vm0, %v482_v53, 0.0  ;;  %v1914_v36 = vsel %vm533_vm0, %v481_v41, 0.0  ;;  %v531_v53 = vld [vmem:[%s11511_s0 + $0xff0] sm:$0xff] }
 0x3cc   :  { %v10953_v0 = vpop.xlane.xlu1 %1852 }
 0x3cd   :  { %v10957_v49 = vpop.xlane.xlu0 %1849 }
 0x3ce   :  { %v11065_v55 = vpack.c.bf16 %v10953_v0, %v10957_v49 }
 0x3cf   :  { %2050 = vadd.xlane.f32.xlu1 %v2049_v37  ;;  %2047 = vadd.xlane.f32.xlu0 %v2046_v6  ;;  %v511_v37 = vld [vmem:[%s11511_s0 + $0xf50] sm:$0xff]  ;;  %v2274_v6 = vpack.c.bf16 %v10882_v9, %v10888_v50 }
 0x3d0   :  { %v10965_v61 = vpop.xlane.xlu1 %1714  ;;  %v499_v9 = vld [vmem:[%s11511_s0 + $0xef0] sm:$0xff] }
 0x3d1   :  { %v10969_v58 = vpop.xlane.xlu0 %1711  ;;  %v3245_v50 = vunpack.c.l.b16 %v2274_v6 }
 0x3d3   :  { %1912 = vadd.xlane.f32.xlu1 %v1911_v8  ;;  %1909 = vadd.xlane.f32.xlu0 %v1908_v16  ;;  %v2004_v8 = vsel %vm533_vm0, %v511_v37, 0.0  ;;  %v11033_v16 = vpack.c.bf16 %v10911_v23, %v10915_v24  ;;  %v530_v23 = vld [vmem:[%s11511_s0 + $0xfe8] sm:$0xff]  ;;  %v529_v24 = vld [vmem:[%s11511_s0 + $0xfe0] sm:$0xff]  ;;  %v5390_v41 = vrot.slane %v3245_v50, %v7914_v2 }
 0x3d4   :  { %v10977_v47 = vpop.xlane.xlu1 %1804 }
 0x3d5   :  { %v10981_v32 = vpop.xlane.xlu0 %1801  ;;  %v3229_v0 = vunpack.c.l.b16 %v11033_v16 }
 0x3d7   :  { %2002 = vadd.xlane.f32.xlu1 %v2001_v25  ;;  %1999 = vadd.xlane.f32.xlu0 %v1998_v52  ;;  %v11045_v25 = vpack.c.bf16 %v10926_v35, %v10933_v43  ;;  %v11055_v52 = vpack.c.bf16 %v10941_v45, %v10945_v62  ;;  %v483_v35 = vld [vmem:[%s11511_s0 + $0xe70] sm:$0xff]  ;;  %v3246_v43 = vunpack.c.h.b16 %v2274_v6  ;;  %v1968_v45 = vsel %vm533_vm0, %v499_v9, 0.0  ;;  %v514_v62 = vld [vmem:[%s11511_s0 + $0xf68] sm:$0xff]  ;;  %v7480_v9 = vld [vmem:[%s11512_s1 + $0x340] sm:$0xff]  }
 0x3d8   :  { %v10989_v31 = vpop.xlane.xlu1 %1768  ;;  %v1920_v42 = vsel %vm533_vm0, %v483_v35, 0.0  ;;  %7338 = vmatprep.subr.bf16.mxu0 %v7480_v9 }
 0x3d9   :  { %v10993_v26 = vpop.xlane.xlu0 %1765  ;;  %v3247_v37 = vunpack.c.l.b16 %v11055_v52  ;;  %v5395_v50 = vrot.slane %v3246_v43, %v7927_v13 }
 0x3db   :  { %1966 = vadd.xlane.f32.xlu1 %v1965_v1  ;;  %1963 = vadd.xlane.f32.xlu0 %v1962_v44  ;;  %v1971_v44 = vsel %vm533_vm0, %v500_v39, 0.0  ;;  %v11096_v39 = vsel %vm533_vm0, %v532_v40, 0.0 }
 0x3dc   :  { %v11001_v17 = vpop.xlane.xlu1 %1858 }
 0x3dd   :  { %v11005_v51 = vpop.xlane.xlu0 %1855 }
 0x3df   :  { %2056 = vadd.xlane.f32.xlu1 %v2055_v10  ;;  %2053 = vadd.xlane.f32.xlu0 %v2052_v11  ;;  %v2061_v10 = vsel %vm533_vm0, %v530_v23, 0.0  ;;  %v2058_v11 = vsel %vm533_vm0, %v529_v24, 0.0  ;;  %v3277_v23 = vunpack.c.l.b16 %v11065_v55  ;;  %v2276_v24 = vpack.c.bf16 %v10989_v31, %v10993_v26  ;;  %v516_v31 = vld [vmem:[%s11511_s0 + $0xf78] sm:$0xff] }
 0x3e0   :  { %v11013_v20 = vpop.xlane.xlu1 %1720  ;;  %v5391_v26 = vsel %vm3397_vm6, %v5390_v41, %v10829_v18  ;;  %v11133_v9 = vsel %vm533_vm0, %v516_v31, 0.0 }
 0x3e1   :  { %v11017_v57 = vpop.xlane.xlu0 %1717  ;;  %v5548_v18 = vrot.slane %v3277_v23, %v7914_v2 }
 0x3e3   :  { %1918 = vadd.xlane.f32.xlu1 %v1917_v59  ;;  %1915 = vadd.xlane.f32.xlu0 %v1914_v36  ;;  %v3259_v59 = vunpack.c.l.b16 %v11045_v25  ;;  %v1923_v36 = vsel %vm533_vm0, %v484_v34, 0.0 }
 0x3e4   :  { %v11027_v63 = vpop.xlane.xlu1 %1810 }
 0x3e5   :  { %v11035_v54 = vpop.xlane.xlu0 %1807 }
 0x3e7   :  { %2008 = vadd.xlane.f32.xlu1 %v2007_v46  ;;  %2005 = vadd.xlane.f32.xlu0 %v2004_v8  ;;  %v11090_v46 = vsel %vm533_vm0, %v514_v62, 0.0  ;;  %v11093_v8 = vsel %vm533_vm0, %v513_v33, 0.0  ;;  %v5311_v62 = vrot.slane %v3229_v0, %v7914_v2  ;;  %v2267_v33 = vpack.c.bf16 %v10965_v61, %v10969_v58 }
 0x3e8   :  { %v1775_v1 = vpop.xlane.xlu1 %1774  ;;  %v2282_v0 = vpack.c.bf16 %v10977_v47, %v10981_v32  ;;  %v3248_v58 = vunpack.c.h.b16 %v11055_v52  ;;  %v5396_v47 = vsel %vm3404_vm7, %v5395_v50, %v5391_v26 }
 0x3e9   :  { %v1772_v49 = vpop.xlane.xlu0 %1771  ;;  %v5312_v32 = vsel %vm3397_vm6, %v5311_v62, %v10886_v15  ;;  %v3232_v62 = vunpack.c.h.b16 %v2267_v33 }
 0x3ea   :  { %v2277_v41 = vpack.c.bf16 %v1775_v1, %v1772_v49  ;;  %v2268_v1 = vpack.c.bf16 %v11013_v20, %v11017_v57  ;;  %v515_v49 = vld [vmem:[%s11511_s0 + $0xf70] sm:$0xff]  ;;  %v5405_v15 = vrot.slane %v3248_v58, %v7941_v27  ;;  %v3262_v26 = vunpack.c.h.b16 %v2282_v0 }
 0x3eb   :  { %1972 = vadd.xlane.f32.xlu1 %v1971_v44  ;;  %v7244_v6 = vpop.f32.mrb[0].mxu1  ;;  %1969 = vadd.xlane.f32.xlu0 %v1968_v45  ;;  %v11108_v44 = vsel %vm533_vm0, %v531_v53, 0.0  ;;  %v3230_v45 = vunpack.c.h.b16 %v11033_v16  ;;  %v3260_v53 = vunpack.c.h.b16 %v11045_v25  ;;  %v5459_v16 = vrot.slane %v3259_v59, %v11544_v22 }
 0x3ec   :  { %v11105_v34 = vpop.xlane.xlu1 %1864  ;;  %v7245_v35 = vpop.f32.mrb[1].mxu1  ;;  %v3249_v25 = vunpack.c.l.b16 %v2276_v24  ;;  %v3251_v20 = vunpack.c.l.b16 %v2277_v41 }
 0x3ed   :  { %v7246_v40 = vadd.f32 %v7245_v35, %v7244_v6  ;;  %v11114_v43 = vpop.xlane.xlu0 %1861  ;;  %v7247_v14 = vpop.f32.mrb[2].mxu1  ;;  %v3278_v6 = vunpack.c.h.b16 %v11065_v55  ;;  %v5316_v52 = vrot.slane %v3230_v45, %v7927_v13  ;;  %v3231_v55 = vunpack.c.l.b16 %v2267_v33 }
 0x3ee   :  { %v7248_v61 = vpop.f32.mrb[3].mxu1  ;;  %v5400_v14 = vrot.slane %v3247_v37, %v7933_v21  ;;  %v3261_v37 = vunpack.c.l.b16 %v2282_v0  ;;  %v3250_v45 = vunpack.c.h.b16 %v2276_v24  ;;  %v3233_v24 = vunpack.c.l.b16 %v2268_v1 }
 0x3ef   :  { %v11129_v35 = vadd.f32 %v7246_v40, %v10842_v5  ;;  %2062 = vadd.xlane.f32.xlu1 %v2061_v10  ;;  %2059 = vadd.xlane.f32.xlu0 %v2058_v11  ;;  %v5460_v10 = vsel %vm3383_vm4, %v5459_v16, %v10903_v29  ;;  %v5464_v11 = vrot.slane %v3260_v53, %v7907_v60  ;;  %v2016_v61 = vsel %vm533_vm0, %v515_v49, 0.0 }
 0x3f0   :  { %v1727_v59 = vpop.xlane.xlu1 %1726  ;;  %v5401_v50 = vsel %vm3411_vm8, %v5400_v14, %v5396_v47  ;;  %v5553_v23 = vrot.slane %v3278_v6, %v7927_v13  ;;  %v5549_v29 = vsel %vm3397_vm6, %v5548_v18, %v10931_v7  ;;  %v5410_v40 = vrot.slane %v3249_v25, %v7959_v48 }
 0x3f1   :  { %v1724_v5 = vpop.xlane.xlu0 %1723  ;;  %v5321_v31 = vrot.slane %v3231_v55, %v7933_v21  ;;  %v2291_v53 = vpack.c.bf16 %v11001_v17, %v11005_v51  ;;  %v5469_v7 = vrot.slane %v3261_v37, %v7914_v2  ;;  %v5406_v33 = vsel %vm11548_vm9, %v5405_v15, %v5401_v50  ;;  %v7487_v17 = vld [vmem:[%s11512_s1 + $0x3c0] sm:$0xff]  }
 0x3f2   :  { %v5554_v58 = vsel %vm3404_vm7, %v5553_v23, %v5549_v29  ;;  %v5415_v14 = vrot.slane %v3250_v45, %v7969_v56  ;;  %v3252_v0 = vunpack.c.h.b16 %v2277_v41  ;;  %v5326_v51 = vrot.slane %v3232_v62, %v7941_v27  ;;  %7360 = vmatprep.subr.bf16.mxu1 %v7487_v17 }
 0x3f3   :  { %1924 = vadd.xlane.f32.xlu1 %v1923_v36  ;;  %1921 = vadd.xlane.f32.xlu0 %v1920_v42  ;;  %v5317_v36 = vsel %vm3404_vm7, %v5316_v52, %v5312_v32  ;;  %v5465_v42 = vsel %vm11546_vm5, %v5464_v11, %v5460_v10  ;;  %v5411_v6 = vsel %vm3425_vm10, %v5410_v40, %v5406_v33  ;;  %v3279_v52 = vunpack.c.l.b16 %v2291_v53  ;;  %vm11550_vm5 = vmmov %vm11548_vm9 }
 0x3f4   :  { %v1817_v57 = vpop.xlane.xlu1 %1816  ;;  %v5420_v18 = vrot.slane %v3251_v20, %v7976_v3  ;;  %v2269_v25 = vpack.c.bf16 %v1727_v59, %v1724_v5  ;;  %v5322_v32 = vsel %vm3411_vm8, %v5321_v31, %v5317_v36  ;;  %v5474_v41 = vrot.slane %v3262_v26, %v7927_v13 }
 0x3f5   :  { %v1814_v16 = vpop.xlane.xlu0 %1813  ;;  %v5470_v55 = vsel %vm3397_vm6, %v5469_v7, %v5465_v42  ;;  %v3234_v10 = vunpack.c.h.b16 %v2268_v1  ;;  %v5331_v11 = vrot.slane %v3233_v24, %v7959_v48  ;;  %v5416_v49 = vsel %vm3432_vm11, %v5415_v14, %v5411_v6 }
 0x3f6   :  { %v3280_v59 = vunpack.c.h.b16 %v2291_v53  ;;  %v5425_v5 = vrot.slane %v3252_v0, %v7979_v4  ;;  %v2292_v50 = vpack.c.bf16 %v11105_v34, %v11114_v43  ;;  %vm11549_vm0 = vcmask 851712  }
 0x3f7   :  { %2014 = vadd.xlane.f32.xlu1 %v11090_v46  ;;  %2011 = vadd.xlane.f32.xlu0 %v11093_v8  ;;  %v2283_v46 = vpack.c.bf16 %v11027_v63, %v11035_v54  ;;  %v5421_v63 = vsel %vm11549_vm0, %v5420_v18, %v5416_v49  ;;  %v3235_v54 = vunpack.c.l.b16 %v2269_v25  ;;  %v5327_v45 = vsel %vm11550_vm5, %v5326_v51, %v5322_v32  ;;  %vm11552_vm9 = vmmov %vm11549_vm0 }
 0x3f8   :  { %v1781_v47 = vpop.xlane.xlu1 %1780  ;;  %v5475_v29 = vsel %vm3404_vm7, %v5474_v41, %v5470_v55  ;;  %v5558_v62 = vrot.slane %v3279_v52, %v7933_v21  ;;  %v5332_v34 = vsel %vm3425_vm10, %v5331_v11, %v5327_v45  ;;  %v5426_v31 = vsel %vm3446_vm13, %v5425_v5, %v5421_v63  ;;  %vm11553_vm0 = vmmov %vm11550_vm5 }
 0x3f9   :  { %v1778_v8 = vpop.xlane.xlu0 %1777  ;;  %v3263_v40 = vunpack.c.l.b16 %v2283_v46  ;;  %v3281_v26 = vunpack.c.l.b16 %v2292_v50  ;;  %v3236_v53 = vunpack.c.h.b16 %v2269_v25  ;;  %v2284_v36 = vpack.c.bf16 %v1817_v57, %v1814_v16  ;;  %vm11554_vm5 = vmmov %vm11553_vm0 }
 0x3fa   :  { %v2278_v37 = vpack.c.bf16 %v1781_v47, %v1778_v8  ;;  %v5563_v42 = vrot.slane %v3280_v59, %v7941_v27  ;;  %v5341_v7 = vrot.slane %v3235_v54, %v7976_v3  ;;  %v3264_v0 = vunpack.c.h.b16 %v2283_v46 }
 0x3fb   :  { %2068 = vadd.xlane.f32.xlu1 %v11096_v39  ;;  %2065 = vadd.xlane.f32.xlu0 %v11108_v44  ;;  %v5336_v39 = vrot.slane %v3234_v10, %v7969_v56  ;;  %v5479_v17 = vrot.slane %v3263_v40, %v7933_v21  ;;  %v3282_v51 = vunpack.c.h.b16 %v2292_v50  ;;  %v5559_v57 = vsel %vm3411_vm8, %v5558_v62, %v5554_v58 }
 0x3fc   :  { %v3253_v15 = vunpack.c.l.b16 %v2278_v37  ;;  %v3254_v1 = vunpack.c.h.b16 %v2278_v37  ;;  %v1871_v23 = vpop.xlane.xlu1 %1870  ;;  %v5568_v47 = vrot.slane %v3281_v26, %v7959_v48  ;;  %v5346_v32 = vrot.slane %v3236_v53, %v7979_v4 }
 0x3fd   :  { %v1868_v20 = vpop.xlane.xlu0 %1867  ;;  %v3265_v41 = vunpack.c.l.b16 %v2284_v36  ;;  %v5564_v58 = vsel %vm11553_vm0, %v5563_v42, %v5559_v57  ;;  %v5480_v37 = vsel %vm3411_vm8, %v5479_v17, %v5475_v29  ;;  %v5484_v49 = vrot.slane %v3264_v0, %v7941_v27  ;;  %v7482_v17 = vld [vmem:[%s11512_s1 + $0x348] sm:$0xff]   ;;  %vm11556_vm0 = vmmov %vm11552_vm9 }
 0x3fe   :  { %v5430_v44 = vrot.slane %v3253_v15, %v7994_v19  ;;  %v5435_v43 = vrot.slane %v3254_v1, %v8001_v28  ;;  %v2293_v24 = vpack.c.bf16 %v1871_v23, %v1868_v20  ;;  %v5573_v59 = vrot.slane %v3282_v51, %v7969_v56 }
 0x3ff   :  { %2020 = vadd.xlane.f32.xlu1 %v11133_v9  ;;  %2017 = vadd.xlane.f32.xlu0 %v2016_v61  ;;  %v5337_v9 = vsel %vm3432_vm11, %v5336_v39, %v5332_v34  ;;  %v11551_v61 = vld [vmem:[#allocation10_spill] sm:$0xff]  ;;  %v3266_v50 = vunpack.c.h.b16 %v2284_v36  ;;  %v5569_v1 = vsel %vm3425_vm10, %v5568_v47, %v5564_v58  ;;  %v5489_v45 = vrot.slane %v3265_v41, %v7959_v48  ;;  %v11555_v36 = vld [vmem:[#allocation9_spill] sm:$0xff] }
 0x400   :  { %v1733_v33 = vpop.xlane.xlu1 %1732  ;;  %v5431_v14 = vsel %vm3453_vm14, %v5430_v44, %v5426_v31  ;;  %v5342_v46 = vsel %vm11552_vm9, %v5341_v7, %v5337_v9  ;;  %v3283_v8 = vunpack.c.l.b16 %v2293_v24  ;;  %v3284_v62 = vunpack.c.h.b16 %v2293_v24  ;;  %v7481_v7 = vld [vmem:[%s11512_s1 + $0x300] sm:$0xff]  }
 0x401   :  { %v1730_v6 = vpop.xlane.xlu0 %1729  ;;  %v5436_v18 = vsel %vm3460_vm15, %v5435_v43, %v5431_v14  ;;  %v5347_v23 = vsel %vm3446_vm13, %v5346_v32, %v5342_v46  ;;  %v5485_v39 = vsel %vm11554_vm5, %v5484_v49, %v5480_v37  ;;  %v5574_v31 = vsel %vm3432_vm11, %v5573_v59, %v5569_v1  ;;  %v7483_v32 = vld [vmem:[%s11512_s1 + $0x308] sm:$0xff]   ;;  %v7485_v1 = vld [vmem:[%s11512_s1 + $0x310] sm:$0xff]  }
 0x402   :  { %v2270_v16 = vpack.c.bf16 %v1733_v33, %v1730_v6  ;;  %v5921_v25 = vsel %vm5911_vm12, %v5436_v18, %v11551_v61  ;;  %v5578_v29 = vrot.slane %v3283_v8, %v7976_v3  ;;  %v5494_v26 = vrot.slane %v3266_v50, %v7969_v56  ;;  %v7484_v8 = vld [vmem:[%s11512_s1 + $0x350] sm:$0xff]  }
 0x403   :  { %v5937_v52 = vpack.c.b16 %v5921_v25, %v5921_v25  ;;  %v5490_v24 = vsel %vm3425_vm10, %v5489_v45, %v5485_v39  ;;  %v5583_v33 = vrot.slane %v3284_v62, %v7979_v4  ;;  %v7486_v62 = vld [vmem:[%s11512_s1 + $0x358] sm:$0xff]   ;;  %vm11560_vm5 = vcmask 392512  }
 0x404   :  { %v3237_v55 = vunpack.c.l.b16 %v2270_v16  ;;  %v3238_v10 = vunpack.c.h.b16 %v2270_v16  ;;  %v1823_v11 = vpop.xlane.xlu1 %1822  ;;  %v5579_v51 = vsel %vm11552_vm9, %v5578_v29, %v5574_v31  ;;  %v5495_v41 = vsel %vm3432_vm11, %v5494_v26, %v5490_v24  ;;  %v7488_v31 = vld [vmem:[%s11512_s1 + $0x318] sm:$0xff]   ;;  %v7489_v26 = vld [vmem:[%s11512_s1 + $0x380] sm:$0xff]   ;;  %v7491_v24 = vld [vmem:[%s11512_s1 + $0x3c8] sm:$0xff]  }
 0x405   :  { %6920 = vmatprep.mubr.bf16.mxu0 %v5937_v52  ;;  %v1820_v5 = vpop.xlane.xlu0 %1819  ;;  %v5584_v52 = vsel %vm3446_vm13, %v5583_v33, %v5579_v51  ;;  %v7493_v51 = vld [vmem:[%s11512_s1 + $0x388] sm:$0xff]   ;;  %vm11561_vm9 = vmmov %vm11560_vm5 }
 0x406   :  { %v5351_v63 = vrot.slane %v3237_v55, %v7994_v19  ;;  %v5356_v54 = vrot.slane %v3238_v10, %v8001_v28  ;;  %v2285_v15 = vpack.c.bf16 %v1823_v11, %v1820_v5 }
 0x408   :  { %v5352_v40 = vsel %vm3453_vm14, %v5351_v63, %v5347_v23  ;;  %v3267_v20 = vunpack.c.l.b16 %v2285_v15  ;;  %v1877_v34 = vpop.xlane.xlu1 %1876  ;;  %v3268_v14 = vunpack.c.h.b16 %v2285_v15 }
 0x409   :  { %v5357_v44 = vsel %vm3460_vm15, %v5356_v54, %v5352_v40  ;;  %v1874_v43 = vpop.xlane.xlu0 %1873  ;;  %v11557_v54 = vld [vmem:[#allocation12_spill] sm:$0xff] }
 0x40a   :  { %v2294_v53 = vpack.c.bf16 %v1877_v34, %v1874_v43  ;;  %v5920_v42 = vsel %vm5911_vm12, %v5357_v44, %v11555_v36  ;;  %v5499_v6 = vrot.slane %v3267_v20, %v7976_v3  ;;  %v5504_v46 = vrot.slane %v3268_v14, %v7979_v4  ;;  %v11558_v44 = vld [vmem:[#allocation11_spill] sm:$0xff] }
 0x40b   :  { %v5936_v0 = vpack.c.b16 %v5920_v42, %v5920_v42 }
 0x40c   :  { %v3285_v18 = vunpack.c.l.b16 %v2294_v53  ;;  %v3286_v57 = vunpack.c.h.b16 %v2294_v53  ;;  %v1829_v9 = vpop.xlane.xlu1 %1828  ;;  %v5500_v55 = vsel %vm11556_vm0, %v5499_v6, %v5495_v41 }
 0x40d   :  { %6921 = vmatmul.mubr.bf16.vlgmr.msra.gmra.mrb[8].mxu0 %v5936_v0  ;;  %v1826_v16 = vpop.xlane.xlu0 %1825  ;;  %v5505_v23 = vsel %vm3446_vm13, %v5504_v46, %v5500_v55  ;;  %v11559_v46 = vld [vmem:[#allocation7_spill] sm:$0xff] }
 0x40e   :  { %v5588_v61 = vrot.slane %v3285_v18, %v7994_v19  ;;  %v5593_v25 = vrot.slane %v3286_v57, %v8001_v28  ;;  %v2286_v47 = vpack.c.bf16 %v1829_v9, %v1826_v16  ;;  %7339 = vmatpush3.bf16.msra.mxu0 %v7481_v7  ;;  %v7490_v7 = vld [vmem:[%s11512_s1 + $0x360] sm:$0xff]   ;;  %v7494_v16 = vld [vmem:[%s11512_s1 + $0x368] sm:$0xff]  }
 0x40f   :  { %7340 = vmatprep.subr.bf16.mxu0 %v7482_v17  ;;  %v7492_v17 = vld [vmem:[%s11512_s1 + $0x320] sm:$0xff]  }
 0x410   :  { %v3269_v10 = vunpack.c.l.b16 %v2286_v47  ;;  %v3270_v11 = vunpack.c.h.b16 %v2286_v47  ;;  %v1931_v58 = vpop.xlane.xlu1 %1930  ;;  %v5589_v37 = vsel %vm3453_vm14, %v5588_v61, %v5584_v52  ;;  %v7495_v61 = vld [vmem:[%s11512_s1 + $0x3d0] sm:$0xff]  }
 0x411   :  { %v1928_v49 = vpop.xlane.xlu0 %1927  ;;  %v5594_v59 = vsel %vm3460_vm15, %v5593_v25, %v5589_v37 }
 0x412   :  { %v5509_v5 = vrot.slane %v3269_v10, %v7994_v19  ;;  %v5514_v50 = vrot.slane %v3270_v11, %v8001_v28  ;;  %v2303_v63 = vpack.c.bf16 %v1931_v58, %v1928_v49  ;;  %v5923_v15 = vsel %vm5911_vm12, %v5594_v59, %v11557_v54  ;;  %7341 = vmatpush3.bf16.msra.mxu0 %v7483_v32  ;;  %v7496_v10 = vld [vmem:[%s11512_s1 + $0x328] sm:$0xff]   ;;  %v7497_v11 = vld [vmem:[%s11512_s1 + $0x390] sm:$0xff]  }
 0x413   :  { %v5939_v45 = vpack.c.b16 %v5923_v15, %v5923_v15  ;;  %7342 = vmatprep.subr.bf16.mxu0 %v7484_v8  ;;  %v7498_v59 = vld [vmem:[%s11512_s1 + $0x370] sm:$0xff]  }
 0x414   :  { %v5510_v29 = vsel %vm3453_vm14, %v5509_v5, %v5505_v23  ;;  %v1883_v40 = vpop.xlane.xlu1 %1882  ;;  %v3303_v53 = vunpack.c.l.b16 %v2303_v63  ;;  %v3304_v36 = vunpack.c.h.b16 %v2303_v63  ;;  %v7499_v5 = vld [vmem:[%s11512_s1 + $0x3d8] sm:$0xff]  }
 0x415   :  { %v5515_v20 = vsel %vm3460_vm15, %v5514_v50, %v5510_v29  ;;  %6960 = vmatprep.mubr.bf16.mxu1 %v5939_v45  ;;  %v1880_v34 = vpop.xlane.xlu0 %1879 }
 0x416   :  { %v2295_v39 = vpack.c.bf16 %v1883_v40, %v1880_v34  ;;  %v5922_v43 = vsel %vm5911_vm12, %v5515_v20, %v11558_v44  ;;  %7343 = vmatpush3.bf16.msra.mxu0 %v7485_v1  ;;  %v5677_v6 = vrot.slane %v3303_v53, %v7869_v30  ;;  %v5681_v18 = vrot.slane %v3304_v36, %v7878_v38  ;;  %v7500_v40 = vld [vmem:[%s11512_s1 + $0x330] sm:$0xff]   ;;  %v7501_v20 = vld [vmem:[%s11512_s1 + $0x398] sm:$0xff]   ;;  %v7503_v44 = vld [vmem:[%s11512_s1 + $0x3e0] sm:$0xff]  }
 0x417   :  { %v5938_v42 = vpack.c.b16 %v5922_v43, %v5922_v43  ;;  %7344 = vmatprep.subr.bf16.mxu0 %v7486_v62 }
 0x418   :  { %v1937_v33 = vpop.xlane.xlu1 %1936  ;;  %v3287_v57 = vunpack.c.l.b16 %v2295_v39  ;;  %v3288_v9 = vunpack.c.h.b16 %v2295_v39  ;;  %v5682_v58 = vsel %vm3362_vm1, %v5681_v18, %v5677_v6  ;;  %v7502_v39 = vld [vmem:[%s11512_s1 + $0x378] sm:$0xff]  }
 0x419   :  { %6961 = vmatmul.mubr.bf16.vlgmr.msra.gmra.mrb[8].mxu1 %v5938_v42  ;;  %v1934_v14 = vpop.xlane.xlu0 %1933  ;;  %v7504_v42 = vld [vmem:[%s11512_s1 + $0x338] sm:$0xff]  }
 0x41a   :  { %v2304_v0 = vpack.c.bf16 %v1937_v33, %v1934_v14  ;;  %7345 = vmatpush3.bf16.msra.mxu0 %v7488_v31  ;;  %7361 = vmatpush3.bf16.msra.mxu1 %v7489_v26  ;;  %v5598_v37 = vrot.slane %v3287_v57, %v7869_v30  ;;  %v5602_v49 = vrot.slane %v3288_v9, %v7878_v38  ;;  %v7507_v57 = vld [vmem:[%s11512_s1 + $0x3a8] sm:$0xff]  }
 0x41b   :  { %7346 = vmatprep.subr.bf16.mxu0 %v7490_v7  ;;  %7362 = vmatprep.subr.bf16.mxu1 %v7491_v24  ;;  %v7505_v7 = vld [vmem:[%s11512_s1 + $0x3a0] sm:$0xff]   ;;  %v7506_v24 = vld [vmem:[%s11512_s1 + $0x3e8] sm:$0xff]  }
 0x41c   :  { %v3305_v25 = vunpack.c.l.b16 %v2304_v0  ;;  %v3306_v47 = vunpack.c.h.b16 %v2304_v0  ;;  %v1889_v32 = vpop.xlane.xlu1 %1888  ;;  %v5603_v34 = vsel %vm3362_vm1, %v5602_v49, %v5598_v37 }
 0x41d   :  { %v1886_v41 = vpop.xlane.xlu0 %1885 }
 0x41e   :  { %v5686_v52 = vrot.slane %v3305_v25, %v11542_v12  ;;  %v5691_v8 = vrot.slane %v3306_v47, %v11559_v46  ;;  %v2296_v55 = vpack.c.bf16 %v1889_v32, %v1886_v41  ;;  %7347 = vmatpush3.bf16.msra.mxu0 %v7492_v17  ;;  %7363 = vmatpush3.bf16.msra.mxu1 %v7493_v51 }
 0x41f   :  { %7348 = vmatprep.subr.bf16.mxu0 %v7494_v16  ;;  %7364 = vmatprep.subr.bf16.mxu1 %v7495_v61  ;;  %v7508_v61 = vld [vmem:[%s11512_s1 + $0x3f0] sm:$0xff]  }
 0x420   :  { %v5687_v50 = vsel %vm3369_vm2, %v5686_v52, %v5682_v58  ;;  %v3289_v63 = vunpack.c.l.b16 %v2296_v55  ;;  %v3290_v54 = vunpack.c.h.b16 %v2296_v55  ;;  %v2027_v15 = vpop.xlane.xlu1 %2026 }
 0x421   :  { %v5692_v1 = vsel %vm3376_vm3, %v5691_v8, %v5687_v50  ;;  %v2024_v23 = vpop.xlane.xlu0 %2023  ;;  %v7509_v8 = vld [vmem:[%s11512_s1 + $0x3b0] sm:$0xff]  }
 0x422   :  { %v5607_v45 = vrot.slane %v3289_v63, %v11542_v12  ;;  %v5612_v62 = vrot.slane %v3290_v54, %v11559_v46  ;;  %v2319_v29 = vpack.c.bf16 %v2027_v15, %v2024_v23  ;;  %7349 = vmatpush3.bf16.msra.mxu0 %v7496_v10  ;;  %7365 = vmatpush3.bf16.msra.mxu1 %v7497_v11  ;;  %v7510_v11 = vld [vmem:[%s11512_s1 + $0x3f8] sm:$0xff]  }
 0x423   :  { %7350 = vmatprep.subr.bf16.mxu0 %v7498_v59  ;;  %7366 = vmatprep.subr.bf16.mxu1 %v7499_v5  ;;  %v7511_v54 = vld [vmem:[%s11512_s1 + $0x3b8] sm:$0xff]  }
 0x424   :  { %v5608_v43 = vsel %vm3369_vm2, %v5607_v45, %v5603_v34  ;;  %v1943_v31 = vpop.xlane.xlu1 %1942  ;;  %v3335_v9 = vunpack.c.l.b16 %v2319_v29  ;;  %v3336_v16 = vunpack.c.h.b16 %v2319_v29 }
 0x425   :  { %v5613_v26 = vsel %vm3376_vm3, %v5612_v62, %v5608_v43  ;;  %v1940_v53 = vpop.xlane.xlu0 %1939 }
 0x426   :  { %v2305_v36 = vpack.c.bf16 %v1943_v31, %v1940_v53  ;;  %7351 = vmatpush3.bf16.msra.mxu0 %v7500_v40  ;;  %7367 = vmatpush3.bf16.msra.mxu1 %v7501_v20  ;;  %v5835_v55 = vrot.slane %v3335_v9, %v7869_v30  ;;  %v5839_v10 = vrot.slane %v3336_v16, %v7878_v38 }
 0x427   :  { %7352 = vmatprep.subr.bf16.mxu0 %v7502_v39  ;;  %7368 = vmatprep.subr.bf16.mxu1 %v7503_v44 }
 0x428   :  { %v3307_v33 = vunpack.c.l.b16 %v2305_v36  ;;  %v3308_v14 = vunpack.c.h.b16 %v2305_v36  ;;  %v1979_v0 = vpop.xlane.xlu1 %1978  ;;  %v5840_v15 = vsel %vm3362_vm1, %v5839_v10, %v5835_v55 }
 0x429   :  { %v1976_v17 = vpop.xlane.xlu0 %1975 }
 0x42a   :  { %v5696_v51 = vrot.slane %v3307_v33, %v11544_v22  ;;  %v5701_v6 = vrot.slane %v3308_v14, %v7907_v60  ;;  %v2311_v18 = vpack.c.bf16 %v1979_v0, %v1976_v17  ;;  %7353 = vmatpush3.bf16.msra.mxu0 %v7504_v42  ;;  %7369 = vmatpush3.bf16.msra.mxu1 %v7505_v7 }
 0x42b   :  { %7370 = vmatprep.subr.bf16.mxu1 %v7506_v24 }
 0x42c   :  { %v5697_v25 = vsel %vm3383_vm4, %v5696_v51, %v5692_v1  ;;  %v2033_v47 = vpop.xlane.xlu1 %2032  ;;  %v3319_v1 = vunpack.c.l.b16 %v2311_v18  ;;  %v3320_v23 = vunpack.c.h.b16 %v2311_v18 }
 0x42d   :  { %v11342_v32 = vsel %vm11560_vm5, %v5701_v6, %v5697_v25  ;;  %v2030_v41 = vpop.xlane.xlu0 %2029 }
 0x42e   :  { %v2320_v52 = vpack.c.bf16 %v2033_v47, %v2030_v41  ;;  %7371 = vmatpush3.bf16.msra.mxu1 %v7507_v57  ;;  %v5756_v31 = vrot.slane %v3319_v1, %v7869_v30  ;;  %v5760_v53 = vrot.slane %v3320_v23, %v7878_v38 }
 0x42f   :  { %7372 = vmatprep.subr.bf16.mxu1 %v7508_v61 }
 0x430   :  { %v3337_v58 = vunpack.c.l.b16 %v2320_v52  ;;  %v3338_v37 = vunpack.c.h.b16 %v2320_v52  ;;  %v1895_v49 = vpop.xlane.xlu1 %1894  ;;  %v5761_v51 = vsel %vm3362_vm1, %v5760_v53, %v5756_v31  ;;  %vm11562_vm1 = vmmov %vm11560_vm5 }
 0x431   :  { %v1892_v59 = vpop.xlane.xlu0 %1891 }
 0x432   :  { %v5844_v5 = vrot.slane %v3337_v58, %v11542_v12  ;;  %v5849_v50 = vrot.slane %v3338_v37, %v11559_v46  ;;  %v2297_v63 = vpack.c.bf16 %v1895_v49, %v1892_v59  ;;  %7373 = vmatpush3.bf16.msra.mxu1 %v7509_v8 }
 0x433   :  { %7374 = vmatprep.subr.bf16.mxu1 %v7510_v11 }
 0x434   :  { %v5845_v45 = vsel %vm3369_vm2, %v5844_v5, %v5840_v15  ;;  %v3291_v62 = vunpack.c.l.b16 %v2297_v63  ;;  %v3292_v29 = vunpack.c.h.b16 %v2297_v63  ;;  %v1985_v40 = vpop.xlane.xlu1 %1984 }
 0x435   :  { %v5850_v20 = vsel %vm3376_vm3, %v5849_v50, %v5845_v45  ;;  %v1982_v34 = vpop.xlane.xlu0 %1981 }
 0x436   :  { %v5617_v39 = vrot.slane %v3291_v62, %v11544_v22  ;;  %v5622_v44 = vrot.slane %v3292_v29, %v7907_v60  ;;  %v2312_v43 = vpack.c.bf16 %v1985_v40, %v1982_v34  ;;  %7375 = vmatpush3.bf16.msra.mxu1 %v7511_v54 }
 0x438   :  { %v5618_v36 = vsel %vm3383_vm4, %v5617_v39, %v5613_v26  ;;  %v3321_v42 = vunpack.c.l.b16 %v2312_v43  ;;  %v3322_v7 = vunpack.c.h.b16 %v2312_v43  ;;  %v1949_v24 = vpop.xlane.xlu1 %1948 }
 0x439   :  { %v11366_v33 = vsel %vm11561_vm9, %v5622_v44, %v5618_v36  ;;  %v1946_v14 = vpop.xlane.xlu0 %1945 }
 0x43a   :  { %v5765_v0 = vrot.slane %v3321_v42, %v11542_v12  ;;  %v5770_v17 = vrot.slane %v3322_v7, %v11559_v46  ;;  %v2306_v40 = vpack.c.bf16 %v1949_v24, %v1946_v14 }
 0x43c   :  { %v5766_v6 = vsel %vm3369_vm2, %v5765_v0, %v5761_v51  ;;  %v2039_v30 = vpop.xlane.xlu1 %2038  ;;  %v3309_v31 = vunpack.c.l.b16 %v2306_v40  ;;  %v3310_v42 = vunpack.c.h.b16 %v2306_v40  ;;  %vm11563_vm2 = vmmov %vm11562_vm1 }
 0x43d   :  { %v11373_v38 = vsel %vm3376_vm3, %v5770_v17, %v5766_v6  ;;  %v2036_v26 = vpop.xlane.xlu0 %2035  ;;  %vm11564_vm3 = vcmask 654912  }
 0x43e   :  { %v2321_v18 = vpack.c.bf16 %v2039_v30, %v2036_v26  ;;  %v5706_v6 = vrot.slane %v3309_v31, %v7914_v2 }
 0x440   :  { %v3339_v57 = vunpack.c.l.b16 %v2321_v18  ;;  %v3340_v9 = vunpack.c.h.b16 %v2321_v18  ;;  %v1901_v16 = vpop.xlane.xlu1 %1900 }
 0x441   :  { %v1898_v61 = vpop.xlane.xlu0 %1897 }
 0x442   :  { %v5854_v25 = vrot.slane %v3339_v57, %v11544_v22  ;;  %v5859_v12 = vrot.slane %v3340_v9, %v7907_v60  ;;  %v2298_v44 = vpack.c.bf16 %v1901_v16, %v1898_v61 }
 0x444   :  { %v5855_v46 = vsel %vm3383_vm4, %v5854_v25, %v5850_v20  ;;  %v1991_v47 = vpop.xlane.xlu1 %1990  ;;  %v3293_v17 = vunpack.c.l.b16 %v2298_v44  ;;  %v3294_v16 = vunpack.c.h.b16 %v2298_v44 }
 0x445   :  { %v11379_v41 = vsel %vm11562_vm1, %v5859_v12, %v5855_v46  ;;  %v1988_v52 = vpop.xlane.xlu0 %1987 }
 0x446   :  { %v2313_v53 = vpack.c.bf16 %v1991_v47, %v1988_v52  ;;  %v5627_v61 = vrot.slane %v3293_v17, %v7914_v2  ;;  %v5707_v52 = vsel %vm3397_vm6, %v5706_v6, %v11342_v32 }
 0x448   :  { %v1955_v8 = vpop.xlane.xlu1 %1954  ;;  %v3323_v30 = vunpack.c.l.b16 %v2313_v53  ;;  %v5628_v32 = vsel %vm3397_vm6, %v5627_v61, %v11366_v33 }
 0x449   :  { %v1952_v55 = vpop.xlane.xlu0 %1951 }
 0x44a   :  { %v2307_v36 = vpack.c.bf16 %v1955_v8, %v1952_v55  ;;  %v3324_v8 = vunpack.c.h.b16 %v2313_v53  ;;  %v5775_v55 = vrot.slane %v3323_v30, %v11544_v22  ;;  %v5632_v22 = vrot.slane %v3294_v16, %v7927_v13 }
 0x44c   :  { %v2045_v10 = vpop.xlane.xlu1 %2044  ;;  %v3311_v24 = vunpack.c.l.b16 %v2307_v36  ;;  %v5633_v30 = vsel %vm3404_vm7, %v5632_v22, %v5628_v32 }
 0x44d   :  { %v2042_v11 = vpop.xlane.xlu0 %2041 }
 0x44e   :  { %v2322_v7 = vpack.c.bf16 %v2045_v10, %v2042_v11 }
 0x450   :  { %v1907_v58 = vpop.xlane.xlu1 %1906  ;;  %v3341_v26 = vunpack.c.l.b16 %v2322_v7 }
 0x451   :  { %v1904_v37 = vpop.xlane.xlu0 %1903 }
 0x452   :  { %v2299_v25 = vpack.c.bf16 %v1907_v58, %v1904_v37 }
 0x454   :  { %v1997_v49 = vpop.xlane.xlu1 %1996 }
 0x455   :  { %v1994_v59 = vpop.xlane.xlu0 %1993 }
 0x456   :  { %v2314_v10 = vpack.c.bf16 %v1997_v49, %v1994_v59  ;;  %v3295_v49 = vunpack.c.l.b16 %v2299_v25 }
 0x458   :  { %v1961_v5 = vpop.xlane.xlu1 %1960  ;;  %v3325_v44 = vunpack.c.l.b16 %v2314_v10 }
 0x459   :  { %v1958_v50 = vpop.xlane.xlu0 %1957 }
 0x45a   :  { %v2308_v18 = vpack.c.bf16 %v1961_v5, %v1958_v50  ;;  %v5716_v5 = vrot.slane %v3311_v24, %v7933_v21  ;;  %v3342_v50 = vunpack.c.h.b16 %v2322_v7 }
 0x45c   :  { %v11381_v63 = vpop.xlane.xlu1 %2050  ;;  %v3313_v58 = vunpack.c.l.b16 %v2308_v18  ;;  %v3314_v7 = vunpack.c.h.b16 %v2308_v18 }
 0x45d   :  { %v11383_v54 = vpop.xlane.xlu0 %2047 }
 0x45e   :  { %v5726_v17 = vrot.slane %v3313_v58, %v7959_v48  ;;  %v5731_v18 = vrot.slane %v3314_v7, %v7969_v56 }
 0x45f   :  { %v7266_v15 = vpop.f32.mrb[4].mxu0 }
 0x460   :  { %v1913_v1 = vpop.xlane.xlu1 %1912  ;;  %v7267_v23 = vpop.f32.mrb[5].mxu0 }
 0x461   :  { %v7268_v45 = vadd.f32 %v7267_v23, %v7266_v15  ;;  %v1910_v62 = vpop.xlane.xlu0 %1909  ;;  %v7269_v29 = vpop.f32.mrb[6].mxu0  ;;  %v3312_v15 = vunpack.c.h.b16 %v2307_v36 }
 0x462   :  { %v7270_v20 = vpop.f32.mrb[7].mxu0  ;;  %v2300_v31 = vpack.c.bf16 %v1913_v1, %v1910_v62  ;;  %v2323_v1 = vpack.c.bf16 %v11381_v63, %v11383_v54 }
 0x463   :  { %v6843_v34 = vadd.f32 %v7268_v45, %v11129_v35  ;;  %v5711_v35 = vrot.slane %v3310_v42, %v7927_v13  ;;  %v5864_v45 = vrot.slane %v3341_v26, %v7914_v2  ;;  %v5776_v20 = vsel %vm3383_vm4, %v5775_v55, %v11373_v38  ;;  %vm11565_vm4 = vmmov %vm11556_vm0 }
 0x464   :  { %v11386_v39 = vpop.xlane.xlu1 %2002  ;;  %v5721_v36 = vrot.slane %v3312_v15, %v7941_v27  ;;  %v5869_v42 = vrot.slane %v3342_v50, %v7927_v13  ;;  %v5637_v38 = vrot.slane %v3295_v49, %v7933_v21  ;;  %v3344_v50 = vunpack.c.h.b16 %v2323_v1  ;;  %vm11566_vm0 = vmmov %vm11564_vm3 }
 0x465   :  { %v11388_v43 = vpop.xlane.xlu0 %1999  ;;  %v5712_v40 = vsel %vm3404_vm7, %v5711_v35, %v5707_v52  ;;  %v5865_v33 = vsel %vm3397_vm6, %v5864_v45, %v11379_v41  ;;  %v3297_v35 = vunpack.c.l.b16 %v2300_v31  ;;  %vm11572_vm5 = vmmov %vm11565_vm4 }
 0x466   :  { %v5717_v53 = vsel %vm3411_vm8, %v5716_v5, %v5712_v40  ;;  %v5870_v26 = vsel %vm3404_vm7, %v5869_v42, %v5865_v33  ;;  %v2315_v52 = vpack.c.bf16 %v11386_v39, %v11388_v43  ;;  %v5879_v42 = vrot.slane %v3344_v50, %v7941_v27 }
 0x467   :  { %v5722_v41 = vsel %vm11564_vm3, %v5721_v36, %v5717_v53 }
 0x468   :  { %v1967_v0 = vpop.xlane.xlu1 %1966  ;;  %v5727_v61 = vsel %vm3425_vm10, %v5726_v17, %v5722_v41  ;;  %v3327_v49 = vunpack.c.l.b16 %v2315_v52 }
 0x469   :  { %v1964_v51 = vpop.xlane.xlu0 %1963  ;;  %v5732_v5 = vsel %vm3432_vm11, %v5731_v18, %v5727_v61 }
 0x46a   :  { %v2309_v37 = vpack.c.bf16 %v1967_v0, %v1964_v51  ;;  %v3296_v0 = vunpack.c.h.b16 %v2299_v25 }
 0x46b   :  { %v7288_v14 = vpop.f32.mrb[4].mxu1 }
 0x46c   :  { %v11392_v57 = vpop.xlane.xlu1 %2056  ;;  %v7289_v9 = vpop.f32.mrb[5].mxu1  ;;  %v3315_v51 = vunpack.c.l.b16 %v2309_v37  ;;  %v5642_v16 = vrot.slane %v3296_v0, %v7941_v27 }
 0x46d   :  { %v7290_v12 = vadd.f32 %v7289_v9, %v7288_v14  ;;  %v2054_v46 = vpop.xlane.xlu0 %2053  ;;  %v7291_v47 = vpop.f32.mrb[6].mxu1  ;;  %v5785_v14 = vrot.slane %v3325_v44, %v7914_v2  ;;  %v3316_v9 = vunpack.c.h.b16 %v2309_v37 }
 0x46e   :  { %v7292_v11 = vpop.f32.mrb[7].mxu1  ;;  %v5736_v63 = vrot.slane %v3315_v51, %v7976_v3  ;;  %v3343_v47 = vunpack.c.l.b16 %v2323_v1  ;;  %v2324_v58 = vpack.c.bf16 %v11392_v57, %v2054_v46  ;;  %v3328_v51 = vunpack.c.h.b16 %v2315_v52 }
 0x46f   :  { %v11399_v23 = vadd.f32 %v7290_v12, %v6843_v34  ;;  %v5780_v34 = vrot.slane %v3324_v8, %v7907_v60  ;;  %v3326_v60 = vunpack.c.h.b16 %v2314_v10  ;;  %v5638_v12 = vsel %vm3411_vm8, %v5637_v38, %v5633_v30 }
 0x470   :  { %v1919_v29 = vpop.xlane.xlu1 %1918  ;;  %v3298_v10 = vunpack.c.h.b16 %v2300_v31  ;;  %v5647_v11 = vrot.slane %v3297_v35, %v7959_v48  ;;  %v5741_v45 = vrot.slane %v3316_v9, %v7979_v4  ;;  %v5643_v43 = vsel %vm11566_vm0, %v5642_v16, %v5638_v12 }
 0x471   :  { %v1916_v59 = vpop.xlane.xlu0 %1915  ;;  %v5781_v24 = vsel %vm11563_vm2, %v5780_v34, %v5776_v20  ;;  %v5790_v2 = vrot.slane %v3326_v60, %v7927_v13  ;;  %v5737_v13 = vsel %vm11565_vm4, %v5736_v63, %v5732_v5  ;;  %v5874_v22 = vrot.slane %v3343_v47, %v7933_v21 }
 0x472   :  { %v2301_v54 = vpack.c.bf16 %v1919_v29, %v1916_v59  ;;  %v5786_v55 = vsel %vm3397_vm6, %v5785_v14, %v5781_v24  ;;  %v5648_v20 = vsel %vm3425_vm10, %v5647_v11, %v5643_v43  ;;  %v5652_v34 = vrot.slane %v3298_v10, %v7969_v56  ;;  %vm11568_vm6 = vmmov %vm11565_vm4 }
 0x473   :  { %v5791_v32 = vsel %vm3404_vm7, %v5790_v2, %v5786_v55  ;;  %v5742_v44 = vsel %vm3446_vm13, %v5741_v45, %v5737_v13  ;;  %v3345_v31 = vunpack.c.l.b16 %v2324_v58  ;;  %v5795_v38 = vrot.slane %v3327_v49, %v7933_v21  ;;  %vm11569_vm7 = vmmov %vm11566_vm0  ;;  %v11571_v49 = vld [vmem:[#allocation13_spill] sm:$0xff] }
 0x474   :  { %v2009_v6 = vpop.xlane.xlu1 %2008  ;;  %v3299_v37 = vunpack.c.l.b16 %v2301_v54  ;;  %v3300_v53 = vunpack.c.h.b16 %v2301_v54  ;;  %v3346_v60 = vunpack.c.h.b16 %v2324_v58  ;;  %v5875_v24 = vsel %vm3411_vm8, %v5874_v22, %v5870_v26 }
 0x475   :  { %v2006_v62 = vpop.xlane.xlu0 %2005  ;;  %v5653_v14 = vsel %vm3432_vm11, %v5652_v34, %v5648_v20  ;;  %v5884_v41 = vrot.slane %v3345_v31, %v7959_v48  ;;  %v5880_v26 = vsel %vm11569_vm7, %v5879_v42, %v5875_v24  ;;  %v5796_v12 = vsel %vm3411_vm8, %v5795_v38, %v5791_v32  ;;  %vm11570_vm8 = vmmov %vm11566_vm0 }
 0x476   :  { %v2316_v36 = vpack.c.bf16 %v2009_v6, %v2006_v62  ;;  %v5657_v7 = vrot.slane %v3299_v37, %v7976_v3  ;;  %v11567_v62 = vld [vmem:[#allocation14_spill] sm:$0xff]  ;;  %v5662_v18 = vrot.slane %v3300_v53, %v7979_v4  ;;  %v5800_v2 = vrot.slane %v3328_v51, %v7941_v27 }
 0x477   :  { %v5889_v47 = vrot.slane %v3346_v60, %v7969_v56 }
 0x478   :  { %v1973_v25 = vpop.xlane.xlu1 %1972  ;;  %v3329_v9 = vunpack.c.l.b16 %v2316_v36  ;;  %v5658_v21 = vsel %vm11568_vm6, %v5657_v7, %v5653_v14 }
 0x479   :  { %v1970_v8 = vpop.xlane.xlu0 %1969  ;;  %v5663_v5 = vsel %vm3446_vm13, %v5662_v18, %v5658_v21 }
 0x47a   :  { %v2310_v15 = vpack.c.bf16 %v1973_v25, %v1970_v8  ;;  %v3330_v8 = vunpack.c.h.b16 %v2316_v36  ;;  %v5805_v50 = vrot.slane %v3329_v9, %v7959_v48  ;;  %v11575_v9 = vld [vmem:[#allocation15_spill] sm:$0xff] }
 0x47c   :  { %v3317_v29 = vunpack.c.l.b16 %v2310_v15  ;;  %v3318_v40 = vunpack.c.h.b16 %v2310_v15  ;;  %v2063_v39 = vpop.xlane.xlu1 %2062  ;;  %v5885_v15 = vsel %vm3425_vm10, %v5884_v41, %v5880_v26  ;;  %v5810_v32 = vrot.slane %v3330_v8, %v7969_v56 }
 0x47d   :  { %v2060_v59 = vpop.xlane.xlu0 %2059  ;;  %v5890_v43 = vsel %vm3432_vm11, %v5889_v47, %v5885_v15  ;;  %v7536_v26 = vmov 0.0  }
 0x47e   :  { %v5746_v57 = vrot.slane %v3317_v29, %v7994_v19  ;;  %v5751_v46 = vrot.slane %v3318_v40, %v8001_v28  ;;  %v2325_v33 = vpack.c.bf16 %v2063_v39, %v2060_v59  ;;  %v5801_v29 = vsel %vm11570_vm8, %v5800_v2, %v5796_v12  ;;  %20 = vst [vmem:[#allocation2] sm:$0x3] %v7536_v26 }
 0x47f   :  { %v5806_v59 = vsel %vm3425_vm10, %v5805_v50, %v5801_v29  ;;  %vm11573_vm10 = vmmov %vm11565_vm4 }
 0x480   :  { %v1925_v0 = vpop.xlane.xlu1 %1924  ;;  %v5747_v17 = vsel %vm3453_vm14, %v5746_v57, %v5742_v44  ;;  %v3347_v61 = vunpack.c.l.b16 %v2325_v33  ;;  %v3348_v45 = vunpack.c.h.b16 %v2325_v33 }
 0x481   :  { %v1922_v1 = vpop.xlane.xlu0 %1921  ;;  %v5752_v30 = vsel %vm3460_vm15, %v5751_v46, %v5747_v17 }
 0x482   :  { %v2302_v6 = vpack.c.bf16 %v1925_v0, %v1922_v1  ;;  %v5925_v35 = vsel %vm5911_vm12, %v5752_v30, %v11567_v62  ;;  %v5894_v58 = vrot.slane %v3347_v61, %v7976_v3  ;;  %v5899_v20 = vrot.slane %v3348_v45, %v7979_v4 }
 0x483   :  { %v5941_v16 = vpack.c.b16 %v5925_v35, %v5925_v35  ;;  %v5811_v0 = vsel %vm3432_vm11, %v5810_v32, %v5806_v59 }
 0x484   :  { %v3301_v63 = vunpack.c.l.b16 %v2302_v6  ;;  %v3302_v54 = vunpack.c.h.b16 %v2302_v6  ;;  %v2015_v25 = vpop.xlane.xlu1 %2014  ;;  %v5895_v46 = vsel %vm11572_vm5, %v5894_v58, %v5890_v43  ;;  %v11574_v6 = vld [vmem:[#allocation16_spill] sm:$0xff]  ;;  %v7205_v43 = vld [vmem:[%s11513_s2] ss:$0 sm:$0xff] }
 0x485   :  { %7000 = vmatprep.mubr.bf16.mxu0 %v5941_v16  ;;  %v2012_v52 = vpop.xlane.xlu0 %2011  ;;  %v5900_v17 = vsel %vm3446_vm13, %v5899_v20, %v5895_v46  ;;  %v2070_v29 = vld [vmem:[#allocation2] sm:$0x3] }
 0x486   :  { %v5667_v55 = vrot.slane %v3301_v63, %v7994_v19  ;;  %v5672_v10 = vrot.slane %v3302_v54, %v8001_v28  ;;  %v2317_v11 = vpack.c.bf16 %v2015_v25, %v2012_v52 }
 0x488   :  { %v5668_v27 = vsel %vm3453_vm14, %v5667_v55, %v5663_v5  ;;  %v3331_v13 = vunpack.c.l.b16 %v2317_v11  ;;  %v2069_v37 = vpop.xlane.xlu1 %2068  ;;  %v3332_v34 = vunpack.c.h.b16 %v2317_v11 }
 0x489   :  { %v5673_v40 = vsel %vm3460_vm15, %v5672_v10, %v5668_v27  ;;  %v2066_v39 = vpop.xlane.xlu0 %2065 }
 0x48a   :  { %v2326_v22 = vpack.c.bf16 %v2069_v37, %v2066_v39  ;;  %v5924_v48 = vsel %vm5911_vm12, %v5673_v40, %v11571_v49  ;;  %v5815_v44 = vrot.slane %v3331_v13, %v7976_v3  ;;  %v5820_v51 = vrot.slane %v3332_v34, %v7979_v4 }
 0x48b   :  { %v5940_v57 = vpack.c.b16 %v5924_v48, %v5924_v48 }
 0x48c   :  { %v3349_v31 = vunpack.c.l.b16 %v2326_v22  ;;  %v3350_v53 = vunpack.c.h.b16 %v2326_v22  ;;  %v2021_v36 = vpop.xlane.xlu1 %2020  ;;  %v5816_v38 = vsel %vm11573_vm10, %v5815_v44, %v5811_v0 }
 0x48d   :  { %7001 = vmatmul.mubr.bf16.vlgmr.msra.gmra.mrb[12].mxu0 %v5940_v57  ;;  %v2018_v42 = vpop.xlane.xlu0 %2017  ;;  %v5821_v35 = vsel %vm3446_vm13, %v5820_v51, %v5816_v38 }
 0x48e   :  { %v5904_v56 = vrot.slane %v3349_v31, %v7994_v19  ;;  %v5909_v7 = vrot.slane %v3350_v53, %v8001_v28  ;;  %v2318_v33 = vpack.c.bf16 %v2021_v36, %v2018_v42 }
 0x490   :  { %v3333_v60 = vunpack.c.l.b16 %v2318_v33  ;;  %v3334_v3 = vunpack.c.h.b16 %v2318_v33  ;;  %v5905_v1 = vsel %vm3453_vm14, %v5904_v56, %v5900_v17 }
 0x491   :  { %v5910_v30 = vsel %vm3460_vm15, %v5909_v7, %v5905_v1 }
 0x492   :  { %v5825_v24 = vrot.slane %v3333_v60, %v7994_v19  ;;  %v5830_v14 = vrot.slane %v3334_v3, %v8001_v28  ;;  %v5927_v62 = vsel %vm5911_vm12, %v5910_v30, %v11574_v6 }
 0x493   :  { %v5943_v41 = vpack.c.b16 %v5927_v62, %v5927_v62 }
 0x494   :  { %v5826_v4 = vsel %vm3453_vm14, %v5825_v24, %v5821_v35 }
 0x495   :  { %v5831_v18 = vsel %vm3460_vm15, %v5830_v14, %v5826_v4  ;;  %7040 = vmatprep.mubr.bf16.mxu1 %v5943_v41 }
 0x496   :  { %v5926_v16 = vsel %vm5911_vm12, %v5831_v18, %v11575_v9 }
 0x497   :  { %v5942_v21 = vpack.c.b16 %v5926_v16, %v5926_v16 }
 0x499   :  { %7041 = vmatmul.mubr.bf16.vlgmr.msra.gmra.mrb[12].mxu1 %v5942_v21 }
 0x4e0   :  { %v7310_v61 = vpop.f32.mrb[8].mxu0 }
 0x4e1   :  { %v7311_v19 = vpop.f32.mrb[9].mxu0 }
 0x4e2   :  { %v7312_v63 = vadd.f32 %v7311_v19, %v7310_v61  ;;  %v7313_v28 = vpop.f32.mrb[10].mxu0 }
 0x4e3   :  { %v7314_v54 = vpop.f32.mrb[11].mxu0 }
 0x4e4   :  { %v6923_v25 = vadd.f32 %v7312_v63, %v11399_v23 }
 0x4ec   :  { %v7332_v12 = vpop.f32.mrb[8].mxu1 }
 0x4ed   :  { %v7333_v2 = vpop.f32.mrb[9].mxu1 }
 0x4ee   :  { %v7334_v47 = vadd.f32 %v7333_v2, %v7332_v12  ;;  %v7335_v52 = vpop.f32.mrb[10].mxu1 }
 0x4ef   :  { %v7336_v8 = vpop.f32.mrb[11].mxu1 }
 0x4f0   :  { %v6963_v55 = vadd.f32 %v7334_v47, %v6923_v25 }
 0x560   :  { %v7354_v10 = vpop.f32.mrb[12].mxu0 }
 0x561   :  { %v7355_v11 = vpop.f32.mrb[13].mxu0 }
 0x562   :  { %v7356_v15 = vadd.f32 %v7355_v11, %v7354_v10  ;;  %v7357_v5 = vpop.f32.mrb[14].mxu0 }
 0x563   :  { %v7358_v50 = vpop.f32.mrb[15].mxu0 }
 0x564   :  { %v7003_v45 = vadd.f32 %v7356_v15, %v6963_v55 }
 0x56c   :  { %v7376_v58 = vpop.f32.mrb[12].mxu1 }
 0x56d   :  { %v7377_v27 = vpop.f32.mrb[13].mxu1 }
 0x56e   :  { %v7378_v13 = vadd.f32 %v7377_v27, %v7376_v58  ;;  %v7379_v37 = vpop.f32.mrb[14].mxu1 }
 0x56f   :  { %v7380_v23 = vpop.f32.mrb[15].mxu1 }
 0x570   :  { %v7043_v40 = vadd.f32 %v7378_v13, %v7003_v45 }
 0x572   :  { %v7048_v39 = vadd.f32 %v7043_v40, %v2070_v29 }
 0x574   :  { %7049 = vst [vmem:[#allocation2] sm:$0x3] %v7048_v39 }
 0x57b   :  { %v7053_v32 = vld [vmem:[#allocation2] sm:$0x3] }
 0x57c   :  { %v7061_v22 = vadd.f32 %v7205_v43, %v7053_v32 }
 0x57e   :  { %7062 = vst [vmem:[#allocation3] sm:$0x3] %v7061_v22 }
 0x57f   :  { %7523 = shalt.err (!%p7520_p4)
}
 0x580   :  { %s7524_s26 = scalar_lea.hbm %s11514_s3, 32 }
 0x581   :  { %p7525_p5 = scmp.ne.s32.totalorder %s11514_s3, %s7524_s26  ;;  %p7528_p6 = scmp.lt.u32.totalorder %s7524_s26, %s11514_s3 }
 0x583   :  { %p7530_p7 = pnand %p7528_p6, %p7525_p5 }
 0x585   :  { %7533 = shalt.err (!%p7530_p7)
}
 0x586   :  { %7072 = dma.vmem_to_hbm [thread:$0]  %s7070_s22, 32, %s11514_s3, [#allocation4]  }
 0x587   :  { %7534 = dma.done.wait [#allocation4], 32  }
 0x588   :  { %7535 = vsyncadd [#allocation4], 4294967264 }
 0x589   :  { %7076 = vsyncpa [#allocation4], 1 }

</bundles_post_ra>
